<compile_context>
chip_gen: v7x
topology: tpu7x:2x2x1
jax: 0.10.0
libtpu: 0.0.40
codegen_flags: <defaults>
</compile_context>

<pallas_src>
import math

import jax
import jax.numpy as jnp
from jax.experimental import pallas as pl
from jax.experimental.pallas import tpu as pltpu

TEXT_DIM, IMAGE_DIM, AUDIO_DIM = 768, 2048, 128

# (weight_name, bias_name, in_features, out_features), in forward order.
_LAYERS = [
    ("tw1", "tb1", TEXT_DIM, 512),
    ("tw2", "tb2", 512, 256),
    ("iw1", "ib1", IMAGE_DIM, 512),
    ("iw2", "ib2", 512, 256),
    ("aw1", "ab1", AUDIO_DIM, 256),
    ("aw2", "ab2", 256, 256),
    ("fw1", "fb1", 768, 512),
    ("fw2", "fb2", 512, 256),
    ("fw3", "fb3", 256, 128),
]

# Static lane offsets of each bias inside the packed (1, 2944) bias array.
# Every offset and size is a multiple of 128 -> aligned lane slices in-kernel.
_BIAS_OFFSETS = {}
_off = 0
for _w, _b, _fi, _fo in _LAYERS:
    _BIAS_OFFSETS[_b] = (_off, _fo)
    _off += _fo
_PACKED_BIAS_LEN = _off  # 2944
_MAC_PER_ROW = sum(fi * fo for _, _, fi, fo in _LAYERS)


def _fused_kernel(t_ref, im_ref, au_ref,
                  tw1, tw2, iw1, iw2, aw1, aw2,
                  fw1_t, fw1_i, fw1_a, fw2, fw3,
                  bias_ref, out_ref):
    f32 = jnp.float32
    cdt = tw1.dtype  # compute dtype of the matmul operands (f32 or bf16)

    def bias(name):
        off, size = _BIAS_OFFSETS[name]
        return bias_ref[:, off:off + size]  # (1, size) f32, broadcasts over rows

    def lin(x, w_ref, bname, relu):
        y = jnp.dot(x, w_ref[...], preferred_element_type=f32) + bias(bname)
        if relu:
            y = jnp.maximum(y, 0.0)
        return y

    # --- modality encoders (Dropout = identity in eval mode) ---
    # f32 inputs are cast to the compute dtype in-VMEM (no wrapper astype pass).
    t = lin(t_ref[...].astype(cdt), tw1, "tb1", True).astype(cdt)
    t = lin(t, tw2, "tb2", False).astype(cdt)

    im = lin(im_ref[...].astype(cdt), iw1, "ib1", True).astype(cdt)
    im = lin(im, iw2, "ib2", False).astype(cdt)

    au = lin(au_ref[...].astype(cdt), aw1, "ab1", True).astype(cdt)
    au = lin(au, aw2, "ab2", False).astype(cdt)

    # --- fusion layer 1: torch.cat([t, im, au], -1) @ fw1 folded into three
    #     partial MXU matmuls against the row-slabs of fw1 (no concat copy).
    #     Sequential accumulation keeps only one (tile_b, 512) f32 product
    #     live at a time. ---
    h = jnp.dot(t, fw1_t[...], preferred_element_type=f32)
    h = h + jnp.dot(im, fw1_i[...], preferred_element_type=f32)
    h = h + jnp.dot(au, fw1_a[...], preferred_element_type=f32)
    h = jnp.maximum(h + bias("fb1"), 0.0).astype(cdt)

    # --- fusion layers 2-3 ---
    h = lin(h, fw2, "fb2", True).astype(cdt)
    out_ref[...] = lin(h, fw3, "fb3", False).astype(out_ref.dtype)


def prepare_params(params, compute_dtype=jnp.bfloat16):
    """One-time kernel-side weight prep (hoisted out of the hot path).

    Casts weights to the compute dtype, pre-slices fw1 into its three 256-row
    slabs, and packs all nine biases into a single (1, 2944) f32 array.
    """
    cdt = jnp.dtype(compute_dtype)

    def w(name):
        return params[name].astype(cdt)

    fw1 = params["fw1"]
    weights = (
        w("tw1"), w("tw2"), w("iw1"), w("iw2"), w("aw1"), w("aw2"),
        fw1[0:256].astype(cdt), fw1[256:512].astype(cdt), fw1[512:768].astype(cdt),
        w("fw2"), w("fw3"),
    )
    packed_bias = jnp.concatenate(
        [params[b].reshape(1, -1).astype(jnp.float32) for _, b, _, _ in _LAYERS],
        axis=-1)
    return {"weights": tuple(jax.block_until_ready(list(weights))),
            "packed_bias": jax.block_until_ready(packed_bias),
            "compute_dtype": cdt}


def cross_modal_fusion_forward(text, image, audio, prepared, *, block_b=256):
    """text: (B, 768), image: (B, 2048), audio: (B, 128) -> (B, 128) f32.

    `prepared` is the output of prepare_params().  block_b=256 fills the
    256x256 MXU on v6e/v7x; pass block_b=128 on v5e (4x128x128 MXU).
    """
    B = text.shape[0]
    weights = prepared["weights"]
    packed_bias = prepared["packed_bias"]
    cdt = prepared["compute_dtype"]

    if B <= block_b:
        tile_b = B          # full-dim block: single grid step, no padding
    else:
        tile_b = block_b    # multiple of 16 -> aligned bf16 sublane packing
    grid = (pl.cdiv(B, tile_b),)

    def act_spec(dim):
        return pl.BlockSpec((tile_b, dim), lambda i: (i, 0))

    def resident_spec(arr):
        # Full-array block, constant block index -> VMEM-resident across all
        # batch tiles; single-buffered since the block never changes.
        return pl.BlockSpec(arr.shape, lambda i: (0, 0),
                            pipeline_mode=pl.Buffered(1))

    in_specs = ([act_spec(TEXT_DIM), act_spec(IMAGE_DIM), act_spec(AUDIO_DIM)]
                + [resident_spec(a) for a in weights]
                + [resident_spec(packed_bias)])
    out_spec = pl.BlockSpec((tile_b, 128), lambda i: (i, 0))

    # Megacore: only shard the batch grid across TensorCores when there is
    # enough work per core; otherwise splitting just duplicates the resident
    # weight DMA into each core's private VMEM.
    semantics = ("parallel",) if grid[0] >= 4 else ("arbitrary",)

    # Advisory cost estimate for XLA's scheduler.
    bytes_accessed = (
        _MAC_PER_ROW * cdt.itemsize                       # resident weights
        + _PACKED_BIAS_LEN * 4                            # packed biases (f32)
        + B * (TEXT_DIM + IMAGE_DIM + AUDIO_DIM) * 4      # f32 activations in
        + B * 128 * 4)                                    # f32 output
    cost = pl.CostEstimate(flops=2 * B * _MAC_PER_ROW, transcendentals=0,
                           bytes_accessed=bytes_accessed)

    return pl.pallas_call(
        _fused_kernel,
        out_shape=jax.ShapeDtypeStruct((B, 128), jnp.float32),
        grid=grid,
        in_specs=in_specs,
        out_specs=out_spec,
        cost_estimate=cost,
        compiler_params=pltpu.CompilerParams(
            dimension_semantics=semantics,
            # real footprint (bf16, Buffered(1) weights): ~5-12 MiB; 40 MiB
            # cap also fits the f32 validation path and v7x's 64 MiB VMEM.
            vmem_limit_bytes=40 << 20,
        ),
    )(text, image, audio, *weights, packed_bias)


def init_params(key):
    """Deterministic synthetic weights (PyTorch nn.Linear-style uniform init)."""
    params = {}
    keys = jax.random.split(key, 2 * len(_LAYERS))
    for idx, (wn, bn, fi, fo) in enumerate(_LAYERS):
        bound = 1.0 / math.sqrt(fi)  # fan_in = in_features for weight AND bias
        params[wn] = jax.random.uniform(keys[2 * idx], (fi, fo),
                                        minval=-bound, maxval=bound,
                                        dtype=jnp.float32)
        params[bn] = jax.random.uniform(keys[2 * idx + 1], (1, fo),
                                        minval=-bound, maxval=bound,
                                        dtype=jnp.float32)
    return params


def reference_forward(text, image, audio, p):
    """Pure-JAX f32 reference of the PyTorch forward (eval mode)."""
    def lin(x, w, b, relu):
        y = x @ w + b
        return jnp.maximum(y, 0.0) if relu else y
    t = lin(lin(text, p["tw1"], p["tb1"], True), p["tw2"], p["tb2"], False)
    im = lin(lin(image, p["iw1"], p["ib1"], True), p["iw2"], p["ib2"], False)
    au = lin(lin(audio, p["aw1"], p["ab1"], True), p["aw2"], p["ab2"], False)
    comb = jnp.concatenate([t, im, au], axis=-1)
    h = lin(comb, p["fw1"], p["fb1"], True)
    h = lin(h, p["fw2"], p["fb2"], True)
    return lin(h, p["fw3"], p["fb3"], False)


if __name__ == "__main__":
    key = jax.random.PRNGKey(0)
    k_t, k_i, k_a, k_p = jax.random.split(key, 4)

    B = 8
    text = jax.random.normal(k_t, (B, TEXT_DIM), dtype=jnp.float32)
    image = jax.random.normal(k_i, (B, IMAGE_DIM), dtype=jnp.float32)
    audio = jax.random.normal(k_a, (B, AUDIO_DIM), dtype=jnp.float32)
    params = init_params(k_p)

    ref = reference_forward(text, image, audio, params)

    # f32 path: tight check against the pure-JAX reference.
    prep_f32 = prepare_params(params, compute_dtype=jnp.float32)
    out_f32 = jax.block_until_ready(
        cross_modal_fusion_forward(text, image, audio, prep_f32))
    assert out_f32.shape == (B, 128)
    assert jnp.allclose(out_f32, ref, atol=1e-3, rtol=1e-3), "f32 mismatch vs reference"

    # bf16 path (default): halves the weight DMA + full MXU rate; f32 accumulation
    # keeps the error small, but larger than the f32 tolerance (intentional
    # accuracy tradeoff vs. the PyTorch f32 reference).
    prep_bf16 = prepare_params(params)  # bf16 weights, prepped once
    out_bf16 = jax.block_until_ready(
        cross_modal_fusion_forward(text, image, audio, prep_bf16))
    assert out_bf16.shape == (B, 128)
    assert jnp.allclose(out_bf16, ref, atol=2e-2, rtol=2e-2), "bf16 mismatch vs reference"

    print("KERNEL_OK")
</pallas_src>

<mosaic_0001>
module attributes {stable_mosaic.version = 11 : i64} {
  func.func @_fused_kernel(%arg0: i32, %arg1: memref<8x768xf32, #tpu.memory_space<vmem>>, %arg2: memref<8x2048xf32, #tpu.memory_space<vmem>>, %arg3: memref<8x128xf32, #tpu.memory_space<vmem>>, %arg4: memref<768x512xf32, #tpu.memory_space<vmem>>, %arg5: memref<512x256xf32, #tpu.memory_space<vmem>>, %arg6: memref<2048x512xf32, #tpu.memory_space<vmem>>, %arg7: memref<512x256xf32, #tpu.memory_space<vmem>>, %arg8: memref<128x256xf32, #tpu.memory_space<vmem>>, %arg9: memref<256x256xf32, #tpu.memory_space<vmem>>, %arg10: memref<256x512xf32, #tpu.memory_space<vmem>>, %arg11: memref<256x512xf32, #tpu.memory_space<vmem>>, %arg12: memref<256x512xf32, #tpu.memory_space<vmem>>, %arg13: memref<512x256xf32, #tpu.memory_space<vmem>>, %arg14: memref<256x128xf32, #tpu.memory_space<vmem>>, %arg15: memref<1x2944xf32, #tpu.memory_space<vmem>>, %arg16: memref<8x128xf32, #tpu.memory_space<vmem>>) attributes {dimension_semantics = [#tpu.dimension_semantics<arbitrary>], iteration_bounds = array<i64: 1>, scalar_prefetch = 0 : i64, scratch_operands = 0 : i64, tpu.core_type = #tpu.core_type<tc>, window_params = [{transform_indices = @transform_0, window_bounds = array<i64: 8, 768>}, {transform_indices = @transform_1, window_bounds = array<i64: 8, 2048>}, {transform_indices = @transform_2, window_bounds = array<i64: 8, 128>}, {pipeline_mode = #tpu.pipeline_mode<synchronous>, transform_indices = @transform_3, window_bounds = array<i64: 768, 512>}, {pipeline_mode = #tpu.pipeline_mode<synchronous>, transform_indices = @transform_4, window_bounds = array<i64: 512, 256>}, {pipeline_mode = #tpu.pipeline_mode<synchronous>, transform_indices = @transform_5, window_bounds = array<i64: 2048, 512>}, {pipeline_mode = #tpu.pipeline_mode<synchronous>, transform_indices = @transform_6, window_bounds = array<i64: 512, 256>}, {pipeline_mode = #tpu.pipeline_mode<synchronous>, transform_indices = @transform_7, window_bounds = array<i64: 128, 256>}, {pipeline_mode = #tpu.pipeline_mode<synchronous>, transform_indices = @transform_8, window_bounds = array<i64: 256, 256>}, {pipeline_mode = #tpu.pipeline_mode<synchronous>, transform_indices = @transform_9, window_bounds = array<i64: 256, 512>}, {pipeline_mode = #tpu.pipeline_mode<synchronous>, transform_indices = @transform_10, window_bounds = array<i64: 256, 512>}, {pipeline_mode = #tpu.pipeline_mode<synchronous>, transform_indices = @transform_11, window_bounds = array<i64: 256, 512>}, {pipeline_mode = #tpu.pipeline_mode<synchronous>, transform_indices = @transform_12, window_bounds = array<i64: 512, 256>}, {pipeline_mode = #tpu.pipeline_mode<synchronous>, transform_indices = @transform_13, window_bounds = array<i64: 256, 128>}, {pipeline_mode = #tpu.pipeline_mode<synchronous>, transform_indices = @transform_14, window_bounds = array<i64: 1, 2944>}, {transform_indices = @transform_15, window_bounds = array<i64: 8, 128>}]} {
    %c0 = arith.constant 0 : index
    %c0_0 = arith.constant 0 : index
    %0 = vector.load %arg1[%c0, %c0_0] : memref<8x768xf32, #tpu.memory_space<vmem>>, vector<8x768xf32>
    %c0_1 = arith.constant 0 : index
    %c0_2 = arith.constant 0 : index
    %1 = vector.load %arg4[%c0_1, %c0_2] : memref<768x512xf32, #tpu.memory_space<vmem>>, vector<768x512xf32>
    %cst = arith.constant dense<0.000000e+00> : vector<8x512xf32>
    %2 = tpu.matmul %0, %1, %cst {dimension_numbers = #tpu.dot_dimension_numbers<[1], [0], [0], [1], [0, 0, 1, 1], [], []>} : vector<8x768xf32>, vector<768x512xf32>, vector<8x512xf32> -> vector<8x512xf32>
    %c0_3 = arith.constant 0 : index
    %c0_4 = arith.constant 0 : index
    %3 = vector.load %arg15[%c0_3, %c0_4] : memref<1x2944xf32, #tpu.memory_space<vmem>>, vector<1x512xf32>
    %4 = vector.broadcast %3 : vector<1x512xf32> to vector<8x512xf32>
    %5 = arith.addf %2, %4 : vector<8x512xf32>
    %cst_5 = arith.constant 0.000000e+00 : f32
    %6 = vector.broadcast %cst_5 : f32 to vector<8x512xf32>
    %7 = arith.maximumf %5, %6 : vector<8x512xf32>
    %c0_6 = arith.constant 0 : index
    %c0_7 = arith.constant 0 : index
    %8 = vector.load %arg5[%c0_6, %c0_7] : memref<512x256xf32, #tpu.memory_space<vmem>>, vector<512x256xf32>
    %cst_8 = arith.constant dense<0.000000e+00> : vector<8x256xf32>
    %9 = tpu.matmul %7, %8, %cst_8 {dimension_numbers = #tpu.dot_dimension_numbers<[1], [0], [0], [1], [0, 0, 1, 1], [], []>} : vector<8x512xf32>, vector<512x256xf32>, vector<8x256xf32> -> vector<8x256xf32>
    %c0_9 = arith.constant 0 : index
    %c512 = arith.constant 512 : index
    %10 = vector.load %arg15[%c0_9, %c512] : memref<1x2944xf32, #tpu.memory_space<vmem>>, vector<1x256xf32>
    %11 = vector.broadcast %10 : vector<1x256xf32> to vector<8x256xf32>
    %12 = arith.addf %9, %11 : vector<8x256xf32>
    %c0_10 = arith.constant 0 : index
    %c0_11 = arith.constant 0 : index
    %13 = vector.load %arg2[%c0_10, %c0_11] : memref<8x2048xf32, #tpu.memory_space<vmem>>, vector<8x2048xf32>
    %c0_12 = arith.constant 0 : index
    %c0_13 = arith.constant 0 : index
    %14 = vector.load %arg6[%c0_12, %c0_13] : memref<2048x512xf32, #tpu.memory_space<vmem>>, vector<2048x512xf32>
    %cst_14 = arith.constant dense<0.000000e+00> : vector<8x512xf32>
    %15 = tpu.matmul %13, %14, %cst_14 {dimension_numbers = #tpu.dot_dimension_numbers<[1], [0], [0], [1], [0, 0, 1, 1], [], []>} : vector<8x2048xf32>, vector<2048x512xf32>, vector<8x512xf32> -> vector<8x512xf32>
    %c0_15 = arith.constant 0 : index
    %c768 = arith.constant 768 : index
    %16 = vector.load %arg15[%c0_15, %c768] : memref<1x2944xf32, #tpu.memory_space<vmem>>, vector<1x512xf32>
    %17 = vector.broadcast %16 : vector<1x512xf32> to vector<8x512xf32>
    %18 = arith.addf %15, %17 : vector<8x512xf32>
    %cst_16 = arith.constant 0.000000e+00 : f32
    %19 = vector.broadcast %cst_16 : f32 to vector<8x512xf32>
    %20 = arith.maximumf %18, %19 : vector<8x512xf32>
    %c0_17 = arith.constant 0 : index
    %c0_18 = arith.constant 0 : index
    %21 = vector.load %arg7[%c0_17, %c0_18] : memref<512x256xf32, #tpu.memory_space<vmem>>, vector<512x256xf32>
    %cst_19 = arith.constant dense<0.000000e+00> : vector<8x256xf32>
    %22 = tpu.matmul %20, %21, %cst_19 {dimension_numbers = #tpu.dot_dimension_numbers<[1], [0], [0], [1], [0, 0, 1, 1], [], []>} : vector<8x512xf32>, vector<512x256xf32>, vector<8x256xf32> -> vector<8x256xf32>
    %c0_20 = arith.constant 0 : index
    %c1280 = arith.constant 1280 : index
    %23 = vector.load %arg15[%c0_20, %c1280] : memref<1x2944xf32, #tpu.memory_space<vmem>>, vector<1x256xf32>
    %24 = vector.broadcast %23 : vector<1x256xf32> to vector<8x256xf32>
    %25 = arith.addf %22, %24 : vector<8x256xf32>
    %c0_21 = arith.constant 0 : index
    %c0_22 = arith.constant 0 : index
    %26 = vector.load %arg3[%c0_21, %c0_22] : memref<8x128xf32, #tpu.memory_space<vmem>>, vector<8x128xf32>
    %c0_23 = arith.constant 0 : index
    %c0_24 = arith.constant 0 : index
    %27 = vector.load %arg8[%c0_23, %c0_24] : memref<128x256xf32, #tpu.memory_space<vmem>>, vector<128x256xf32>
    %cst_25 = arith.constant dense<0.000000e+00> : vector<8x256xf32>
    %28 = tpu.matmul %26, %27, %cst_25 {dimension_numbers = #tpu.dot_dimension_numbers<[1], [0], [0], [1], [0, 0, 1, 1], [], []>} : vector<8x128xf32>, vector<128x256xf32>, vector<8x256xf32> -> vector<8x256xf32>
    %c0_26 = arith.constant 0 : index
    %c1536 = arith.constant 1536 : index
    %29 = vector.load %arg15[%c0_26, %c1536] : memref<1x2944xf32, #tpu.memory_space<vmem>>, vector<1x256xf32>
    %30 = vector.broadcast %29 : vector<1x256xf32> to vector<8x256xf32>
    %31 = arith.addf %28, %30 : vector<8x256xf32>
    %cst_27 = arith.constant 0.000000e+00 : f32
    %32 = vector.broadcast %cst_27 : f32 to vector<8x256xf32>
    %33 = arith.maximumf %31, %32 : vector<8x256xf32>
    %c0_28 = arith.constant 0 : index
    %c0_29 = arith.constant 0 : index
    %34 = vector.load %arg9[%c0_28, %c0_29] : memref<256x256xf32, #tpu.memory_space<vmem>>, vector<256x256xf32>
    %cst_30 = arith.constant dense<0.000000e+00> : vector<8x256xf32>
    %35 = tpu.matmul %33, %34, %cst_30 {dimension_numbers = #tpu.dot_dimension_numbers<[1], [0], [0], [1], [0, 0, 1, 1], [], []>} : vector<8x256xf32>, vector<256x256xf32>, vector<8x256xf32> -> vector<8x256xf32>
    %c0_31 = arith.constant 0 : index
    %c1792 = arith.constant 1792 : index
    %36 = vector.load %arg15[%c0_31, %c1792] : memref<1x2944xf32, #tpu.memory_space<vmem>>, vector<1x256xf32>
    %37 = vector.broadcast %36 : vector<1x256xf32> to vector<8x256xf32>
    %38 = arith.addf %35, %37 : vector<8x256xf32>
    %c0_32 = arith.constant 0 : index
    %c0_33 = arith.constant 0 : index
    %39 = vector.load %arg10[%c0_32, %c0_33] : memref<256x512xf32, #tpu.memory_space<vmem>>, vector<256x512xf32>
    %cst_34 = arith.constant dense<0.000000e+00> : vector<8x512xf32>
    %40 = tpu.matmul %12, %39, %cst_34 {dimension_numbers = #tpu.dot_dimension_numbers<[1], [0], [0], [1], [0, 0, 1, 1], [], []>} : vector<8x256xf32>, vector<256x512xf32>, vector<8x512xf32> -> vector<8x512xf32>
    %c0_35 = arith.constant 0 : index
    %c0_36 = arith.constant 0 : index
    %41 = vector.load %arg11[%c0_35, %c0_36] : memref<256x512xf32, #tpu.memory_space<vmem>>, vector<256x512xf32>
    %cst_37 = arith.constant dense<0.000000e+00> : vector<8x512xf32>
    %42 = tpu.matmul %25, %41, %cst_37 {dimension_numbers = #tpu.dot_dimension_numbers<[1], [0], [0], [1], [0, 0, 1, 1], [], []>} : vector<8x256xf32>, vector<256x512xf32>, vector<8x512xf32> -> vector<8x512xf32>
    %43 = arith.addf %40, %42 : vector<8x512xf32>
    %c0_38 = arith.constant 0 : index
    %c0_39 = arith.constant 0 : index
    %44 = vector.load %arg12[%c0_38, %c0_39] : memref<256x512xf32, #tpu.memory_space<vmem>>, vector<256x512xf32>
    %cst_40 = arith.constant dense<0.000000e+00> : vector<8x512xf32>
    %45 = tpu.matmul %38, %44, %cst_40 {dimension_numbers = #tpu.dot_dimension_numbers<[1], [0], [0], [1], [0, 0, 1, 1], [], []>} : vector<8x256xf32>, vector<256x512xf32>, vector<8x512xf32> -> vector<8x512xf32>
    %46 = arith.addf %43, %45 : vector<8x512xf32>
    %c0_41 = arith.constant 0 : index
    %c2048 = arith.constant 2048 : index
    %47 = vector.load %arg15[%c0_41, %c2048] : memref<1x2944xf32, #tpu.memory_space<vmem>>, vector<1x512xf32>
    %48 = vector.broadcast %47 : vector<1x512xf32> to vector<8x512xf32>
    %49 = arith.addf %46, %48 : vector<8x512xf32>
    %cst_42 = arith.constant 0.000000e+00 : f32
    %50 = vector.broadcast %cst_42 : f32 to vector<8x512xf32>
    %51 = arith.maximumf %49, %50 : vector<8x512xf32>
    %c0_43 = arith.constant 0 : index
    %c0_44 = arith.constant 0 : index
    %52 = vector.load %arg13[%c0_43, %c0_44] : memref<512x256xf32, #tpu.memory_space<vmem>>, vector<512x256xf32>
    %cst_45 = arith.constant dense<0.000000e+00> : vector<8x256xf32>
    %53 = tpu.matmul %51, %52, %cst_45 {dimension_numbers = #tpu.dot_dimension_numbers<[1], [0], [0], [1], [0, 0, 1, 1], [], []>} : vector<8x512xf32>, vector<512x256xf32>, vector<8x256xf32> -> vector<8x256xf32>
    %c0_46 = arith.constant 0 : index
    %c2560 = arith.constant 2560 : index
    %54 = vector.load %arg15[%c0_46, %c2560] : memref<1x2944xf32, #tpu.memory_space<vmem>>, vector<1x256xf32>
    %55 = vector.broadcast %54 : vector<1x256xf32> to vector<8x256xf32>
    %56 = arith.addf %53, %55 : vector<8x256xf32>
    %cst_47 = arith.constant 0.000000e+00 : f32
    %57 = vector.broadcast %cst_47 : f32 to vector<8x256xf32>
    %58 = arith.maximumf %56, %57 : vector<8x256xf32>
    %c0_48 = arith.constant 0 : index
    %c0_49 = arith.constant 0 : index
    %59 = vector.load %arg14[%c0_48, %c0_49] : memref<256x128xf32, #tpu.memory_space<vmem>>, vector<256x128xf32>
    %cst_50 = arith.constant dense<0.000000e+00> : vector<8x128xf32>
    %60 = tpu.matmul %58, %59, %cst_50 {dimension_numbers = #tpu.dot_dimension_numbers<[1], [0], [0], [1], [0, 0, 1, 1], [], []>} : vector<8x256xf32>, vector<256x128xf32>, vector<8x128xf32> -> vector<8x128xf32>
    %c0_51 = arith.constant 0 : index
    %c2816 = arith.constant 2816 : index
    %61 = vector.load %arg15[%c0_51, %c2816] : memref<1x2944xf32, #tpu.memory_space<vmem>>, vector<1x128xf32>
    %62 = vector.broadcast %61 : vector<1x128xf32> to vector<8x128xf32>
    %63 = arith.addf %60, %62 : vector<8x128xf32>
    %c0_52 = arith.constant 0 : index
    %c0_53 = arith.constant 0 : index
    %64 = vector.load %arg16[%c0_52, %c0_53] : memref<8x128xf32, #tpu.memory_space<vmem>>, vector<8x128xf32>
    tpu.vector_store %arg16[%c0_52, %c0_53], %63 {strides = array<i32>} : memref<8x128xf32, #tpu.memory_space<vmem>>, vector<8x128xf32>,
    return
  }
  func.func @transform_0(%arg0: i32) -> (i32, i32) {
    %c0_i32 = arith.constant 0 : i32
    %c0_i32_0 = arith.constant 0 : i32
    return %arg0, %c0_i32 : i32, i32
  }
  func.func @transform_1(%arg0: i32) -> (i32, i32) {
    %c0_i32 = arith.constant 0 : i32
    %c0_i32_0 = arith.constant 0 : i32
    return %arg0, %c0_i32 : i32, i32
  }
  func.func @transform_2(%arg0: i32) -> (i32, i32) {
    %c0_i32 = arith.constant 0 : i32
    %c0_i32_0 = arith.constant 0 : i32
    return %arg0, %c0_i32 : i32, i32
  }
  func.func @transform_3(%arg0: i32) -> (i32, i32) {
    %c0_i32 = arith.constant 0 : i32
    %c0_i32_0 = arith.constant 0 : i32
    %c0_i32_1 = arith.constant 0 : i32
    return %c0_i32, %c0_i32_0 : i32, i32
  }
  func.func @transform_4(%arg0: i32) -> (i32, i32) {
    %c0_i32 = arith.constant 0 : i32
    %c0_i32_0 = arith.constant 0 : i32
    %c0_i32_1 = arith.constant 0 : i32
    return %c0_i32, %c0_i32_0 : i32, i32
  }
  func.func @transform_5(%arg0: i32) -> (i32, i32) {
    %c0_i32 = arith.constant 0 : i32
    %c0_i32_0 = arith.constant 0 : i32
    %c0_i32_1 = arith.constant 0 : i32
    return %c0_i32, %c0_i32_0 : i32, i32
  }
  func.func @transform_6(%arg0: i32) -> (i32, i32) {
    %c0_i32 = arith.constant 0 : i32
    %c0_i32_0 = arith.constant 0 : i32
    %c0_i32_1 = arith.constant 0 : i32
    return %c0_i32, %c0_i32_0 : i32, i32
  }
  func.func @transform_7(%arg0: i32) -> (i32, i32) {
    %c0_i32 = arith.constant 0 : i32
    %c0_i32_0 = arith.constant 0 : i32
    %c0_i32_1 = arith.constant 0 : i32
    return %c0_i32, %c0_i32_0 : i32, i32
  }
  func.func @transform_8(%arg0: i32) -> (i32, i32) {
    %c0_i32 = arith.constant 0 : i32
    %c0_i32_0 = arith.constant 0 : i32
    %c0_i32_1 = arith.constant 0 : i32
    return %c0_i32, %c0_i32_0 : i32, i32
  }
  func.func @transform_9(%arg0: i32) -> (i32, i32) {
    %c0_i32 = arith.constant 0 : i32
    %c0_i32_0 = arith.constant 0 : i32
    %c0_i32_1 = arith.constant 0 : i32
    return %c0_i32, %c0_i32_0 : i32, i32
  }
  func.func @transform_10(%arg0: i32) -> (i32, i32) {
    %c0_i32 = arith.constant 0 : i32
    %c0_i32_0 = arith.constant 0 : i32
    %c0_i32_1 = arith.constant 0 : i32
    return %c0_i32, %c0_i32_0 : i32, i32
  }
  func.func @transform_11(%arg0: i32) -> (i32, i32) {
    %c0_i32 = arith.constant 0 : i32
    %c0_i32_0 = arith.constant 0 : i32
    %c0_i32_1 = arith.constant 0 : i32
    return %c0_i32, %c0_i32_0 : i32, i32
  }
  func.func @transform_12(%arg0: i32) -> (i32, i32) {
    %c0_i32 = arith.constant 0 : i32
    %c0_i32_0 = arith.constant 0 : i32
    %c0_i32_1 = arith.constant 0 : i32
    return %c0_i32, %c0_i32_0 : i32, i32
  }
  func.func @transform_13(%arg0: i32) -> (i32, i32) {
    %c0_i32 = arith.constant 0 : i32
    %c0_i32_0 = arith.constant 0 : i32
    %c0_i32_1 = arith.constant 0 : i32
    return %c0_i32, %c0_i32_0 : i32, i32
  }
  func.func @transform_14(%arg0: i32) -> (i32, i32) {
    %c0_i32 = arith.constant 0 : i32
    %c0_i32_0 = arith.constant 0 : i32
    %c0_i32_1 = arith.constant 0 : i32
    return %c0_i32, %c0_i32_0 : i32, i32
  }
  func.func @transform_15(%arg0: i32) -> (i32, i32) {
    %c0_i32 = arith.constant 0 : i32
    %c0_i32_0 = arith.constant 0 : i32
    return %arg0, %c0_i32 : i32, i32
  }
}

</mosaic_0001>

<bundles_post_ra>
// kernel: tpu_custom_call.1
= control target key start
LH: loop header
LB: loop body
LE: loop exit
PB: predicated region body
PF: predicated region fallthrough
CT: control target
= control target key end

     0   :  { %20 = vsyncpa [#allocation3], 0  ;;  %s8592_s0 = inlined_call_operand.hbm [shape: f32[8,768], index: 0, kind: input, shape index: {}]   ;;  %s8593_s1 = inlined_call_operand.hbm [shape: f32[8,2048], index: 1, kind: input, shape index: {}]   ;;  %s8594_s2 = inlined_call_operand.hbm [shape: f32[8,128], index: 2, kind: input, shape index: {}]   ;;  %s8595_s3 = inlined_call_operand.hbm [shape: f32[768,512], index: 3, kind: input, shape index: {}]   ;;  %s8596_s4 = inlined_call_operand.hbm [shape: f32[512,256], index: 4, kind: input, shape index: {}]   ;;  %s8597_s5 = inlined_call_operand.hbm [shape: f32[2048,512], index: 5, kind: input, shape index: {}]   ;;  %s8598_s6 = inlined_call_operand.hbm [shape: f32[512,256], index: 6, kind: input, shape index: {}]   ;;  %s8599_s7 = inlined_call_operand.hbm [shape: f32[128,256], index: 7, kind: input, shape index: {}]   ;;  %s8600_s8 = inlined_call_operand.hbm [shape: f32[256,256], index: 8, kind: input, shape index: {}]   ;;  %s8601_s9 = inlined_call_operand.hbm [shape: f32[256,512], index: 9, kind: input, shape index: {}]   ;;  %s8602_s10 = inlined_call_operand.hbm [shape: f32[256,512], index: 10, kind: input, shape index: {}]   ;;  %s8603_s11 = inlined_call_operand.hbm [shape: f32[256,512], index: 11, kind: input, shape index: {}]   ;;  %s8604_s12 = inlined_call_operand.hbm [shape: f32[512,256], index: 12, kind: input, shape index: {}]   ;;  %s8605_s13 = inlined_call_operand.hbm [shape: f32[256,128], index: 13, kind: input, shape index: {}]   ;;  %s8606_s14 = inlined_call_operand.hbm [shape: f32[1,2944], index: 14, kind: input, shape index: {}]   ;;  %s8607_s15 = inlined_call_operand.hbm [shape: f32[8,128], index: 15, kind: output, shape index: {}]  }
   0x1   :  { %21 = vsyncpa [#allocation6], 0 }
   0x2   :  { %22 = vsyncpa [#allocation9], 0 }
   0x3   :  { %23 = vsyncpa [#allocation12], 0 }
   0x4   :  { %24 = vsyncpa [#allocation15], 0 }
   0x5   :  { %25 = vsyncpa [#allocation18], 0 }
   0x6   :  { %26 = vsyncpa [#allocation21], 0 }
   0x7   :  { %27 = vsyncpa [#allocation24], 0 }
   0x8   :  { %28 = vsyncpa [#allocation4], 0  ;;  %s8192_s18 = smov [#allocation5]   ;;  %s8193_s20 = smov [#allocation8]  }
   0x9   :  { %s45_s19 = sshll.u32 %s8192_s18, 4  ;;  %s64_s21 = sshll.u32 %s8193_s20, 4  ;;  %s46_s19 = int_to_ptr.vmem [resolvable:$true] %s45_s19  ;;  %s8295_s21 = int_to_ptr.vmem [resolvable:$true] %s64_s21 }
   0xa   :  { %s7822_s24 = scalar_lea.hbm %s8593_s1, 2048 }
   0xb   :  { %p7823_p0 = scmp.ne.s32.totalorder %s8593_s1, %s7822_s24  ;;  %p7826_p1 = scmp.lt.u32.totalorder %s7822_s24, %s8593_s1 }
   0xd   :  { %p7828_p2 = pnand %p7826_p1, %p7823_p0 }
   0xf   :  { %7831 = shalt.err (!%p7828_p2)
}
  0x10   :  { %s7832_s29 = scalar_lea.vmem %s46_s19, 2048  ;;  %p7837_p4 = scmp.lt.s32.totalorder %s46_s19, %s46_s19 }
  0x11   :  { %p7833_p3 = scmp.ne.s32.totalorder %s46_s19, %s7832_s29  ;;  %p7838_p5 = scmp.lt.s32.totalorder %s7832_s29, %s7832_s29 }
  0x13   :  { %p7839_p6 = por %p7838_p5, %p7837_p4 }
  0x15   :  { %p7840_p7 = pnand %p7839_p6, %p7833_p3 }
  0x17   :  { %7843 = shalt.err (!%p7840_p7)
}
  0x18   :  { %48 = dma.hbm_to_vmem [thread:$0]  %s8593_s1, 2048, %s46_s19, [#allocation6]  }
  0x19   :  { %s7844_s20 = scalar_lea.hbm %s8595_s3, 49152 }
  0x1a   :  { %p7845_p8 = scmp.ne.s32.totalorder %s8595_s3, %s7844_s20  ;;  %p7848_p9 = scmp.lt.u32.totalorder %s7844_s20, %s8595_s3 }
  0x1c   :  { %p7850_p10 = pnand %p7848_p9, %p7845_p8 }
  0x1e   :  { %7853 = shalt.err (!%p7850_p10)
}
  0x1f   :  { %s7854_s26 = scalar_lea.vmem %s8295_s21, 49152  ;;  %p7859_p12 = scmp.lt.s32.totalorder %s8295_s21, %s8295_s21 }
  0x20   :  { %p7855_p11 = scmp.ne.s32.totalorder %s8295_s21, %s7854_s26  ;;  %p7860_p13 = scmp.lt.s32.totalorder %s7854_s26, %s7854_s26 }
  0x22   :  { %p7861_p0 = por %p7860_p13, %p7859_p12 }
  0x24   :  { %p7862_p1 = pnand %p7861_p0, %p7855_p11 }
  0x26   :  { %7865 = shalt.err (!%p7862_p1)
}
  0x27   :  { %s8194_s1 = smov 512   ;;  %s8195_s19 = smov 32  }
  0x28   :  { %70 = dma.hbm_to_vmem [thread:$0]  %s8595_s3, 49152, %s8295_s21, [#allocation9], %s8194_s1, %s8194_s1, %s8195_s19  }
  0x29   :  { %s8196_s29 = smov [#allocation11]   ;;  %s7866_s18 = scalar_lea.hbm %s8597_s5, 131072 }
  0x2a   :  { %s88_s30 = sshll.u32 %s8196_s29, 4  ;;  %p7867_p2 = scmp.ne.s32.totalorder %s8597_s5, %s7866_s18  ;;  %s89_s30 = int_to_ptr.vmem [resolvable:$true] %s88_s30 }
  0x2b   :  { %p7870_p3 = scmp.lt.u32.totalorder %s7866_s18, %s8597_s5 }
  0x2d   :  { %p7872_p4 = pnand %p7870_p3, %p7867_p2 }
  0x2f   :  { %7875 = shalt.err (!%p7872_p4)
}
  0x30   :  { %s7876_s25 = scalar_lea.vmem %s89_s30, 131072  ;;  %p7881_p6 = scmp.lt.s32.totalorder %s89_s30, %s89_s30 }
  0x31   :  { %p7877_p5 = scmp.ne.s32.totalorder %s89_s30, %s7876_s25  ;;  %p7882_p7 = scmp.lt.s32.totalorder %s7876_s25, %s7876_s25 }
  0x33   :  { %p7883_p8 = por %p7882_p7, %p7881_p6 }
  0x35   :  { %p7884_p9 = pnand %p7883_p8, %p7877_p5 }
  0x37   :  { %7887 = shalt.err (!%p7884_p9)
}
  0x38   :  { %94 = dma.hbm_to_vmem [thread:$0]  %s8597_s5, 131072, %s89_s30, [#allocation12], %s8194_s1, %s8194_s1, %s8195_s19  }
  0x39   :  { %s8197_s26 = smov [#allocation14]   ;;  %s8198_s28 = smov [#allocation17]  }
  0x3a   :  { %s112_s27 = sshll.u32 %s8197_s26, 4  ;;  %s136_s29 = sshll.u32 %s8198_s28, 4  ;;  %s113_s27 = int_to_ptr.vmem [resolvable:$true] %s112_s27  ;;  %s137_s29 = int_to_ptr.vmem [resolvable:$true] %s136_s29 }
  0x3b   :  { %s7888_s18 = scalar_lea.hbm %s8599_s7, 4096 }
  0x3c   :  { %p7889_p10 = scmp.ne.s32.totalorder %s8599_s7, %s7888_s18  ;;  %p7892_p11 = scmp.lt.u32.totalorder %s7888_s18, %s8599_s7 }
  0x3e   :  { %p7894_p12 = pnand %p7892_p11, %p7889_p10 }
  0x40   :  { %7897 = shalt.err (!%p7894_p12)
}
  0x41   :  { %s7898_s5 = scalar_lea.vmem %s113_s27, 4096  ;;  %p7903_p0 = scmp.lt.s32.totalorder %s113_s27, %s113_s27 }
  0x42   :  { %p7899_p13 = scmp.ne.s32.totalorder %s113_s27, %s7898_s5  ;;  %p7904_p1 = scmp.lt.s32.totalorder %s7898_s5, %s7898_s5 }
  0x44   :  { %p7905_p2 = por %p7904_p1, %p7903_p0 }
  0x46   :  { %p7906_p3 = pnand %p7905_p2, %p7899_p13 }
  0x48   :  { %7909 = shalt.err (!%p7906_p3)
}
  0x49   :  { %s8199_s30 = smov 256   ;;  %s8200_s25 = smov 16  }
  0x4a   :  { %118 = dma.hbm_to_vmem [thread:$0]  %s8599_s7, 4096, %s113_s27, [#allocation15], %s8199_s30, %s8199_s30, %s8200_s25  }
  0x4b   :  { %s7910_s16 = scalar_lea.hbm %s8601_s9, 16384 }
  0x4c   :  { %p7911_p4 = scmp.ne.s32.totalorder %s8601_s9, %s7910_s16  ;;  %p7914_p5 = scmp.lt.u32.totalorder %s7910_s16, %s8601_s9 }
  0x4e   :  { %p7916_p6 = pnand %p7914_p5, %p7911_p4 }
  0x50   :  { %7919 = shalt.err (!%p7916_p6)
}
  0x51   :  { %s7920_s23 = scalar_lea.vmem %s137_s29, 16384  ;;  %p7925_p8 = scmp.lt.s32.totalorder %s137_s29, %s137_s29 }
  0x52   :  { %p7921_p7 = scmp.ne.s32.totalorder %s137_s29, %s7920_s23  ;;  %p7926_p9 = scmp.lt.s32.totalorder %s7920_s23, %s7920_s23 }
  0x54   :  { %p7927_p10 = por %p7926_p9, %p7925_p8 }
  0x56   :  { %p7928_p11 = pnand %p7927_p10, %p7921_p7 }
  0x58   :  { %7931 = shalt.err (!%p7928_p11)
}
  0x59   :  { %142 = dma.hbm_to_vmem [thread:$0]  %s8601_s9, 16384, %s137_s29, [#allocation18], %s8194_s1, %s8194_s1, %s8195_s19  }
  0x5a   :  { %s8201_s24 = smov [#allocation20]   ;;  %s8202_s3 = smov [#allocation23]  }
  0x5b   :  { %s160_s5 = sshll.u32 %s8201_s24, 4  ;;  %s184_s21 = sshll.u32 %s8202_s3, 4  ;;  %s161_s5 = int_to_ptr.vmem [resolvable:$true] %s160_s5  ;;  %s185_s21 = int_to_ptr.vmem [resolvable:$true] %s184_s21 }
  0x5c   :  { %s7932_s16 = scalar_lea.hbm %s8603_s11, 16384 }
  0x5d   :  { %p7933_p12 = scmp.ne.s32.totalorder %s8603_s11, %s7932_s16  ;;  %p7936_p13 = scmp.lt.u32.totalorder %s7932_s16, %s8603_s11 }
  0x5f   :  { %p7938_p0 = pnand %p7936_p13, %p7933_p12 }
  0x61   :  { %7941 = shalt.err (!%p7938_p0)
}
  0x62   :  { %s7942_s9 = scalar_lea.vmem %s161_s5, 16384  ;;  %p7947_p2 = scmp.lt.s32.totalorder %s161_s5, %s161_s5 }
  0x63   :  { %p7943_p1 = scmp.ne.s32.totalorder %s161_s5, %s7942_s9  ;;  %p7948_p3 = scmp.lt.s32.totalorder %s7942_s9, %s7942_s9 }
  0x65   :  { %p7949_p4 = por %p7948_p3, %p7947_p2 }
  0x67   :  { %p7950_p5 = pnand %p7949_p4, %p7943_p1 }
  0x69   :  { %7953 = shalt.err (!%p7950_p5)
}
  0x6a   :  { %166 = dma.hbm_to_vmem [thread:$0]  %s8603_s11, 16384, %s161_s5, [#allocation21], %s8194_s1, %s8194_s1, %s8195_s19  }
  0x6b   :  { %s7954_s24 = scalar_lea.hbm %s8605_s13, 4096 }
  0x6c   :  { %p7955_p6 = scmp.ne.s32.totalorder %s8605_s13, %s7954_s24  ;;  %p7958_p7 = scmp.lt.u32.totalorder %s7954_s24, %s8605_s13 }
  0x6e   :  { %p7960_p8 = pnand %p7958_p7, %p7955_p6 }
  0x70   :  { %7963 = shalt.err (!%p7960_p8)
}
  0x71   :  { %s7964_s17 = scalar_lea.vmem %s185_s21, 4096  ;;  %p7969_p10 = scmp.lt.s32.totalorder %s185_s21, %s185_s21 }
  0x72   :  { %p7965_p9 = scmp.ne.s32.totalorder %s185_s21, %s7964_s17  ;;  %p7970_p11 = scmp.lt.s32.totalorder %s7964_s17, %s7964_s17 }
  0x74   :  { %p7971_p12 = por %p7970_p11, %p7969_p10 }
  0x76   :  { %p7972_p13 = pnand %p7971_p12, %p7965_p9 }
  0x78   :  { %7975 = shalt.err (!%p7972_p13)
}
  0x79   :  { %s8203_s11 = smov 128   ;;  %s8204_s5 = smov 8  }
  0x7a   :  { %190 = dma.hbm_to_vmem [thread:$0]  %s8605_s13, 4096, %s185_s21, [#allocation24], %s8203_s11, %s8203_s11, %s8204_s5  }
  0x7b   :  { %s8205_s22 = smov [#allocation2]   ;;  %s8206_s29 = smov [#allocation7]  }
  0x7c   :  { %s35_s9 = sshll.u32 %s8205_s22, 4  ;;  %s55_s23 = sshll.u32 %s8206_s29, 4  ;;  %s36_s9 = int_to_ptr.vmem [resolvable:$true] %s35_s9  ;;  %s56_s23 = int_to_ptr.vmem [resolvable:$true] %s55_s23 }
  0x7d   :  { %s7976_s24 = scalar_lea.hbm %s8592_s0, 768 }
  0x7e   :  { %p7977_p0 = scmp.ne.s32.totalorder %s8592_s0, %s7976_s24  ;;  %p7980_p1 = scmp.lt.u32.totalorder %s7976_s24, %s8592_s0 }
  0x80   :  { %p7982_p2 = pnand %p7980_p1, %p7977_p0 }
  0x82   :  { %7985 = shalt.err (!%p7982_p2)
}
  0x83   :  { %s7986_s13 = scalar_lea.vmem %s36_s9, 768  ;;  %p7991_p4 = scmp.lt.s32.totalorder %s36_s9, %s36_s9 }
  0x84   :  { %p7987_p3 = scmp.ne.s32.totalorder %s36_s9, %s7986_s13  ;;  %p7992_p5 = scmp.lt.s32.totalorder %s7986_s13, %s7986_s13 }
  0x86   :  { %p7993_p6 = por %p7992_p5, %p7991_p4 }
  0x88   :  { %p7994_p7 = pnand %p7993_p6, %p7987_p3 }
  0x8a   :  { %7997 = shalt.err (!%p7994_p7)
}
  0x8b   :  { %38 = dma.hbm_to_vmem [thread:$0]  %s8592_s0, 768, %s36_s9, [#allocation3]  }
  0x8c   :  { %s7998_s18 = scalar_lea.hbm %s8594_s2, 128 }
  0x8d   :  { %p7999_p8 = scmp.ne.s32.totalorder %s8594_s2, %s7998_s18  ;;  %p8002_p9 = scmp.lt.u32.totalorder %s7998_s18, %s8594_s2 }
  0x8f   :  { %p8004_p10 = pnand %p8002_p9, %p7999_p8 }
  0x91   :  { %8007 = shalt.err (!%p8004_p10)
}
  0x92   :  { %s8008_s27 = scalar_lea.vmem %s56_s23, 128  ;;  %p8013_p12 = scmp.lt.s32.totalorder %s56_s23, %s56_s23 }
  0x93   :  { %p8009_p11 = scmp.ne.s32.totalorder %s56_s23, %s8008_s27  ;;  %p8014_p13 = scmp.lt.s32.totalorder %s8008_s27, %s8008_s27 }
  0x95   :  { %p8015_p0 = por %p8014_p13, %p8013_p12 }
  0x97   :  { %p8016_p1 = pnand %p8015_p0, %p8009_p11 }
  0x99   :  { %8019 = shalt.err (!%p8016_p1)
}
  0x9a   :  { %58 = dma.hbm_to_vmem [thread:$0]  %s8594_s2, 128, %s56_s23, [#allocation6]  }
  0x9b   :  { %s8207_s24 = smov [#allocation10]   ;;  %s8208_s26 = smov [#allocation13]  }
  0x9c   :  { %s76_s3 = sshll.u32 %s8207_s24, 4  ;;  %s100_s28 = sshll.u32 %s8208_s26, 4  ;;  %s77_s3 = int_to_ptr.vmem [resolvable:$true] %s76_s3  ;;  %s101_s28 = int_to_ptr.vmem [resolvable:$true] %s100_s28 }
  0x9d   :  { %s8020_s21 = scalar_lea.hbm %s8596_s4, 16384 }
  0x9e   :  { %p8021_p2 = scmp.ne.s32.totalorder %s8596_s4, %s8020_s21  ;;  %p8024_p3 = scmp.lt.u32.totalorder %s8020_s21, %s8596_s4 }
  0xa0   :  { %p8026_p4 = pnand %p8024_p3, %p8021_p2 }
  0xa2   :  { %8029 = shalt.err (!%p8026_p4)
}
  0xa3   :  { %s8030_s2 = scalar_lea.vmem %s77_s3, 16384  ;;  %p8035_p6 = scmp.lt.s32.totalorder %s77_s3, %s77_s3 }
  0xa4   :  { %p8031_p5 = scmp.ne.s32.totalorder %s77_s3, %s8030_s2  ;;  %p8036_p7 = scmp.lt.s32.totalorder %s8030_s2, %s8030_s2 }
  0xa6   :  { %p8037_p8 = por %p8036_p7, %p8035_p6 }
  0xa8   :  { %p8038_p9 = pnand %p8037_p8, %p8031_p5 }
  0xaa   :  { %8041 = shalt.err (!%p8038_p9)
}
  0xab   :  { %82 = dma.hbm_to_vmem [thread:$0]  %s8596_s4, 16384, %s77_s3, [#allocation9], %s8199_s30, %s8199_s30, %s8200_s25  }
  0xac   :  { %s8042_s7 = scalar_lea.hbm %s8598_s6, 16384 }
  0xad   :  { %p8043_p10 = scmp.ne.s32.totalorder %s8598_s6, %s8042_s7  ;;  %p8046_p11 = scmp.lt.u32.totalorder %s8042_s7, %s8598_s6 }
  0xaf   :  { %p8048_p12 = pnand %p8046_p11, %p8043_p10 }
  0xb1   :  { %8051 = shalt.err (!%p8048_p12)
}
  0xb2   :  { %s8052_s26 = scalar_lea.vmem %s101_s28, 16384  ;;  %p8057_p0 = scmp.lt.s32.totalorder %s101_s28, %s101_s28 }
  0xb3   :  { %p8053_p13 = scmp.ne.s32.totalorder %s101_s28, %s8052_s26  ;;  %p8058_p1 = scmp.lt.s32.totalorder %s8052_s26, %s8052_s26 }
  0xb5   :  { %p8059_p2 = por %p8058_p1, %p8057_p0 }
  0xb7   :  { %p8060_p3 = pnand %p8059_p2, %p8053_p13 }
  0xb9   :  { %8063 = shalt.err (!%p8060_p3)
}
  0xba   :  { %106 = dma.hbm_to_vmem [thread:$0]  %s8598_s6, 16384, %s101_s28, [#allocation12], %s8199_s30, %s8199_s30, %s8200_s25  }
  0xbb   :  { %s8209_s16 = smov [#allocation16]   ;;  %s8210_s21 = smov [#allocation19]  }
  0xbc   :  { %s124_s13 = sshll.u32 %s8209_s16, 4  ;;  %s148_s17 = sshll.u32 %s8210_s21, 4  ;;  %s125_s13 = int_to_ptr.vmem [resolvable:$true] %s124_s13  ;;  %s149_s17 = int_to_ptr.vmem [resolvable:$true] %s148_s17 }
  0xbd   :  { %s8064_s18 = scalar_lea.hbm %s8600_s8, 8192 }
  0xbe   :  { %p8065_p4 = scmp.ne.s32.totalorder %s8600_s8, %s8064_s18  ;;  %p8068_p5 = scmp.lt.u32.totalorder %s8064_s18, %s8600_s8 }
  0xc0   :  { %p8070_p6 = pnand %p8068_p5, %p8065_p4 }
  0xc2   :  { %8073 = shalt.err (!%p8070_p6)
}
  0xc3   :  { %s8074_s6 = scalar_lea.vmem %s125_s13, 8192  ;;  %p8079_p8 = scmp.lt.s32.totalorder %s125_s13, %s125_s13 }
  0xc4   :  { %p8075_p7 = scmp.ne.s32.totalorder %s125_s13, %s8074_s6  ;;  %p8080_p9 = scmp.lt.s32.totalorder %s8074_s6, %s8074_s6 }
  0xc6   :  { %p8081_p10 = por %p8080_p9, %p8079_p8 }
  0xc8   :  { %p8082_p11 = pnand %p8081_p10, %p8075_p7 }
  0xca   :  { %8085 = shalt.err (!%p8082_p11)
}
  0xcb   :  { %130 = dma.hbm_to_vmem [thread:$0]  %s8600_s8, 8192, %s125_s13, [#allocation15], %s8199_s30, %s8199_s30, %s8200_s25  }
  0xcc   :  { %s8086_s0 = scalar_lea.hbm %s8602_s10, 16384 }
  0xcd   :  { %p8087_p12 = scmp.ne.s32.totalorder %s8602_s10, %s8086_s0  ;;  %p8090_p13 = scmp.lt.u32.totalorder %s8086_s0, %s8602_s10 }
  0xcf   :  { %p8092_p0 = pnand %p8090_p13, %p8087_p12 }
  0xd1   :  { %8095 = shalt.err (!%p8092_p0)
}
  0xd2   :  { %s8096_s3 = scalar_lea.vmem %s149_s17, 16384  ;;  %p8101_p2 = scmp.lt.s32.totalorder %s149_s17, %s149_s17 }
  0xd3   :  { %p8097_p1 = scmp.ne.s32.totalorder %s149_s17, %s8096_s3  ;;  %p8102_p3 = scmp.lt.s32.totalorder %s8096_s3, %s8096_s3 }
  0xd5   :  { %p8103_p4 = por %p8102_p3, %p8101_p2 }
  0xd7   :  { %p8104_p5 = pnand %p8103_p4, %p8097_p1 }
  0xd9   :  { %8107 = shalt.err (!%p8104_p5)
}
  0xda   :  { %154 = dma.hbm_to_vmem [thread:$0]  %s8602_s10, 16384, %s149_s17, [#allocation18], %s8194_s1, %s8194_s1, %s8195_s19  }
  0xdb   :  { %s8211_s13 = smov [#allocation22]   ;;  %s8212_s11 = smov [#allocation25]  }
  0xdc   :  { %s172_s21 = sshll.u32 %s8211_s13, 4  ;;  %s197_s5 = sshll.u32 %s8212_s11, 4  ;;  %s173_s21 = int_to_ptr.vmem [resolvable:$true] %s172_s21  ;;  %s198_s5 = int_to_ptr.vmem [resolvable:$true] %s197_s5 }
  0xdd   :  { %s8108_s23 = scalar_lea.hbm %s8604_s12, 16384 }
  0xde   :  { %p8109_p6 = scmp.ne.s32.totalorder %s8604_s12, %s8108_s23  ;;  %p8112_p7 = scmp.lt.u32.totalorder %s8108_s23, %s8604_s12 }
  0xe0   :  { %p8114_p8 = pnand %p8112_p7, %p8109_p6 }
  0xe2   :  { %8117 = shalt.err (!%p8114_p8)
}
  0xe3   :  { %s8118_s10 = scalar_lea.vmem %s173_s21, 16384  ;;  %p8123_p10 = scmp.lt.s32.totalorder %s173_s21, %s173_s21 }
  0xe4   :  { %p8119_p9 = scmp.ne.s32.totalorder %s173_s21, %s8118_s10  ;;  %p8124_p11 = scmp.lt.s32.totalorder %s8118_s10, %s8118_s10 }
  0xe6   :  { %p8125_p12 = por %p8124_p11, %p8123_p10 }
  0xe8   :  { %p8126_p13 = pnand %p8125_p12, %p8119_p9 }
  0xea   :  { %8129 = shalt.err (!%p8126_p13)
}
  0xeb   :  { %178 = dma.hbm_to_vmem [thread:$0]  %s8604_s12, 16384, %s173_s21, [#allocation21], %s8199_s30, %s8199_s30, %s8200_s25  }
  0xec   :  { %s8130_s7 = scalar_lea.hbm %s8606_s14, 368 }
  0xed   :  { %p8131_p0 = scmp.ne.s32.totalorder %s8606_s14, %s8130_s7  ;;  %p8134_p1 = scmp.lt.u32.totalorder %s8130_s7, %s8606_s14 }
  0xef   :  { %p8136_p2 = pnand %p8134_p1, %p8131_p0 }
  0xf1   :  { %8139 = shalt.err (!%p8136_p2)
}
  0xf2   :  { %s8140_s26 = scalar_lea.vmem %s198_s5, 368  ;;  %s8144_s4 = scalar_lea.vmem %s198_s5, 384 }
  0xf3   :  { %p8141_p3 = scmp.ne.s32.totalorder %s198_s5, %s8140_s26  ;;  %p8145_p4 = scmp.lt.s32.totalorder %s198_s5, %s198_s5 }
  0xf4   :  { %p8146_p5 = scmp.lt.s32.totalorder %s8144_s4, %s8140_s26 }
  0xf6   :  { %p8147_p6 = por %p8146_p5, %p8145_p4 }
  0xf8   :  { %p8148_p7 = pnand %p8147_p6, %p8141_p3 }
  0xfa   :  { %8151 = shalt.err (!%p8148_p7)
}
  0xfb   :  { %200 = dma.hbm_to_vmem [thread:$0]  %s8606_s14, 368, %s198_s5, [#allocation24]  }
  0xfc   :  { %8174 = dma.done.wait [#allocation3], 768  }
  0xfd   :  { %8175 = vsyncadd [#allocation3], 4294966528 }
  0xfe   :  { %8176 = dma.done.wait [#allocation6], 2176  }
  0xff   :  { %8177 = vsyncadd [#allocation6], 4294965120 }
 0x100   :  { %8178 = dma.done.wait [#allocation9], 65536  }
 0x101   :  { %8179 = vsyncadd [#allocation9], 4294901760 }
 0x102   :  { %8180 = dma.done.wait [#allocation12], 147456  }
 0x103   :  { %8181 = vsyncadd [#allocation12], 4294819840 }
 0x104   :  { %8182 = dma.done.wait [#allocation15], 12288  }
 0x105   :  { %8183 = vsyncadd [#allocation15], 4294955008 }
 0x106   :  { %8184 = dma.done.wait [#allocation18], 32768  }
 0x107   :  { %8185 = vsyncadd [#allocation18], 4294934528 }
 0x108   :  { %8186 = dma.done.wait [#allocation21], 32768  }
 0x109   :  { %8187 = vsyncadd [#allocation21], 4294934528 }
 0x10a   :  { %8188 = dma.done.wait [#allocation24], 4464  }
 0x10b   :  { %8189 = vsyncadd [#allocation24], 4294962832  ;;  %v253_v0 = vld [vmem:[#allocation8 + $0x8] sm:$0xff]  ;;  %v255_v2 = vld [vmem:[#allocation8 + $0x18] sm:$0xff]  ;;  %s8214_s14 = smov [#allocation26]  }
 0x10c   :  { %v257_v1 = vld [vmem:[#allocation8 + $0x28] sm:$0xff]  ;;  %v259_v4 = vld [vmem:[#allocation8 + $0x38] sm:$0xff]  ;;  %v252_v5 = vld [vmem:[#allocation8] sm:$0xff]  ;;  %s5363_s25 = sshll.u32 %s8214_s14, 4  ;;  %s5364_s25 = int_to_ptr.vmem [resolvable:$true] %s5363_s25 }
 0x10d   :  { %v5415_v3 = vpack.c.bf16 %v257_v1, %v253_v0  ;;  %v256_v6 = vld [vmem:[#allocation8 + $0x20] sm:$0xff]  ;;  %v5607_v7 = vpack.c.bf16 %v259_v4, %v255_v2  ;;  %v254_v9 = vld [vmem:[#allocation8 + $0x10] sm:$0xff]  ;;  %v261_v11 = vld [vmem:[#allocation8 + $0x48] sm:$0xff]  ;;  %s8152_s3 = scalar_lea.vmem %s5364_s25, 128  ;;  %p8157_p9 = scmp.lt.s32.totalorder %s5364_s25, %s5364_s25 }
 0x10e   :  { %v5417_v8 = vpack.c.bf16 %v256_v6, %v252_v5  ;;  %v258_v10 = vld [vmem:[#allocation8 + $0x30] sm:$0xff]  ;;  %v265_v13 = vld [vmem:[#allocation8 + $0x68] sm:$0xff]  ;;  %v263_v14 = vld [vmem:[#allocation8 + $0x58] sm:$0xff]  ;;  %p8153_p8 = scmp.ne.s32.totalorder %s5364_s25, %s8152_s3  ;;  %p8158_p10 = scmp.lt.s32.totalorder %s8152_s3, %s8152_s3 }
 0x10f   :  { %5416 = vmatprep.subr.bf16.mxu0 %v5415_v3  ;;  %v5609_v12 = vpack.c.bf16 %v258_v10, %v254_v9  ;;  %v267_v15 = vld [vmem:[#allocation8 + $0x78] sm:$0xff]  ;;  %5608 = vmatprep.subr.bf16.mxu1 %v5607_v7  ;;  %v5419_v16 = vpack.c.bf16 %v265_v13, %v261_v11  ;;  %v260_v18 = vld [vmem:[#allocation8 + $0x40] sm:$0xff]  ;;  %v262_v20 = vld [vmem:[#allocation8 + $0x50] sm:$0xff] }
 0x110   :  { %5418 = vmatpush1.bf16.msra.mxu0 %v5417_v8  ;;  %v5611_v17 = vpack.c.bf16 %v267_v15, %v263_v14  ;;  %v264_v19 = vld [vmem:[#allocation8 + $0x60] sm:$0xff]  ;;  %v266_v22 = vld [vmem:[#allocation8 + $0x70] sm:$0xff]  ;;  %v269_v23 = vld [vmem:[#allocation8 + $0x88] sm:$0xff]  ;;  %p8159_p11 = por %p8158_p10, %p8157_p9 }
 0x111   :  { %5610 = vmatpush1.bf16.msra.mxu1 %v5609_v12  ;;  %v5421_v21 = vpack.c.bf16 %v264_v19, %v260_v18  ;;  %v273_v24 = vld [vmem:[#allocation8 + $0xa8] sm:$0xff]  ;;  %5420 = vmatprep.subr.bf16.mxu0 %v5419_v16  ;;  %v5613_v25 = vpack.c.bf16 %v266_v22, %v262_v20  ;;  %v271_v27 = vld [vmem:[#allocation8 + $0x98] sm:$0xff]  ;;  %v268_v29 = vld [vmem:[#allocation8 + $0x80] sm:$0xff] }
 0x112   :  { %5612 = vmatprep.subr.bf16.mxu1 %v5611_v17  ;;  %v5423_v26 = vpack.c.bf16 %v273_v24, %v269_v23  ;;  %v275_v28 = vld [vmem:[#allocation8 + $0xb8] sm:$0xff]  ;;  %v272_v31 = vld [vmem:[#allocation8 + $0xa0] sm:$0xff]  ;;  %v270_v32 = vld [vmem:[#allocation8 + $0x90] sm:$0xff]  ;;  %p8160_p12 = pnand %p8159_p11, %p8153_p8 }
 0x113   :  { %v5615_v30 = vpack.c.bf16 %v275_v28, %v271_v27  ;;  %v274_v33 = vld [vmem:[#allocation8 + $0xb0] sm:$0xff]  ;;  %v5425_v34 = vpack.c.bf16 %v272_v31, %v268_v29  ;;  %v277_v35 = vld [vmem:[#allocation8 + $0xc8] sm:$0xff]  ;;  %v279_v37 = vld [vmem:[#allocation8 + $0xd8] sm:$0xff] }
 0x114   :  { %5422 = vmatpush1.bf16.msra.mxu0 %v5421_v21  ;;  %v281_v36 = vld [vmem:[#allocation8 + $0xe8] sm:$0xff]  ;;  %v5617_v38 = vpack.c.bf16 %v274_v33, %v270_v32  ;;  %v283_v40 = vld [vmem:[#allocation8 + $0xf8] sm:$0xff]  ;;  %v276_v41 = vld [vmem:[#allocation8 + $0xc0] sm:$0xff] }
 0x115   :  { %5614 = vmatpush1.bf16.msra.mxu1 %v5613_v25  ;;  %5424 = vmatprep.subr.bf16.mxu0 %v5423_v26  ;;  %v5427_v39 = vpack.c.bf16 %v281_v36, %v277_v35  ;;  %v280_v42 = vld [vmem:[#allocation8 + $0xe0] sm:$0xff]  ;;  %v5619_v43 = vpack.c.bf16 %v283_v40, %v279_v37  ;;  %v278_v44 = vld [vmem:[#allocation8 + $0xd0] sm:$0xff]  ;;  %v285_v46 = vld [vmem:[#allocation8 + $0x108] sm:$0xff] }
 0x116   :  { %5616 = vmatprep.subr.bf16.mxu1 %v5615_v30  ;;  %v282_v45 = vld [vmem:[#allocation8 + $0xf0] sm:$0xff]  ;;  %v289_v47 = vld [vmem:[#allocation8 + $0x128] sm:$0xff]  ;;  %v287_v48 = vld [vmem:[#allocation8 + $0x118] sm:$0xff]  ;;  %v5429_v50 = vpack.c.bf16 %v280_v42, %v276_v41 }
 0x117   :  { %v291_v49 = vld [vmem:[#allocation8 + $0x138] sm:$0xff]  ;;  %v5621_v51 = vpack.c.bf16 %v282_v45, %v278_v44  ;;  %v5431_v52 = vpack.c.bf16 %v289_v47, %v285_v46  ;;  %v284_v53 = vld [vmem:[#allocation8 + $0x100] sm:$0xff]  ;;  %v286_v55 = vld [vmem:[#allocation8 + $0x110] sm:$0xff] }
 0x118   :  { %5426 = vmatpush1.bf16.msra.mxu0 %v5425_v34  ;;  %v288_v54 = vld [vmem:[#allocation8 + $0x120] sm:$0xff]  ;;  %v5623_v56 = vpack.c.bf16 %v291_v49, %v287_v48  ;;  %v290_v57 = vld [vmem:[#allocation8 + $0x130] sm:$0xff]  ;;  %v293_v58 = vld [vmem:[#allocation8 + $0x148] sm:$0xff] }
 0x119   :  { %5618 = vmatpush1.bf16.msra.mxu1 %v5617_v38  ;;  %5428 = vmatprep.subr.bf16.mxu0 %v5427_v39  ;;  %v297_v59 = vld [vmem:[#allocation8 + $0x168] sm:$0xff]  ;;  %v295_v60 = vld [vmem:[#allocation8 + $0x158] sm:$0xff]  ;;  %v5433_v62 = vpack.c.bf16 %v288_v54, %v284_v53  ;;  %v5625_v63 = vpack.c.bf16 %v290_v57, %v286_v55  ;;  %v292_v1 = vld [vmem:[#allocation8 + $0x140] sm:$0xff] }
 0x11a   :  { %5620 = vmatprep.subr.bf16.mxu1 %v5619_v43  ;;  %v299_v61 = vld [vmem:[#allocation8 + $0x178] sm:$0xff]  ;;  %v5435_v0 = vpack.c.bf16 %v297_v59, %v293_v58  ;;  %v296_v2 = vld [vmem:[#allocation8 + $0x160] sm:$0xff]  ;;  %v294_v3 = vld [vmem:[#allocation8 + $0x150] sm:$0xff] }
 0x11b   :  { %v5627_v4 = vpack.c.bf16 %v299_v61, %v295_v60  ;;  %v298_v5 = vld [vmem:[#allocation8 + $0x170] sm:$0xff]  ;;  %v301_v6 = vld [vmem:[#allocation8 + $0x188] sm:$0xff]  ;;  %v303_v8 = vld [vmem:[#allocation8 + $0x198] sm:$0xff]  ;;  %v5437_v10 = vpack.c.bf16 %v296_v2, %v292_v1 }
 0x11c   :  { %5430 = vmatpush1.bf16.msra.mxu0 %v5429_v50  ;;  %v305_v7 = vld [vmem:[#allocation8 + $0x1a8] sm:$0xff]  ;;  %v307_v9 = vld [vmem:[#allocation8 + $0x1b8] sm:$0xff]  ;;  %v5629_v11 = vpack.c.bf16 %v298_v5, %v294_v3  ;;  %v300_v13 = vld [vmem:[#allocation8 + $0x180] sm:$0xff] }
 0x11d   :  { %5622 = vmatpush1.bf16.msra.mxu1 %v5621_v51  ;;  %5432 = vmatprep.subr.bf16.mxu0 %v5431_v52  ;;  %v5439_v12 = vpack.c.bf16 %v305_v7, %v301_v6  ;;  %v304_v14 = vld [vmem:[#allocation8 + $0x1a0] sm:$0xff]  ;;  %v302_v15 = vld [vmem:[#allocation8 + $0x190] sm:$0xff]  ;;  %v5631_v16 = vpack.c.bf16 %v307_v9, %v303_v8  ;;  %v309_v18 = vld [vmem:[#allocation8 + $0x1c8] sm:$0xff] }
 0x11e   :  { %5624 = vmatprep.subr.bf16.mxu1 %v5623_v56  ;;  %v306_v17 = vld [vmem:[#allocation8 + $0x1b0] sm:$0xff]  ;;  %v313_v19 = vld [vmem:[#allocation8 + $0x1e8] sm:$0xff]  ;;  %v311_v20 = vld [vmem:[#allocation8 + $0x1d8] sm:$0xff]  ;;  %v5441_v22 = vpack.c.bf16 %v304_v14, %v300_v13 }
 0x11f   :  { %v315_v21 = vld [vmem:[#allocation8 + $0x1f8] sm:$0xff]  ;;  %v5633_v23 = vpack.c.bf16 %v306_v17, %v302_v15  ;;  %v5443_v24 = vpack.c.bf16 %v313_v19, %v309_v18  ;;  %v308_v25 = vld [vmem:[#allocation8 + $0x1c0] sm:$0xff]  ;;  %v310_v27 = vld [vmem:[#allocation8 + $0x1d0] sm:$0xff] }
 0x120   :  { %5434 = vmatpush1.bf16.msra.mxu0 %v5433_v62  ;;  %v312_v26 = vld [vmem:[#allocation8 + $0x1e0] sm:$0xff]  ;;  %v5635_v28 = vpack.c.bf16 %v315_v21, %v311_v20  ;;  %v314_v29 = vld [vmem:[#allocation8 + $0x1f0] sm:$0xff]  ;;  %v317_v30 = vld [vmem:[#allocation8 + $0x208] sm:$0xff] }
 0x121   :  { %5626 = vmatpush1.bf16.msra.mxu1 %v5625_v63  ;;  %5436 = vmatprep.subr.bf16.mxu0 %v5435_v0  ;;  %v321_v31 = vld [vmem:[#allocation8 + $0x228] sm:$0xff]  ;;  %v319_v32 = vld [vmem:[#allocation8 + $0x218] sm:$0xff]  ;;  %v5445_v34 = vpack.c.bf16 %v312_v26, %v308_v25  ;;  %v5637_v35 = vpack.c.bf16 %v314_v29, %v310_v27  ;;  %v316_v37 = vld [vmem:[#allocation8 + $0x200] sm:$0xff] }
 0x122   :  { %5628 = vmatprep.subr.bf16.mxu1 %v5627_v4  ;;  %v323_v33 = vld [vmem:[#allocation8 + $0x238] sm:$0xff]  ;;  %v5447_v36 = vpack.c.bf16 %v321_v31, %v317_v30  ;;  %v320_v38 = vld [vmem:[#allocation8 + $0x220] sm:$0xff]  ;;  %v318_v39 = vld [vmem:[#allocation8 + $0x210] sm:$0xff] }
 0x123   :  { %v5639_v40 = vpack.c.bf16 %v323_v33, %v319_v32  ;;  %v322_v41 = vld [vmem:[#allocation8 + $0x230] sm:$0xff]  ;;  %v325_v42 = vld [vmem:[#allocation8 + $0x248] sm:$0xff]  ;;  %v327_v44 = vld [vmem:[#allocation8 + $0x258] sm:$0xff]  ;;  %v5449_v46 = vpack.c.bf16 %v320_v38, %v316_v37 }
 0x124   :  { %5438 = vmatpush1.bf16.msra.mxu0 %v5437_v10  ;;  %v329_v43 = vld [vmem:[#allocation8 + $0x268] sm:$0xff]  ;;  %v331_v45 = vld [vmem:[#allocation8 + $0x278] sm:$0xff]  ;;  %v5641_v47 = vpack.c.bf16 %v322_v41, %v318_v39  ;;  %v324_v49 = vld [vmem:[#allocation8 + $0x240] sm:$0xff] }
 0x125   :  { %5630 = vmatpush1.bf16.msra.mxu1 %v5629_v11  ;;  %5440 = vmatprep.subr.bf16.mxu0 %v5439_v12  ;;  %v5451_v48 = vpack.c.bf16 %v329_v43, %v325_v42  ;;  %v328_v50 = vld [vmem:[#allocation8 + $0x260] sm:$0xff]  ;;  %v326_v51 = vld [vmem:[#allocation8 + $0x250] sm:$0xff]  ;;  %v5643_v52 = vpack.c.bf16 %v331_v45, %v327_v44  ;;  %v333_v54 = vld [vmem:[#allocation8 + $0x288] sm:$0xff] }
 0x126   :  { %5632 = vmatprep.subr.bf16.mxu1 %v5631_v16  ;;  %v330_v53 = vld [vmem:[#allocation8 + $0x270] sm:$0xff]  ;;  %v337_v55 = vld [vmem:[#allocation8 + $0x2a8] sm:$0xff]  ;;  %v335_v56 = vld [vmem:[#allocation8 + $0x298] sm:$0xff]  ;;  %v5453_v58 = vpack.c.bf16 %v328_v50, %v324_v49 }
 0x127   :  { %v339_v57 = vld [vmem:[#allocation8 + $0x2b8] sm:$0xff]  ;;  %v5645_v59 = vpack.c.bf16 %v330_v53, %v326_v51  ;;  %v5455_v60 = vpack.c.bf16 %v337_v55, %v333_v54  ;;  %v332_v61 = vld [vmem:[#allocation8 + $0x280] sm:$0xff]  ;;  %v334_v63 = vld [vmem:[#allocation8 + $0x290] sm:$0xff] }
 0x128   :  { %5442 = vmatpush1.bf16.msra.mxu0 %v5441_v22  ;;  %v336_v62 = vld [vmem:[#allocation8 + $0x2a0] sm:$0xff]  ;;  %v5647_v0 = vpack.c.bf16 %v339_v57, %v335_v56  ;;  %v338_v1 = vld [vmem:[#allocation8 + $0x2b0] sm:$0xff]  ;;  %v341_v2 = vld [vmem:[#allocation8 + $0x2c8] sm:$0xff] }
 0x129   :  { %5634 = vmatpush1.bf16.msra.mxu1 %v5633_v23  ;;  %5444 = vmatprep.subr.bf16.mxu0 %v5443_v24  ;;  %v345_v3 = vld [vmem:[#allocation8 + $0x2e8] sm:$0xff]  ;;  %v343_v4 = vld [vmem:[#allocation8 + $0x2d8] sm:$0xff]  ;;  %v5457_v6 = vpack.c.bf16 %v336_v62, %v332_v61  ;;  %v340_v7 = vld [vmem:[#allocation8 + $0x2c0] sm:$0xff]  ;;  %v5649_v8 = vpack.c.bf16 %v338_v1, %v334_v63 }
 0x12a   :  { %5636 = vmatprep.subr.bf16.mxu1 %v5635_v28  ;;  %v347_v5 = vld [vmem:[#allocation8 + $0x2f8] sm:$0xff]  ;;  %v5459_v9 = vpack.c.bf16 %v345_v3, %v341_v2  ;;  %v344_v10 = vld [vmem:[#allocation8 + $0x2e0] sm:$0xff]  ;;  %v342_v11 = vld [vmem:[#allocation8 + $0x2d0] sm:$0xff] }
 0x12b   :  { %v346_v12 = vld [vmem:[#allocation8 + $0x2f0] sm:$0xff]  ;;  %v5651_v13 = vpack.c.bf16 %v347_v5, %v343_v4  ;;  %v349_v14 = vld [vmem:[#allocation8 + $0x308] sm:$0xff]  ;;  %v351_v17 = vld [vmem:[#allocation8 + $0x318] sm:$0xff]  ;;  %v5461_v19 = vpack.c.bf16 %v344_v10, %v340_v7 }
 0x12c   :  { %5446 = vmatpush1.bf16.msra.mxu0 %v5445_v34  ;;  %v353_v15 = vld [vmem:[#allocation8 + $0x328] sm:$0xff]  ;;  %v247_v16 = vld [vmem:[#allocation2 + $0x8] sm:$0xff]  ;;  %v355_v18 = vld [vmem:[#allocation8 + $0x338] sm:$0xff]  ;;  %v5653_v20 = vpack.c.bf16 %v346_v12, %v342_v11 }
 0x12d   :  { %5638 = vmatpush1.bf16.msra.mxu1 %v5637_v35  ;;  %5448 = vmatprep.subr.bf16.mxu0 %v5447_v36  ;;  %v5463_v21 = vpack.c.bf16 %v353_v15, %v349_v14  ;;  %v348_v22 = vld [vmem:[#allocation8 + $0x300] sm:$0xff]  ;;  %v350_v24 = vld [vmem:[#allocation8 + $0x310] sm:$0xff]  ;;  %v5655_v25 = vpack.c.bf16 %v355_v18, %v351_v17  ;;  %v357_v27 = vld [vmem:[#allocation8 + $0x348] sm:$0xff] }
 0x12e   :  { %5640 = vmatprep.subr.bf16.mxu1 %v5639_v40  ;;  %722 = vmatprep.mubr.f32.mxu0 %v247_v16  ;;  %v352_v23 = vld [vmem:[#allocation8 + $0x320] sm:$0xff]  ;;  %v354_v26 = vld [vmem:[#allocation8 + $0x330] sm:$0xff]  ;;  %v361_v28 = vld [vmem:[#allocation8 + $0x368] sm:$0xff] }
 0x12f   :  { %935 = vmatprep.mubr.f32.mxu1 %v247_v16  ;;  %v359_v29 = vld [vmem:[#allocation8 + $0x358] sm:$0xff]  ;;  %v5465_v31 = vpack.c.bf16 %v352_v23, %v348_v22  ;;  %v5657_v32 = vpack.c.bf16 %v354_v26, %v350_v24  ;;  %v5467_v33 = vpack.c.bf16 %v361_v28, %v357_v27  ;;  %v356_v34 = vld [vmem:[#allocation8 + $0x340] sm:$0xff]  ;;  %v358_v36 = vld [vmem:[#allocation8 + $0x350] sm:$0xff] }
 0x130   :  { %5450 = vmatpush1.bf16.msra.mxu0 %v5449_v46  ;;  %v363_v30 = vld [vmem:[#allocation8 + $0x378] sm:$0xff]  ;;  %v360_v35 = vld [vmem:[#allocation8 + $0x360] sm:$0xff]  ;;  %v362_v38 = vld [vmem:[#allocation8 + $0x370] sm:$0xff] }
 0x131   :  { %5642 = vmatpush1.bf16.msra.mxu1 %v5641_v47  ;;  %5452 = vmatprep.subr.bf16.mxu0 %v5451_v48  ;;  %v5659_v37 = vpack.c.bf16 %v363_v30, %v359_v29  ;;  %v365_v39 = vld [vmem:[#allocation8 + $0x388] sm:$0xff]  ;;  %v367_v41 = vld [vmem:[#allocation8 + $0x398] sm:$0xff]  ;;  %v5469_v43 = vpack.c.bf16 %v360_v35, %v356_v34  ;;  %v5661_v44 = vpack.c.bf16 %v362_v38, %v358_v36  ;;  %v364_v46 = vld [vmem:[#allocation8 + $0x380] sm:$0xff] }
 0x132   :  { %5644 = vmatprep.subr.bf16.mxu1 %v5643_v52  ;;  %v369_v40 = vld [vmem:[#allocation8 + $0x3a8] sm:$0xff]  ;;  %v371_v42 = vld [vmem:[#allocation8 + $0x3b8] sm:$0xff]  ;;  %v368_v47 = vld [vmem:[#allocation8 + $0x3a0] sm:$0xff] }
 0x133   :  { %v5471_v45 = vpack.c.bf16 %v369_v40, %v365_v39  ;;  %v366_v48 = vld [vmem:[#allocation8 + $0x390] sm:$0xff]  ;;  %v5663_v49 = vpack.c.bf16 %v371_v42, %v367_v41  ;;  %v373_v51 = vld [vmem:[#allocation8 + $0x3c8] sm:$0xff]  ;;  %v375_v53 = vld [vmem:[#allocation8 + $0x3d8] sm:$0xff]  ;;  %v5473_v55 = vpack.c.bf16 %v368_v47, %v364_v46 }
 0x134   :  { %5454 = vmatpush1.bf16.msra.mxu0 %v5453_v58  ;;  %v370_v50 = vld [vmem:[#allocation8 + $0x3b0] sm:$0xff]  ;;  %v377_v52 = vld [vmem:[#allocation8 + $0x3e8] sm:$0xff]  ;;  %v379_v54 = vld [vmem:[#allocation8 + $0x3f8] sm:$0xff] }
 0x135   :  { %5646 = vmatpush1.bf16.msra.mxu1 %v5645_v59  ;;  %5456 = vmatprep.subr.bf16.mxu0 %v5455_v60  ;;  %v5665_v56 = vpack.c.bf16 %v370_v50, %v366_v48  ;;  %v5475_v57 = vpack.c.bf16 %v377_v52, %v373_v51  ;;  %v372_v58 = vld [vmem:[#allocation8 + $0x3c0] sm:$0xff]  ;;  %v374_v60 = vld [vmem:[#allocation8 + $0x3d0] sm:$0xff]  ;;  %v5667_v61 = vpack.c.bf16 %v379_v54, %v375_v53  ;;  %v381_v63 = vld [vmem:[#allocation8 + $0x408] sm:$0xff] }
 0x136   :  { %5648 = vmatprep.subr.bf16.mxu1 %v5647_v0  ;;  %v376_v59 = vld [vmem:[#allocation8 + $0x3e0] sm:$0xff]  ;;  %v378_v62 = vld [vmem:[#allocation8 + $0x3f0] sm:$0xff]  ;;  %v385_v0 = vld [vmem:[#allocation8 + $0x428] sm:$0xff] }
 0x137   :  { %v383_v1 = vld [vmem:[#allocation8 + $0x418] sm:$0xff]  ;;  %v5477_v3 = vpack.c.bf16 %v376_v59, %v372_v58  ;;  %v5669_v4 = vpack.c.bf16 %v378_v62, %v374_v60  ;;  %v5479_v5 = vpack.c.bf16 %v385_v0, %v381_v63  ;;  %v384_v7 = vld [vmem:[#allocation8 + $0x420] sm:$0xff]  ;;  %v386_v10 = vld [vmem:[#allocation8 + $0x430] sm:$0xff] }
 0x138   :  { %5458 = vmatpush1.bf16.msra.mxu0 %v5457_v6  ;;  %v387_v2 = vld [vmem:[#allocation8 + $0x438] sm:$0xff]  ;;  %v380_v6 = vld [vmem:[#allocation8 + $0x400] sm:$0xff]  ;;  %v389_v11 = vld [vmem:[#allocation8 + $0x448] sm:$0xff] }
 0x139   :  { %5650 = vmatpush1.bf16.msra.mxu1 %v5649_v8  ;;  %5460 = vmatprep.subr.bf16.mxu0 %v5459_v9  ;;  %v382_v8 = vld [vmem:[#allocation8 + $0x410] sm:$0xff]  ;;  %v5671_v9 = vpack.c.bf16 %v387_v2, %v383_v1  ;;  %v393_v12 = vld [vmem:[#allocation8 + $0x468] sm:$0xff]  ;;  %v395_v14 = vld [vmem:[#allocation8 + $0x478] sm:$0xff]  ;;  %v5481_v16 = vpack.c.bf16 %v384_v7, %v380_v6 }
 0x13a   :  { %5652 = vmatprep.subr.bf16.mxu1 %v5651_v13  ;;  %v391_v13 = vld [vmem:[#allocation8 + $0x458] sm:$0xff]  ;;  %v246_v15 = vld [vmem:[#allocation2] sm:$0xff]  ;;  %v5673_v17 = vpack.c.bf16 %v386_v10, %v382_v8  ;;  %v5483_v18 = vpack.c.bf16 %v393_v12, %v389_v11  ;;  %v394_v23 = vld [vmem:[#allocation8 + $0x470] sm:$0xff] }
 0x13b   :  { %v5675_v22 = vpack.c.bf16 %v395_v14, %v391_v13  ;;  %v397_v24 = vld [vmem:[#allocation8 + $0x488] sm:$0xff]  ;;  %v399_v26 = vld [vmem:[#allocation8 + $0x498] sm:$0xff]  ;;  %v402_v35 = vld [vmem:[#allocation8 + $0x4b0] sm:$0xff] }
 0x13c   :  { %5462 = vmatpush1.bf16.msra.mxu0 %v5461_v19  ;;  %v388_v19 = vld [vmem:[#allocation8 + $0x440] sm:$0xff]  ;;  %v403_v27 = vld [vmem:[#allocation8 + $0x4b8] sm:$0xff]  ;;  %v405_v36 = vld [vmem:[#allocation8 + $0x4c8] sm:$0xff] }
 0x13d   :  { %5654 = vmatpush1.bf16.msra.mxu1 %v5653_v20  ;;  %5464 = vmatprep.subr.bf16.mxu0 %v5463_v21  ;;  %v392_v20 = vld [vmem:[#allocation8 + $0x460] sm:$0xff]  ;;  %v390_v21 = vld [vmem:[#allocation8 + $0x450] sm:$0xff]  ;;  %v5679_v34 = vpack.c.bf16 %v403_v27, %v399_v26  ;;  %v407_v38 = vld [vmem:[#allocation8 + $0x4d8] sm:$0xff] }
 0x13e   :  { %5656 = vmatprep.subr.bf16.mxu1 %v5655_v25  ;;  %v401_v25 = vld [vmem:[#allocation8 + $0x4a8] sm:$0xff]  ;;  %v5485_v28 = vpack.c.bf16 %v392_v20, %v388_v19  ;;  %v5677_v29 = vpack.c.bf16 %v394_v23, %v390_v21  ;;  %v411_v39 = vld [vmem:[#allocation8 + $0x4f8] sm:$0xff]  ;;  %v410_v47 = vld [vmem:[#allocation8 + $0x4f0] sm:$0xff] }
 0x13f   :  { %v5487_v30 = vpack.c.bf16 %v401_v25, %v397_v24  ;;  %v5683_v46 = vpack.c.bf16 %v411_v39, %v407_v38  ;;  %v413_v48 = vld [vmem:[#allocation8 + $0x508] sm:$0xff]  ;;  %v415_v50 = vld [vmem:[#allocation8 + $0x518] sm:$0xff]  ;;  %v418_v59 = vld [vmem:[#allocation8 + $0x530] sm:$0xff] }
 0x140   :  { %5466 = vmatpush1.bf16.msra.mxu0 %v5465_v31  ;;  %v396_v31 = vld [vmem:[#allocation8 + $0x480] sm:$0xff]  ;;  %v419_v51 = vld [vmem:[#allocation8 + $0x538] sm:$0xff]  ;;  %v421_v60 = vld [vmem:[#allocation8 + $0x548] sm:$0xff] }
 0x141   :  { %5658 = vmatpush1.bf16.msra.mxu1 %v5657_v32  ;;  %5468 = vmatprep.subr.bf16.mxu0 %v5467_v33  ;;  %v400_v32 = vld [vmem:[#allocation8 + $0x4a0] sm:$0xff]  ;;  %v398_v33 = vld [vmem:[#allocation8 + $0x490] sm:$0xff]  ;;  %v5687_v58 = vpack.c.bf16 %v419_v51, %v415_v50  ;;  %v423_v62 = vld [vmem:[#allocation8 + $0x558] sm:$0xff] }
 0x142   :  { %5660 = vmatprep.subr.bf16.mxu1 %v5659_v37  ;;  %v409_v37 = vld [vmem:[#allocation8 + $0x4e8] sm:$0xff]  ;;  %v5489_v40 = vpack.c.bf16 %v400_v32, %v396_v31  ;;  %v5681_v41 = vpack.c.bf16 %v402_v35, %v398_v33  ;;  %v427_v63 = vld [vmem:[#allocation8 + $0x578] sm:$0xff]  ;;  %v426_v7 = vld [vmem:[#allocation8 + $0x570] sm:$0xff] }
 0x143   :  { %v5491_v42 = vpack.c.bf16 %v409_v37, %v405_v36  ;;  %v5691_v6 = vpack.c.bf16 %v427_v63, %v423_v62  ;;  %v429_v8 = vld [vmem:[#allocation8 + $0x588] sm:$0xff]  ;;  %v431_v10 = vld [vmem:[#allocation8 + $0x598] sm:$0xff]  ;;  %v428_v13 = vld [vmem:[#allocation8 + $0x580] sm:$0xff] }
 0x144   :  { %5470 = vmatpush1.bf16.msra.mxu0 %v5469_v43  ;;  %v404_v43 = vld [vmem:[#allocation8 + $0x4c0] sm:$0xff]  ;;  %v435_v11 = vld [vmem:[#allocation8 + $0x5b8] sm:$0xff]  ;;  %v437_v20 = vld [vmem:[#allocation8 + $0x5c8] sm:$0xff] }
 0x145   :  { %5662 = vmatpush1.bf16.msra.mxu1 %v5661_v44  ;;  %5472 = vmatprep.subr.bf16.mxu0 %v5471_v45  ;;  %v408_v44 = vld [vmem:[#allocation8 + $0x4e0] sm:$0xff]  ;;  %v406_v45 = vld [vmem:[#allocation8 + $0x4d0] sm:$0xff]  ;;  %v5695_v19 = vpack.c.bf16 %v435_v11, %v431_v10  ;;  %v441_v21 = vld [vmem:[#allocation8 + $0x5e8] sm:$0xff] }
 0x146   :  { %5664 = vmatprep.subr.bf16.mxu1 %v5663_v49  ;;  %v417_v49 = vld [vmem:[#allocation8 + $0x528] sm:$0xff]  ;;  %v5493_v52 = vpack.c.bf16 %v408_v44, %v404_v43  ;;  %v5685_v53 = vpack.c.bf16 %v410_v47, %v406_v45  ;;  %v439_v23 = vld [vmem:[#allocation8 + $0x5d8] sm:$0xff]  ;;  %v5507_v27 = vpack.c.bf16 %v441_v21, %v437_v20  ;;  %v442_v32 = vld [vmem:[#allocation8 + $0x5f0] sm:$0xff] }
 0x147   :  { %v5495_v54 = vpack.c.bf16 %v417_v49, %v413_v48  ;;  %v443_v24 = vld [vmem:[#allocation8 + $0x5f8] sm:$0xff]  ;;  %v445_v33 = vld [vmem:[#allocation8 + $0x608] sm:$0xff]  ;;  %v450_v44 = vld [vmem:[#allocation8 + $0x630] sm:$0xff] }
 0x148   :  { %5474 = vmatpush1.bf16.msra.mxu0 %v5473_v55  ;;  %v412_v55 = vld [vmem:[#allocation8 + $0x500] sm:$0xff]  ;;  %v5699_v31 = vpack.c.bf16 %v443_v24, %v439_v23  ;;  %v447_v35 = vld [vmem:[#allocation8 + $0x618] sm:$0xff]  ;;  %v453_v45 = vld [vmem:[#allocation8 + $0x648] sm:$0xff] }
 0x149   :  { %5666 = vmatpush1.bf16.msra.mxu1 %v5665_v56  ;;  %5476 = vmatprep.subr.bf16.mxu0 %v5475_v57  ;;  %v416_v56 = vld [vmem:[#allocation8 + $0x520] sm:$0xff]  ;;  %v414_v57 = vld [vmem:[#allocation8 + $0x510] sm:$0xff]  ;;  %v451_v36 = vld [vmem:[#allocation8 + $0x638] sm:$0xff] }
 0x14a   :  { %5668 = vmatprep.subr.bf16.mxu1 %v5667_v61  ;;  %v425_v61 = vld [vmem:[#allocation8 + $0x568] sm:$0xff]  ;;  %v5497_v0 = vpack.c.bf16 %v416_v56, %v412_v55  ;;  %v5689_v1 = vpack.c.bf16 %v418_v59, %v414_v57  ;;  %v5703_v43 = vpack.c.bf16 %v451_v36, %v447_v35  ;;  %v455_v47 = vld [vmem:[#allocation8 + $0x658] sm:$0xff]  ;;  %v458_v56 = vld [vmem:[#allocation8 + $0x670] sm:$0xff] }
 0x14b   :  { %v5499_v2 = vpack.c.bf16 %v425_v61, %v421_v60  ;;  %v459_v48 = vld [vmem:[#allocation8 + $0x678] sm:$0xff]  ;;  %v461_v57 = vld [vmem:[#allocation8 + $0x688] sm:$0xff]  ;;  %v476_v24 = vld [vmem:[#allocation8 + $0x700] sm:$0xff] }
 0x14c   :  { %5478 = vmatpush1.bf16.msra.mxu0 %v5477_v3  ;;  %v420_v3 = vld [vmem:[#allocation8 + $0x540] sm:$0xff]  ;;  %v5707_v55 = vpack.c.bf16 %v459_v48, %v455_v47  ;;  %v463_v59 = vld [vmem:[#allocation8 + $0x698] sm:$0xff] }
 0x14d   :  { %5670 = vmatpush1.bf16.msra.mxu1 %v5669_v4  ;;  %5480 = vmatprep.subr.bf16.mxu0 %v5479_v5  ;;  %v424_v4 = vld [vmem:[#allocation8 + $0x560] sm:$0xff]  ;;  %v422_v5 = vld [vmem:[#allocation8 + $0x550] sm:$0xff]  ;;  %v467_v60 = vld [vmem:[#allocation8 + $0x6b8] sm:$0xff] }
 0x14e   :  { %5672 = vmatprep.subr.bf16.mxu1 %v5671_v9  ;;  %v433_v9 = vld [vmem:[#allocation8 + $0x5a8] sm:$0xff]  ;;  %v5501_v12 = vpack.c.bf16 %v424_v4, %v420_v3  ;;  %v5693_v14 = vpack.c.bf16 %v426_v7, %v422_v5  ;;  %v5711_v3 = vpack.c.bf16 %v467_v60, %v463_v59  ;;  %v466_v4 = vld [vmem:[#allocation8 + $0x6b0] sm:$0xff]  ;;  %v471_v7 = vld [vmem:[#allocation8 + $0x6d8] sm:$0xff] }
 0x14f   :  { %723 = vmatmul.mubr.f32.vlgmr.msra.gmra.mrb[0].mxu0 %v246_v15  ;;  %v469_v5 = vld [vmem:[#allocation8 + $0x6c8] sm:$0xff]  ;;  %v483_v20 = vld [vmem:[#allocation8 + $0x738] sm:$0xff]  ;;  %v484_v36 = vld [vmem:[#allocation8 + $0x740] sm:$0xff] }
 0x150   :  { %5482 = vmatpush1.bf16.msra.mxu0 %v5481_v16  ;;  %936 = vmatmul.mubr.f32.vlgmr.msra.gmra.mrb[0].mxu1 %v246_v15  ;;  %v5503_v15 = vpack.c.bf16 %v433_v9, %v429_v8  ;;  %v432_v16 = vld [vmem:[#allocation8 + $0x5a0] sm:$0xff]  ;;  %v475_v8 = vld [vmem:[#allocation8 + $0x6f8] sm:$0xff] }
 0x151   :  { %5674 = vmatpush1.bf16.msra.mxu1 %v5673_v17  ;;  %5484 = vmatprep.subr.bf16.mxu0 %v5483_v18  ;;  %v430_v17 = vld [vmem:[#allocation8 + $0x590] sm:$0xff]  ;;  %v5505_v25 = vpack.c.bf16 %v432_v16, %v428_v13  ;;  %v472_v13 = vld [vmem:[#allocation8 + $0x6e0] sm:$0xff] }
 0x152   :  { %5676 = vmatprep.subr.bf16.mxu1 %v5675_v22  ;;  %v434_v18 = vld [vmem:[#allocation8 + $0x5b0] sm:$0xff]  ;;  %v249_v22 = vld [vmem:[#allocation2 + $0x18] sm:$0xff] }
 0x153   :  { %793 = vmatprep.mubr.f32.mxu0 %v249_v22  ;;  %1006 = vmatprep.mubr.f32.mxu1 %v249_v22  ;;  %v5697_v26 = vpack.c.bf16 %v434_v18, %v430_v17  ;;  %v474_v16 = vld [vmem:[#allocation8 + $0x6f0] sm:$0xff]  ;;  %v477_v17 = vld [vmem:[#allocation8 + $0x708] sm:$0xff]  ;;  %v492_v48 = vld [vmem:[#allocation8 + $0x780] sm:$0xff] }
 0x154   :  { %5486 = vmatpush1.bf16.msra.mxu0 %v5485_v28  ;;  %v436_v28 = vld [vmem:[#allocation8 + $0x5c0] sm:$0xff]  ;;  %v481_v18 = vld [vmem:[#allocation8 + $0x728] sm:$0xff] }
 0x155   :  { %5678 = vmatpush1.bf16.msra.mxu1 %v5677_v29  ;;  %5488 = vmatprep.subr.bf16.mxu0 %v5487_v30  ;;  %v440_v29 = vld [vmem:[#allocation8 + $0x5e0] sm:$0xff]  ;;  %v438_v30 = vld [vmem:[#allocation8 + $0x5d0] sm:$0xff]  ;;  %v5527_v23 = vpack.c.bf16 %v481_v18, %v477_v17  ;;  %v248_v17 = vld [vmem:[#allocation2 + $0x10] sm:$0xff] }
 0x156   :  { %5680 = vmatprep.subr.bf16.mxu1 %v5679_v34  ;;  %v449_v34 = vld [vmem:[#allocation8 + $0x628] sm:$0xff]  ;;  %v5509_v37 = vpack.c.bf16 %v440_v29, %v436_v28  ;;  %v5701_v38 = vpack.c.bf16 %v442_v32, %v438_v30  ;;  %v482_v28 = vld [vmem:[#allocation8 + $0x730] sm:$0xff]  ;;  %v491_v32 = vld [vmem:[#allocation8 + $0x778] sm:$0xff] }
 0x157   :  { %v5511_v39 = vpack.c.bf16 %v449_v34, %v445_v33  ;;  %v485_v29 = vld [vmem:[#allocation8 + $0x748] sm:$0xff]  ;;  %v500_v60 = vld [vmem:[#allocation8 + $0x7c0] sm:$0xff] }
 0x158   :  { %5490 = vmatpush1.bf16.msra.mxu0 %v5489_v40  ;;  %v444_v40 = vld [vmem:[#allocation8 + $0x600] sm:$0xff]  ;;  %v489_v30 = vld [vmem:[#allocation8 + $0x768] sm:$0xff] }
 0x159   :  { %5682 = vmatpush1.bf16.msra.mxu1 %v5681_v41  ;;  %5492 = vmatprep.subr.bf16.mxu0 %v5491_v42  ;;  %v448_v41 = vld [vmem:[#allocation8 + $0x620] sm:$0xff]  ;;  %v446_v42 = vld [vmem:[#allocation8 + $0x610] sm:$0xff]  ;;  %v5531_v35 = vpack.c.bf16 %v489_v30, %v485_v29  ;;  %v531_v29 = vld [vmem:[#allocation8 + $0x8b8] sm:$0xff] }
 0x15a   :  { %5684 = vmatprep.subr.bf16.mxu1 %v5683_v46  ;;  %v457_v46 = vld [vmem:[#allocation8 + $0x668] sm:$0xff]  ;;  %v5513_v49 = vpack.c.bf16 %v448_v41, %v444_v40  ;;  %v5705_v50 = vpack.c.bf16 %v450_v44, %v446_v42  ;;  %v490_v40 = vld [vmem:[#allocation8 + $0x770] sm:$0xff]  ;;  %v499_v44 = vld [vmem:[#allocation8 + $0x7b8] sm:$0xff] }
 0x15b   :  { %v5515_v51 = vpack.c.bf16 %v457_v46, %v453_v45  ;;  %v493_v41 = vld [vmem:[#allocation8 + $0x788] sm:$0xff]  ;;  %v251_v30 = vld [vmem:[#allocation2 + $0x28] sm:$0xff] }
 0x15c   :  { %5494 = vmatpush1.bf16.msra.mxu0 %v5493_v52  ;;  %v452_v52 = vld [vmem:[#allocation8 + $0x640] sm:$0xff]  ;;  %v497_v42 = vld [vmem:[#allocation8 + $0x7a8] sm:$0xff] }
 0x15d   :  { %5686 = vmatpush1.bf16.msra.mxu1 %v5685_v53  ;;  %5496 = vmatprep.subr.bf16.mxu0 %v5495_v54  ;;  %v456_v53 = vld [vmem:[#allocation8 + $0x660] sm:$0xff]  ;;  %v454_v54 = vld [vmem:[#allocation8 + $0x650] sm:$0xff]  ;;  %v5535_v47 = vpack.c.bf16 %v497_v42, %v493_v41  ;;  %v535_v41 = vld [vmem:[#allocation8 + $0x8d8] sm:$0xff] }
 0x15e   :  { %5688 = vmatprep.subr.bf16.mxu1 %v5687_v58  ;;  %v465_v58 = vld [vmem:[#allocation8 + $0x6a8] sm:$0xff]  ;;  %v5517_v61 = vpack.c.bf16 %v456_v53, %v452_v52  ;;  %v5709_v62 = vpack.c.bf16 %v458_v56, %v454_v54  ;;  %v498_v52 = vld [vmem:[#allocation8 + $0x7b0] sm:$0xff]  ;;  %v507_v56 = vld [vmem:[#allocation8 + $0x7f8] sm:$0xff] }
 0x15f   :  { %v5519_v63 = vpack.c.bf16 %v465_v58, %v461_v57  ;;  %v501_v53 = vld [vmem:[#allocation8 + $0x7c8] sm:$0xff]  ;;  %v539_v42 = vld [vmem:[#allocation8 + $0x8f8] sm:$0xff] }
 0x160   :  { %5498 = vmatpush1.bf16.msra.mxu0 %v5497_v0  ;;  %v460_v0 = vld [vmem:[#allocation8 + $0x680] sm:$0xff]  ;;  %v505_v54 = vld [vmem:[#allocation8 + $0x7e8] sm:$0xff] }
 0x161   :  { %5690 = vmatpush1.bf16.msra.mxu1 %v5689_v1  ;;  %5500 = vmatprep.subr.bf16.mxu0 %v5499_v2  ;;  %v464_v1 = vld [vmem:[#allocation8 + $0x6a0] sm:$0xff]  ;;  %v462_v2 = vld [vmem:[#allocation8 + $0x690] sm:$0xff]  ;;  %v5539_v59 = vpack.c.bf16 %v505_v54, %v501_v53  ;;  %v543_v53 = vld [vmem:[#allocation8 + $0x918] sm:$0xff] }
 0x162   :  { %5692 = vmatprep.subr.bf16.mxu1 %v5691_v6  ;;  %v473_v6 = vld [vmem:[#allocation8 + $0x6e8] sm:$0xff]  ;;  %v5521_v9 = vpack.c.bf16 %v464_v1, %v460_v0  ;;  %v5713_v10 = vpack.c.bf16 %v466_v4, %v462_v2  ;;  %v506_v0 = vld [vmem:[#allocation8 + $0x7f0] sm:$0xff]  ;;  %v515_v4 = vld [vmem:[#allocation8 + $0x838] sm:$0xff] }
 0x163   :  { %v5523_v11 = vpack.c.bf16 %v473_v6, %v469_v5  ;;  %v509_v1 = vld [vmem:[#allocation8 + $0x808] sm:$0xff]  ;;  %v547_v54 = vld [vmem:[#allocation8 + $0x938] sm:$0xff] }
 0x164   :  { %5502 = vmatpush1.bf16.msra.mxu0 %v5501_v12  ;;  %v468_v12 = vld [vmem:[#allocation8 + $0x6c0] sm:$0xff]  ;;  %v513_v2 = vld [vmem:[#allocation8 + $0x828] sm:$0xff] }
 0x165   :  { %5694 = vmatpush1.bf16.msra.mxu1 %v5693_v14  ;;  %5504 = vmatprep.subr.bf16.mxu0 %v5503_v15  ;;  %v470_v14 = vld [vmem:[#allocation8 + $0x6d0] sm:$0xff]  ;;  %v5715_v15 = vpack.c.bf16 %v475_v8, %v471_v7  ;;  %v5525_v21 = vpack.c.bf16 %v472_v13, %v468_v12  ;;  %v5543_v7 = vpack.c.bf16 %v513_v2, %v509_v1  ;;  %v508_v8 = vld [vmem:[#allocation8 + $0x800] sm:$0xff]  ;;  %v517_v13 = vld [vmem:[#allocation8 + $0x848] sm:$0xff] }
 0x166   :  { %5696 = vmatprep.subr.bf16.mxu1 %v5695_v19  ;;  %v479_v19 = vld [vmem:[#allocation8 + $0x718] sm:$0xff]  ;;  %v5717_v22 = vpack.c.bf16 %v474_v16, %v470_v14  ;;  %v514_v12 = vld [vmem:[#allocation8 + $0x830] sm:$0xff]  ;;  %v521_v14 = vld [vmem:[#allocation8 + $0x868] sm:$0xff] }
 0x167   :  { %v523_v16 = vld [vmem:[#allocation8 + $0x878] sm:$0xff] }
 0x168   :  { %5506 = vmatpush1.bf16.msra.mxu0 %v5505_v25  ;;  %v480_v25 = vld [vmem:[#allocation8 + $0x720] sm:$0xff]  ;;  %v551_v1 = vld [vmem:[#allocation8 + $0x958] sm:$0xff] }
 0x169   :  { %5698 = vmatpush1.bf16.msra.mxu1 %v5697_v26  ;;  %5508 = vmatprep.subr.bf16.mxu0 %v5507_v27  ;;  %v478_v26 = vld [vmem:[#allocation8 + $0x710] sm:$0xff]  ;;  %v5719_v27 = vpack.c.bf16 %v483_v20, %v479_v19  ;;  %v5529_v33 = vpack.c.bf16 %v480_v25, %v476_v24  ;;  %v5547_v20 = vpack.c.bf16 %v521_v14, %v517_v13  ;;  %v555_v2 = vld [vmem:[#allocation8 + $0x978] sm:$0xff] }
 0x16a   :  { %5700 = vmatprep.subr.bf16.mxu1 %v5699_v31  ;;  %v487_v31 = vld [vmem:[#allocation8 + $0x758] sm:$0xff]  ;;  %v5721_v34 = vpack.c.bf16 %v482_v28, %v478_v26  ;;  %v522_v25 = vld [vmem:[#allocation8 + $0x870] sm:$0xff]  ;;  %v525_v26 = vld [vmem:[#allocation8 + $0x888] sm:$0xff] }
 0x16b   :  { %v527_v28 = vld [vmem:[#allocation8 + $0x898] sm:$0xff] }
 0x16c   :  { %5510 = vmatpush1.bf16.msra.mxu0 %v5509_v37  ;;  %v488_v37 = vld [vmem:[#allocation8 + $0x760] sm:$0xff]  ;;  %v559_v13 = vld [vmem:[#allocation8 + $0x998] sm:$0xff] }
 0x16d   :  { %5702 = vmatpush1.bf16.msra.mxu1 %v5701_v38  ;;  %5512 = vmatprep.subr.bf16.mxu0 %v5511_v39  ;;  %v486_v38 = vld [vmem:[#allocation8 + $0x750] sm:$0xff]  ;;  %v5723_v39 = vpack.c.bf16 %v491_v32, %v487_v31  ;;  %v5533_v45 = vpack.c.bf16 %v488_v37, %v484_v36  ;;  %v5743_v37 = vpack.c.bf16 %v531_v29, %v527_v28  ;;  %v563_v14 = vld [vmem:[#allocation8 + $0x9b8] sm:$0xff] }
 0x16e   :  { %5704 = vmatprep.subr.bf16.mxu1 %v5703_v43  ;;  %v495_v43 = vld [vmem:[#allocation8 + $0x798] sm:$0xff]  ;;  %v5725_v46 = vpack.c.bf16 %v490_v40, %v486_v38  ;;  %v526_v36 = vld [vmem:[#allocation8 + $0x890] sm:$0xff]  ;;  %v537_v40 = vld [vmem:[#allocation8 + $0x8e8] sm:$0xff] }
 0x16f   :  { %v530_v38 = vld [vmem:[#allocation8 + $0x8b0] sm:$0xff] }
 0x170   :  { %5514 = vmatpush1.bf16.msra.mxu0 %v5513_v49  ;;  %v496_v49 = vld [vmem:[#allocation8 + $0x7a0] sm:$0xff] }
 0x171   :  { %5706 = vmatpush1.bf16.msra.mxu1 %v5705_v50  ;;  %5516 = vmatprep.subr.bf16.mxu0 %v5515_v51  ;;  %v494_v50 = vld [vmem:[#allocation8 + $0x790] sm:$0xff]  ;;  %v5727_v51 = vpack.c.bf16 %v499_v44, %v495_v43  ;;  %v5537_v57 = vpack.c.bf16 %v496_v49, %v492_v48  ;;  %v5745_v44 = vpack.c.bf16 %v530_v38, %v526_v36  ;;  %v577_v36 = vld [vmem:[#allocation8 + $0xa28] sm:$0xff]  ;;  %v579_v38 = vld [vmem:[#allocation8 + $0xa38] sm:$0xff] }
 0x172   :  { %5708 = vmatprep.subr.bf16.mxu1 %v5707_v55  ;;  %v503_v55 = vld [vmem:[#allocation8 + $0x7d8] sm:$0xff]  ;;  %v5729_v58 = vpack.c.bf16 %v498_v52, %v494_v50  ;;  %v534_v48 = vld [vmem:[#allocation8 + $0x8d0] sm:$0xff]  ;;  %v5747_v49 = vpack.c.bf16 %v539_v42, %v535_v41  ;;  %v545_v52 = vld [vmem:[#allocation8 + $0x928] sm:$0xff] }
 0x173   :  { %v538_v50 = vld [vmem:[#allocation8 + $0x8f0] sm:$0xff]  ;;  %v572_v42 = vld [vmem:[#allocation8 + $0xa00] sm:$0xff] }
 0x174   :  { %5518 = vmatpush1.bf16.msra.mxu0 %v5517_v61  ;;  %v504_v61 = vld [vmem:[#allocation8 + $0x7e0] sm:$0xff] }
 0x175   :  { %5710 = vmatpush1.bf16.msra.mxu1 %v5709_v62  ;;  %5520 = vmatprep.subr.bf16.mxu0 %v5519_v63  ;;  %v502_v62 = vld [vmem:[#allocation8 + $0x7d0] sm:$0xff]  ;;  %v5731_v63 = vpack.c.bf16 %v507_v56, %v503_v55  ;;  %v5541_v5 = vpack.c.bf16 %v504_v61, %v500_v60  ;;  %v5749_v56 = vpack.c.bf16 %v538_v50, %v534_v48  ;;  %v585_v48 = vld [vmem:[#allocation8 + $0xa68] sm:$0xff]  ;;  %v587_v50 = vld [vmem:[#allocation8 + $0xa78] sm:$0xff] }
 0x176   :  { %5712 = vmatprep.subr.bf16.mxu1 %v5711_v3  ;;  %v511_v3 = vld [vmem:[#allocation8 + $0x818] sm:$0xff]  ;;  %v5733_v6 = vpack.c.bf16 %v506_v0, %v502_v62  ;;  %v542_v60 = vld [vmem:[#allocation8 + $0x910] sm:$0xff]  ;;  %v5751_v61 = vpack.c.bf16 %v547_v54, %v543_v53  ;;  %v553_v0 = vld [vmem:[#allocation8 + $0x968] sm:$0xff] }
 0x177   :  { %v546_v62 = vld [vmem:[#allocation8 + $0x930] sm:$0xff]  ;;  %v580_v54 = vld [vmem:[#allocation8 + $0xa40] sm:$0xff] }
 0x178   :  { %5522 = vmatpush1.bf16.msra.mxu0 %v5521_v9  ;;  %v512_v9 = vld [vmem:[#allocation8 + $0x820] sm:$0xff] }
 0x179   :  { %5714 = vmatpush1.bf16.msra.mxu1 %v5713_v10  ;;  %5524 = vmatprep.subr.bf16.mxu0 %v5523_v11  ;;  %v510_v10 = vld [vmem:[#allocation8 + $0x810] sm:$0xff]  ;;  %v5735_v11 = vpack.c.bf16 %v515_v4, %v511_v3  ;;  %v5545_v18 = vpack.c.bf16 %v512_v9, %v508_v8  ;;  %v5753_v4 = vpack.c.bf16 %v546_v62, %v542_v60  ;;  %v593_v60 = vld [vmem:[#allocation8 + $0xaa8] sm:$0xff]  ;;  %v595_v62 = vld [vmem:[#allocation8 + $0xab8] sm:$0xff] }
 0x17a   :  { %5716 = vmatprep.subr.bf16.mxu1 %v5715_v15  ;;  %v519_v15 = vld [vmem:[#allocation8 + $0x858] sm:$0xff]  ;;  %v5737_v19 = vpack.c.bf16 %v514_v12, %v510_v10  ;;  %v550_v8 = vld [vmem:[#allocation8 + $0x950] sm:$0xff]  ;;  %v5755_v9 = vpack.c.bf16 %v555_v2, %v551_v1  ;;  %v561_v12 = vld [vmem:[#allocation8 + $0x9a8] sm:$0xff] }
 0x17b   :  { %v5739_v24 = vpack.c.bf16 %v523_v16, %v519_v15  ;;  %v554_v10 = vld [vmem:[#allocation8 + $0x970] sm:$0xff]  ;;  %v588_v2 = vld [vmem:[#allocation8 + $0xa80] sm:$0xff] }
 0x17c   :  { %5526 = vmatpush1.bf16.msra.mxu0 %v5525_v21  ;;  %v516_v21 = vld [vmem:[#allocation8 + $0x840] sm:$0xff]  ;;  %v5757_v16 = vpack.c.bf16 %v554_v10, %v550_v8  ;;  %v601_v8 = vld [vmem:[#allocation8 + $0xae8] sm:$0xff]  ;;  %v603_v10 = vld [vmem:[#allocation8 + $0xaf8] sm:$0xff] }
 0x17d   :  { %5718 = vmatpush1.bf16.msra.mxu1 %v5717_v22  ;;  %5528 = vmatprep.subr.bf16.mxu0 %v5527_v23  ;;  %v520_v22 = vld [vmem:[#allocation8 + $0x860] sm:$0xff]  ;;  %v518_v23 = vld [vmem:[#allocation8 + $0x850] sm:$0xff] }
 0x17e   :  { %5720 = vmatprep.subr.bf16.mxu1 %v5719_v27  ;;  %v529_v27 = vld [vmem:[#allocation8 + $0x8a8] sm:$0xff]  ;;  %v5549_v31 = vpack.c.bf16 %v520_v22, %v516_v21  ;;  %v5741_v32 = vpack.c.bf16 %v522_v25, %v518_v23  ;;  %v5759_v21 = vpack.c.bf16 %v563_v14, %v559_v13  ;;  %v562_v22 = vld [vmem:[#allocation8 + $0x9b0] sm:$0xff]  ;;  %v567_v25 = vld [vmem:[#allocation8 + $0x9d8] sm:$0xff] }
 0x17f   :  { %v565_v23 = vld [vmem:[#allocation8 + $0x9c8] sm:$0xff]  ;;  %v596_v14 = vld [vmem:[#allocation8 + $0xac0] sm:$0xff] }
 0x180   :  { %5530 = vmatpush1.bf16.msra.mxu0 %v5529_v33  ;;  %v5551_v33 = vpack.c.bf16 %v529_v27, %v525_v26  ;;  %v571_v26 = vld [vmem:[#allocation8 + $0x9f8] sm:$0xff] }
 0x181   :  { %5722 = vmatpush1.bf16.msra.mxu1 %v5721_v34  ;;  %5532 = vmatprep.subr.bf16.mxu0 %v5531_v35  ;;  %v524_v34 = vld [vmem:[#allocation8 + $0x880] sm:$0xff] }
 0x182   :  { %5724 = vmatprep.subr.bf16.mxu1 %v5723_v39  ;;  %v528_v35 = vld [vmem:[#allocation8 + $0x8a0] sm:$0xff]  ;;  %v533_v39 = vld [vmem:[#allocation8 + $0x8c8] sm:$0xff] }
 0x183   :  { %v5553_v43 = vpack.c.bf16 %v528_v35, %v524_v34  ;;  %v570_v34 = vld [vmem:[#allocation8 + $0x9f0] sm:$0xff]  ;;  %v573_v35 = vld [vmem:[#allocation8 + $0xa08] sm:$0xff] }
 0x184   :  { %5534 = vmatpush1.bf16.msra.mxu0 %v5533_v45  ;;  %v5555_v45 = vpack.c.bf16 %v537_v40, %v533_v39  ;;  %v5575_v41 = vpack.c.bf16 %v577_v36, %v573_v35 }
 0x185   :  { %5726 = vmatpush1.bf16.msra.mxu1 %v5725_v46  ;;  %5536 = vmatprep.subr.bf16.mxu0 %v5535_v47  ;;  %v532_v46 = vld [vmem:[#allocation8 + $0x8c0] sm:$0xff] }
 0x186   :  { %5728 = vmatprep.subr.bf16.mxu1 %v5727_v51  ;;  %v536_v47 = vld [vmem:[#allocation8 + $0x8e0] sm:$0xff]  ;;  %v541_v51 = vld [vmem:[#allocation8 + $0x908] sm:$0xff] }
 0x187   :  { %v5557_v55 = vpack.c.bf16 %v536_v47, %v532_v46  ;;  %v578_v46 = vld [vmem:[#allocation8 + $0xa30] sm:$0xff]  ;;  %v581_v47 = vld [vmem:[#allocation8 + $0xa48] sm:$0xff] }
 0x188   :  { %5538 = vmatpush1.bf16.msra.mxu0 %v5537_v57  ;;  %v5559_v57 = vpack.c.bf16 %v545_v52, %v541_v51  ;;  %v5579_v53 = vpack.c.bf16 %v585_v48, %v581_v47 }
 0x189   :  { %5730 = vmatpush1.bf16.msra.mxu1 %v5729_v58  ;;  %5540 = vmatprep.subr.bf16.mxu0 %v5539_v59  ;;  %v540_v58 = vld [vmem:[#allocation8 + $0x900] sm:$0xff] }
 0x18a   :  { %5732 = vmatprep.subr.bf16.mxu1 %v5731_v63  ;;  %v544_v59 = vld [vmem:[#allocation8 + $0x920] sm:$0xff]  ;;  %v549_v63 = vld [vmem:[#allocation8 + $0x948] sm:$0xff] }
 0x18b   :  { %v5561_v3 = vpack.c.bf16 %v544_v59, %v540_v58  ;;  %v586_v58 = vld [vmem:[#allocation8 + $0xa70] sm:$0xff]  ;;  %v589_v59 = vld [vmem:[#allocation8 + $0xa88] sm:$0xff] }
 0x18c   :  { %5542 = vmatpush1.bf16.msra.mxu0 %v5541_v5  ;;  %v5563_v5 = vpack.c.bf16 %v553_v0, %v549_v63  ;;  %v5583_v1 = vpack.c.bf16 %v593_v60, %v589_v59 }
 0x18d   :  { %5734 = vmatpush1.bf16.msra.mxu1 %v5733_v6  ;;  %5544 = vmatprep.subr.bf16.mxu0 %v5543_v7  ;;  %v548_v6 = vld [vmem:[#allocation8 + $0x940] sm:$0xff] }
 0x18e   :  { %5736 = vmatprep.subr.bf16.mxu1 %v5735_v11  ;;  %v552_v7 = vld [vmem:[#allocation8 + $0x960] sm:$0xff]  ;;  %v557_v11 = vld [vmem:[#allocation8 + $0x988] sm:$0xff] }
 0x18f   :  { %794 = vmatmul.mubr.f32.vlgmr.msra.gmra.mrb[0].mxu0 %v248_v17  ;;  %v5565_v15 = vpack.c.bf16 %v552_v7, %v548_v6  ;;  %v594_v6 = vld [vmem:[#allocation8 + $0xab0] sm:$0xff]  ;;  %v597_v7 = vld [vmem:[#allocation8 + $0xac8] sm:$0xff] }
 0x190   :  { %5546 = vmatpush1.bf16.msra.mxu0 %v5545_v18  ;;  %1007 = vmatmul.mubr.f32.vlgmr.msra.gmra.mrb[0].mxu1 %v248_v17  ;;  %v5567_v17 = vpack.c.bf16 %v561_v12, %v557_v11  ;;  %v556_v18 = vld [vmem:[#allocation8 + $0x980] sm:$0xff]  ;;  %v5587_v13 = vpack.c.bf16 %v601_v8, %v597_v7 }
 0x191   :  { %5738 = vmatpush1.bf16.msra.mxu1 %v5737_v19  ;;  %5548 = vmatprep.subr.bf16.mxu0 %v5547_v20  ;;  %v560_v19 = vld [vmem:[#allocation8 + $0x9a0] sm:$0xff]  ;;  %v558_v20 = vld [vmem:[#allocation8 + $0x990] sm:$0xff] }
 0x192   :  { %5740 = vmatprep.subr.bf16.mxu1 %v5739_v24  ;;  %864 = vmatprep.mubr.f32.mxu0 %v251_v30  ;;  %v569_v24 = vld [vmem:[#allocation8 + $0x9e8] sm:$0xff]  ;;  %v5569_v27 = vpack.c.bf16 %v560_v19, %v556_v18  ;;  %v5761_v28 = vpack.c.bf16 %v562_v22, %v558_v20  ;;  %v602_v18 = vld [vmem:[#allocation8 + $0xaf0] sm:$0xff]  ;;  %v611_v22 = vld [vmem:[#allocation8 + $0xb38] sm:$0xff] }
 0x193   :  { %1077 = vmatprep.mubr.f32.mxu1 %v251_v30  ;;  %v5571_v29 = vpack.c.bf16 %v569_v24, %v565_v23  ;;  %v564_v30 = vld [vmem:[#allocation8 + $0x9c0] sm:$0xff]  ;;  %v605_v19 = vld [vmem:[#allocation8 + $0xb08] sm:$0xff] }
 0x194   :  { %5550 = vmatpush1.bf16.msra.mxu0 %v5549_v31  ;;  %v568_v31 = vld [vmem:[#allocation8 + $0x9e0] sm:$0xff]  ;;  %v609_v20 = vld [vmem:[#allocation8 + $0xb28] sm:$0xff] }
 0x195   :  { %5742 = vmatpush1.bf16.msra.mxu1 %v5741_v32  ;;  %5552 = vmatprep.subr.bf16.mxu0 %v5551_v33  ;;  %v566_v32 = vld [vmem:[#allocation8 + $0x9d0] sm:$0xff]  ;;  %v5763_v33 = vpack.c.bf16 %v571_v26, %v567_v25  ;;  %v5573_v39 = vpack.c.bf16 %v568_v31, %v564_v30  ;;  %v5591_v25 = vpack.c.bf16 %v609_v20, %v605_v19  ;;  %v604_v26 = vld [vmem:[#allocation8 + $0xb00] sm:$0xff]  ;;  %v613_v31 = vld [vmem:[#allocation8 + $0xb48] sm:$0xff] }
 0x196   :  { %5744 = vmatprep.subr.bf16.mxu1 %v5743_v37  ;;  %v575_v37 = vld [vmem:[#allocation8 + $0xa18] sm:$0xff]  ;;  %v5765_v40 = vpack.c.bf16 %v570_v34, %v566_v32  ;;  %v610_v30 = vld [vmem:[#allocation8 + $0xb30] sm:$0xff]  ;;  %v617_v32 = vld [vmem:[#allocation8 + $0xb68] sm:$0xff] }
 0x197   :  { %v619_v34 = vld [vmem:[#allocation8 + $0xb78] sm:$0xff]  ;;  %v1386_v8 = vld [vmem:[#allocation11] sm:$0xff]  ;;  %v1407_v19 = vld [vmem:[#allocation11 + $0xa8] sm:$0xff] }
 0x198   :  { %5554 = vmatpush1.bf16.msra.mxu0 %v5553_v43  ;;  %v576_v43 = vld [vmem:[#allocation8 + $0xa20] sm:$0xff] }
 0x199   :  { %5746 = vmatpush1.bf16.msra.mxu1 %v5745_v44  ;;  %5556 = vmatprep.subr.bf16.mxu0 %v5555_v45  ;;  %v574_v44 = vld [vmem:[#allocation8 + $0xa10] sm:$0xff]  ;;  %v5767_v45 = vpack.c.bf16 %v579_v38, %v575_v37  ;;  %v5577_v51 = vpack.c.bf16 %v576_v43, %v572_v42  ;;  %v5595_v37 = vpack.c.bf16 %v617_v32, %v613_v31  ;;  %v612_v38 = vld [vmem:[#allocation8 + $0xb40] sm:$0xff]  ;;  %v621_v43 = vld [vmem:[#allocation8 + $0xb88] sm:$0xff] }
 0x19a   :  { %5748 = vmatprep.subr.bf16.mxu1 %v5747_v49  ;;  %v583_v49 = vld [vmem:[#allocation8 + $0xa58] sm:$0xff]  ;;  %v5769_v52 = vpack.c.bf16 %v578_v46, %v574_v44  ;;  %v618_v42 = vld [vmem:[#allocation8 + $0xb70] sm:$0xff]  ;;  %v625_v44 = vld [vmem:[#allocation8 + $0xba8] sm:$0xff] }
 0x19b   :  { %v627_v46 = vld [vmem:[#allocation8 + $0xbb8] sm:$0xff]  ;;  %v1423_v31 = vld [vmem:[#allocation11 + $0x128] sm:$0xff] }
 0x19c   :  { %5558 = vmatpush1.bf16.msra.mxu0 %v5557_v55  ;;  %v584_v55 = vld [vmem:[#allocation8 + $0xa60] sm:$0xff] }
 0x19d   :  { %5750 = vmatpush1.bf16.msra.mxu1 %v5749_v56  ;;  %5560 = vmatprep.subr.bf16.mxu0 %v5559_v57  ;;  %v582_v56 = vld [vmem:[#allocation8 + $0xa50] sm:$0xff]  ;;  %v5771_v57 = vpack.c.bf16 %v587_v50, %v583_v49  ;;  %v5581_v63 = vpack.c.bf16 %v584_v55, %v580_v54  ;;  %v5599_v49 = vpack.c.bf16 %v625_v44, %v621_v43  ;;  %v620_v50 = vld [vmem:[#allocation8 + $0xb80] sm:$0xff]  ;;  %v629_v55 = vld [vmem:[#allocation8 + $0xbc8] sm:$0xff] }
 0x19e   :  { %5752 = vmatprep.subr.bf16.mxu1 %v5751_v61  ;;  %v591_v61 = vld [vmem:[#allocation8 + $0xa98] sm:$0xff]  ;;  %v5773_v0 = vpack.c.bf16 %v586_v58, %v582_v56  ;;  %v626_v54 = vld [vmem:[#allocation8 + $0xbb0] sm:$0xff]  ;;  %v633_v56 = vld [vmem:[#allocation8 + $0xbe8] sm:$0xff] }
 0x19f   :  { %v635_v58 = vld [vmem:[#allocation8 + $0xbf8] sm:$0xff]  ;;  %v1439_v43 = vld [vmem:[#allocation11 + $0x1a8] sm:$0xff] }
 0x1a0   :  { %5562 = vmatpush1.bf16.msra.mxu0 %v5561_v3  ;;  %v592_v3 = vld [vmem:[#allocation8 + $0xaa0] sm:$0xff] }
 0x1a1   :  { %5754 = vmatpush1.bf16.msra.mxu1 %v5753_v4  ;;  %5564 = vmatprep.subr.bf16.mxu0 %v5563_v5  ;;  %v590_v4 = vld [vmem:[#allocation8 + $0xa90] sm:$0xff]  ;;  %v5775_v5 = vpack.c.bf16 %v595_v62, %v591_v61  ;;  %v5585_v11 = vpack.c.bf16 %v592_v3, %v588_v2  ;;  %v5603_v61 = vpack.c.bf16 %v633_v56, %v629_v55  ;;  %v628_v62 = vld [vmem:[#allocation8 + $0xbc0] sm:$0xff]  ;;  %v1387_v3 = vld [vmem:[#allocation11 + $0x8] sm:$0xff] }
 0x1a2   :  { %5756 = vmatprep.subr.bf16.mxu1 %v5755_v9  ;;  %v599_v9 = vld [vmem:[#allocation8 + $0xad8] sm:$0xff]  ;;  %v5777_v12 = vpack.c.bf16 %v594_v6, %v590_v4  ;;  %v634_v2 = vld [vmem:[#allocation8 + $0xbf0] sm:$0xff]  ;;  %v1391_v4 = vld [vmem:[#allocation11 + $0x28] sm:$0xff] }
 0x1a3   :  { %v5927_v7 = vpack.c.bf16 %v1391_v4, %v1387_v3  ;;  %v1089_v55 = vld [vmem:[#allocation10 + $0x8] sm:$0xff]  ;;  %v1091_v56 = vld [vmem:[#allocation10 + $0x18] sm:$0xff] }
 0x1a4   :  { %5566 = vmatpush1.bf16.msra.mxu0 %v5565_v15  ;;  %v600_v15 = vld [vmem:[#allocation8 + $0xae0] sm:$0xff]  ;;  %v1093_v3 = vld [vmem:[#allocation10 + $0x28] sm:$0xff]  ;;  %v1095_v4 = vld [vmem:[#allocation10 + $0x38] sm:$0xff] }
 0x1a5   :  { %5758 = vmatpush1.bf16.msra.mxu1 %v5757_v16  ;;  %5568 = vmatprep.subr.bf16.mxu0 %v5567_v17  ;;  %v598_v16 = vld [vmem:[#allocation8 + $0xad0] sm:$0xff]  ;;  %v5779_v17 = vpack.c.bf16 %v603_v10, %v599_v9  ;;  %v5589_v23 = vpack.c.bf16 %v600_v15, %v596_v14  ;;  %v1390_v9 = vld [vmem:[#allocation11 + $0x20] sm:$0xff]  ;;  %v1395_v10 = vld [vmem:[#allocation11 + $0x48] sm:$0xff] }
 0x1a6   :  { %5760 = vmatprep.subr.bf16.mxu1 %v5759_v21  ;;  %v607_v21 = vld [vmem:[#allocation8 + $0xb18] sm:$0xff]  ;;  %v5781_v24 = vpack.c.bf16 %v602_v18, %v598_v16  ;;  %v1394_v15 = vld [vmem:[#allocation11 + $0x40] sm:$0xff]  ;;  %v1403_v18 = vld [vmem:[#allocation11 + $0x88] sm:$0xff] }
 0x1a7   :  { %v1398_v16 = vld [vmem:[#allocation11 + $0x60] sm:$0xff] }
 0x1a8   :  { %5570 = vmatpush1.bf16.msra.mxu0 %v5569_v27  ;;  %v608_v27 = vld [vmem:[#allocation8 + $0xb20] sm:$0xff]  ;;  %v5933_v20 = vpack.c.bf16 %v1398_v16, %v1394_v15  ;;  %v1097_v15 = vld [vmem:[#allocation10 + $0x48] sm:$0xff]  ;;  %v1099_v16 = vld [vmem:[#allocation10 + $0x58] sm:$0xff] }
 0x1a9   :  { %5762 = vmatpush1.bf16.msra.mxu1 %v5761_v28  ;;  %5572 = vmatprep.subr.bf16.mxu0 %v5571_v29  ;;  %v606_v28 = vld [vmem:[#allocation8 + $0xb10] sm:$0xff]  ;;  %v5783_v29 = vpack.c.bf16 %v611_v22, %v607_v21  ;;  %v5593_v35 = vpack.c.bf16 %v608_v27, %v604_v26  ;;  %v5935_v21 = vpack.c.bf16 %v1407_v19, %v1403_v18  ;;  %v1402_v22 = vld [vmem:[#allocation11 + $0x80] sm:$0xff] }
 0x1aa   :  { %5764 = vmatprep.subr.bf16.mxu1 %v5763_v33  ;;  %v615_v33 = vld [vmem:[#allocation8 + $0xb58] sm:$0xff]  ;;  %v5785_v36 = vpack.c.bf16 %v610_v30, %v606_v28  ;;  %v1410_v28 = vld [vmem:[#allocation11 + $0xc0] sm:$0xff]  ;;  %v1419_v30 = vld [vmem:[#allocation11 + $0x108] sm:$0xff]  ;;  %v5807_v18 = vpack.c.bf16 %v1099_v16, %v1097_v15 }
 0x1ab   :  { %v1096_v19 = vld [vmem:[#allocation10 + $0x40] sm:$0xff]  ;;  %v1118_v16 = vld [vmem:[#allocation10 + $0xf0] sm:$0xff] }
 0x1ac   :  { %5574 = vmatpush1.bf16.msra.mxu0 %v5573_v39  ;;  %v616_v39 = vld [vmem:[#allocation8 + $0xb60] sm:$0xff] }
 0x1ad   :  { %5766 = vmatpush1.bf16.msra.mxu1 %v5765_v40  ;;  %5576 = vmatprep.subr.bf16.mxu0 %v5575_v41  ;;  %v614_v40 = vld [vmem:[#allocation8 + $0xb50] sm:$0xff]  ;;  %v5787_v41 = vpack.c.bf16 %v619_v34, %v615_v33  ;;  %v5597_v47 = vpack.c.bf16 %v616_v39, %v612_v38  ;;  %v5943_v33 = vpack.c.bf16 %v1423_v31, %v1419_v30  ;;  %v1418_v34 = vld [vmem:[#allocation11 + $0x100] sm:$0xff] }
 0x1ae   :  { %5768 = vmatprep.subr.bf16.mxu1 %v5767_v45  ;;  %v623_v45 = vld [vmem:[#allocation8 + $0xb98] sm:$0xff]  ;;  %v5789_v48 = vpack.c.bf16 %v618_v42, %v614_v40  ;;  %v1426_v40 = vld [vmem:[#allocation11 + $0x140] sm:$0xff]  ;;  %v1435_v42 = vld [vmem:[#allocation11 + $0x188] sm:$0xff] }
 0x1af   :  { %v1100_v31 = vld [vmem:[#allocation10 + $0x60] sm:$0xff] }
 0x1b0   :  { %5578 = vmatpush1.bf16.msra.mxu0 %v5577_v51  ;;  %v624_v51 = vld [vmem:[#allocation8 + $0xba0] sm:$0xff] }
 0x1b1   :  { %5770 = vmatpush1.bf16.msra.mxu1 %v5769_v52  ;;  %5580 = vmatprep.subr.bf16.mxu0 %v5579_v53  ;;  %v622_v52 = vld [vmem:[#allocation8 + $0xb90] sm:$0xff]  ;;  %v5791_v53 = vpack.c.bf16 %v627_v46, %v623_v45  ;;  %v5601_v59 = vpack.c.bf16 %v624_v51, %v620_v50  ;;  %v5951_v45 = vpack.c.bf16 %v1439_v43, %v1435_v42  ;;  %v1434_v46 = vld [vmem:[#allocation11 + $0x180] sm:$0xff] }
 0x1b2   :  { %5772 = vmatprep.subr.bf16.mxu1 %v5771_v57  ;;  %v631_v57 = vld [vmem:[#allocation8 + $0xbd8] sm:$0xff]  ;;  %v5793_v60 = vpack.c.bf16 %v626_v54, %v622_v52  ;;  %v1442_v51 = vld [vmem:[#allocation11 + $0x1c0] sm:$0xff]  ;;  %v1451_v54 = vld [vmem:[#allocation11 + $0x208] sm:$0xff] }
 0x1b3   :  { %v1446_v52 = vld [vmem:[#allocation11 + $0x1e0] sm:$0xff] }
 0x1b4   :  { %5582 = vmatpush1.bf16.msra.mxu0 %v5581_v63  ;;  %v632_v63 = vld [vmem:[#allocation8 + $0xbe0] sm:$0xff] }
 0x1b5   :  { %5774 = vmatpush1.bf16.msra.mxu1 %v5773_v0  ;;  %5584 = vmatprep.subr.bf16.mxu0 %v5583_v1  ;;  %v5795_v0 = vpack.c.bf16 %v635_v58, %v631_v57  ;;  %v630_v1 = vld [vmem:[#allocation8 + $0xbd0] sm:$0xff]  ;;  %v1455_v57 = vld [vmem:[#allocation11 + $0x228] sm:$0xff]  ;;  %v5799_v58 = vpack.c.bf16 %v1091_v56, %v1089_v55  ;;  %v1104_v43 = vld [vmem:[#allocation10 + $0x80] sm:$0xff] }
 0x1b6   :  { %5776 = vmatprep.subr.bf16.mxu1 %v5775_v5  ;;  %v5605_v5 = vpack.c.bf16 %v632_v63, %v628_v62  ;;  %v5797_v6 = vpack.c.bf16 %v634_v2, %v630_v1  ;;  %v5957_v62 = vpack.c.bf16 %v1446_v52, %v1442_v51  ;;  %v1450_v63 = vld [vmem:[#allocation11 + $0x200] sm:$0xff]  ;;  %v5959_v1 = vpack.c.bf16 %v1455_v57, %v1451_v54  ;;  %v1459_v2 = vld [vmem:[#allocation11 + $0x248] sm:$0xff]  ;;  %v1111_v52 = vld [vmem:[#allocation10 + $0xb8] sm:$0xff] }
 0x1b7   :  { %v1109_v51 = vld [vmem:[#allocation10 + $0xa8] sm:$0xff]  ;;  %v1108_v55 = vld [vmem:[#allocation10 + $0xa0] sm:$0xff]  ;;  %v1110_v56 = vld [vmem:[#allocation10 + $0xb0] sm:$0xff] }
 0x1b8   :  { %5586 = vmatpush1.bf16.msra.mxu0 %v5585_v11  ;;  %v1399_v11 = vld [vmem:[#allocation11 + $0x68] sm:$0xff]  ;;  %v5819_v54 = vpack.c.bf16 %v1111_v52, %v1109_v51  ;;  %v5821_v57 = vpack.c.bf16 %v1110_v56, %v1108_v55  ;;  %v1116_v15 = vld [vmem:[#allocation10 + $0xe0] sm:$0xff] }
 0x1b9   :  { %5778 = vmatpush1.bf16.msra.mxu1 %v5777_v12  ;;  %5588 = vmatprep.subr.bf16.mxu0 %v5587_v13  ;;  %v250_v12 = vld [vmem:[#allocation2 + $0x20] sm:$0xff]  ;;  %v5929_v13 = vpack.c.bf16 %v1390_v9, %v1386_v8  ;;  %v5931_v14 = vpack.c.bf16 %v1399_v11, %v1395_v10  ;;  %v1094_v8 = vld [vmem:[#allocation10 + $0x30] sm:$0xff]  ;;  %v1458_v11 = vld [vmem:[#allocation11 + $0x240] sm:$0xff] }
 0x1ba   :  { %5780 = vmatprep.subr.bf16.mxu1 %v5779_v17  ;;  %v1371_v17 = vld [vmem:[#allocation5 + $0x8] sm:$0xff]  ;;  %v1535_v51 = vld [vmem:[#allocation11 + $0x4a8] sm:$0xff] }
 0x1bb   :  { %v1530_v56 = vld [vmem:[#allocation11 + $0x480] sm:$0xff] }
 0x1bc   :  { %5590 = vmatpush1.bf16.msra.mxu0 %v5589_v23  ;;  %v1406_v23 = vld [vmem:[#allocation11 + $0xa0] sm:$0xff] }
 0x1bd   :  { %5782 = vmatpush1.bf16.msra.mxu1 %v5781_v24  ;;  %5592 = vmatprep.subr.bf16.mxu0 %v5591_v25  ;;  %v1411_v24 = vld [vmem:[#allocation11 + $0xc8] sm:$0xff]  ;;  %v5937_v26 = vpack.c.bf16 %v1406_v23, %v1402_v22  ;;  %v1466_v23 = vld [vmem:[#allocation11 + $0x280] sm:$0xff] }
 0x1be   :  { %5784 = vmatprep.subr.bf16.mxu1 %v5783_v29  ;;  %v1415_v25 = vld [vmem:[#allocation11 + $0xe8] sm:$0xff]  ;;  %v1414_v29 = vld [vmem:[#allocation11 + $0xe0] sm:$0xff] }
 0x1bf   :  { %v5939_v27 = vpack.c.bf16 %v1415_v25, %v1411_v24  ;;  %v5941_v32 = vpack.c.bf16 %v1414_v29, %v1410_v28  ;;  %v1470_v24 = vld [vmem:[#allocation11 + $0x2a0] sm:$0xff]  ;;  %v1103_v28 = vld [vmem:[#allocation10 + $0x78] sm:$0xff]  ;;  %v1479_v29 = vld [vmem:[#allocation11 + $0x2e8] sm:$0xff] }
 0x1c0   :  { %5594 = vmatpush1.bf16.msra.mxu0 %v5593_v35  ;;  %v1422_v35 = vld [vmem:[#allocation11 + $0x120] sm:$0xff] }
 0x1c1   :  { %5786 = vmatpush1.bf16.msra.mxu1 %v5785_v36  ;;  %5596 = vmatprep.subr.bf16.mxu0 %v5595_v37  ;;  %v1427_v36 = vld [vmem:[#allocation11 + $0x148] sm:$0xff]  ;;  %v5945_v38 = vpack.c.bf16 %v1422_v35, %v1418_v34  ;;  %v5969_v34 = vpack.c.bf16 %v1470_v24, %v1466_v23  ;;  %v1474_v35 = vld [vmem:[#allocation11 + $0x2c0] sm:$0xff]  ;;  %v1123_v24 = vld [vmem:[#allocation10 + $0x118] sm:$0xff] }
 0x1c2   :  { %5788 = vmatprep.subr.bf16.mxu1 %v5787_v41  ;;  %v1431_v37 = vld [vmem:[#allocation11 + $0x168] sm:$0xff]  ;;  %v1430_v41 = vld [vmem:[#allocation11 + $0x160] sm:$0xff] }
 0x1c3   :  { %v5947_v39 = vpack.c.bf16 %v1431_v37, %v1427_v36  ;;  %v5949_v44 = vpack.c.bf16 %v1430_v41, %v1426_v40  ;;  %v1478_v36 = vld [vmem:[#allocation11 + $0x2e0] sm:$0xff]  ;;  %v1107_v40 = vld [vmem:[#allocation10 + $0x98] sm:$0xff]  ;;  %v1487_v41 = vld [vmem:[#allocation11 + $0x328] sm:$0xff] }
 0x1c4   :  { %5598 = vmatpush1.bf16.msra.mxu0 %v5597_v47  ;;  %v1438_v47 = vld [vmem:[#allocation11 + $0x1a0] sm:$0xff]  ;;  %v1121_v23 = vld [vmem:[#allocation10 + $0x108] sm:$0xff] }
 0x1c5   :  { %5790 = vmatpush1.bf16.msra.mxu1 %v5789_v48  ;;  %5600 = vmatprep.subr.bf16.mxu0 %v5599_v49  ;;  %v1443_v48 = vld [vmem:[#allocation11 + $0x1c8] sm:$0xff]  ;;  %v5953_v50 = vpack.c.bf16 %v1438_v47, %v1434_v46  ;;  %v5973_v46 = vpack.c.bf16 %v1478_v36, %v1474_v35  ;;  %v1482_v47 = vld [vmem:[#allocation11 + $0x300] sm:$0xff]  ;;  %v1127_v36 = vld [vmem:[#allocation10 + $0x138] sm:$0xff] }
 0x1c6   :  { %5792 = vmatprep.subr.bf16.mxu1 %v5791_v53  ;;  %v1447_v49 = vld [vmem:[#allocation11 + $0x1e8] sm:$0xff] }
 0x1c7   :  { %v5955_v53 = vpack.c.bf16 %v1447_v49, %v1443_v48  ;;  %v1486_v48 = vld [vmem:[#allocation11 + $0x320] sm:$0xff]  ;;  %v1125_v35 = vld [vmem:[#allocation10 + $0x128] sm:$0xff] }
 0x1c8   :  { %5602 = vmatpush1.bf16.msra.mxu0 %v5601_v59  ;;  %v1088_v59 = vld [vmem:[#allocation10] sm:$0xff] }
 0x1c9   :  { %5794 = vmatpush1.bf16.msra.mxu1 %v5793_v60  ;;  %5604 = vmatprep.subr.bf16.mxu0 %v5603_v61  ;;  %v1090_v60 = vld [vmem:[#allocation10 + $0x10] sm:$0xff] }
 0x1ca   :  { %5796 = vmatprep.subr.bf16.mxu1 %v5795_v0  ;;  %v5801_v61 = vpack.c.bf16 %v1090_v60, %v1088_v59  ;;  %v1454_v0 = vld [vmem:[#allocation11 + $0x220] sm:$0xff] }
 0x1cb   :  { %v5961_v10 = vpack.c.bf16 %v1454_v0, %v1450_v63  ;;  %v1490_v59 = vld [vmem:[#allocation11 + $0x340] sm:$0xff]  ;;  %v1113_v63 = vld [vmem:[#allocation10 + $0xc8] sm:$0xff]  ;;  %v1115_v0 = vld [vmem:[#allocation10 + $0xd8] sm:$0xff] }
 0x1cc   :  { %5606 = vmatpush1.bf16.msra.mxu0 %v5605_v5  ;;  %v1463_v5 = vld [vmem:[#allocation11 + $0x268] sm:$0xff]  ;;  %v1494_v60 = vld [vmem:[#allocation11 + $0x360] sm:$0xff] }
 0x1cd   :  { %5798 = vmatpush1.bf16.msra.mxu1 %v5797_v6  ;;  %5800 = vmatprep.subr.bf16.mxu0 %v5799_v58  ;;  %v5803_v6 = vpack.c.bf16 %v1095_v4, %v1093_v3  ;;  %v5977_v58 = vpack.c.bf16 %v1486_v48, %v1482_v47  ;;  %v1112_v3 = vld [vmem:[#allocation10 + $0xc0] sm:$0xff]  ;;  %v1114_v4 = vld [vmem:[#allocation10 + $0xd0] sm:$0xff]  ;;  %v1129_v48 = vld [vmem:[#allocation10 + $0x148] sm:$0xff] }
 0x1ce   :  { %5928 = vmatprep.subr.bf16.mxu1 %v5927_v7  ;;  %v1092_v7 = vld [vmem:[#allocation10 + $0x20] sm:$0xff]  ;;  %v1373_v47 = vld [vmem:[#allocation5 + $0x18] sm:$0xff] }
 0x1cf   :  { %865 = vmatmul.mubr.f32.vlgmr.msra.gmra.mrb[0].mxu0 %v250_v12  ;;  %v5805_v9 = vpack.c.bf16 %v1094_v8, %v1092_v7  ;;  %v1498_v7 = vld [vmem:[#allocation11 + $0x380] sm:$0xff] }
 0x1d0   :  { %1078 = vmatmul.mubr.f32.vlgmr.msra.gmra.mrb[0].mxu1 %v250_v12  ;;  %5802 = vmatpush1.bf16.msra.mxu0 %v5801_v61  ;;  %v1462_v12 = vld [vmem:[#allocation11 + $0x260] sm:$0xff] }
 0x1d1   :  { %5930 = vmatpush1.bf16.msra.mxu1 %v5929_v13  ;;  %2496 = vmatprep.mubr.f32.mxu1 %v1371_v17  ;;  %v5963_v13 = vpack.c.bf16 %v1463_v5, %v1459_v2  ;;  %v1471_v17 = vld [vmem:[#allocation11 + $0x2a8] sm:$0xff]  ;;  %v5965_v22 = vpack.c.bf16 %v1462_v12, %v1458_v11  ;;  %v5823_v2 = vpack.c.bf16 %v1115_v0, %v1113_v63  ;;  %v1502_v8 = vld [vmem:[#allocation11 + $0x3a0] sm:$0xff]  ;;  %v1119_v12 = vld [vmem:[#allocation10 + $0xf8] sm:$0xff] }
 0x1d2   :  { %5932 = vmatprep.subr.bf16.mxu1 %v5931_v14  ;;  %5804 = vmatprep.subr.bf16.mxu0 %v5803_v6  ;;  %v1467_v14 = vld [vmem:[#allocation11 + $0x288] sm:$0xff]  ;;  %v5825_v5 = vpack.c.bf16 %v1114_v4, %v1112_v3  ;;  %v5981_v6 = vpack.c.bf16 %v1494_v60, %v1490_v59 }
 0x1d3   :  { %v5967_v25 = vpack.c.bf16 %v1471_v17, %v1467_v14  ;;  %v1117_v11 = vld [vmem:[#allocation10 + $0xe8] sm:$0xff]  ;;  %v5829_v17 = vpack.c.bf16 %v1118_v16, %v1116_v15 }
 0x1d4   :  { %5806 = vmatpush1.bf16.msra.mxu0 %v5805_v9  ;;  %v5827_v14 = vpack.c.bf16 %v1119_v12, %v1117_v11  ;;  %v1539_v60 = vld [vmem:[#allocation11 + $0x4c8] sm:$0xff] }
 0x1d5   :  { %5934 = vmatpush1.bf16.msra.mxu1 %v5933_v20  ;;  %v1098_v20 = vld [vmem:[#allocation10 + $0x50] sm:$0xff]  ;;  %5808 = vmatprep.subr.bf16.mxu0 %v5807_v18  ;;  %v5985_v18 = vpack.c.bf16 %v1502_v8, %v1498_v7  ;;  %v1543_v63 = vld [vmem:[#allocation11 + $0x4e8] sm:$0xff] }
 0x1d6   :  { %5936 = vmatprep.subr.bf16.mxu1 %v5935_v21  ;;  %v5809_v21 = vpack.c.bf16 %v1098_v20, %v1096_v19  ;;  %v1506_v19 = vld [vmem:[#allocation11 + $0x3c0] sm:$0xff]  ;;  %v6003_v7 = vpack.c.bf16 %v1543_v63, %v1539_v60  ;;  %v1547_v8 = vld [vmem:[#allocation11 + $0x508] sm:$0xff] }
 0x1d7   :  { %v1510_v20 = vld [vmem:[#allocation11 + $0x3e0] sm:$0xff]  ;;  %v1551_v11 = vld [vmem:[#allocation11 + $0x528] sm:$0xff] }
 0x1d8   :  { %5810 = vmatpush1.bf16.msra.mxu0 %v5809_v21  ;;  %v1578_v63 = vld [vmem:[#allocation11 + $0x600] sm:$0xff] }
 0x1d9   :  { %5938 = vmatpush1.bf16.msra.mxu1 %v5937_v26  ;;  %v1475_v26 = vld [vmem:[#allocation11 + $0x2c8] sm:$0xff] }
 0x1da   :  { %5940 = vmatprep.subr.bf16.mxu1 %v5939_v27  ;;  %v1101_v27 = vld [vmem:[#allocation10 + $0x68] sm:$0xff]  ;;  %v5971_v37 = vpack.c.bf16 %v1479_v29, %v1475_v26  ;;  %v5831_v26 = vpack.c.bf16 %v1123_v24, %v1121_v23 }
 0x1db   :  { %v5811_v30 = vpack.c.bf16 %v1103_v28, %v1101_v27  ;;  %v1120_v27 = vld [vmem:[#allocation10 + $0x100] sm:$0xff]  ;;  %v1122_v28 = vld [vmem:[#allocation10 + $0x110] sm:$0xff]  ;;  %v1559_v23 = vld [vmem:[#allocation11 + $0x568] sm:$0xff] }
 0x1dc   :  { %v5833_v29 = vpack.c.bf16 %v1122_v28, %v1120_v27 }
 0x1dd   :  { %5942 = vmatpush1.bf16.msra.mxu1 %v5941_v32  ;;  %v1102_v32 = vld [vmem:[#allocation10 + $0x70] sm:$0xff]  ;;  %5812 = vmatprep.subr.bf16.mxu0 %v5811_v30  ;;  %v5989_v30 = vpack.c.bf16 %v1510_v20, %v1506_v19  ;;  %v6007_v19 = vpack.c.bf16 %v1551_v11, %v1547_v8  ;;  %v1555_v20 = vld [vmem:[#allocation11 + $0x548] sm:$0xff]  ;;  %v1594_v11 = vld [vmem:[#allocation11 + $0x680] sm:$0xff] }
 0x1de   :  { %5944 = vmatprep.subr.bf16.mxu1 %v5943_v33  ;;  %v5813_v33 = vpack.c.bf16 %v1102_v32, %v1100_v31  ;;  %v1514_v31 = vld [vmem:[#allocation11 + $0x400] sm:$0xff]  ;;  %v1599_v8 = vld [vmem:[#allocation11 + $0x6a8] sm:$0xff] }
 0x1df   :  { %v1518_v32 = vld [vmem:[#allocation11 + $0x420] sm:$0xff] }
 0x1e0   :  { %5814 = vmatpush1.bf16.msra.mxu0 %v5813_v33 }
 0x1e1   :  { %5946 = vmatpush1.bf16.msra.mxu1 %v5945_v38  ;;  %v1483_v38 = vld [vmem:[#allocation11 + $0x308] sm:$0xff] }
 0x1e2   :  { %5948 = vmatprep.subr.bf16.mxu1 %v5947_v39  ;;  %v1105_v39 = vld [vmem:[#allocation10 + $0x88] sm:$0xff]  ;;  %v5975_v49 = vpack.c.bf16 %v1487_v41, %v1483_v38  ;;  %v5835_v38 = vpack.c.bf16 %v1127_v36, %v1125_v35 }
 0x1e3   :  { %v5815_v42 = vpack.c.bf16 %v1107_v40, %v1105_v39  ;;  %v1124_v39 = vld [vmem:[#allocation10 + $0x120] sm:$0xff]  ;;  %v1126_v40 = vld [vmem:[#allocation10 + $0x130] sm:$0xff]  ;;  %v1567_v35 = vld [vmem:[#allocation11 + $0x5a8] sm:$0xff] }
 0x1e4   :  { %v5837_v41 = vpack.c.bf16 %v1126_v40, %v1124_v39 }
 0x1e5   :  { %5950 = vmatpush1.bf16.msra.mxu1 %v5949_v44  ;;  %v1106_v44 = vld [vmem:[#allocation10 + $0x90] sm:$0xff]  ;;  %5816 = vmatprep.subr.bf16.mxu0 %v5815_v42  ;;  %v1370_v42 = vld [vmem:[#allocation5] sm:$0xff] }
 0x1e6   :  { %5952 = vmatprep.subr.bf16.mxu1 %v5951_v45  ;;  %v5817_v45 = vpack.c.bf16 %v1106_v44, %v1104_v43  ;;  %v5993_v43 = vpack.c.bf16 %v1518_v32, %v1514_v31  ;;  %v1522_v44 = vld [vmem:[#allocation11 + $0x440] sm:$0xff]  ;;  %v6011_v31 = vpack.c.bf16 %v1559_v23, %v1555_v20  ;;  %v1563_v32 = vld [vmem:[#allocation11 + $0x588] sm:$0xff] }
 0x1e7   :  { %v1615_v20 = vld [vmem:[#allocation11 + $0x728] sm:$0xff]  ;;  %v1610_v23 = vld [vmem:[#allocation11 + $0x700] sm:$0xff] }
 0x1e8   :  { %5818 = vmatpush1.bf16.msra.mxu0 %v5817_v45  ;;  %v1526_v45 = vld [vmem:[#allocation11 + $0x460] sm:$0xff] }
 0x1e9   :  { %5954 = vmatpush1.bf16.msra.mxu1 %v5953_v50  ;;  %v1491_v50 = vld [vmem:[#allocation11 + $0x348] sm:$0xff]  ;;  %5820 = vmatprep.subr.bf16.mxu0 %v5819_v54  ;;  %v1130_v54 = vld [vmem:[#allocation10 + $0x150] sm:$0xff]  ;;  %v5997_v55 = vpack.c.bf16 %v1526_v45, %v1522_v44 }
 0x1ea   :  { %5956 = vmatprep.subr.bf16.mxu1 %v5955_v53  ;;  %v1495_v53 = vld [vmem:[#allocation11 + $0x368] sm:$0xff] }
 0x1eb   :  { %v5979_v61 = vpack.c.bf16 %v1495_v53, %v1491_v50  ;;  %v1531_v50 = vld [vmem:[#allocation11 + $0x488] sm:$0xff]  ;;  %v1128_v53 = vld [vmem:[#allocation10 + $0x140] sm:$0xff] }
 0x1ec   :  { %5822 = vmatpush1.bf16.msra.mxu0 %v5821_v57  ;;  %v1534_v57 = vld [vmem:[#allocation11 + $0x4a0] sm:$0xff]  ;;  %v5999_v59 = vpack.c.bf16 %v1535_v51, %v1531_v50  ;;  %v1571_v44 = vld [vmem:[#allocation11 + $0x5c8] sm:$0xff]  ;;  %v1150_v50 = vld [vmem:[#allocation10 + $0x1f0] sm:$0xff] }
 0x1ed   :  { %5958 = vmatpush1.bf16.msra.mxu1 %v5957_v62  ;;  %v1499_v62 = vld [vmem:[#allocation11 + $0x388] sm:$0xff]  ;;  %5824 = vmatprep.subr.bf16.mxu0 %v5823_v2  ;;  %v1134_v2 = vld [vmem:[#allocation10 + $0x170] sm:$0xff]  ;;  %v6001_v4 = vpack.c.bf16 %v1534_v57, %v1530_v56  ;;  %v1155_v57 = vld [vmem:[#allocation10 + $0x218] sm:$0xff] }
 0x1ee   :  { %5960 = vmatprep.subr.bf16.mxu1 %v5959_v1  ;;  %v1503_v1 = vld [vmem:[#allocation11 + $0x3a8] sm:$0xff] }
 0x1ef   :  { %v5983_v9 = vpack.c.bf16 %v1503_v1, %v1499_v62  ;;  %v1135_v62 = vld [vmem:[#allocation10 + $0x178] sm:$0xff]  ;;  %v1132_v1 = vld [vmem:[#allocation10 + $0x160] sm:$0xff]  ;;  %v1149_v45 = vld [vmem:[#allocation10 + $0x1e8] sm:$0xff] }
 0x1f0   :  { %5826 = vmatpush1.bf16.msra.mxu0 %v5825_v5  ;;  %v5845_v3 = vpack.c.bf16 %v1134_v2, %v1132_v1  ;;  %v1538_v5 = vld [vmem:[#allocation11 + $0x4c0] sm:$0xff]  ;;  %v1153_v56 = vld [vmem:[#allocation10 + $0x208] sm:$0xff] }
 0x1f1   :  { %5962 = vmatpush1.bf16.msra.mxu1 %v5961_v10  ;;  %v1507_v10 = vld [vmem:[#allocation11 + $0x3c8] sm:$0xff]  ;;  %5828 = vmatprep.subr.bf16.mxu0 %v5827_v14  ;;  %v1138_v14 = vld [vmem:[#allocation10 + $0x190] sm:$0xff]  ;;  %v5863_v60 = vpack.c.bf16 %v1155_v57, %v1153_v56  ;;  %v1375_v56 = vld [vmem:[#allocation5 + $0x28] sm:$0xff] }
 0x1f2   :  { %5964 = vmatprep.subr.bf16.mxu1 %v5963_v13  ;;  %v1511_v13 = vld [vmem:[#allocation11 + $0x3e8] sm:$0xff] }
 0x1f3   :  { %v5987_v21 = vpack.c.bf16 %v1511_v13, %v1507_v10  ;;  %v1139_v10 = vld [vmem:[#allocation10 + $0x198] sm:$0xff]  ;;  %v1136_v13 = vld [vmem:[#allocation10 + $0x180] sm:$0xff]  ;;  %v1587_v1 = vld [vmem:[#allocation11 + $0x648] sm:$0xff] }
 0x1f4   :  { %5830 = vmatpush1.bf16.msra.mxu0 %v5829_v17  ;;  %v5849_v15 = vpack.c.bf16 %v1138_v14, %v1136_v13  ;;  %v1546_v17 = vld [vmem:[#allocation11 + $0x500] sm:$0xff]  ;;  %v1591_v2 = vld [vmem:[#allocation11 + $0x668] sm:$0xff] }
 0x1f5   :  { %5966 = vmatpush1.bf16.msra.mxu1 %v5965_v22  ;;  %v1515_v22 = vld [vmem:[#allocation11 + $0x408] sm:$0xff]  ;;  %5832 = vmatprep.subr.bf16.mxu0 %v5831_v26  ;;  %v1142_v26 = vld [vmem:[#allocation10 + $0x1b0] sm:$0xff] }
 0x1f6   :  { %5968 = vmatprep.subr.bf16.mxu1 %v5967_v25  ;;  %v1519_v25 = vld [vmem:[#allocation11 + $0x428] sm:$0xff] }
 0x1f7   :  { %v5991_v33 = vpack.c.bf16 %v1519_v25, %v1515_v22  ;;  %v1143_v22 = vld [vmem:[#allocation10 + $0x1b8] sm:$0xff]  ;;  %v1140_v25 = vld [vmem:[#allocation10 + $0x1a0] sm:$0xff]  ;;  %v1603_v13 = vld [vmem:[#allocation11 + $0x6c8] sm:$0xff] }
 0x1f8   :  { %5834 = vmatpush1.bf16.msra.mxu0 %v5833_v29  ;;  %v5853_v27 = vpack.c.bf16 %v1142_v26, %v1140_v25  ;;  %v1554_v29 = vld [vmem:[#allocation11 + $0x540] sm:$0xff]  ;;  %v1607_v14 = vld [vmem:[#allocation11 + $0x6e8] sm:$0xff] }
 0x1f9   :  { %5970 = vmatpush1.bf16.msra.mxu1 %v5969_v34  ;;  %v1523_v34 = vld [vmem:[#allocation11 + $0x448] sm:$0xff]  ;;  %5836 = vmatprep.subr.bf16.mxu0 %v5835_v38  ;;  %v1146_v38 = vld [vmem:[#allocation10 + $0x1d0] sm:$0xff] }
 0x1fa   :  { %5972 = vmatprep.subr.bf16.mxu1 %v5971_v37  ;;  %v1527_v37 = vld [vmem:[#allocation11 + $0x468] sm:$0xff] }
 0x1fb   :  { %v1619_v25 = vld [vmem:[#allocation11 + $0x748] sm:$0xff] }
 0x1fc   :  { %5838 = vmatpush1.bf16.msra.mxu0 %v5837_v41  ;;  %v1562_v41 = vld [vmem:[#allocation11 + $0x580] sm:$0xff]  ;;  %v1623_v26 = vld [vmem:[#allocation11 + $0x768] sm:$0xff] }
 0x1fd   :  { %5974 = vmatpush1.bf16.msra.mxu1 %v5973_v46  ;;  %v5995_v46 = vpack.c.bf16 %v1527_v37, %v1523_v34  ;;  %v1147_v34 = vld [vmem:[#allocation10 + $0x1d8] sm:$0xff]  ;;  %v1144_v37 = vld [vmem:[#allocation10 + $0x1c0] sm:$0xff]  ;;  %v1659_v57 = vld [vmem:[#allocation11 + $0x888] sm:$0xff] }
 0x1fe   :  { %5976 = vmatprep.subr.bf16.mxu1 %v5975_v49  ;;  %v1131_v49 = vld [vmem:[#allocation10 + $0x158] sm:$0xff]  ;;  %v5857_v39 = vpack.c.bf16 %v1146_v38, %v1144_v37  ;;  %v1635_v37 = vld [vmem:[#allocation11 + $0x7c8] sm:$0xff] }
 0x1ff   :  { %v5839_v52 = vpack.c.bf16 %v1131_v49, %v1129_v48  ;;  %v1148_v49 = vld [vmem:[#allocation10 + $0x1e0] sm:$0xff]  ;;  %v1639_v38 = vld [vmem:[#allocation11 + $0x7e8] sm:$0xff] }
 0x200   :  { %v5861_v51 = vpack.c.bf16 %v1150_v50, %v1148_v49  ;;  %v1651_v49 = vld [vmem:[#allocation11 + $0x848] sm:$0xff] }
 0x201   :  { %5978 = vmatpush1.bf16.msra.mxu1 %v5977_v58  ;;  %v5841_v58 = vpack.c.bf16 %v1130_v54, %v1128_v53  ;;  %5840 = vmatprep.subr.bf16.mxu0 %v5839_v52  ;;  %v1570_v53 = vld [vmem:[#allocation11 + $0x5c0] sm:$0xff]  ;;  %v1655_v50 = vld [vmem:[#allocation11 + $0x868] sm:$0xff] }
 0x202   :  { %5980 = vmatprep.subr.bf16.mxu1 %v5979_v61  ;;  %v1133_v61 = vld [vmem:[#allocation10 + $0x168] sm:$0xff] }
 0x203   :  { %5842 = vmatpush1.bf16.msra.mxu0 %v5841_v58  ;;  %v5843_v0 = vpack.c.bf16 %v1135_v62, %v1133_v61  ;;  %v1579_v58 = vld [vmem:[#allocation11 + $0x608] sm:$0xff] }
 0x205   :  { %5982 = vmatpush1.bf16.msra.mxu1 %v5981_v6  ;;  %v1542_v6 = vld [vmem:[#allocation11 + $0x4e0] sm:$0xff]  ;;  %5844 = vmatprep.subr.bf16.mxu0 %v5843_v0 }
 0x206   :  { %5984 = vmatprep.subr.bf16.mxu1 %v5983_v9  ;;  %v1137_v9 = vld [vmem:[#allocation10 + $0x188] sm:$0xff]  ;;  %v6005_v16 = vpack.c.bf16 %v1542_v6, %v1538_v5  ;;  %v1582_v0 = vld [vmem:[#allocation11 + $0x620] sm:$0xff] }
 0x207   :  { %5846 = vmatpush1.bf16.msra.mxu0 %v5845_v3  ;;  %v5847_v12 = vpack.c.bf16 %v1139_v10, %v1137_v9  ;;  %v6025_v3 = vpack.c.bf16 %v1582_v0, %v1578_v63  ;;  %v1586_v5 = vld [vmem:[#allocation11 + $0x640] sm:$0xff]  ;;  %v1667_v63 = vld [vmem:[#allocation11 + $0x8c8] sm:$0xff] }
 0x208   :  { %v1590_v6 = vld [vmem:[#allocation11 + $0x660] sm:$0xff]  ;;  %v1671_v0 = vld [vmem:[#allocation11 + $0x8e8] sm:$0xff] }
 0x209   :  { %5986 = vmatpush1.bf16.msra.mxu1 %v5985_v18  ;;  %v1550_v18 = vld [vmem:[#allocation11 + $0x520] sm:$0xff]  ;;  %5848 = vmatprep.subr.bf16.mxu0 %v5847_v12  ;;  %v6029_v9 = vpack.c.bf16 %v1590_v6, %v1586_v5  ;;  %v1675_v5 = vld [vmem:[#allocation11 + $0x908] sm:$0xff] }
 0x20a   :  { %5988 = vmatprep.subr.bf16.mxu1 %v5987_v21  ;;  %v1141_v21 = vld [vmem:[#allocation10 + $0x1a8] sm:$0xff]  ;;  %v6009_v28 = vpack.c.bf16 %v1550_v18, %v1546_v17  ;;  %v1598_v12 = vld [vmem:[#allocation11 + $0x6a0] sm:$0xff] }
 0x20b   :  { %5850 = vmatpush1.bf16.msra.mxu0 %v5849_v15  ;;  %v5851_v24 = vpack.c.bf16 %v1143_v22, %v1141_v21  ;;  %v6033_v15 = vpack.c.bf16 %v1598_v12, %v1594_v11  ;;  %v1602_v17 = vld [vmem:[#allocation11 + $0x6c0] sm:$0xff]  ;;  %v1679_v6 = vld [vmem:[#allocation11 + $0x928] sm:$0xff] }
 0x20c   :  { %v1606_v18 = vld [vmem:[#allocation11 + $0x6e0] sm:$0xff]  ;;  %v1683_v11 = vld [vmem:[#allocation11 + $0x948] sm:$0xff] }
 0x20d   :  { %5990 = vmatpush1.bf16.msra.mxu1 %v5989_v30  ;;  %v1558_v30 = vld [vmem:[#allocation11 + $0x560] sm:$0xff]  ;;  %5852 = vmatprep.subr.bf16.mxu0 %v5851_v24  ;;  %v6037_v21 = vpack.c.bf16 %v1606_v18, %v1602_v17  ;;  %v1687_v12 = vld [vmem:[#allocation11 + $0x968] sm:$0xff] }
 0x20e   :  { %5992 = vmatprep.subr.bf16.mxu1 %v5991_v33  ;;  %v1145_v33 = vld [vmem:[#allocation10 + $0x1c8] sm:$0xff]  ;;  %v6013_v40 = vpack.c.bf16 %v1558_v30, %v1554_v29  ;;  %v1614_v24 = vld [vmem:[#allocation11 + $0x720] sm:$0xff] }
 0x20f   :  { %5854 = vmatpush1.bf16.msra.mxu0 %v5853_v27  ;;  %v5855_v36 = vpack.c.bf16 %v1147_v34, %v1145_v33  ;;  %v6041_v27 = vpack.c.bf16 %v1614_v24, %v1610_v23  ;;  %v1618_v29 = vld [vmem:[#allocation11 + $0x740] sm:$0xff]  ;;  %v1691_v17 = vld [vmem:[#allocation11 + $0x988] sm:$0xff] }
 0x210   :  { %2497 = vmatmul.mubr.f32.vlgmr.msra.gmra.mrb[2].mxu1 %v1370_v42  ;;  %v1566_v42 = vld [vmem:[#allocation11 + $0x5a0] sm:$0xff]  ;;  %v1695_v18 = vld [vmem:[#allocation11 + $0x9a8] sm:$0xff] }
 0x211   :  { %5994 = vmatpush1.bf16.msra.mxu1 %v5993_v43  ;;  %2567 = vmatprep.mubr.f32.mxu1 %v1373_v47  ;;  %v6015_v43 = vpack.c.bf16 %v1567_v35, %v1563_v32  ;;  %v1575_v47 = vld [vmem:[#allocation11 + $0x5e8] sm:$0xff]  ;;  %v6017_v52 = vpack.c.bf16 %v1566_v42, %v1562_v41  ;;  %v1622_v30 = vld [vmem:[#allocation11 + $0x760] sm:$0xff] }
 0x212   :  { %5996 = vmatprep.subr.bf16.mxu1 %v5995_v46  ;;  %5856 = vmatprep.subr.bf16.mxu0 %v5855_v36  ;;  %v1151_v46 = vld [vmem:[#allocation10 + $0x1f8] sm:$0xff]  ;;  %v6019_v54 = vpack.c.bf16 %v1575_v47, %v1571_v44  ;;  %v1631_v32 = vld [vmem:[#allocation11 + $0x7a8] sm:$0xff]  ;;  %v6045_v33 = vpack.c.bf16 %v1622_v30, %v1618_v29  ;;  %v1626_v35 = vld [vmem:[#allocation11 + $0x780] sm:$0xff] }
 0x213   :  { %5858 = vmatpush1.bf16.msra.mxu0 %v5857_v39  ;;  %v5859_v48 = vpack.c.bf16 %v1151_v46, %v1149_v45  ;;  %v1630_v36 = vld [vmem:[#allocation11 + $0x7a0] sm:$0xff]  ;;  %v1647_v44 = vld [vmem:[#allocation11 + $0x828] sm:$0xff] }
 0x214   :  { %v6049_v39 = vpack.c.bf16 %v1630_v36, %v1626_v35  ;;  %v1634_v41 = vld [vmem:[#allocation11 + $0x7c0] sm:$0xff]  ;;  %v1699_v23 = vld [vmem:[#allocation11 + $0x9c8] sm:$0xff] }
 0x215   :  { %5998 = vmatpush1.bf16.msra.mxu1 %v5997_v55  ;;  %5860 = vmatprep.subr.bf16.mxu0 %v5859_v48  ;;  %v1574_v55 = vld [vmem:[#allocation11 + $0x5e0] sm:$0xff]  ;;  %v1703_v24 = vld [vmem:[#allocation11 + $0x9e8] sm:$0xff] }
 0x216   :  { %6000 = vmatprep.subr.bf16.mxu1 %v5999_v59  ;;  %v1583_v59 = vld [vmem:[#allocation11 + $0x628] sm:$0xff]  ;;  %v6021_v61 = vpack.c.bf16 %v1574_v55, %v1570_v53  ;;  %v1638_v42 = vld [vmem:[#allocation11 + $0x7e0] sm:$0xff]  ;;  %v6059_v53 = vpack.c.bf16 %v1655_v50, %v1651_v49 }
 0x217   :  { %5862 = vmatpush1.bf16.msra.mxu0 %v5861_v51  ;;  %v6023_v62 = vpack.c.bf16 %v1583_v59, %v1579_v58  ;;  %v6053_v45 = vpack.c.bf16 %v1638_v42, %v1634_v41  ;;  %v1642_v47 = vld [vmem:[#allocation11 + $0x800] sm:$0xff]  ;;  %v1372_v51 = vld [vmem:[#allocation5 + $0x10] sm:$0xff] }
 0x218   :  { %5864 = vmatprep.subr.bf16.mxu0 %v5863_v60  ;;  %v1646_v48 = vld [vmem:[#allocation11 + $0x820] sm:$0xff]  ;;  %v1663_v58 = vld [vmem:[#allocation11 + $0x8a8] sm:$0xff] }
 0x219   :  { %6002 = vmatpush1.bf16.msra.mxu1 %v6001_v4  ;;  %v6027_v4 = vpack.c.bf16 %v1591_v2, %v1587_v1  ;;  %v1654_v55 = vld [vmem:[#allocation11 + $0x860] sm:$0xff]  ;;  %v6063_v60 = vpack.c.bf16 %v1663_v58, %v1659_v57  ;;  %v6067_v2 = vpack.c.bf16 %v1671_v0, %v1667_v63  ;;  %v1707_v29 = vld [vmem:[#allocation11 + $0xa08] sm:$0xff] }
 0x21a   :  { %6004 = vmatprep.subr.bf16.mxu1 %v6003_v7  ;;  %v1595_v7 = vld [vmem:[#allocation11 + $0x688] sm:$0xff]  ;;  %v1738_v57 = vld [vmem:[#allocation11 + $0xb00] sm:$0xff] }
 0x21b   :  { %v6031_v10 = vpack.c.bf16 %v1599_v8, %v1595_v7  ;;  %v6071_v8 = vpack.c.bf16 %v1679_v6, %v1675_v5  ;;  %v1711_v30 = vld [vmem:[#allocation11 + $0xa28] sm:$0xff]  ;;  %v1742_v58 = vld [vmem:[#allocation11 + $0xb20] sm:$0xff] }
 0x21c   :  { %v1715_v35 = vld [vmem:[#allocation11 + $0xa48] sm:$0xff]  ;;  %v1746_v63 = vld [vmem:[#allocation11 + $0xb40] sm:$0xff] }
 0x21d   :  { %6006 = vmatpush1.bf16.msra.mxu1 %v6005_v16  ;;  %v6035_v16 = vpack.c.bf16 %v1607_v14, %v1603_v13  ;;  %v6075_v14 = vpack.c.bf16 %v1687_v12, %v1683_v11  ;;  %v1719_v36 = vld [vmem:[#allocation11 + $0xa68] sm:$0xff]  ;;  %v1750_v0 = vld [vmem:[#allocation11 + $0xb60] sm:$0xff] }
 0x21e   :  { %6008 = vmatprep.subr.bf16.mxu1 %v6007_v19  ;;  %v1611_v19 = vld [vmem:[#allocation11 + $0x708] sm:$0xff]  ;;  %v1754_v5 = vld [vmem:[#allocation11 + $0xb80] sm:$0xff] }
 0x21f   :  { %v6039_v22 = vpack.c.bf16 %v1615_v20, %v1611_v19  ;;  %v6079_v20 = vpack.c.bf16 %v1695_v18, %v1691_v17  ;;  %v1723_v41 = vld [vmem:[#allocation11 + $0xa88] sm:$0xff]  ;;  %v1758_v6 = vld [vmem:[#allocation11 + $0xba0] sm:$0xff] }
 0x220   :  { %v1727_v42 = vld [vmem:[#allocation11 + $0xaa8] sm:$0xff]  ;;  %v1762_v11 = vld [vmem:[#allocation11 + $0xbc0] sm:$0xff] }
 0x221   :  { %6010 = vmatpush1.bf16.msra.mxu1 %v6009_v28  ;;  %v6043_v28 = vpack.c.bf16 %v1623_v26, %v1619_v25  ;;  %v6083_v26 = vpack.c.bf16 %v1703_v24, %v1699_v23  ;;  %v1766_v12 = vld [vmem:[#allocation11 + $0xbe0] sm:$0xff] }
 0x222   :  { %6012 = vmatprep.subr.bf16.mxu1 %v6011_v31  ;;  %v1627_v31 = vld [vmem:[#allocation11 + $0x788] sm:$0xff]  ;;  %v1770_v17 = vld [vmem:[#allocation11 + $0xc00] sm:$0xff] }
 0x223   :  { %v6047_v34 = vpack.c.bf16 %v1631_v32, %v1627_v31  ;;  %v6087_v32 = vpack.c.bf16 %v1711_v30, %v1707_v29  ;;  %v1774_v18 = vld [vmem:[#allocation11 + $0xc20] sm:$0xff] }
 0x224   :  { %v1778_v24 = vld [vmem:[#allocation11 + $0xc40] sm:$0xff] }
 0x225   :  { %6014 = vmatpush1.bf16.msra.mxu1 %v6013_v40  ;;  %v6051_v40 = vpack.c.bf16 %v1639_v38, %v1635_v37  ;;  %v6091_v38 = vpack.c.bf16 %v1719_v36, %v1715_v35  ;;  %v638_v35 = vlaneseq }
 0x226   :  { %6016 = vmatprep.subr.bf16.mxu1 %v6015_v43  ;;  %v1643_v43 = vld [vmem:[#allocation11 + $0x808] sm:$0xff] }
 0x227   :  { %v6055_v46 = vpack.c.bf16 %v1647_v44, %v1643_v43  ;;  %v6095_v44 = vpack.c.bf16 %v1727_v42, %v1723_v41  ;;  %v1807_v41 = vld [vmem:[#allocation11 + $0xd28] sm:$0xff]  ;;  %v639_v42 = vshrl.u32 %v638_v35, 7 }
 0x229   :  { %6018 = vmatpush1.bf16.msra.mxu1 %v6017_v52  ;;  %v6057_v52 = vpack.c.bf16 %v1646_v48, %v1642_v47  ;;  %v1731_v47 = vld [vmem:[#allocation11 + $0xac8] sm:$0xff] }
 0x22a   :  { %6020 = vmatprep.subr.bf16.mxu1 %v6019_v54  ;;  %v1650_v54 = vld [vmem:[#allocation11 + $0x840] sm:$0xff]  ;;  %v1735_v48 = vld [vmem:[#allocation11 + $0xae8] sm:$0xff] }
 0x22b   :  { %v6061_v59 = vpack.c.bf16 %v1654_v55, %v1650_v54  ;;  %v6099_v50 = vpack.c.bf16 %v1735_v48, %v1731_v47  ;;  %v1743_v54 = vld [vmem:[#allocation11 + $0xb28] sm:$0xff]  ;;  %v8512_v47 = vsub.s32 0, %v639_v42 }
 0x22c   :  { %v1811_v48 = vld [vmem:[#allocation11 + $0xd48] sm:$0xff] }
 0x22d   :  { %6022 = vmatpush1.bf16.msra.mxu1 %v6021_v61  ;;  %v1658_v61 = vld [vmem:[#allocation11 + $0x880] sm:$0xff] }
 0x22e   :  { %6024 = vmatprep.subr.bf16.mxu1 %v6023_v62  ;;  %v1662_v62 = vld [vmem:[#allocation11 + $0x8a0] sm:$0xff] }
 0x22f   :  { %v6065_v1 = vpack.c.bf16 %v1662_v62, %v1658_v61  ;;  %v6105_v61 = vpack.c.bf16 %v1742_v58, %v1738_v57  ;;  %v1814_v57 = vld [vmem:[#allocation11 + $0xd60] sm:$0xff] }
 0x231   :  { %6026 = vmatpush1.bf16.msra.mxu1 %v6025_v3  ;;  %v1666_v3 = vld [vmem:[#allocation11 + $0x8c0] sm:$0xff] }
 0x232   :  { %6028 = vmatprep.subr.bf16.mxu1 %v6027_v4  ;;  %v1670_v4 = vld [vmem:[#allocation11 + $0x8e0] sm:$0xff] }
 0x233   :  { %v6069_v7 = vpack.c.bf16 %v1670_v4, %v1666_v3  ;;  %v6109_v3 = vpack.c.bf16 %v1750_v0, %v1746_v63 }
 0x235   :  { %6030 = vmatpush1.bf16.msra.mxu1 %v6029_v9  ;;  %v1674_v9 = vld [vmem:[#allocation11 + $0x900] sm:$0xff] }
 0x236   :  { %6032 = vmatprep.subr.bf16.mxu1 %v6031_v10  ;;  %v1678_v10 = vld [vmem:[#allocation11 + $0x920] sm:$0xff] }
 0x237   :  { %v6073_v13 = vpack.c.bf16 %v1678_v10, %v1674_v9  ;;  %v6113_v9 = vpack.c.bf16 %v1758_v6, %v1754_v5 }
 0x239   :  { %6034 = vmatpush1.bf16.msra.mxu1 %v6033_v15  ;;  %v1682_v15 = vld [vmem:[#allocation11 + $0x940] sm:$0xff] }
 0x23a   :  { %6036 = vmatprep.subr.bf16.mxu1 %v6035_v16  ;;  %v1686_v16 = vld [vmem:[#allocation11 + $0x960] sm:$0xff] }
 0x23b   :  { %v6077_v19 = vpack.c.bf16 %v1686_v16, %v1682_v15  ;;  %v6117_v15 = vpack.c.bf16 %v1766_v12, %v1762_v11 }
 0x23d   :  { %6038 = vmatpush1.bf16.msra.mxu1 %v6037_v21  ;;  %v1690_v21 = vld [vmem:[#allocation11 + $0x980] sm:$0xff] }
 0x23e   :  { %6040 = vmatprep.subr.bf16.mxu1 %v6039_v22  ;;  %v1694_v22 = vld [vmem:[#allocation11 + $0x9a0] sm:$0xff] }
 0x23f   :  { %v6081_v25 = vpack.c.bf16 %v1694_v22, %v1690_v21  ;;  %v1374_v21 = vld [vmem:[#allocation5 + $0x20] sm:$0xff]  ;;  %v6121_v22 = vpack.c.bf16 %v1774_v18, %v1770_v17 }
 0x241   :  { %6042 = vmatpush1.bf16.msra.mxu1 %v6041_v27  ;;  %v1698_v27 = vld [vmem:[#allocation11 + $0x9c0] sm:$0xff] }
 0x242   :  { %6044 = vmatprep.subr.bf16.mxu1 %v6043_v28  ;;  %v1702_v28 = vld [vmem:[#allocation11 + $0x9e0] sm:$0xff] }
 0x243   :  { %v6085_v31 = vpack.c.bf16 %v1702_v28, %v1698_v27  ;;  %v1787_v27 = vld [vmem:[#allocation11 + $0xc88] sm:$0xff] }
 0x244   :  { %v1791_v28 = vld [vmem:[#allocation11 + $0xca8] sm:$0xff] }
 0x245   :  { %6046 = vmatpush1.bf16.msra.mxu1 %v6045_v33  ;;  %v1706_v33 = vld [vmem:[#allocation11 + $0xa00] sm:$0xff]  ;;  %v6127_v30 = vpack.c.bf16 %v1791_v28, %v1787_v27  ;;  %v1158_v27 = vld [vmem:[#allocation10 + $0x230] sm:$0xff]  ;;  %v1835_v28 = vld [vmem:[#allocation11 + $0xe08] sm:$0xff] }
 0x246   :  { %6048 = vmatprep.subr.bf16.mxu1 %v6047_v34  ;;  %v1710_v34 = vld [vmem:[#allocation11 + $0xa20] sm:$0xff] }
 0x247   :  { %v6089_v37 = vpack.c.bf16 %v1710_v34, %v1706_v33  ;;  %v1795_v33 = vld [vmem:[#allocation11 + $0xcc8] sm:$0xff] }
 0x248   :  { %v1799_v34 = vld [vmem:[#allocation11 + $0xce8] sm:$0xff] }
 0x249   :  { %6050 = vmatpush1.bf16.msra.mxu1 %v6049_v39  ;;  %v1714_v39 = vld [vmem:[#allocation11 + $0xa40] sm:$0xff] }
 0x24a   :  { %6052 = vmatprep.subr.bf16.mxu1 %v6051_v40  ;;  %v1718_v40 = vld [vmem:[#allocation11 + $0xa60] sm:$0xff] }
 0x24b   :  { %v6093_v43 = vpack.c.bf16 %v1718_v40, %v1714_v39  ;;  %v1798_v39 = vld [vmem:[#allocation11 + $0xce0] sm:$0xff]  ;;  %v1803_v40 = vld [vmem:[#allocation11 + $0xd08] sm:$0xff] }
 0x24d   :  { %6054 = vmatpush1.bf16.msra.mxu1 %v6053_v45  ;;  %v1722_v45 = vld [vmem:[#allocation11 + $0xa80] sm:$0xff] }
 0x24e   :  { %6056 = vmatprep.subr.bf16.mxu1 %v6055_v46  ;;  %v1726_v46 = vld [vmem:[#allocation11 + $0xaa0] sm:$0xff] }
 0x24f   :  { %v6097_v49 = vpack.c.bf16 %v1726_v46, %v1722_v45  ;;  %v1802_v45 = vld [vmem:[#allocation11 + $0xd00] sm:$0xff] }
 0x250   :  { %2568 = vmatmul.mubr.f32.vlgmr.msra.gmra.mrb[2].mxu1 %v1372_v51  ;;  %v1730_v51 = vld [vmem:[#allocation11 + $0xac0] sm:$0xff] }
 0x251   :  { %6058 = vmatpush1.bf16.msra.mxu1 %v6057_v52  ;;  %2638 = vmatprep.mubr.f32.mxu1 %v1375_v56  ;;  %v1734_v52 = vld [vmem:[#allocation11 + $0xae0] sm:$0xff] }
 0x252   :  { %6060 = vmatprep.subr.bf16.mxu1 %v6059_v53  ;;  %v1739_v53 = vld [vmem:[#allocation11 + $0xb08] sm:$0xff]  ;;  %v6101_v55 = vpack.c.bf16 %v1734_v52, %v1730_v51  ;;  %v1806_v46 = vld [vmem:[#allocation11 + $0xd20] sm:$0xff]  ;;  %v8514_v51 = vsub.s32 2, %v639_v42  ;;  %v8516_v52 = vsub.s32 1, %v639_v42 }
 0x253   :  { %v6103_v56 = vpack.c.bf16 %v1743_v54, %v1739_v53  ;;  %v6137_v53 = vpack.c.bf16 %v1806_v46, %v1802_v45  ;;  %v8518_v54 = vsub.s32 3, %v639_v42  ;;  %v1847_v42 = vld [vmem:[#allocation11 + $0xe68] sm:$0xff] }
 0x255   :  { %6062 = vmatpush1.bf16.msra.mxu1 %v6061_v59  ;;  %v1747_v59 = vld [vmem:[#allocation11 + $0xb48] sm:$0xff] }
 0x256   :  { %6064 = vmatprep.subr.bf16.mxu1 %v6063_v60  ;;  %v1751_v60 = vld [vmem:[#allocation11 + $0xb68] sm:$0xff] }
 0x257   :  { %v6107_v62 = vpack.c.bf16 %v1751_v60, %v1747_v59  ;;  %v1819_v59 = vld [vmem:[#allocation11 + $0xd88] sm:$0xff] }
 0x258   :  { %v1823_v60 = vld [vmem:[#allocation11 + $0xda8] sm:$0xff] }
 0x259   :  { %6066 = vmatpush1.bf16.msra.mxu1 %v6065_v1  ;;  %v1755_v1 = vld [vmem:[#allocation11 + $0xb88] sm:$0xff] }
 0x25a   :  { %6068 = vmatprep.subr.bf16.mxu1 %v6067_v2  ;;  %v1759_v2 = vld [vmem:[#allocation11 + $0xba8] sm:$0xff] }
 0x25b   :  { %v6111_v4 = vpack.c.bf16 %v1759_v2, %v1755_v1  ;;  %v6143_v2 = vpack.c.bf16 %v1823_v60, %v1819_v59  ;;  %v1169_v59 = vld [vmem:[#allocation10 + $0x288] sm:$0xff]  ;;  %v1171_v60 = vld [vmem:[#allocation10 + $0x298] sm:$0xff] }
 0x25d   :  { %6070 = vmatpush1.bf16.msra.mxu1 %v6069_v7  ;;  %v1763_v7 = vld [vmem:[#allocation11 + $0xbc8] sm:$0xff] }
 0x25e   :  { %6072 = vmatprep.subr.bf16.mxu1 %v6071_v8  ;;  %v1767_v8 = vld [vmem:[#allocation11 + $0xbe8] sm:$0xff] }
 0x25f   :  { %v6115_v10 = vpack.c.bf16 %v1767_v8, %v1763_v7  ;;  %v1152_v8 = vld [vmem:[#allocation10 + $0x200] sm:$0xff] }
 0x261   :  { %6074 = vmatpush1.bf16.msra.mxu1 %v6073_v13  ;;  %v1771_v13 = vld [vmem:[#allocation11 + $0xc08] sm:$0xff] }
 0x262   :  { %6076 = vmatprep.subr.bf16.mxu1 %v6075_v14  ;;  %v1775_v14 = vld [vmem:[#allocation11 + $0xc28] sm:$0xff] }
 0x263   :  { %v6119_v16 = vpack.c.bf16 %v1775_v14, %v1771_v13  ;;  %v1831_v14 = vld [vmem:[#allocation11 + $0xde8] sm:$0xff] }
 0x265   :  { %6078 = vmatpush1.bf16.msra.mxu1 %v6077_v19  ;;  %v1779_v19 = vld [vmem:[#allocation11 + $0xc48] sm:$0xff] }
 0x266   :  { %6080 = vmatprep.subr.bf16.mxu1 %v6079_v20  ;;  %v1783_v20 = vld [vmem:[#allocation11 + $0xc68] sm:$0xff] }
 0x267   :  { %v6123_v23 = vpack.c.bf16 %v1783_v20, %v1779_v19 }
 0x269   :  { %6082 = vmatpush1.bf16.msra.mxu1 %v6081_v25  ;;  %v1782_v25 = vld [vmem:[#allocation11 + $0xc60] sm:$0xff] }
 0x26a   :  { %6084 = vmatprep.subr.bf16.mxu1 %v6083_v26  ;;  %v1377_v26 = vld [vmem:[#allocation5 + $0x38] sm:$0xff]  ;;  %v6125_v29 = vpack.c.bf16 %v1782_v25, %v1778_v24 }
 0x26d   :  { %6086 = vmatpush1.bf16.msra.mxu1 %v6085_v31  ;;  %v1786_v31 = vld [vmem:[#allocation11 + $0xc80] sm:$0xff] }
 0x26e   :  { %6088 = vmatprep.subr.bf16.mxu1 %v6087_v32  ;;  %v1790_v32 = vld [vmem:[#allocation11 + $0xca0] sm:$0xff] }
 0x26f   :  { %v6129_v36 = vpack.c.bf16 %v1790_v32, %v1786_v31  ;;  %v1161_v31 = vld [vmem:[#allocation10 + $0x248] sm:$0xff]  ;;  %v1163_v32 = vld [vmem:[#allocation10 + $0x258] sm:$0xff] }
 0x271   :  { %6090 = vmatpush1.bf16.msra.mxu1 %v6089_v37  ;;  %v6131_v37 = vpack.c.bf16 %v1799_v34, %v1795_v33 }
 0x272   :  { %6092 = vmatprep.subr.bf16.mxu1 %v6091_v38  ;;  %v1794_v38 = vld [vmem:[#allocation11 + $0xcc0] sm:$0xff] }
 0x275   :  { %6094 = vmatpush1.bf16.msra.mxu1 %v6093_v43  ;;  %v6133_v43 = vpack.c.bf16 %v1798_v39, %v1794_v38  ;;  %v1160_v38 = vld [vmem:[#allocation10 + $0x240] sm:$0xff]  ;;  %v5871_v39 = vpack.c.bf16 %v1163_v32, %v1161_v31  ;;  %v1879_v31 = vld [vmem:[#allocation11 + $0xf68] sm:$0xff] }
 0x276   :  { %6096 = vmatprep.subr.bf16.mxu1 %v6095_v44  ;;  %v6135_v44 = vpack.c.bf16 %v1807_v41, %v1803_v40  ;;  %v1162_v40 = vld [vmem:[#allocation10 + $0x250] sm:$0xff]  ;;  %v1843_v41 = vld [vmem:[#allocation11 + $0xe48] sm:$0xff] }
 0x277   :  { %v5873_v46 = vpack.c.bf16 %v1162_v40, %v1160_v38  ;;  %v1181_v32 = vld [vmem:[#allocation10 + $0x2e8] sm:$0xff]  ;;  %v1878_v38 = vld [vmem:[#allocation11 + $0xf60] sm:$0xff] }
 0x279   :  { %6098 = vmatpush1.bf16.msra.mxu1 %v6097_v49  ;;  %v1815_v49 = vld [vmem:[#allocation11 + $0xd68] sm:$0xff] }
 0x27a   :  { %6100 = vmatprep.subr.bf16.mxu1 %v6099_v50  ;;  %v636_v50 = vld [vmem:[#allocation25] sm:$0xf] }
 0x27b   :  { %v641_v58 = vrot.slane %v636_v50, %v8512_v47  ;;  %v653_v63 = vrot.slane %v636_v50, %v8518_v54 }
 0x27d   :  { %6102 = vmatpush1.bf16.msra.mxu1 %v6101_v55  ;;  %v6139_v55 = vpack.c.bf16 %v1815_v49, %v1811_v48  ;;  %v6155_v48 = vpack.c.bf16 %v1847_v42, %v1843_v41  ;;  %v1842_v49 = vld [vmem:[#allocation11 + $0xe40] sm:$0xff]  ;;  %v1182_v41 = vld [vmem:[#allocation10 + $0x2f0] sm:$0xff]  ;;  %v1883_v42 = vld [vmem:[#allocation11 + $0xf88] sm:$0xff] }
 0x27e   :  { %6104 = vmatprep.subr.bf16.mxu1 %v6103_v56  ;;  %v1810_v56 = vld [vmem:[#allocation11 + $0xd40] sm:$0xff] }
 0x27f   :  { %v6141_v0 = vpack.c.bf16 %v1814_v57, %v1810_v56  ;;  %v1166_v56 = vld [vmem:[#allocation10 + $0x270] sm:$0xff]  ;;  %v1851_v57 = vld [vmem:[#allocation11 + $0xe88] sm:$0xff] }
 0x281   :  { %6106 = vmatpush1.bf16.msra.mxu1 %v6105_v61  ;;  %v649_v61 = vrot.slane %v636_v50, %v8514_v51 }
 0x282   :  { %6108 = vmatprep.subr.bf16.mxu1 %v6107_v62  ;;  %v645_v62 = vrot.slane %v636_v50, %v8516_v52  ;;  %v1846_v50 = vld [vmem:[#allocation11 + $0xe60] sm:$0xff] }
 0x285   :  { %6110 = vmatpush1.bf16.msra.mxu1 %v6109_v3  ;;  %v1818_v3 = vld [vmem:[#allocation11 + $0xd80] sm:$0xff] }
 0x286   :  { %6112 = vmatprep.subr.bf16.mxu1 %v6111_v4  ;;  %v1822_v4 = vld [vmem:[#allocation11 + $0xda0] sm:$0xff] }
 0x287   :  { %v6145_v18 = vpack.c.bf16 %v1822_v4, %v1818_v3  ;;  %v5879_v3 = vpack.c.bf16 %v1171_v60, %v1169_v59  ;;  %v1170_v4 = vld [vmem:[#allocation10 + $0x290] sm:$0xff]  ;;  %v1895_v59 = vld [vmem:[#allocation11 + $0xfe8] sm:$0xff] }
 0x288   :  { %v1189_v60 = vld [vmem:[#allocation10 + $0x328] sm:$0xff] }
 0x289   :  { %6114 = vmatpush1.bf16.msra.mxu1 %v6113_v9  ;;  %v1154_v9 = vld [vmem:[#allocation10 + $0x210] sm:$0xff] }
 0x28a   :  { %6116 = vmatprep.subr.bf16.mxu1 %v6115_v10  ;;  %v1827_v10 = vld [vmem:[#allocation11 + $0xdc8] sm:$0xff]  ;;  %v5865_v20 = vpack.c.bf16 %v1154_v9, %v1152_v8  ;;  %v1175_v8 = vld [vmem:[#allocation10 + $0x2b8] sm:$0xff] }
 0x28b   :  { %v6147_v25 = vpack.c.bf16 %v1831_v14, %v1827_v10  ;;  %v1862_v14 = vld [vmem:[#allocation11 + $0xee0] sm:$0xff] }
 0x28d   :  { %6118 = vmatpush1.bf16.msra.mxu1 %v6117_v15  ;;  %v1157_v15 = vld [vmem:[#allocation10 + $0x228] sm:$0xff] }
 0x28e   :  { %6120 = vmatprep.subr.bf16.mxu1 %v6119_v16  ;;  %v1159_v16 = vld [vmem:[#allocation10 + $0x238] sm:$0xff] }
 0x290   :  { %2639 = vmatmul.mubr.f32.vlgmr.msra.gmra.mrb[2].mxu1 %v1374_v21  ;;  %v1826_v21 = vld [vmem:[#allocation11 + $0xdc0] sm:$0xff] }
 0x291   :  { %6122 = vmatpush1.bf16.msra.mxu1 %v6121_v22  ;;  %2709 = vmatprep.mubr.f32.mxu1 %v1377_v26  ;;  %v1830_v22 = vld [vmem:[#allocation11 + $0xde0] sm:$0xff]  ;;  %v5867_v26 = vpack.c.bf16 %v1159_v16, %v1157_v15 }
 0x292   :  { %6124 = vmatprep.subr.bf16.mxu1 %v6123_v23  ;;  %v1156_v23 = vld [vmem:[#allocation10 + $0x220] sm:$0xff]  ;;  %v6149_v33 = vpack.c.bf16 %v1830_v22, %v1826_v21  ;;  %v1179_v21 = vld [vmem:[#allocation10 + $0x2d8] sm:$0xff] }
 0x293   :  { %v5869_v34 = vpack.c.bf16 %v1158_v27, %v1156_v23  ;;  %v1172_v15 = vld [vmem:[#allocation10 + $0x2a0] sm:$0xff] }
 0x294   :  { %v1176_v27 = vld [vmem:[#allocation10 + $0x2c0] sm:$0xff] }
 0x295   :  { %6126 = vmatpush1.bf16.msra.mxu1 %v6125_v29  ;;  %v1839_v29 = vld [vmem:[#allocation11 + $0xe28] sm:$0xff] }
 0x296   :  { %6128 = vmatprep.subr.bf16.mxu1 %v6127_v30  ;;  %v6151_v35 = vpack.c.bf16 %v1839_v29, %v1835_v28  ;;  %v1178_v29 = vld [vmem:[#allocation10 + $0x2d0] sm:$0xff] }
 0x299   :  { %6130 = vmatpush1.bf16.msra.mxu1 %v6129_v36  ;;  %v1834_v36 = vld [vmem:[#allocation11 + $0xe00] sm:$0xff] }
 0x29a   :  { %6132 = vmatprep.subr.bf16.mxu1 %v6131_v37  ;;  %v1838_v37 = vld [vmem:[#allocation11 + $0xe20] sm:$0xff] }
 0x29b   :  { %v6153_v45 = vpack.c.bf16 %v1838_v37, %v1834_v36  ;;  %v1874_v37 = vld [vmem:[#allocation11 + $0xf40] sm:$0xff] }
 0x29d   :  { %6134 = vmatpush1.bf16.msra.mxu1 %v6133_v43  ;;  %v1165_v43 = vld [vmem:[#allocation10 + $0x268] sm:$0xff] }
 0x29e   :  { %6136 = vmatprep.subr.bf16.mxu1 %v6135_v44  ;;  %v1167_v44 = vld [vmem:[#allocation10 + $0x278] sm:$0xff] }
 0x2a1   :  { %6138 = vmatpush1.bf16.msra.mxu1 %v6137_v53  ;;  %v1164_v53 = vld [vmem:[#allocation10 + $0x260] sm:$0xff] }
 0x2a2   :  { %v866_v1 = vpop.f32.mrb[0].mxu0  ;;  %6140 = vmatprep.subr.bf16.mxu1 %v6139_v55  ;;  %v5875_v55 = vpack.c.bf16 %v1167_v44, %v1165_v43  ;;  %v1887_v43 = vld [vmem:[#allocation11 + $0xfa8] sm:$0xff] }
 0x2a3   :  { %v7719_v5 = vadd.f32 %v866_v1, %v641_v58  ;;  %v1079_v6 = vpop.f32.mrb[0].mxu1  ;;  %v868_v7 = vpop.f32.mrb[1].mxu0  ;;  %v1855_v58 = vld [vmem:[#allocation11 + $0xea8] sm:$0xff]  ;;  %v1854_v1 = vld [vmem:[#allocation11 + $0xea0] sm:$0xff] }
 0x2a4   :  { %v8524_v11 = vadd.f32 %v1079_v6, %v649_v61  ;;  %v7720_v12 = vadd.f32 %v868_v7, %v645_v62  ;;  %v1081_v13 = vpop.f32.mrb[1].mxu1  ;;  %v6157_v61 = vpack.c.bf16 %v1846_v50, %v1842_v49  ;;  %v5877_v62 = vpack.c.bf16 %v1166_v56, %v1164_v53  ;;  %v1863_v6 = vld [vmem:[#allocation11 + $0xee8] sm:$0xff]  ;;  %v1882_v50 = vld [vmem:[#allocation11 + $0xf80] sm:$0xff] }
 0x2a5   :  { %v7722_v17 = vadd.f32 %v1081_v13, %v653_v63  ;;  %6142 = vmatpush1.bf16.msra.mxu1 %v6141_v0  ;;  %v1084_v24 = vmax.f32 %v7719_v5, 0.0  ;;  %v6159_v63 = vpack.c.bf16 %v1855_v58, %v1851_v57  ;;  %v1850_v0 = vld [vmem:[#allocation11 + $0xe80] sm:$0xff]  ;;  %v1859_v5 = vld [vmem:[#allocation11 + $0xec8] sm:$0xff]  ;;  %v6175_v49 = vpack.c.bf16 %v1887_v43, %v1883_v42  ;;  %v1186_v57 = vld [vmem:[#allocation10 + $0x310] sm:$0xff] }
 0x2a6   :  { %v1085_v19 = vmax.f32 %v7720_v12, 0.0  ;;  %6144 = vmatprep.subr.bf16.mxu1 %v6143_v2  ;;  %v1168_v2 = vld [vmem:[#allocation10 + $0x280] sm:$0xff]  ;;  %v1173_v7 = vld [vmem:[#allocation10 + $0x2a8] sm:$0xff]  ;;  %v6161_v9 = vpack.c.bf16 %v1854_v1, %v1850_v0  ;;  %v6163_v12 = vpack.c.bf16 %v1863_v6, %v1859_v5  ;;  %v1190_v5 = vld [vmem:[#allocation10 + $0x330] sm:$0xff] }
 0x2a7   :  { %v1087_v30 = vmax.f32 %v7722_v17, 0.0  ;;  %v5881_v10 = vpack.c.bf16 %v1170_v4, %v1168_v2  ;;  %v1858_v13 = vld [vmem:[#allocation11 + $0xec0] sm:$0xff]  ;;  %v5883_v16 = vpack.c.bf16 %v1175_v8, %v1173_v7  ;;  %v1174_v17 = vld [vmem:[#allocation10 + $0x2b0] sm:$0xff]  ;;  %v1185_v44 = vld [vmem:[#allocation10 + $0x308] sm:$0xff] }
 0x2a8   :  { %1292 = vmatprep.mubr.f32.mxu0 %v1085_v19  ;;  %v1871_v19 = vld [vmem:[#allocation11 + $0xf28] sm:$0xff]  ;;  %v6165_v22 = vpack.c.bf16 %v1862_v14, %v1858_v13  ;;  %v5885_v23 = vpack.c.bf16 %v1174_v17, %v1172_v15  ;;  %v1886_v53 = vld [vmem:[#allocation11 + $0xfa0] sm:$0xff] }
 0x2a9   :  { %6146 = vmatpush1.bf16.msra.mxu1 %v6145_v18  ;;  %1293 = vmatmul.mubr.f32.vlgmr.msra.gmra.mrb[2].mxu0 %v1084_v24  ;;  %v1867_v18 = vld [vmem:[#allocation11 + $0xf08] sm:$0xff]  ;;  %v1890_v1 = vld [vmem:[#allocation11 + $0xfc0] sm:$0xff] }
 0x2aa   :  { %5866 = vmatpush1.bf16.msra.mxu0 %v5865_v20  ;;  %1363 = vmatprep.mubr.f32.mxu0 %v1087_v30  ;;  %v1177_v20 = vld [vmem:[#allocation10 + $0x2c8] sm:$0xff]  ;;  %v6167_v24 = vpack.c.bf16 %v1871_v19, %v1867_v18  ;;  %v1894_v2 = vld [vmem:[#allocation11 + $0xfe0] sm:$0xff]  ;;  %v1194_v18 = vld [vmem:[#allocation10 + $0x350] sm:$0xff] }
 0x2ab   :  { %6148 = vmatprep.subr.bf16.mxu1 %v6147_v25  ;;  %5868 = vmatprep.subr.bf16.mxu0 %v5867_v26  ;;  %v1866_v25 = vld [vmem:[#allocation11 + $0xf00] sm:$0xff]  ;;  %v5887_v28 = vpack.c.bf16 %v1179_v21, %v1177_v20  ;;  %v1875_v30 = vld [vmem:[#allocation11 + $0xf48] sm:$0xff] }
 0x2ac   :  { %v1870_v26 = vld [vmem:[#allocation11 + $0xf20] sm:$0xff]  ;;  %v6171_v36 = vpack.c.bf16 %v1879_v31, %v1875_v30  ;;  %v1891_v58 = vld [vmem:[#allocation11 + $0xfc8] sm:$0xff] }
 0x2ad   :  { %6150 = vmatpush1.bf16.msra.mxu1 %v6149_v33  ;;  %v1183_v33 = vld [vmem:[#allocation10 + $0x2f8] sm:$0xff]  ;;  %v6179_v0 = vpack.c.bf16 %v1895_v59, %v1891_v58  ;;  %v1899_v6 = vld [vmem:[#allocation11 + $0x1008] sm:$0xff]  ;;  %v1898_v14 = vld [vmem:[#allocation11 + $0x1000] sm:$0xff] }
 0x2ae   :  { %5870 = vmatpush1.bf16.msra.mxu0 %v5869_v34  ;;  %6152 = vmatprep.subr.bf16.mxu1 %v6151_v35  ;;  %v6169_v34 = vpack.c.bf16 %v1870_v26, %v1866_v25  ;;  %v5889_v35 = vpack.c.bf16 %v1178_v29, %v1176_v27  ;;  %v5891_v40 = vpack.c.bf16 %v1183_v33, %v1181_v32  ;;  %v1903_v7 = vld [vmem:[#allocation11 + $0x1028] sm:$0xff]  ;;  %v1902_v15 = vld [vmem:[#allocation11 + $0x1020] sm:$0xff]  ;;  %v1198_v32 = vld [vmem:[#allocation10 + $0x370] sm:$0xff] }
 0x2af   :  { %5872 = vmatprep.subr.bf16.mxu0 %v5871_v39  ;;  %v1180_v39 = vld [vmem:[#allocation10 + $0x2e0] sm:$0xff]  ;;  %v1193_v8 = vld [vmem:[#allocation10 + $0x348] sm:$0xff]  ;;  %v6183_v13 = vpack.c.bf16 %v1903_v7, %v1899_v6 }
 0x2b0   :  { %v1907_v19 = vld [vmem:[#allocation11 + $0x1048] sm:$0xff]  ;;  %v1906_v25 = vld [vmem:[#allocation11 + $0x1040] sm:$0xff] }
 0x2b1   :  { %6154 = vmatpush1.bf16.msra.mxu1 %v6153_v45  ;;  %v1187_v45 = vld [vmem:[#allocation10 + $0x318] sm:$0xff]  ;;  %v1911_v20 = vld [vmem:[#allocation11 + $0x1068] sm:$0xff]  ;;  %v1196_v29 = vld [vmem:[#allocation10 + $0x360] sm:$0xff] }
 0x2b2   :  { %5874 = vmatpush1.bf16.msra.mxu0 %v5873_v46  ;;  %6156 = vmatprep.subr.bf16.mxu1 %v6155_v48  ;;  %v6173_v46 = vpack.c.bf16 %v1878_v38, %v1874_v37  ;;  %v5893_v48 = vpack.c.bf16 %v1182_v41, %v1180_v39  ;;  %v5895_v56 = vpack.c.bf16 %v1187_v45, %v1185_v44  ;;  %v1197_v21 = vld [vmem:[#allocation10 + $0x368] sm:$0xff]  ;;  %v1379_v30 = vld [vmem:[#allocation5 + $0x48] sm:$0xff]  ;;  %v1202_v44 = vld [vmem:[#allocation10 + $0x390] sm:$0xff] }
 0x2b3   :  { %5876 = vmatprep.subr.bf16.mxu0 %v5875_v55  ;;  %v1184_v55 = vld [vmem:[#allocation10 + $0x300] sm:$0xff]  ;;  %v6187_v27 = vpack.c.bf16 %v1911_v20, %v1907_v19  ;;  %v1915_v33 = vld [vmem:[#allocation11 + $0x1088] sm:$0xff]  ;;  %v5909_v38 = vpack.c.bf16 %v1198_v32, %v1196_v29 }
 0x2b4   :  { %v1918_v41 = vld [vmem:[#allocation11 + $0x10a0] sm:$0xff]  ;;  %v1923_v45 = vld [vmem:[#allocation11 + $0x10c8] sm:$0xff] }
 0x2b5   :  { %6158 = vmatpush1.bf16.msra.mxu1 %v6157_v61  ;;  %v1191_v61 = vld [vmem:[#allocation10 + $0x338] sm:$0xff]  ;;  %v1200_v42 = vld [vmem:[#allocation10 + $0x380] sm:$0xff] }
 0x2b6   :  { %5878 = vmatpush1.bf16.msra.mxu0 %v5877_v62  ;;  %6160 = vmatprep.subr.bf16.mxu1 %v6159_v63  ;;  %v6177_v62 = vpack.c.bf16 %v1886_v53, %v1882_v50  ;;  %v5897_v63 = vpack.c.bf16 %v1186_v57, %v1184_v55  ;;  %v5899_v4 = vpack.c.bf16 %v1191_v61, %v1189_v60  ;;  %v1926_v57 = vld [vmem:[#allocation11 + $0x10e0] sm:$0xff]  ;;  %v1206_v60 = vld [vmem:[#allocation10 + $0x3b0] sm:$0xff]  ;;  %v1931_v61 = vld [vmem:[#allocation11 + $0x1108] sm:$0xff] }
 0x2b7   :  { %5880 = vmatprep.subr.bf16.mxu0 %v5879_v3  ;;  %v1188_v3 = vld [vmem:[#allocation10 + $0x320] sm:$0xff]  ;;  %v5913_v53 = vpack.c.bf16 %v1202_v44, %v1200_v42  ;;  %v1086_v44 = vmax.f32 %v8524_v11, 0.0  ;;  %v1408_v11 = vld [vmem:[#allocation11 + $0xb0] sm:$0xff] }
 0x2b8   :  { %v1204_v58 = vld [vmem:[#allocation10 + $0x3a0] sm:$0xff] }
 0x2b9   :  { %6162 = vmatpush1.bf16.msra.mxu1 %v6161_v9  ;;  %v1195_v9 = vld [vmem:[#allocation10 + $0x358] sm:$0xff]  ;;  %v1208_v6 = vld [vmem:[#allocation10 + $0x3c0] sm:$0xff] }
 0x2ba   :  { %5882 = vmatpush1.bf16.msra.mxu0 %v5881_v10  ;;  %6164 = vmatprep.subr.bf16.mxu1 %v6163_v12  ;;  %v6181_v10 = vpack.c.bf16 %v1894_v2, %v1890_v1  ;;  %v5901_v12 = vpack.c.bf16 %v1190_v5, %v1188_v3  ;;  %v5903_v17 = vpack.c.bf16 %v1195_v9, %v1193_v8  ;;  %v1934_v5 = vld [vmem:[#allocation11 + $0x1120] sm:$0xff]  ;;  %v1210_v8 = vld [vmem:[#allocation10 + $0x3d0] sm:$0xff]  ;;  %v1939_v9 = vld [vmem:[#allocation11 + $0x1148] sm:$0xff] }
 0x2bb   :  { %5884 = vmatprep.subr.bf16.mxu0 %v5883_v16  ;;  %v1192_v16 = vld [vmem:[#allocation10 + $0x340] sm:$0xff]  ;;  %v5917_v2 = vpack.c.bf16 %v1206_v60, %v1204_v58  ;;  %v1404_v60 = vld [vmem:[#allocation11 + $0x90] sm:$0xff] }
 0x2bc   :  { %v5905_v26 = vpack.c.bf16 %v1194_v18, %v1192_v16  ;;  %v1942_v18 = vld [vmem:[#allocation11 + $0x1160] sm:$0xff] }
 0x2bd   :  { %6166 = vmatpush1.bf16.msra.mxu1 %v6165_v22  ;;  %v1199_v22 = vld [vmem:[#allocation10 + $0x378] sm:$0xff]  ;;  %v1212_v19 = vld [vmem:[#allocation10 + $0x3e0] sm:$0xff] }
 0x2be   :  { %5886 = vmatpush1.bf16.msra.mxu0 %v5885_v23  ;;  %6168 = vmatprep.subr.bf16.mxu1 %v6167_v24  ;;  %v1376_v23 = vld [vmem:[#allocation5 + $0x30] sm:$0xff]  ;;  %v6185_v24 = vpack.c.bf16 %v1902_v15, %v1898_v14  ;;  %v5907_v31 = vpack.c.bf16 %v1199_v22, %v1197_v21  ;;  %v5921_v15 = vpack.c.bf16 %v1210_v8, %v1208_v6  ;;  %v1214_v21 = vld [vmem:[#allocation10 + $0x3f0] sm:$0xff]  ;;  %v1946_v29 = vld [vmem:[#allocation11 + $0x1180] sm:$0xff] }
 0x2bf   :  { %5888 = vmatprep.subr.bf16.mxu0 %v5887_v28  ;;  %v1910_v28 = vld [vmem:[#allocation11 + $0x1060] sm:$0xff]  ;;  %v1947_v22 = vld [vmem:[#allocation11 + $0x1188] sm:$0xff]  ;;  %v1412_v8 = vld [vmem:[#allocation11 + $0xd0] sm:$0xff] }
 0x2c0   :  { %v6189_v37 = vpack.c.bf16 %v1910_v28, %v1906_v25  ;;  %v1393_v25 = vld [vmem:[#allocation11 + $0x38] sm:$0xff]  ;;  %v1958_v42 = vld [vmem:[#allocation11 + $0x11e0] sm:$0xff] }
 0x2c1   :  { %6170 = vmatpush1.bf16.msra.mxu1 %v6169_v34  ;;  %v1919_v34 = vld [vmem:[#allocation11 + $0x10a8] sm:$0xff]  ;;  %v1962_v58 = vld [vmem:[#allocation11 + $0x1200] sm:$0xff] }
 0x2c2   :  { %5890 = vmatpush1.bf16.msra.mxu0 %v5889_v35  ;;  %6172 = vmatprep.subr.bf16.mxu1 %v6171_v36  ;;  %v1201_v35 = vld [vmem:[#allocation10 + $0x388] sm:$0xff]  ;;  %v1203_v36 = vld [vmem:[#allocation10 + $0x398] sm:$0xff]  ;;  %v6191_v39 = vpack.c.bf16 %v1919_v34, %v1915_v33  ;;  %v1392_v33 = vld [vmem:[#allocation11 + $0x30] sm:$0xff] }
 0x2c3   :  { %5892 = vmatprep.subr.bf16.mxu0 %v5891_v40  ;;  %v1914_v40 = vld [vmem:[#allocation11 + $0x1080] sm:$0xff]  ;;  %v5911_v43 = vpack.c.bf16 %v1203_v36, %v1201_v35  ;;  %v1955_v34 = vld [vmem:[#allocation11 + $0x11c8] sm:$0xff]  ;;  %v1397_v36 = vld [vmem:[#allocation11 + $0x58] sm:$0xff] }
 0x2c4   :  { %v6193_v50 = vpack.c.bf16 %v1918_v41, %v1914_v40  ;;  %v1959_v35 = vld [vmem:[#allocation11 + $0x11e8] sm:$0xff]  ;;  %v1954_v41 = vld [vmem:[#allocation11 + $0x11c0] sm:$0xff] }
 0x2c5   :  { %6174 = vmatpush1.bf16.msra.mxu1 %v6173_v46  ;;  %v1927_v46 = vld [vmem:[#allocation11 + $0x10e8] sm:$0xff]  ;;  %v6211_v40 = vpack.c.bf16 %v1959_v35, %v1955_v34  ;;  %v1970_v6 = vld [vmem:[#allocation11 + $0x1240] sm:$0xff]  ;;  %v1432_v35 = vld [vmem:[#allocation11 + $0x170] sm:$0xff] }
 0x2c6   :  { %5894 = vmatpush1.bf16.msra.mxu0 %v5893_v48  ;;  %6176 = vmatprep.subr.bf16.mxu1 %v6175_v49  ;;  %v1205_v48 = vld [vmem:[#allocation10 + $0x3a8] sm:$0xff]  ;;  %v1207_v49 = vld [vmem:[#allocation10 + $0x3b8] sm:$0xff]  ;;  %v6195_v55 = vpack.c.bf16 %v1927_v46, %v1923_v45  ;;  %v1400_v46 = vld [vmem:[#allocation11 + $0x70] sm:$0xff] }
 0x2c7   :  { %5896 = vmatprep.subr.bf16.mxu0 %v5895_v56  ;;  %v1922_v56 = vld [vmem:[#allocation11 + $0x10c0] sm:$0xff]  ;;  %v5915_v59 = vpack.c.bf16 %v1207_v49, %v1205_v48  ;;  %v1963_v48 = vld [vmem:[#allocation11 + $0x1208] sm:$0xff] }
 0x2c8   :  { %v6197_v1 = vpack.c.bf16 %v1926_v57, %v1922_v56  ;;  %v1967_v49 = vld [vmem:[#allocation11 + $0x1228] sm:$0xff] }
 0x2c9   :  { %6178 = vmatpush1.bf16.msra.mxu1 %v6177_v62  ;;  %v1935_v62 = vld [vmem:[#allocation11 + $0x1128] sm:$0xff]  ;;  %v6215_v57 = vpack.c.bf16 %v1967_v49, %v1963_v48  ;;  %v1440_v48 = vld [vmem:[#allocation11 + $0x1b0] sm:$0xff] }
 0x2ca   :  { %5898 = vmatpush1.bf16.msra.mxu0 %v5897_v63  ;;  %6180 = vmatprep.subr.bf16.mxu1 %v6179_v0  ;;  %v1209_v63 = vld [vmem:[#allocation10 + $0x3c8] sm:$0xff]  ;;  %v1211_v0 = vld [vmem:[#allocation10 + $0x3d8] sm:$0xff]  ;;  %v6199_v3 = vpack.c.bf16 %v1935_v62, %v1931_v61 }
 0x2cb   :  { %5900 = vmatprep.subr.bf16.mxu0 %v5899_v4  ;;  %v1930_v4 = vld [vmem:[#allocation11 + $0x1100] sm:$0xff]  ;;  %v5919_v7 = vpack.c.bf16 %v1211_v0, %v1209_v63  ;;  %v1971_v62 = vld [vmem:[#allocation11 + $0x1248] sm:$0xff] }
 0x2cc   :  { %v6201_v14 = vpack.c.bf16 %v1934_v5, %v1930_v4  ;;  %v1975_v63 = vld [vmem:[#allocation11 + $0x1268] sm:$0xff]  ;;  %v7806_v0 = vld [vmem:[#allocation5 + $0x8] sm:$0xff]  ;;  %v6449_v4 = vpack.c.bf16 %v1408_v11, %v1404_v60 }
 0x2cd   :  { %6182 = vmatpush1.bf16.msra.mxu1 %v6181_v10  ;;  %v1943_v10 = vld [vmem:[#allocation11 + $0x1168] sm:$0xff]  ;;  %v6219_v5 = vpack.c.bf16 %v1975_v63, %v1971_v62  ;;  %v2006_v60 = vld [vmem:[#allocation11 + $0x1360] sm:$0xff]  ;;  %v1448_v62 = vld [vmem:[#allocation11 + $0x1f0] sm:$0xff] }
 0x2ce   :  { %5902 = vmatpush1.bf16.msra.mxu0 %v5901_v12  ;;  %6184 = vmatprep.subr.bf16.mxu1 %v6183_v13  ;;  %v1213_v12 = vld [vmem:[#allocation10 + $0x3e8] sm:$0xff]  ;;  %v1215_v13 = vld [vmem:[#allocation10 + $0x3f8] sm:$0xff]  ;;  %v6203_v16 = vpack.c.bf16 %v1943_v10, %v1939_v9  ;;  %v1416_v10 = vld [vmem:[#allocation11 + $0xf0] sm:$0xff] }
 0x2cf   :  { %5904 = vmatprep.subr.bf16.mxu0 %v5903_v17  ;;  %v1938_v17 = vld [vmem:[#allocation11 + $0x1140] sm:$0xff]  ;;  %v5923_v20 = vpack.c.bf16 %v1215_v13, %v1213_v12  ;;  %v1979_v12 = vld [vmem:[#allocation11 + $0x1288] sm:$0xff] }
 0x2d0   :  { %2710 = vmatmul.mubr.f32.vlgmr.msra.gmra.mrb[2].mxu1 %v1376_v23  ;;  %v1951_v23 = vld [vmem:[#allocation11 + $0x11a8] sm:$0xff] }
 0x2d1   :  { %6186 = vmatpush1.bf16.msra.mxu1 %v6185_v24  ;;  %2780 = vmatprep.mubr.f32.mxu1 %v1379_v30  ;;  %v1389_v24 = vld [vmem:[#allocation11 + $0x18] sm:$0xff]  ;;  %v6207_v28 = vpack.c.bf16 %v1951_v23, %v1947_v22  ;;  %v1950_v30 = vld [vmem:[#allocation11 + $0x11a0] sm:$0xff]  ;;  %v1983_v13 = vld [vmem:[#allocation11 + $0x12a8] sm:$0xff] }
 0x2d2   :  { %5906 = vmatpush1.bf16.msra.mxu0 %v5905_v26  ;;  %6188 = vmatprep.subr.bf16.mxu1 %v6187_v27  ;;  %v6205_v26 = vpack.c.bf16 %v1942_v18, %v1938_v17  ;;  %v5925_v27 = vpack.c.bf16 %v1214_v21, %v1212_v19  ;;  %v6439_v32 = vpack.c.bf16 %v1393_v25, %v1389_v24  ;;  %v1978_v19 = vld [vmem:[#allocation11 + $0x1280] sm:$0xff]  ;;  %v1420_v21 = vld [vmem:[#allocation11 + $0x110] sm:$0xff]  ;;  %v1987_v24 = vld [vmem:[#allocation11 + $0x12c8] sm:$0xff] }
 0x2d3   :  { %5908 = vmatprep.subr.bf16.mxu0 %v5907_v31  ;;  %v1388_v31 = vld [vmem:[#allocation11 + $0x10] sm:$0xff]  ;;  %v6453_v17 = vpack.c.bf16 %v1416_v10, %v1412_v8  ;;  %v6223_v18 = vpack.c.bf16 %v1983_v13, %v1979_v12  ;;  %v1991_v25 = vld [vmem:[#allocation11 + $0x12e8] sm:$0xff] }
 0x2d4   :  { %v1424_v23 = vld [vmem:[#allocation11 + $0x130] sm:$0xff]  ;;  %v2003_v49 = vld [vmem:[#allocation11 + $0x1348] sm:$0xff] }
 0x2d5   :  { %6190 = vmatpush1.bf16.msra.mxu1 %v6189_v37  ;;  %v1401_v37 = vld [vmem:[#allocation11 + $0x78] sm:$0xff]  ;;  %v2011_v63 = vld [vmem:[#allocation11 + $0x1388] sm:$0xff]  ;;  %v1452_v8 = vld [vmem:[#allocation11 + $0x210] sm:$0xff] }
 0x2d6   :  { %5910 = vmatpush1.bf16.msra.mxu0 %v5909_v38  ;;  %6192 = vmatprep.subr.bf16.mxu1 %v6191_v39  ;;  %v6209_v38 = vpack.c.bf16 %v1950_v30, %v1946_v29  ;;  %v6441_v39 = vpack.c.bf16 %v1392_v33, %v1388_v31  ;;  %v6443_v45 = vpack.c.bf16 %v1401_v37, %v1397_v36  ;;  %v1986_v31 = vld [vmem:[#allocation11 + $0x12c0] sm:$0xff]  ;;  %v1428_v33 = vld [vmem:[#allocation11 + $0x150] sm:$0xff]  ;;  %v1995_v36 = vld [vmem:[#allocation11 + $0x1308] sm:$0xff] }
 0x2d7   :  { %5912 = vmatprep.subr.bf16.mxu0 %v5911_v43  ;;  %v1396_v43 = vld [vmem:[#allocation11 + $0x50] sm:$0xff]  ;;  %v6457_v29 = vpack.c.bf16 %v1424_v23, %v1420_v21  ;;  %v6227_v30 = vpack.c.bf16 %v1991_v25, %v1987_v24  ;;  %v1999_v37 = vld [vmem:[#allocation11 + $0x1328] sm:$0xff] }
 0x2d8   :  { %v6445_v56 = vpack.c.bf16 %v1400_v46, %v1396_v43  ;;  %v1994_v43 = vld [vmem:[#allocation11 + $0x1300] sm:$0xff]  ;;  %v1456_v10 = vld [vmem:[#allocation11 + $0x230] sm:$0xff]  ;;  %v2019_v12 = vld [vmem:[#allocation11 + $0x13c8] sm:$0xff] }
 0x2d9   :  { %6194 = vmatpush1.bf16.msra.mxu1 %v6193_v50  ;;  %v1405_v50 = vld [vmem:[#allocation11 + $0x98] sm:$0xff]  ;;  %v2023_v13 = vld [vmem:[#allocation11 + $0x13e8] sm:$0xff]  ;;  %v1460_v21 = vld [vmem:[#allocation11 + $0x250] sm:$0xff] }
 0x2da   :  { %5914 = vmatpush1.bf16.msra.mxu0 %v5913_v53  ;;  %6196 = vmatprep.subr.bf16.mxu1 %v6195_v55  ;;  %v1409_v53 = vld [vmem:[#allocation11 + $0xb8] sm:$0xff]  ;;  %v6213_v55 = vpack.c.bf16 %v1958_v42, %v1954_v41  ;;  %v6461_v41 = vpack.c.bf16 %v1432_v35, %v1428_v33  ;;  %v6231_v42 = vpack.c.bf16 %v1999_v37, %v1995_v36  ;;  %v1464_v23 = vld [vmem:[#allocation11 + $0x270] sm:$0xff]  ;;  %v2027_v24 = vld [vmem:[#allocation11 + $0x1408] sm:$0xff] }
 0x2db   :  { %5916 = vmatprep.subr.bf16.mxu0 %v5915_v59  ;;  %v1966_v59 = vld [vmem:[#allocation11 + $0x1220] sm:$0xff]  ;;  %v6447_v61 = vpack.c.bf16 %v1409_v53, %v1405_v50  ;;  %v2007_v50 = vld [vmem:[#allocation11 + $0x1368] sm:$0xff]  ;;  %v1445_v53 = vld [vmem:[#allocation11 + $0x1d8] sm:$0xff] }
 0x2dc   :  { %v2031_v25 = vld [vmem:[#allocation11 + $0x1428] sm:$0xff]  ;;  %v1468_v33 = vld [vmem:[#allocation11 + $0x290] sm:$0xff] }
 0x2dd   :  { %6198 = vmatpush1.bf16.msra.mxu1 %v6197_v1  ;;  %v1413_v1 = vld [vmem:[#allocation11 + $0xd8] sm:$0xff]  ;;  %v1472_v35 = vld [vmem:[#allocation11 + $0x2b0] sm:$0xff]  ;;  %v2035_v36 = vld [vmem:[#allocation11 + $0x1448] sm:$0xff] }
 0x2de   :  { %5918 = vmatpush1.bf16.msra.mxu0 %v5917_v2  ;;  %6200 = vmatprep.subr.bf16.mxu1 %v6199_v3  ;;  %v1417_v2 = vld [vmem:[#allocation11 + $0xf8] sm:$0xff]  ;;  %v6217_v3 = vpack.c.bf16 %v1966_v59, %v1962_v58  ;;  %v6235_v58 = vpack.c.bf16 %v2007_v50, %v2003_v49  ;;  %v2002_v59 = vld [vmem:[#allocation11 + $0x1340] sm:$0xff]  ;;  %v2039_v37 = vld [vmem:[#allocation11 + $0x1468] sm:$0xff] }
 0x2df   :  { %5920 = vmatprep.subr.bf16.mxu0 %v5919_v7  ;;  %v1974_v7 = vld [vmem:[#allocation11 + $0x1260] sm:$0xff]  ;;  %v6451_v9 = vpack.c.bf16 %v1417_v2, %v1413_v1  ;;  %v1453_v1 = vld [vmem:[#allocation11 + $0x218] sm:$0xff]  ;;  %v1480_v50 = vld [vmem:[#allocation11 + $0x2f0] sm:$0xff] }
 0x2e0   :  { %v1457_v2 = vld [vmem:[#allocation11 + $0x238] sm:$0xff] }
 0x2e1   :  { %6202 = vmatpush1.bf16.msra.mxu1 %v6201_v14  ;;  %v1421_v14 = vld [vmem:[#allocation11 + $0x118] sm:$0xff] }
 0x2e2   :  { %5922 = vmatpush1.bf16.msra.mxu0 %v5921_v15  ;;  %6204 = vmatprep.subr.bf16.mxu1 %v6203_v16  ;;  %v1425_v15 = vld [vmem:[#allocation11 + $0x138] sm:$0xff]  ;;  %v6221_v16 = vpack.c.bf16 %v1974_v7, %v1970_v6  ;;  %v2010_v6 = vld [vmem:[#allocation11 + $0x1380] sm:$0xff] }
 0x2e3   :  { %5924 = vmatprep.subr.bf16.mxu0 %v5923_v20  ;;  %v1982_v20 = vld [vmem:[#allocation11 + $0x12a0] sm:$0xff]  ;;  %v6455_v22 = vpack.c.bf16 %v1425_v15, %v1421_v14  ;;  %v1461_v14 = vld [vmem:[#allocation11 + $0x258] sm:$0xff] }
 0x2e4   :  { %v2014_v7 = vld [vmem:[#allocation11 + $0x13a0] sm:$0xff]  ;;  %v1465_v15 = vld [vmem:[#allocation11 + $0x278] sm:$0xff] }
 0x2e5   :  { %6206 = vmatpush1.bf16.msra.mxu1 %v6205_v26  ;;  %v1429_v26 = vld [vmem:[#allocation11 + $0x158] sm:$0xff] }
 0x2e6   :  { %5926 = vmatpush1.bf16.msra.mxu0 %v5925_v27  ;;  %6208 = vmatprep.subr.bf16.mxu1 %v6207_v28  ;;  %v1433_v27 = vld [vmem:[#allocation11 + $0x178] sm:$0xff]  ;;  %v6225_v28 = vpack.c.bf16 %v1982_v20, %v1978_v19  ;;  %v2018_v19 = vld [vmem:[#allocation11 + $0x13c0] sm:$0xff] }
 0x2e7   :  { %6440 = vmatprep.subr.bf16.mxu0 %v6439_v32  ;;  %v1990_v32 = vld [vmem:[#allocation11 + $0x12e0] sm:$0xff]  ;;  %v6459_v34 = vpack.c.bf16 %v1433_v27, %v1429_v26  ;;  %v1469_v26 = vld [vmem:[#allocation11 + $0x298] sm:$0xff] }
 0x2e8   :  { %v2022_v20 = vld [vmem:[#allocation11 + $0x13e0] sm:$0xff]  ;;  %v1473_v27 = vld [vmem:[#allocation11 + $0x2b8] sm:$0xff] }
 0x2e9   :  { %1364 = vmatmul.mubr.f32.vlgmr.msra.gmra.mrb[2].mxu0 %v1086_v44  ;;  %6210 = vmatpush1.bf16.msra.mxu1 %v6209_v38  ;;  %v1437_v38 = vld [vmem:[#allocation11 + $0x198] sm:$0xff]  ;;  %v1998_v44 = vld [vmem:[#allocation11 + $0x1320] sm:$0xff] }
 0x2ea   :  { %6442 = vmatpush1.bf16.msra.mxu0 %v6441_v39  ;;  %6212 = vmatprep.subr.bf16.mxu1 %v6211_v40  ;;  %v1441_v39 = vld [vmem:[#allocation11 + $0x1b8] sm:$0xff]  ;;  %v6229_v40 = vpack.c.bf16 %v1990_v32, %v1986_v31  ;;  %v2026_v31 = vld [vmem:[#allocation11 + $0x1400] sm:$0xff] }
 0x2eb   :  { %6444 = vmatprep.subr.bf16.mxu0 %v6443_v45  ;;  %3064 = vmatprep.mubr.f32.mxu0 %v7806_v0  ;;  %v1436_v45 = vld [vmem:[#allocation11 + $0x190] sm:$0xff]  ;;  %v6463_v46 = vpack.c.bf16 %v1441_v39, %v1437_v38  ;;  %v2015_v0 = vld [vmem:[#allocation11 + $0x13a8] sm:$0xff]  ;;  %v2030_v32 = vld [vmem:[#allocation11 + $0x1420] sm:$0xff] }
 0x2ec   :  { %v1477_v38 = vld [vmem:[#allocation11 + $0x2d8] sm:$0xff] }
 0x2ed   :  { %6214 = vmatpush1.bf16.msra.mxu1 %v6213_v55  ;;  %v1449_v55 = vld [vmem:[#allocation11 + $0x1f8] sm:$0xff] }
 0x2ee   :  { %6446 = vmatpush1.bf16.msra.mxu0 %v6445_v56  ;;  %6216 = vmatprep.subr.bf16.mxu1 %v6215_v57  ;;  %v6233_v56 = vpack.c.bf16 %v1998_v44, %v1994_v43  ;;  %v6465_v57 = vpack.c.bf16 %v1440_v48, %v1436_v45  ;;  %v6467_v11 = vpack.c.bf16 %v1449_v55, %v1445_v53  ;;  %v1481_v39 = vld [vmem:[#allocation11 + $0x2f8] sm:$0xff]  ;;  %v2038_v45 = vld [vmem:[#allocation11 + $0x1460] sm:$0xff]  ;;  %v1381_v48 = vld [vmem:[#allocation5 + $0x58] sm:$0xff] }
 0x2ef   :  { %6448 = vmatprep.subr.bf16.mxu0 %v6447_v61  ;;  %v1444_v61 = vld [vmem:[#allocation11 + $0x1d0] sm:$0xff]  ;;  %v6481_v43 = vpack.c.bf16 %v1472_v35, %v1468_v33  ;;  %v6251_v44 = vpack.c.bf16 %v2039_v37, %v2035_v36  ;;  %v6483_v49 = vpack.c.bf16 %v1481_v39, %v1477_v38  ;;  %v2043_v53 = vld [vmem:[#allocation11 + $0x1488] sm:$0xff]  ;;  %v2066_v33 = vld [vmem:[#allocation11 + $0x1540] sm:$0xff] }
 0x2f0   :  { %v2047_v55 = vld [vmem:[#allocation11 + $0x14a8] sm:$0xff]  ;;  %v1508_v35 = vld [vmem:[#allocation11 + $0x3d0] sm:$0xff] }
 0x2f1   :  { %6218 = vmatpush1.bf16.msra.mxu1 %v6217_v3  ;;  %v6237_v3 = vpack.c.bf16 %v2006_v60, %v2002_v59  ;;  %v6255_v60 = vpack.c.bf16 %v2047_v55, %v2043_v53  ;;  %v1512_v37 = vld [vmem:[#allocation11 + $0x3f0] sm:$0xff]  ;;  %v2075_v38 = vld [vmem:[#allocation11 + $0x1588] sm:$0xff] }
 0x2f2   :  { %6450 = vmatpush1.bf16.msra.mxu0 %v6449_v4  ;;  %6220 = vmatprep.subr.bf16.mxu1 %v6219_v5  ;;  %v6469_v4 = vpack.c.bf16 %v1448_v62, %v1444_v61  ;;  %v6239_v5 = vpack.c.bf16 %v2015_v0, %v2011_v63  ;;  %v2042_v61 = vld [vmem:[#allocation11 + $0x1480] sm:$0xff]  ;;  %v1484_v62 = vld [vmem:[#allocation11 + $0x310] sm:$0xff]  ;;  %v2079_v39 = vld [vmem:[#allocation11 + $0x15a8] sm:$0xff] }
 0x2f3   :  { %6452 = vmatprep.subr.bf16.mxu0 %v6451_v9  ;;  %v6471_v9 = vpack.c.bf16 %v1457_v2, %v1453_v1  ;;  %v1488_v0 = vld [vmem:[#allocation11 + $0x330] sm:$0xff]  ;;  %v2051_v1 = vld [vmem:[#allocation11 + $0x14c8] sm:$0xff] }
 0x2f4   :  { %v2055_v2 = vld [vmem:[#allocation11 + $0x14e8] sm:$0xff] }
 0x2f5   :  { %6222 = vmatpush1.bf16.msra.mxu1 %v6221_v16  ;;  %v6241_v16 = vpack.c.bf16 %v2014_v7, %v2010_v6  ;;  %v6489_v6 = vpack.c.bf16 %v1488_v0, %v1484_v62  ;;  %v6259_v7 = vpack.c.bf16 %v2055_v2, %v2051_v1  ;;  %v2083_v53 = vld [vmem:[#allocation11 + $0x15c8] sm:$0xff]  ;;  %v1524_v62 = vld [vmem:[#allocation11 + $0x450] sm:$0xff] }
 0x2f6   :  { %6454 = vmatpush1.bf16.msra.mxu0 %v6453_v17  ;;  %6224 = vmatprep.subr.bf16.mxu1 %v6223_v18  ;;  %v6473_v17 = vpack.c.bf16 %v1456_v10, %v1452_v8  ;;  %v6243_v18 = vpack.c.bf16 %v2023_v13, %v2019_v12  ;;  %v2050_v8 = vld [vmem:[#allocation11 + $0x14c0] sm:$0xff]  ;;  %v1492_v10 = vld [vmem:[#allocation11 + $0x350] sm:$0xff]  ;;  %v2087_v55 = vld [vmem:[#allocation11 + $0x15e8] sm:$0xff] }
 0x2f7   :  { %6456 = vmatprep.subr.bf16.mxu0 %v6455_v22  ;;  %v6475_v22 = vpack.c.bf16 %v1465_v15, %v1461_v14  ;;  %v1496_v13 = vld [vmem:[#allocation11 + $0x370] sm:$0xff]  ;;  %v2059_v14 = vld [vmem:[#allocation11 + $0x1508] sm:$0xff] }
 0x2f8   :  { %v2063_v15 = vld [vmem:[#allocation11 + $0x1528] sm:$0xff]  ;;  %v1528_v0 = vld [vmem:[#allocation11 + $0x470] sm:$0xff] }
 0x2f9   :  { %6226 = vmatpush1.bf16.msra.mxu1 %v6225_v28  ;;  %v6245_v28 = vpack.c.bf16 %v2022_v20, %v2018_v19  ;;  %v6493_v19 = vpack.c.bf16 %v1496_v13, %v1492_v10  ;;  %v6263_v20 = vpack.c.bf16 %v2063_v15, %v2059_v14  ;;  %v2091_v1 = vld [vmem:[#allocation11 + $0x1608] sm:$0xff]  ;;  %v2094_v10 = vld [vmem:[#allocation11 + $0x1620] sm:$0xff]  ;;  %v1536_v14 = vld [vmem:[#allocation11 + $0x4b0] sm:$0xff] }
 0x2fa   :  { %6458 = vmatpush1.bf16.msra.mxu0 %v6457_v29  ;;  %6228 = vmatprep.subr.bf16.mxu1 %v6227_v30  ;;  %v6477_v29 = vpack.c.bf16 %v1464_v23, %v1460_v21  ;;  %v6247_v30 = vpack.c.bf16 %v2031_v25, %v2027_v24  ;;  %v2058_v21 = vld [vmem:[#allocation11 + $0x1500] sm:$0xff]  ;;  %v1500_v23 = vld [vmem:[#allocation11 + $0x390] sm:$0xff]  ;;  %v2095_v2 = vld [vmem:[#allocation11 + $0x1628] sm:$0xff] }
 0x2fb   :  { %6460 = vmatprep.subr.bf16.mxu0 %v6459_v34  ;;  %v6479_v34 = vpack.c.bf16 %v1473_v27, %v1469_v26  ;;  %v1504_v25 = vld [vmem:[#allocation11 + $0x3b0] sm:$0xff]  ;;  %v2067_v26 = vld [vmem:[#allocation11 + $0x1548] sm:$0xff] }
 0x2fc   :  { %v2071_v27 = vld [vmem:[#allocation11 + $0x1568] sm:$0xff] }
 0x2fd   :  { %6230 = vmatpush1.bf16.msra.mxu1 %v6229_v40  ;;  %v1378_v40 = vld [vmem:[#allocation5 + $0x40] sm:$0xff]  ;;  %v2099_v15 = vld [vmem:[#allocation11 + $0x1648] sm:$0xff] }
 0x2fe   :  { %6462 = vmatpush1.bf16.msra.mxu0 %v6461_v41  ;;  %6232 = vmatprep.subr.bf16.mxu1 %v6231_v42  ;;  %v6249_v41 = vpack.c.bf16 %v2030_v32, %v2026_v31  ;;  %v2034_v42 = vld [vmem:[#allocation11 + $0x1440] sm:$0xff]  ;;  %v6497_v31 = vpack.c.bf16 %v1504_v25, %v1500_v23  ;;  %v6267_v32 = vpack.c.bf16 %v2071_v27, %v2067_v26  ;;  %v1540_v25 = vld [vmem:[#allocation11 + $0x4d0] sm:$0xff] }
 0x2ff   :  { %6464 = vmatprep.subr.bf16.mxu0 %v6463_v46  ;;  %v1476_v46 = vld [vmem:[#allocation11 + $0x2d0] sm:$0xff]  ;;  %v2098_v23 = vld [vmem:[#allocation11 + $0x1640] sm:$0xff] }
 0x300   :  { %v6485_v59 = vpack.c.bf16 %v1480_v50, %v1476_v46  ;;  %v2078_v46 = vld [vmem:[#allocation11 + $0x15a0] sm:$0xff]  ;;  %v1520_v50 = vld [vmem:[#allocation11 + $0x430] sm:$0xff] }
 0x301   :  { %6234 = vmatpush1.bf16.msra.mxu1 %v6233_v56  ;;  %v1485_v56 = vld [vmem:[#allocation11 + $0x318] sm:$0xff]  ;;  %v1544_v27 = vld [vmem:[#allocation11 + $0x4f0] sm:$0xff] }
 0x302   :  { %6466 = vmatpush1.bf16.msra.mxu0 %v6465_v57  ;;  %6236 = vmatprep.subr.bf16.mxu1 %v6235_v58  ;;  %v1489_v57 = vld [vmem:[#allocation11 + $0x338] sm:$0xff]  ;;  %v6253_v58 = vpack.c.bf16 %v2038_v45, %v2034_v42  ;;  %v2074_v45 = vld [vmem:[#allocation11 + $0x1580] sm:$0xff] }
 0x303   :  { %6468 = vmatprep.subr.bf16.mxu0 %v6467_v11  ;;  %v2046_v11 = vld [vmem:[#allocation11 + $0x14a0] sm:$0xff]  ;;  %v6487_v63 = vpack.c.bf16 %v1489_v57, %v1485_v56  ;;  %v1525_v56 = vld [vmem:[#allocation11 + $0x458] sm:$0xff] }
 0x304   :  { %v1529_v57 = vld [vmem:[#allocation11 + $0x478] sm:$0xff] }
 0x305   :  { %6238 = vmatpush1.bf16.msra.mxu1 %v6237_v3  ;;  %v1493_v3 = vld [vmem:[#allocation11 + $0x358] sm:$0xff] }
 0x306   :  { %6470 = vmatpush1.bf16.msra.mxu0 %v6469_v4  ;;  %6240 = vmatprep.subr.bf16.mxu1 %v6239_v5  ;;  %v1497_v4 = vld [vmem:[#allocation11 + $0x378] sm:$0xff]  ;;  %v6257_v5 = vpack.c.bf16 %v2046_v11, %v2042_v61  ;;  %v2082_v61 = vld [vmem:[#allocation11 + $0x15c0] sm:$0xff] }
 0x307   :  { %6472 = vmatprep.subr.bf16.mxu0 %v6471_v9  ;;  %v2054_v9 = vld [vmem:[#allocation11 + $0x14e0] sm:$0xff]  ;;  %v6491_v12 = vpack.c.bf16 %v1497_v4, %v1493_v3  ;;  %v1533_v3 = vld [vmem:[#allocation11 + $0x498] sm:$0xff] }
 0x308   :  { %v2086_v11 = vld [vmem:[#allocation11 + $0x15e0] sm:$0xff]  ;;  %v1537_v4 = vld [vmem:[#allocation11 + $0x4b8] sm:$0xff] }
 0x309   :  { %6242 = vmatpush1.bf16.msra.mxu1 %v6241_v16  ;;  %v1501_v16 = vld [vmem:[#allocation11 + $0x398] sm:$0xff]  ;;  %v6511_v13 = vpack.c.bf16 %v1537_v4, %v1533_v3  ;;  %v2131_v3 = vld [vmem:[#allocation11 + $0x1748] sm:$0xff] }
 0x30a   :  { %6474 = vmatpush1.bf16.msra.mxu0 %v6473_v17  ;;  %6244 = vmatprep.subr.bf16.mxu1 %v6243_v18  ;;  %v1505_v17 = vld [vmem:[#allocation11 + $0x3b8] sm:$0xff]  ;;  %v6261_v18 = vpack.c.bf16 %v2054_v9, %v2050_v8  ;;  %v6279_v8 = vpack.c.bf16 %v2095_v2, %v2091_v1  ;;  %v2090_v9 = vld [vmem:[#allocation11 + $0x1600] sm:$0xff]  ;;  %v1568_v2 = vld [vmem:[#allocation11 + $0x5b0] sm:$0xff] }
 0x30b   :  { %6476 = vmatprep.subr.bf16.mxu0 %v6475_v22  ;;  %v2062_v22 = vld [vmem:[#allocation11 + $0x1520] sm:$0xff]  ;;  %v6495_v24 = vpack.c.bf16 %v1505_v17, %v1501_v16  ;;  %v2103_v16 = vld [vmem:[#allocation11 + $0x1668] sm:$0xff]  ;;  %v7808_v17 = vld [vmem:[#allocation5 + $0x18] sm:$0xff] }
 0x30c   :  { %v2135_v4 = vld [vmem:[#allocation11 + $0x1768] sm:$0xff] }
 0x30d   :  { %6246 = vmatpush1.bf16.msra.mxu1 %v6245_v28  ;;  %v1509_v28 = vld [vmem:[#allocation11 + $0x3d8] sm:$0xff] }
 0x30e   :  { %6478 = vmatpush1.bf16.msra.mxu0 %v6477_v29  ;;  %6248 = vmatprep.subr.bf16.mxu1 %v6247_v30  ;;  %v1513_v29 = vld [vmem:[#allocation11 + $0x3f8] sm:$0xff]  ;;  %v6265_v30 = vpack.c.bf16 %v2062_v22, %v2058_v21  ;;  %v6283_v22 = vpack.c.bf16 %v2103_v16, %v2099_v15  ;;  %v1576_v15 = vld [vmem:[#allocation11 + $0x5f0] sm:$0xff]  ;;  %v2139_v16 = vld [vmem:[#allocation11 + $0x1788] sm:$0xff] }
 0x30f   :  { %6480 = vmatprep.subr.bf16.mxu0 %v6479_v34  ;;  %v2070_v34 = vld [vmem:[#allocation11 + $0x1560] sm:$0xff]  ;;  %v6499_v36 = vpack.c.bf16 %v1513_v29, %v1509_v28  ;;  %v2107_v28 = vld [vmem:[#allocation11 + $0x1688] sm:$0xff] }
 0x310   :  { %2781 = vmatmul.mubr.f32.vlgmr.msra.gmra.mrb[2].mxu1 %v1378_v40  ;;  %v1517_v40 = vld [vmem:[#allocation11 + $0x418] sm:$0xff]  ;;  %v6269_v42 = vpack.c.bf16 %v2070_v34, %v2066_v33  ;;  %v2111_v29 = vld [vmem:[#allocation11 + $0x16a8] sm:$0xff]  ;;  %v6517_v33 = vpack.c.bf16 %v1544_v27, %v1540_v25  ;;  %v1580_v25 = vld [vmem:[#allocation11 + $0x610] sm:$0xff] }
 0x311   :  { %6250 = vmatpush1.bf16.msra.mxu1 %v6249_v41  ;;  %2851 = vmatprep.mubr.f32.mxu1 %v1381_v48  ;;  %v1521_v41 = vld [vmem:[#allocation11 + $0x438] sm:$0xff]  ;;  %v1516_v48 = vld [vmem:[#allocation11 + $0x410] sm:$0xff]  ;;  %v6287_v34 = vpack.c.bf16 %v2111_v29, %v2107_v28  ;;  %v2147_v28 = vld [vmem:[#allocation11 + $0x17c8] sm:$0xff] }
 0x312   :  { %6482 = vmatpush1.bf16.msra.mxu0 %v6481_v43  ;;  %6252 = vmatprep.subr.bf16.mxu1 %v6251_v44  ;;  %v6501_v43 = vpack.c.bf16 %v1512_v37, %v1508_v35  ;;  %v6271_v44 = vpack.c.bf16 %v2079_v39, %v2075_v38  ;;  %v2106_v35 = vld [vmem:[#allocation11 + $0x1680] sm:$0xff]  ;;  %v1548_v37 = vld [vmem:[#allocation11 + $0x510] sm:$0xff]  ;;  %v2151_v29 = vld [vmem:[#allocation11 + $0x17e8] sm:$0xff] }
 0x313   :  { %6484 = vmatprep.subr.bf16.mxu0 %v6483_v49  ;;  %v6503_v49 = vpack.c.bf16 %v1521_v41, %v1517_v40  ;;  %v1552_v39 = vld [vmem:[#allocation11 + $0x530] sm:$0xff]  ;;  %v2115_v40 = vld [vmem:[#allocation11 + $0x16c8] sm:$0xff] }
 0x314   :  { %v2119_v41 = vld [vmem:[#allocation11 + $0x16e8] sm:$0xff]  ;;  %v1584_v27 = vld [vmem:[#allocation11 + $0x630] sm:$0xff] }
 0x315   :  { %6254 = vmatpush1.bf16.msra.mxu1 %v6253_v58  ;;  %v6273_v58 = vpack.c.bf16 %v2078_v46, %v2074_v45  ;;  %v6521_v45 = vpack.c.bf16 %v1552_v39, %v1548_v37  ;;  %v6291_v46 = vpack.c.bf16 %v2119_v41, %v2115_v40  ;;  %v1588_v37 = vld [vmem:[#allocation11 + $0x650] sm:$0xff]  ;;  %v2155_v40 = vld [vmem:[#allocation11 + $0x1808] sm:$0xff] }
 0x316   :  { %6486 = vmatpush1.bf16.msra.mxu0 %v6485_v59  ;;  %6256 = vmatprep.subr.bf16.mxu1 %v6255_v60  ;;  %v6505_v59 = vpack.c.bf16 %v1520_v50, %v1516_v48  ;;  %v6275_v60 = vpack.c.bf16 %v2087_v55, %v2083_v53  ;;  %v2114_v48 = vld [vmem:[#allocation11 + $0x16c0] sm:$0xff]  ;;  %v1556_v50 = vld [vmem:[#allocation11 + $0x550] sm:$0xff]  ;;  %v2159_v41 = vld [vmem:[#allocation11 + $0x1828] sm:$0xff] }
 0x317   :  { %6488 = vmatprep.subr.bf16.mxu0 %v6487_v63  ;;  %v6507_v63 = vpack.c.bf16 %v1529_v57, %v1525_v56  ;;  %v1560_v55 = vld [vmem:[#allocation11 + $0x570] sm:$0xff]  ;;  %v2123_v56 = vld [vmem:[#allocation11 + $0x1708] sm:$0xff] }
 0x318   :  { %v2127_v57 = vld [vmem:[#allocation11 + $0x1728] sm:$0xff]  ;;  %v1592_v39 = vld [vmem:[#allocation11 + $0x670] sm:$0xff] }
 0x319   :  { %6258 = vmatpush1.bf16.msra.mxu1 %v6257_v5  ;;  %v7807_v5 = vld [vmem:[#allocation5] sm:$0xff] }
 0x31a   :  { %6490 = vmatpush1.bf16.msra.mxu0 %v6489_v6  ;;  %6260 = vmatprep.subr.bf16.mxu1 %v6259_v7  ;;  %v6277_v6 = vpack.c.bf16 %v2086_v11, %v2082_v61  ;;  %v6509_v7 = vpack.c.bf16 %v1528_v0, %v1524_v62  ;;  %v6525_v61 = vpack.c.bf16 %v1560_v55, %v1556_v50  ;;  %v2122_v62 = vld [vmem:[#allocation11 + $0x1700] sm:$0xff]  ;;  %v1564_v0 = vld [vmem:[#allocation11 + $0x590] sm:$0xff] }
 0x31b   :  { %6492 = vmatprep.subr.bf16.mxu0 %v6491_v12  ;;  %v1532_v12 = vld [vmem:[#allocation11 + $0x490] sm:$0xff]  ;;  %v6295_v11 = vpack.c.bf16 %v2127_v57, %v2123_v56  ;;  %v2163_v56 = vld [vmem:[#allocation11 + $0x1848] sm:$0xff] }
 0x31c   :  { %v6513_v21 = vpack.c.bf16 %v1536_v14, %v1532_v12  ;;  %v2134_v12 = vld [vmem:[#allocation11 + $0x1760] sm:$0xff]  ;;  %v1596_v50 = vld [vmem:[#allocation11 + $0x690] sm:$0xff]  ;;  %v2167_v57 = vld [vmem:[#allocation11 + $0x1868] sm:$0xff] }
 0x31d   :  { %6262 = vmatpush1.bf16.msra.mxu1 %v6261_v18  ;;  %v1541_v18 = vld [vmem:[#allocation11 + $0x4d8] sm:$0xff]  ;;  %v1600_v55 = vld [vmem:[#allocation11 + $0x6b0] sm:$0xff] }
 0x31e   :  { %6494 = vmatpush1.bf16.msra.mxu0 %v6493_v19  ;;  %6264 = vmatprep.subr.bf16.mxu1 %v6263_v20  ;;  %v1545_v19 = vld [vmem:[#allocation11 + $0x4f8] sm:$0xff]  ;;  %v6281_v20 = vpack.c.bf16 %v2094_v10, %v2090_v9  ;;  %v6299_v9 = vpack.c.bf16 %v2135_v4, %v2131_v3  ;;  %v2130_v10 = vld [vmem:[#allocation11 + $0x1740] sm:$0xff]  ;;  %v1608_v4 = vld [vmem:[#allocation11 + $0x6f0] sm:$0xff] }
 0x31f   :  { %6496 = vmatprep.subr.bf16.mxu0 %v6495_v24  ;;  %v2102_v24 = vld [vmem:[#allocation11 + $0x1660] sm:$0xff]  ;;  %v6515_v26 = vpack.c.bf16 %v1545_v19, %v1541_v18  ;;  %v1581_v18 = vld [vmem:[#allocation11 + $0x618] sm:$0xff] }
 0x320   :  { %v1585_v19 = vld [vmem:[#allocation11 + $0x638] sm:$0xff] }
 0x321   :  { %6266 = vmatpush1.bf16.msra.mxu1 %v6265_v30  ;;  %v1549_v30 = vld [vmem:[#allocation11 + $0x518] sm:$0xff] }
 0x322   :  { %6498 = vmatpush1.bf16.msra.mxu0 %v6497_v31  ;;  %6268 = vmatprep.subr.bf16.mxu1 %v6267_v32  ;;  %v1553_v31 = vld [vmem:[#allocation11 + $0x538] sm:$0xff]  ;;  %v6285_v32 = vpack.c.bf16 %v2102_v24, %v2098_v23  ;;  %v2138_v23 = vld [vmem:[#allocation11 + $0x1780] sm:$0xff] }
 0x323   :  { %6500 = vmatprep.subr.bf16.mxu0 %v6499_v36  ;;  %v2110_v36 = vld [vmem:[#allocation11 + $0x16a0] sm:$0xff]  ;;  %v6519_v38 = vpack.c.bf16 %v1553_v31, %v1549_v30  ;;  %v1589_v30 = vld [vmem:[#allocation11 + $0x658] sm:$0xff] }
 0x324   :  { %v2142_v24 = vld [vmem:[#allocation11 + $0x17a0] sm:$0xff]  ;;  %v1593_v31 = vld [vmem:[#allocation11 + $0x678] sm:$0xff] }
 0x325   :  { %6270 = vmatpush1.bf16.msra.mxu1 %v6269_v42  ;;  %v1557_v42 = vld [vmem:[#allocation11 + $0x558] sm:$0xff] }
 0x326   :  { %6502 = vmatpush1.bf16.msra.mxu0 %v6501_v43  ;;  %6272 = vmatprep.subr.bf16.mxu1 %v6271_v44  ;;  %v1561_v43 = vld [vmem:[#allocation11 + $0x578] sm:$0xff]  ;;  %v6289_v44 = vpack.c.bf16 %v2110_v36, %v2106_v35  ;;  %v2146_v35 = vld [vmem:[#allocation11 + $0x17c0] sm:$0xff] }
 0x327   :  { %6504 = vmatprep.subr.bf16.mxu0 %v6503_v49  ;;  %v2118_v49 = vld [vmem:[#allocation11 + $0x16e0] sm:$0xff]  ;;  %v6523_v53 = vpack.c.bf16 %v1561_v43, %v1557_v42  ;;  %v1597_v42 = vld [vmem:[#allocation11 + $0x698] sm:$0xff] }
 0x328   :  { %v2150_v36 = vld [vmem:[#allocation11 + $0x17e0] sm:$0xff]  ;;  %v1601_v43 = vld [vmem:[#allocation11 + $0x6b8] sm:$0xff] }
 0x329   :  { %6274 = vmatpush1.bf16.msra.mxu1 %v6273_v58  ;;  %3065 = vmatmul.mubr.f32.vlgmr.msra.gmra.mrb[4].mxu0 %v7807_v5  ;;  %v1565_v58 = vld [vmem:[#allocation11 + $0x598] sm:$0xff] }
 0x32a   :  { %6506 = vmatpush1.bf16.msra.mxu0 %v6505_v59  ;;  %6276 = vmatprep.subr.bf16.mxu1 %v6275_v60  ;;  %v1569_v59 = vld [vmem:[#allocation11 + $0x5b8] sm:$0xff]  ;;  %v6293_v60 = vpack.c.bf16 %v2118_v49, %v2114_v48  ;;  %v2154_v48 = vld [vmem:[#allocation11 + $0x1800] sm:$0xff] }
 0x32b   :  { %6508 = vmatprep.subr.bf16.mxu0 %v6507_v63  ;;  %3135 = vmatprep.mubr.f32.mxu0 %v7808_v17  ;;  %v2126_v63 = vld [vmem:[#allocation11 + $0x1720] sm:$0xff]  ;;  %v6527_v1 = vpack.c.bf16 %v1569_v59, %v1565_v58  ;;  %v1573_v5 = vld [vmem:[#allocation11 + $0x5d8] sm:$0xff]  ;;  %v2143_v17 = vld [vmem:[#allocation11 + $0x17a8] sm:$0xff] }
 0x32c   :  { %v2158_v49 = vld [vmem:[#allocation11 + $0x1820] sm:$0xff]  ;;  %v1605_v58 = vld [vmem:[#allocation11 + $0x6d8] sm:$0xff] }
 0x32d   :  { %6278 = vmatpush1.bf16.msra.mxu1 %v6277_v6  ;;  %v1577_v6 = vld [vmem:[#allocation11 + $0x5f8] sm:$0xff] }
 0x32e   :  { %6510 = vmatpush1.bf16.msra.mxu0 %v6509_v7  ;;  %6280 = vmatprep.subr.bf16.mxu1 %v6279_v8  ;;  %v6297_v7 = vpack.c.bf16 %v2126_v63, %v2122_v62  ;;  %v6529_v8 = vpack.c.bf16 %v1568_v2, %v1564_v0  ;;  %v6531_v14 = vpack.c.bf16 %v1577_v6, %v1573_v5  ;;  %v1609_v59 = vld [vmem:[#allocation11 + $0x6f8] sm:$0xff]  ;;  %v2166_v0 = vld [vmem:[#allocation11 + $0x1860] sm:$0xff]  ;;  %v2171_v5 = vld [vmem:[#allocation11 + $0x1888] sm:$0xff] }
 0x32f   :  { %6512 = vmatprep.subr.bf16.mxu0 %v6511_v13  ;;  %v1572_v13 = vld [vmem:[#allocation11 + $0x5d0] sm:$0xff]  ;;  %v6545_v62 = vpack.c.bf16 %v1600_v55, %v1596_v50  ;;  %v6315_v63 = vpack.c.bf16 %v2167_v57, %v2163_v56  ;;  %v1383_v2 = vld [vmem:[#allocation5 + $0x68] sm:$0xff]  ;;  %v6547_v3 = vpack.c.bf16 %v1609_v59, %v1605_v58  ;;  %v2175_v6 = vld [vmem:[#allocation11 + $0x18a8] sm:$0xff] }
 0x330   :  { %v2194_v50 = vld [vmem:[#allocation11 + $0x1940] sm:$0xff]  ;;  %v1636_v55 = vld [vmem:[#allocation11 + $0x7d0] sm:$0xff]  ;;  %v2203_v58 = vld [vmem:[#allocation11 + $0x1988] sm:$0xff] }
 0x331   :  { %6282 = vmatpush1.bf16.msra.mxu1 %v6281_v20  ;;  %v6301_v20 = vpack.c.bf16 %v2134_v12, %v2130_v10  ;;  %v6319_v12 = vpack.c.bf16 %v2175_v6, %v2171_v5  ;;  %v1640_v57 = vld [vmem:[#allocation11 + $0x7f0] sm:$0xff]  ;;  %v2207_v59 = vld [vmem:[#allocation11 + $0x19a8] sm:$0xff] }
 0x332   :  { %6514 = vmatpush1.bf16.msra.mxu0 %v6513_v21  ;;  %6284 = vmatprep.subr.bf16.mxu1 %v6283_v22  ;;  %v6533_v21 = vpack.c.bf16 %v1576_v15, %v1572_v13  ;;  %v6303_v22 = vpack.c.bf16 %v2143_v17, %v2139_v16  ;;  %v2170_v13 = vld [vmem:[#allocation11 + $0x1880] sm:$0xff]  ;;  %v1612_v15 = vld [vmem:[#allocation11 + $0x710] sm:$0xff]  ;;  %v2211_v5 = vld [vmem:[#allocation11 + $0x19c8] sm:$0xff] }
 0x333   :  { %6516 = vmatprep.subr.bf16.mxu0 %v6515_v26  ;;  %v6535_v26 = vpack.c.bf16 %v1585_v19, %v1581_v18  ;;  %v1616_v17 = vld [vmem:[#allocation11 + $0x730] sm:$0xff]  ;;  %v2179_v18 = vld [vmem:[#allocation11 + $0x18c8] sm:$0xff] }
 0x334   :  { %v2183_v19 = vld [vmem:[#allocation11 + $0x18e8] sm:$0xff] }
 0x335   :  { %6286 = vmatpush1.bf16.msra.mxu1 %v6285_v32  ;;  %v6305_v32 = vpack.c.bf16 %v2142_v24, %v2138_v23  ;;  %v6553_v23 = vpack.c.bf16 %v1616_v17, %v1612_v15  ;;  %v6323_v24 = vpack.c.bf16 %v2183_v19, %v2179_v18  ;;  %v2215_v6 = vld [vmem:[#allocation11 + $0x19e8] sm:$0xff]  ;;  %v1652_v15 = vld [vmem:[#allocation11 + $0x850] sm:$0xff] }
 0x336   :  { %6518 = vmatpush1.bf16.msra.mxu0 %v6517_v33  ;;  %6288 = vmatprep.subr.bf16.mxu1 %v6287_v34  ;;  %v6537_v33 = vpack.c.bf16 %v1584_v27, %v1580_v25  ;;  %v6307_v34 = vpack.c.bf16 %v2151_v29, %v2147_v28  ;;  %v2178_v25 = vld [vmem:[#allocation11 + $0x18c0] sm:$0xff]  ;;  %v1620_v27 = vld [vmem:[#allocation11 + $0x750] sm:$0xff]  ;;  %v2219_v18 = vld [vmem:[#allocation11 + $0x1a08] sm:$0xff] }
 0x337   :  { %6520 = vmatprep.subr.bf16.mxu0 %v6519_v38  ;;  %v6539_v38 = vpack.c.bf16 %v1593_v31, %v1589_v30  ;;  %v1624_v29 = vld [vmem:[#allocation11 + $0x770] sm:$0xff]  ;;  %v2187_v30 = vld [vmem:[#allocation11 + $0x1908] sm:$0xff] }
 0x338   :  { %v2191_v31 = vld [vmem:[#allocation11 + $0x1928] sm:$0xff]  ;;  %v1656_v17 = vld [vmem:[#allocation11 + $0x870] sm:$0xff] }
 0x339   :  { %6290 = vmatpush1.bf16.msra.mxu1 %v6289_v44  ;;  %v6309_v44 = vpack.c.bf16 %v2150_v36, %v2146_v35  ;;  %v6557_v35 = vpack.c.bf16 %v1624_v29, %v1620_v27  ;;  %v6327_v36 = vpack.c.bf16 %v2191_v31, %v2187_v30  ;;  %v2223_v19 = vld [vmem:[#allocation11 + $0x1a28] sm:$0xff]  ;;  %v2222_v27 = vld [vmem:[#allocation11 + $0x1a20] sm:$0xff]  ;;  %v1664_v30 = vld [vmem:[#allocation11 + $0x8b0] sm:$0xff] }
 0x33a   :  { %6522 = vmatpush1.bf16.msra.mxu0 %v6521_v45  ;;  %6292 = vmatprep.subr.bf16.mxu1 %v6291_v46  ;;  %v6541_v45 = vpack.c.bf16 %v1592_v39, %v1588_v37  ;;  %v6311_v46 = vpack.c.bf16 %v2159_v41, %v2155_v40  ;;  %v2186_v37 = vld [vmem:[#allocation11 + $0x1900] sm:$0xff]  ;;  %v1628_v39 = vld [vmem:[#allocation11 + $0x790] sm:$0xff]  ;;  %v2227_v31 = vld [vmem:[#allocation11 + $0x1a48] sm:$0xff] }
 0x33b   :  { %6524 = vmatprep.subr.bf16.mxu0 %v6523_v53  ;;  %v6543_v53 = vpack.c.bf16 %v1601_v43, %v1597_v42  ;;  %v1632_v41 = vld [vmem:[#allocation11 + $0x7b0] sm:$0xff]  ;;  %v2195_v42 = vld [vmem:[#allocation11 + $0x1948] sm:$0xff] }
 0x33c   :  { %v2199_v43 = vld [vmem:[#allocation11 + $0x1968] sm:$0xff] }
 0x33d   :  { %6294 = vmatpush1.bf16.msra.mxu1 %v6293_v60  ;;  %v1380_v60 = vld [vmem:[#allocation5 + $0x50] sm:$0xff] }
 0x33e   :  { %6526 = vmatpush1.bf16.msra.mxu0 %v6525_v61  ;;  %6296 = vmatprep.subr.bf16.mxu1 %v6295_v11  ;;  %v6313_v61 = vpack.c.bf16 %v2158_v49, %v2154_v48  ;;  %v2162_v11 = vld [vmem:[#allocation11 + $0x1840] sm:$0xff]  ;;  %v6561_v48 = vpack.c.bf16 %v1632_v41, %v1628_v39  ;;  %v6331_v49 = vpack.c.bf16 %v2199_v43, %v2195_v42  ;;  %v1668_v41 = vld [vmem:[#allocation11 + $0x8d0] sm:$0xff] }
 0x33f   :  { %6528 = vmatprep.subr.bf16.mxu0 %v6527_v1  ;;  %v1604_v1 = vld [vmem:[#allocation11 + $0x6d0] sm:$0xff]  ;;  %v2226_v39 = vld [vmem:[#allocation11 + $0x1a40] sm:$0xff] }
 0x340   :  { %v6549_v10 = vpack.c.bf16 %v1608_v4, %v1604_v1  ;;  %v2206_v1 = vld [vmem:[#allocation11 + $0x19a0] sm:$0xff]  ;;  %v1648_v4 = vld [vmem:[#allocation11 + $0x830] sm:$0xff] }
 0x341   :  { %6298 = vmatpush1.bf16.msra.mxu1 %v6297_v7  ;;  %v1613_v7 = vld [vmem:[#allocation11 + $0x718] sm:$0xff]  ;;  %v1672_v43 = vld [vmem:[#allocation11 + $0x8f0] sm:$0xff] }
 0x342   :  { %6530 = vmatpush1.bf16.msra.mxu0 %v6529_v8  ;;  %6300 = vmatprep.subr.bf16.mxu1 %v6299_v9  ;;  %v1617_v8 = vld [vmem:[#allocation11 + $0x738] sm:$0xff]  ;;  %v6317_v9 = vpack.c.bf16 %v2166_v0, %v2162_v11  ;;  %v2202_v0 = vld [vmem:[#allocation11 + $0x1980] sm:$0xff] }
 0x343   :  { %6532 = vmatprep.subr.bf16.mxu0 %v6531_v14  ;;  %v2174_v14 = vld [vmem:[#allocation11 + $0x18a0] sm:$0xff]  ;;  %v6551_v16 = vpack.c.bf16 %v1617_v8, %v1613_v7  ;;  %v1653_v7 = vld [vmem:[#allocation11 + $0x858] sm:$0xff] }
 0x344   :  { %v1657_v8 = vld [vmem:[#allocation11 + $0x878] sm:$0xff] }
 0x345   :  { %6302 = vmatpush1.bf16.msra.mxu1 %v6301_v20  ;;  %v1621_v20 = vld [vmem:[#allocation11 + $0x758] sm:$0xff] }
 0x346   :  { %6534 = vmatpush1.bf16.msra.mxu0 %v6533_v21  ;;  %6304 = vmatprep.subr.bf16.mxu1 %v6303_v22  ;;  %v1625_v21 = vld [vmem:[#allocation11 + $0x778] sm:$0xff]  ;;  %v6321_v22 = vpack.c.bf16 %v2174_v14, %v2170_v13  ;;  %v2210_v13 = vld [vmem:[#allocation11 + $0x19c0] sm:$0xff] }
 0x347   :  { %6536 = vmatprep.subr.bf16.mxu0 %v6535_v26  ;;  %v2182_v26 = vld [vmem:[#allocation11 + $0x18e0] sm:$0xff]  ;;  %v6555_v28 = vpack.c.bf16 %v1625_v21, %v1621_v20  ;;  %v1661_v20 = vld [vmem:[#allocation11 + $0x898] sm:$0xff] }
 0x348   :  { %v2214_v14 = vld [vmem:[#allocation11 + $0x19e0] sm:$0xff]  ;;  %v1665_v21 = vld [vmem:[#allocation11 + $0x8b8] sm:$0xff] }
 0x349   :  { %6306 = vmatpush1.bf16.msra.mxu1 %v6305_v32  ;;  %v1629_v32 = vld [vmem:[#allocation11 + $0x798] sm:$0xff]  ;;  %v6575_v29 = vpack.c.bf16 %v1665_v21, %v1661_v20  ;;  %v2259_v20 = vld [vmem:[#allocation11 + $0x1b48] sm:$0xff] }
 0x34a   :  { %6538 = vmatpush1.bf16.msra.mxu0 %v6537_v33  ;;  %6308 = vmatprep.subr.bf16.mxu1 %v6307_v34  ;;  %v1633_v33 = vld [vmem:[#allocation11 + $0x7b8] sm:$0xff]  ;;  %v6325_v34 = vpack.c.bf16 %v2182_v26, %v2178_v25  ;;  %v6343_v25 = vpack.c.bf16 %v2223_v19, %v2219_v18  ;;  %v2218_v26 = vld [vmem:[#allocation11 + $0x1a00] sm:$0xff]  ;;  %v1696_v19 = vld [vmem:[#allocation11 + $0x9b0] sm:$0xff] }
 0x34b   :  { %6540 = vmatprep.subr.bf16.mxu0 %v6539_v38  ;;  %v2190_v38 = vld [vmem:[#allocation11 + $0x1920] sm:$0xff]  ;;  %v6559_v40 = vpack.c.bf16 %v1633_v33, %v1629_v32  ;;  %v2231_v32 = vld [vmem:[#allocation11 + $0x1a68] sm:$0xff] }
 0x34c   :  { %v7810_v33 = vld [vmem:[#allocation5 + $0x28] sm:$0xff]  ;;  %v2263_v21 = vld [vmem:[#allocation11 + $0x1b68] sm:$0xff] }
 0x34d   :  { %6310 = vmatpush1.bf16.msra.mxu1 %v6309_v44  ;;  %v1637_v44 = vld [vmem:[#allocation11 + $0x7d8] sm:$0xff] }
 0x34e   :  { %6542 = vmatpush1.bf16.msra.mxu0 %v6541_v45  ;;  %6312 = vmatprep.subr.bf16.mxu1 %v6311_v46  ;;  %v1641_v45 = vld [vmem:[#allocation11 + $0x7f8] sm:$0xff]  ;;  %v6329_v46 = vpack.c.bf16 %v2190_v38, %v2186_v37  ;;  %v6347_v38 = vpack.c.bf16 %v2231_v32, %v2227_v31  ;;  %v1704_v31 = vld [vmem:[#allocation11 + $0x9f0] sm:$0xff]  ;;  %v2267_v32 = vld [vmem:[#allocation11 + $0x1b88] sm:$0xff] }
 0x34f   :  { %6544 = vmatprep.subr.bf16.mxu0 %v6543_v53  ;;  %v2198_v53 = vld [vmem:[#allocation11 + $0x1960] sm:$0xff]  ;;  %v6563_v56 = vpack.c.bf16 %v1641_v45, %v1637_v44  ;;  %v2235_v44 = vld [vmem:[#allocation11 + $0x1a88] sm:$0xff] }
 0x350   :  { %2852 = vmatmul.mubr.f32.vlgmr.msra.gmra.mrb[2].mxu1 %v1380_v60  ;;  %v1645_v60 = vld [vmem:[#allocation11 + $0x818] sm:$0xff]  ;;  %v6333_v11 = vpack.c.bf16 %v2198_v53, %v2194_v50  ;;  %v2239_v45 = vld [vmem:[#allocation11 + $0x1aa8] sm:$0xff]  ;;  %v6581_v50 = vpack.c.bf16 %v1672_v43, %v1668_v41  ;;  %v1708_v41 = vld [vmem:[#allocation11 + $0xa10] sm:$0xff] }
 0x351   :  { %6314 = vmatpush1.bf16.msra.mxu1 %v6313_v61  ;;  %2922 = vmatprep.mubr.f32.mxu1 %v1383_v2  ;;  %v1649_v61 = vld [vmem:[#allocation11 + $0x838] sm:$0xff]  ;;  %v1644_v2 = vld [vmem:[#allocation11 + $0x810] sm:$0xff]  ;;  %v6351_v53 = vpack.c.bf16 %v2239_v45, %v2235_v44  ;;  %v2275_v44 = vld [vmem:[#allocation11 + $0x1bc8] sm:$0xff] }
 0x352   :  { %6546 = vmatpush1.bf16.msra.mxu0 %v6545_v62  ;;  %6316 = vmatprep.subr.bf16.mxu1 %v6315_v63  ;;  %v6565_v62 = vpack.c.bf16 %v1640_v57, %v1636_v55  ;;  %v6335_v63 = vpack.c.bf16 %v2207_v59, %v2203_v58  ;;  %v2234_v55 = vld [vmem:[#allocation11 + $0x1a80] sm:$0xff]  ;;  %v1676_v57 = vld [vmem:[#allocation11 + $0x910] sm:$0xff]  ;;  %v2279_v45 = vld [vmem:[#allocation11 + $0x1be8] sm:$0xff] }
 0x353   :  { %6548 = vmatprep.subr.bf16.mxu0 %v6547_v3  ;;  %v6567_v3 = vpack.c.bf16 %v1649_v61, %v1645_v60  ;;  %v1680_v59 = vld [vmem:[#allocation11 + $0x930] sm:$0xff]  ;;  %v2243_v60 = vld [vmem:[#allocation11 + $0x1ac8] sm:$0xff] }
 0x354   :  { %v2247_v61 = vld [vmem:[#allocation11 + $0x1ae8] sm:$0xff]  ;;  %v1712_v43 = vld [vmem:[#allocation11 + $0xa30] sm:$0xff] }
 0x355   :  { %6318 = vmatpush1.bf16.msra.mxu1 %v6317_v9  ;;  %v6337_v9 = vpack.c.bf16 %v2206_v1, %v2202_v0  ;;  %v6585_v0 = vpack.c.bf16 %v1680_v59, %v1676_v57  ;;  %v6355_v1 = vpack.c.bf16 %v2247_v61, %v2243_v60  ;;  %v1716_v57 = vld [vmem:[#allocation11 + $0xa50] sm:$0xff]  ;;  %v2283_v60 = vld [vmem:[#allocation11 + $0x1c08] sm:$0xff] }
 0x356   :  { %6550 = vmatpush1.bf16.msra.mxu0 %v6549_v10  ;;  %6320 = vmatprep.subr.bf16.mxu1 %v6319_v12  ;;  %v6569_v10 = vpack.c.bf16 %v1648_v4, %v1644_v2  ;;  %v6339_v12 = vpack.c.bf16 %v2215_v6, %v2211_v5  ;;  %v2242_v2 = vld [vmem:[#allocation11 + $0x1ac0] sm:$0xff]  ;;  %v1684_v4 = vld [vmem:[#allocation11 + $0x950] sm:$0xff]  ;;  %v2287_v61 = vld [vmem:[#allocation11 + $0x1c28] sm:$0xff] }
 0x357   :  { %6552 = vmatprep.subr.bf16.mxu0 %v6551_v16  ;;  %v6571_v16 = vpack.c.bf16 %v1657_v8, %v1653_v7  ;;  %v1688_v6 = vld [vmem:[#allocation11 + $0x970] sm:$0xff]  ;;  %v2251_v7 = vld [vmem:[#allocation11 + $0x1b08] sm:$0xff] }
 0x358   :  { %v2255_v8 = vld [vmem:[#allocation11 + $0x1b28] sm:$0xff]  ;;  %v1720_v59 = vld [vmem:[#allocation11 + $0xa70] sm:$0xff] }
 0x359   :  { %6322 = vmatpush1.bf16.msra.mxu1 %v6321_v22  ;;  %v7809_v22 = vld [vmem:[#allocation5 + $0x10] sm:$0xff] }
 0x35a   :  { %6554 = vmatpush1.bf16.msra.mxu0 %v6553_v23  ;;  %6324 = vmatprep.subr.bf16.mxu1 %v6323_v24  ;;  %v6341_v23 = vpack.c.bf16 %v2214_v14, %v2210_v13  ;;  %v6573_v24 = vpack.c.bf16 %v1656_v17, %v1652_v15  ;;  %v6589_v13 = vpack.c.bf16 %v1688_v6, %v1684_v4  ;;  %v2250_v15 = vld [vmem:[#allocation11 + $0x1b00] sm:$0xff]  ;;  %v1692_v17 = vld [vmem:[#allocation11 + $0x990] sm:$0xff] }
 0x35b   :  { %6556 = vmatprep.subr.bf16.mxu0 %v6555_v28  ;;  %v1660_v28 = vld [vmem:[#allocation11 + $0x890] sm:$0xff]  ;;  %v6359_v14 = vpack.c.bf16 %v2255_v8, %v2251_v7  ;;  %v2291_v7 = vld [vmem:[#allocation11 + $0x1c48] sm:$0xff] }
 0x35c   :  { %v6577_v37 = vpack.c.bf16 %v1664_v30, %v1660_v28  ;;  %v2262_v28 = vld [vmem:[#allocation11 + $0x1b60] sm:$0xff]  ;;  %v1724_v4 = vld [vmem:[#allocation11 + $0xa90] sm:$0xff]  ;;  %v2295_v8 = vld [vmem:[#allocation11 + $0x1c68] sm:$0xff] }
 0x35d   :  { %6326 = vmatpush1.bf16.msra.mxu1 %v6325_v34  ;;  %v1669_v34 = vld [vmem:[#allocation11 + $0x8d8] sm:$0xff]  ;;  %v1728_v6 = vld [vmem:[#allocation11 + $0xab0] sm:$0xff] }
 0x35e   :  { %6558 = vmatpush1.bf16.msra.mxu0 %v6557_v35  ;;  %6328 = vmatprep.subr.bf16.mxu1 %v6327_v36  ;;  %v1673_v35 = vld [vmem:[#allocation11 + $0x8f8] sm:$0xff]  ;;  %v6345_v36 = vpack.c.bf16 %v2222_v27, %v2218_v26  ;;  %v6363_v26 = vpack.c.bf16 %v2263_v21, %v2259_v20  ;;  %v2258_v27 = vld [vmem:[#allocation11 + $0x1b40] sm:$0xff]  ;;  %v1736_v21 = vld [vmem:[#allocation11 + $0xaf0] sm:$0xff] }
 0x35f   :  { %6560 = vmatprep.subr.bf16.mxu0 %v6559_v40  ;;  %v2230_v40 = vld [vmem:[#allocation11 + $0x1a60] sm:$0xff]  ;;  %v6579_v42 = vpack.c.bf16 %v1673_v35, %v1669_v34  ;;  %v1709_v34 = vld [vmem:[#allocation11 + $0xa18] sm:$0xff] }
 0x360   :  { %v1713_v35 = vld [vmem:[#allocation11 + $0xa38] sm:$0xff] }
 0x361   :  { %6330 = vmatpush1.bf16.msra.mxu1 %v6329_v46  ;;  %v1677_v46 = vld [vmem:[#allocation11 + $0x918] sm:$0xff] }
 0x362   :  { %6562 = vmatpush1.bf16.msra.mxu0 %v6561_v48  ;;  %6332 = vmatprep.subr.bf16.mxu1 %v6331_v49  ;;  %v1681_v48 = vld [vmem:[#allocation11 + $0x938] sm:$0xff]  ;;  %v6349_v49 = vpack.c.bf16 %v2230_v40, %v2226_v39  ;;  %v2266_v39 = vld [vmem:[#allocation11 + $0x1b80] sm:$0xff] }
 0x363   :  { %6564 = vmatprep.subr.bf16.mxu0 %v6563_v56  ;;  %v2238_v56 = vld [vmem:[#allocation11 + $0x1aa0] sm:$0xff]  ;;  %v6583_v58 = vpack.c.bf16 %v1681_v48, %v1677_v46  ;;  %v1717_v46 = vld [vmem:[#allocation11 + $0xa58] sm:$0xff] }
 0x364   :  { %v2270_v40 = vld [vmem:[#allocation11 + $0x1ba0] sm:$0xff]  ;;  %v1721_v48 = vld [vmem:[#allocation11 + $0xa78] sm:$0xff] }
 0x365   :  { %6334 = vmatpush1.bf16.msra.mxu1 %v6333_v11  ;;  %v1685_v11 = vld [vmem:[#allocation11 + $0x958] sm:$0xff] }
 0x366   :  { %6566 = vmatpush1.bf16.msra.mxu0 %v6565_v62  ;;  %6336 = vmatprep.subr.bf16.mxu1 %v6335_v63  ;;  %v1689_v62 = vld [vmem:[#allocation11 + $0x978] sm:$0xff]  ;;  %v6353_v63 = vpack.c.bf16 %v2238_v56, %v2234_v55  ;;  %v2274_v55 = vld [vmem:[#allocation11 + $0x1bc0] sm:$0xff] }
 0x367   :  { %6568 = vmatprep.subr.bf16.mxu0 %v6567_v3  ;;  %v2246_v3 = vld [vmem:[#allocation11 + $0x1ae0] sm:$0xff]  ;;  %v6587_v5 = vpack.c.bf16 %v1689_v62, %v1685_v11  ;;  %v1725_v11 = vld [vmem:[#allocation11 + $0xa98] sm:$0xff] }
 0x368   :  { %v2278_v56 = vld [vmem:[#allocation11 + $0x1be0] sm:$0xff]  ;;  %v1729_v62 = vld [vmem:[#allocation11 + $0xab8] sm:$0xff] }
 0x369   :  { %6338 = vmatpush1.bf16.msra.mxu1 %v6337_v9  ;;  %3136 = vmatmul.mubr.f32.vlgmr.msra.gmra.mrb[4].mxu0 %v7809_v22  ;;  %v1693_v9 = vld [vmem:[#allocation11 + $0x998] sm:$0xff] }
 0x36a   :  { %6570 = vmatpush1.bf16.msra.mxu0 %v6569_v10  ;;  %6340 = vmatprep.subr.bf16.mxu1 %v6339_v12  ;;  %v1697_v10 = vld [vmem:[#allocation11 + $0x9b8] sm:$0xff]  ;;  %v6357_v12 = vpack.c.bf16 %v2246_v3, %v2242_v2  ;;  %v2282_v2 = vld [vmem:[#allocation11 + $0x1c00] sm:$0xff] }
 0x36b   :  { %6572 = vmatprep.subr.bf16.mxu0 %v6571_v16  ;;  %3206 = vmatprep.mubr.f32.mxu0 %v7810_v33  ;;  %v2254_v16 = vld [vmem:[#allocation11 + $0x1b20] sm:$0xff]  ;;  %v6591_v18 = vpack.c.bf16 %v1697_v10, %v1693_v9  ;;  %v1701_v22 = vld [vmem:[#allocation11 + $0x9d8] sm:$0xff]  ;;  %v2271_v33 = vld [vmem:[#allocation11 + $0x1ba8] sm:$0xff] }
 0x36c   :  { %v2286_v3 = vld [vmem:[#allocation11 + $0x1c20] sm:$0xff]  ;;  %v1733_v9 = vld [vmem:[#allocation11 + $0xad8] sm:$0xff] }
 0x36d   :  { %6342 = vmatpush1.bf16.msra.mxu1 %v6341_v23  ;;  %v1705_v23 = vld [vmem:[#allocation11 + $0x9f8] sm:$0xff] }
 0x36e   :  { %6574 = vmatpush1.bf16.msra.mxu0 %v6573_v24  ;;  %6344 = vmatprep.subr.bf16.mxu1 %v6343_v25  ;;  %v6361_v24 = vpack.c.bf16 %v2254_v16, %v2250_v15  ;;  %v6593_v25 = vpack.c.bf16 %v1696_v19, %v1692_v17  ;;  %v6595_v30 = vpack.c.bf16 %v1705_v23, %v1701_v22  ;;  %v1737_v10 = vld [vmem:[#allocation11 + $0xaf8] sm:$0xff]  ;;  %v2294_v17 = vld [vmem:[#allocation11 + $0x1c60] sm:$0xff]  ;;  %v1385_v19 = vld [vmem:[#allocation5 + $0x78] sm:$0xff] }
 0x36f   :  { %6576 = vmatprep.subr.bf16.mxu0 %v6575_v29  ;;  %v1700_v29 = vld [vmem:[#allocation11 + $0x9d0] sm:$0xff]  ;;  %v6609_v15 = vpack.c.bf16 %v1728_v6, %v1724_v4  ;;  %v6379_v16 = vpack.c.bf16 %v2295_v8, %v2291_v7  ;;  %v6611_v20 = vpack.c.bf16 %v1737_v10, %v1733_v9  ;;  %v2299_v22 = vld [vmem:[#allocation11 + $0x1c88] sm:$0xff]  ;;  %v2322_v4 = vld [vmem:[#allocation11 + $0x1d40] sm:$0xff] }
 0x370   :  { %v2303_v23 = vld [vmem:[#allocation11 + $0x1ca8] sm:$0xff]  ;;  %v1764_v6 = vld [vmem:[#allocation11 + $0xbd0] sm:$0xff] }
 0x371   :  { %6346 = vmatpush1.bf16.msra.mxu1 %v6345_v36  ;;  %v6365_v36 = vpack.c.bf16 %v2262_v28, %v2258_v27  ;;  %v6383_v28 = vpack.c.bf16 %v2303_v23, %v2299_v22  ;;  %v1768_v8 = vld [vmem:[#allocation11 + $0xbf0] sm:$0xff]  ;;  %v2331_v9 = vld [vmem:[#allocation11 + $0x1d88] sm:$0xff] }
 0x372   :  { %6578 = vmatpush1.bf16.msra.mxu0 %v6577_v37  ;;  %6348 = vmatprep.subr.bf16.mxu1 %v6347_v38  ;;  %v6597_v37 = vpack.c.bf16 %v1704_v31, %v1700_v29  ;;  %v6367_v38 = vpack.c.bf16 %v2271_v33, %v2267_v32  ;;  %v2298_v29 = vld [vmem:[#allocation11 + $0x1c80] sm:$0xff]  ;;  %v1740_v31 = vld [vmem:[#allocation11 + $0xb10] sm:$0xff]  ;;  %v2335_v10 = vld [vmem:[#allocation11 + $0x1da8] sm:$0xff] }
 0x373   :  { %6580 = vmatprep.subr.bf16.mxu0 %v6579_v42  ;;  %v6599_v42 = vpack.c.bf16 %v1713_v35, %v1709_v34  ;;  %v1744_v33 = vld [vmem:[#allocation11 + $0xb30] sm:$0xff]  ;;  %v2307_v34 = vld [vmem:[#allocation11 + $0x1cc8] sm:$0xff] }
 0x374   :  { %v2311_v35 = vld [vmem:[#allocation11 + $0x1ce8] sm:$0xff] }
 0x375   :  { %6350 = vmatpush1.bf16.msra.mxu1 %v6349_v49  ;;  %v6369_v49 = vpack.c.bf16 %v2270_v40, %v2266_v39  ;;  %v6617_v39 = vpack.c.bf16 %v1744_v33, %v1740_v31  ;;  %v6387_v40 = vpack.c.bf16 %v2311_v35, %v2307_v34  ;;  %v2339_v22 = vld [vmem:[#allocation11 + $0x1dc8] sm:$0xff]  ;;  %v1780_v31 = vld [vmem:[#allocation11 + $0xc50] sm:$0xff] }
 0x376   :  { %6582 = vmatpush1.bf16.msra.mxu0 %v6581_v50  ;;  %6352 = vmatprep.subr.bf16.mxu1 %v6351_v53  ;;  %v6601_v50 = vpack.c.bf16 %v1712_v43, %v1708_v41  ;;  %v6371_v53 = vpack.c.bf16 %v2279_v45, %v2275_v44  ;;  %v2306_v41 = vld [vmem:[#allocation11 + $0x1cc0] sm:$0xff]  ;;  %v1748_v43 = vld [vmem:[#allocation11 + $0xb50] sm:$0xff]  ;;  %v2343_v23 = vld [vmem:[#allocation11 + $0x1de8] sm:$0xff] }
 0x377   :  { %6584 = vmatprep.subr.bf16.mxu0 %v6583_v58  ;;  %v6603_v58 = vpack.c.bf16 %v1721_v48, %v1717_v46  ;;  %v1752_v45 = vld [vmem:[#allocation11 + $0xb70] sm:$0xff]  ;;  %v2315_v46 = vld [vmem:[#allocation11 + $0x1d08] sm:$0xff] }
 0x378   :  { %v2319_v48 = vld [vmem:[#allocation11 + $0x1d28] sm:$0xff]  ;;  %v1784_v33 = vld [vmem:[#allocation11 + $0xc70] sm:$0xff] }
 0x379   :  { %6354 = vmatpush1.bf16.msra.mxu1 %v6353_v63  ;;  %v6373_v63 = vpack.c.bf16 %v2278_v56, %v2274_v55  ;;  %v6621_v55 = vpack.c.bf16 %v1752_v45, %v1748_v43  ;;  %v6391_v56 = vpack.c.bf16 %v2319_v48, %v2315_v46  ;;  %v2347_v34 = vld [vmem:[#allocation11 + $0x1e08] sm:$0xff]  ;;  %v2350_v43 = vld [vmem:[#allocation11 + $0x1e20] sm:$0xff]  ;;  %v1792_v46 = vld [vmem:[#allocation11 + $0xcb0] sm:$0xff] }
 0x37a   :  { %6586 = vmatpush1.bf16.msra.mxu0 %v6585_v0  ;;  %6356 = vmatprep.subr.bf16.mxu1 %v6355_v1  ;;  %v6605_v0 = vpack.c.bf16 %v1720_v59, %v1716_v57  ;;  %v6375_v1 = vpack.c.bf16 %v2287_v61, %v2283_v60  ;;  %v2314_v57 = vld [vmem:[#allocation11 + $0x1d00] sm:$0xff]  ;;  %v1756_v59 = vld [vmem:[#allocation11 + $0xb90] sm:$0xff]  ;;  %v2351_v35 = vld [vmem:[#allocation11 + $0x1e28] sm:$0xff] }
 0x37b   :  { %6588 = vmatprep.subr.bf16.mxu0 %v6587_v5  ;;  %v6607_v5 = vpack.c.bf16 %v1729_v62, %v1725_v11  ;;  %v1760_v61 = vld [vmem:[#allocation11 + $0xbb0] sm:$0xff]  ;;  %v2323_v11 = vld [vmem:[#allocation11 + $0x1d48] sm:$0xff] }
 0x37c   :  { %v2327_v62 = vld [vmem:[#allocation11 + $0x1d68] sm:$0xff] }
 0x37d   :  { %6358 = vmatpush1.bf16.msra.mxu1 %v6357_v12  ;;  %v1382_v12 = vld [vmem:[#allocation5 + $0x60] sm:$0xff]  ;;  %v2355_v48 = vld [vmem:[#allocation11 + $0x1e48] sm:$0xff] }
 0x37e   :  { %6590 = vmatpush1.bf16.msra.mxu0 %v6589_v13  ;;  %6360 = vmatprep.subr.bf16.mxu1 %v6359_v14  ;;  %v6377_v13 = vpack.c.bf16 %v2286_v3, %v2282_v2  ;;  %v2290_v14 = vld [vmem:[#allocation11 + $0x1c40] sm:$0xff]  ;;  %v6625_v2 = vpack.c.bf16 %v1760_v61, %v1756_v59  ;;  %v6395_v3 = vpack.c.bf16 %v2327_v62, %v2323_v11  ;;  %v1796_v61 = vld [vmem:[#allocation11 + $0xcd0] sm:$0xff] }
 0x37f   :  { %6592 = vmatprep.subr.bf16.mxu0 %v6591_v18  ;;  %v1732_v18 = vld [vmem:[#allocation11 + $0xad0] sm:$0xff]  ;;  %v2354_v59 = vld [vmem:[#allocation11 + $0x1e40] sm:$0xff] }
 0x380   :  { %v6613_v27 = vpack.c.bf16 %v1736_v21, %v1732_v18  ;;  %v2334_v18 = vld [vmem:[#allocation11 + $0x1da0] sm:$0xff]  ;;  %v1776_v21 = vld [vmem:[#allocation11 + $0xc30] sm:$0xff] }
 0x381   :  { %6362 = vmatpush1.bf16.msra.mxu1 %v6361_v24  ;;  %v1741_v24 = vld [vmem:[#allocation11 + $0xb18] sm:$0xff]  ;;  %v1800_v62 = vld [vmem:[#allocation11 + $0xcf0] sm:$0xff] }
 0x382   :  { %6594 = vmatpush1.bf16.msra.mxu0 %v6593_v25  ;;  %6364 = vmatprep.subr.bf16.mxu1 %v6363_v26  ;;  %v1745_v25 = vld [vmem:[#allocation11 + $0xb38] sm:$0xff]  ;;  %v6381_v26 = vpack.c.bf16 %v2294_v17, %v2290_v14  ;;  %v2330_v17 = vld [vmem:[#allocation11 + $0x1d80] sm:$0xff] }
 0x383   :  { %6596 = vmatprep.subr.bf16.mxu0 %v6595_v30  ;;  %v2302_v30 = vld [vmem:[#allocation11 + $0x1ca0] sm:$0xff]  ;;  %v6615_v32 = vpack.c.bf16 %v1745_v25, %v1741_v24  ;;  %v1781_v24 = vld [vmem:[#allocation11 + $0xc58] sm:$0xff] }
 0x384   :  { %v1785_v25 = vld [vmem:[#allocation11 + $0xc78] sm:$0xff] }
 0x385   :  { %6366 = vmatpush1.bf16.msra.mxu1 %v6365_v36  ;;  %v1749_v36 = vld [vmem:[#allocation11 + $0xb58] sm:$0xff] }
 0x386   :  { %6598 = vmatpush1.bf16.msra.mxu0 %v6597_v37  ;;  %6368 = vmatprep.subr.bf16.mxu1 %v6367_v38  ;;  %v1753_v37 = vld [vmem:[#allocation11 + $0xb78] sm:$0xff]  ;;  %v6385_v38 = vpack.c.bf16 %v2302_v30, %v2298_v29  ;;  %v2338_v29 = vld [vmem:[#allocation11 + $0x1dc0] sm:$0xff] }
 0x387   :  { %6600 = vmatprep.subr.bf16.mxu0 %v6599_v42  ;;  %v2310_v42 = vld [vmem:[#allocation11 + $0x1ce0] sm:$0xff]  ;;  %v6619_v44 = vpack.c.bf16 %v1753_v37, %v1749_v36  ;;  %v1789_v36 = vld [vmem:[#allocation11 + $0xc98] sm:$0xff] }
 0x388   :  { %v2342_v30 = vld [vmem:[#allocation11 + $0x1de0] sm:$0xff]  ;;  %v1793_v37 = vld [vmem:[#allocation11 + $0xcb8] sm:$0xff] }
 0x389   :  { %6370 = vmatpush1.bf16.msra.mxu1 %v6369_v49  ;;  %v1757_v49 = vld [vmem:[#allocation11 + $0xb98] sm:$0xff]  ;;  %v6639_v45 = vpack.c.bf16 %v1793_v37, %v1789_v36  ;;  %v2387_v36 = vld [vmem:[#allocation11 + $0x1f48] sm:$0xff] }
 0x38a   :  { %6602 = vmatpush1.bf16.msra.mxu0 %v6601_v50  ;;  %6372 = vmatprep.subr.bf16.mxu1 %v6371_v53  ;;  %v1761_v50 = vld [vmem:[#allocation11 + $0xbb8] sm:$0xff]  ;;  %v6389_v53 = vpack.c.bf16 %v2310_v42, %v2306_v41  ;;  %v6407_v41 = vpack.c.bf16 %v2351_v35, %v2347_v34  ;;  %v2346_v42 = vld [vmem:[#allocation11 + $0x1e00] sm:$0xff]  ;;  %v1824_v35 = vld [vmem:[#allocation11 + $0xdb0] sm:$0xff] }
 0x38b   :  { %6604 = vmatprep.subr.bf16.mxu0 %v6603_v58  ;;  %v2318_v58 = vld [vmem:[#allocation11 + $0x1d20] sm:$0xff]  ;;  %v6623_v60 = vpack.c.bf16 %v1761_v50, %v1757_v49  ;;  %v2359_v49 = vld [vmem:[#allocation11 + $0x1e68] sm:$0xff]  ;;  %v7812_v50 = vld [vmem:[#allocation5 + $0x38] sm:$0xff] }
 0x38c   :  { %v2391_v37 = vld [vmem:[#allocation11 + $0x1f68] sm:$0xff] }
 0x38d   :  { %6374 = vmatpush1.bf16.msra.mxu1 %v6373_v63  ;;  %v1765_v63 = vld [vmem:[#allocation11 + $0xbd8] sm:$0xff] }
 0x38e   :  { %6606 = vmatpush1.bf16.msra.mxu0 %v6605_v0  ;;  %6376 = vmatprep.subr.bf16.mxu1 %v6375_v1  ;;  %v1769_v0 = vld [vmem:[#allocation11 + $0xbf8] sm:$0xff]  ;;  %v6393_v1 = vpack.c.bf16 %v2318_v58, %v2314_v57  ;;  %v6411_v58 = vpack.c.bf16 %v2359_v49, %v2355_v48  ;;  %v1828_v48 = vld [vmem:[#allocation11 + $0xdd0] sm:$0xff] }
 0x38f   :  { %6608 = vmatprep.subr.bf16.mxu0 %v6607_v5  ;;  %v2326_v5 = vld [vmem:[#allocation11 + $0x1d60] sm:$0xff]  ;;  %v6627_v7 = vpack.c.bf16 %v1769_v0, %v1765_v63  ;;  %v2363_v63 = vld [vmem:[#allocation11 + $0x1e88] sm:$0xff] }
 0x390   :  { %2923 = vmatmul.mubr.f32.vlgmr.msra.gmra.mrb[2].mxu1 %v1382_v12  ;;  %v1773_v12 = vld [vmem:[#allocation11 + $0xc18] sm:$0xff]  ;;  %v6397_v14 = vpack.c.bf16 %v2326_v5, %v2322_v4  ;;  %v2367_v0 = vld [vmem:[#allocation11 + $0x1ea8] sm:$0xff]  ;;  %v6645_v4 = vpack.c.bf16 %v1800_v62, %v1796_v61  ;;  %v2394_v61 = vld [vmem:[#allocation11 + $0x1f80] sm:$0xff] }
 0x391   :  { %6378 = vmatpush1.bf16.msra.mxu1 %v6377_v13  ;;  %2993 = vmatprep.mubr.f32.mxu1 %v1385_v19  ;;  %v1777_v13 = vld [vmem:[#allocation11 + $0xc38] sm:$0xff]  ;;  %v1772_v19 = vld [vmem:[#allocation11 + $0xc10] sm:$0xff]  ;;  %v6415_v5 = vpack.c.bf16 %v2367_v0, %v2363_v63 }
 0x392   :  { %6610 = vmatpush1.bf16.msra.mxu0 %v6609_v15  ;;  %6380 = vmatprep.subr.bf16.mxu1 %v6379_v16  ;;  %v6629_v15 = vpack.c.bf16 %v1768_v8, %v1764_v6  ;;  %v6399_v16 = vpack.c.bf16 %v2335_v10, %v2331_v9  ;;  %v2362_v6 = vld [vmem:[#allocation11 + $0x1e80] sm:$0xff]  ;;  %v1804_v8 = vld [vmem:[#allocation11 + $0xd10] sm:$0xff] }
 0x393   :  { %6612 = vmatprep.subr.bf16.mxu0 %v6611_v20  ;;  %v6631_v20 = vpack.c.bf16 %v1777_v13, %v1773_v12  ;;  %v1808_v10 = vld [vmem:[#allocation11 + $0xd30] sm:$0xff]  ;;  %v2371_v12 = vld [vmem:[#allocation11 + $0x1ec8] sm:$0xff] }
 0x394   :  { %v2375_v13 = vld [vmem:[#allocation11 + $0x1ee8] sm:$0xff]  ;;  %v1836_v62 = vld [vmem:[#allocation11 + $0xe10] sm:$0xff] }
 0x395   :  { %6382 = vmatpush1.bf16.msra.mxu1 %v6381_v26  ;;  %v6401_v26 = vpack.c.bf16 %v2334_v18, %v2330_v17  ;;  %v6649_v17 = vpack.c.bf16 %v1808_v10, %v1804_v8  ;;  %v6419_v18 = vpack.c.bf16 %v2375_v13, %v2371_v12  ;;  %v1840_v0 = vld [vmem:[#allocation11 + $0xe30] sm:$0xff]  ;;  %v2402_v8 = vld [vmem:[#allocation11 + $0x1fc0] sm:$0xff] }
 0x396   :  { %6614 = vmatpush1.bf16.msra.mxu0 %v6613_v27  ;;  %6384 = vmatprep.subr.bf16.mxu1 %v6383_v28  ;;  %v6633_v27 = vpack.c.bf16 %v1776_v21, %v1772_v19  ;;  %v6403_v28 = vpack.c.bf16 %v2343_v23, %v2339_v22  ;;  %v2370_v19 = vld [vmem:[#allocation11 + $0x1ec0] sm:$0xff]  ;;  %v1812_v21 = vld [vmem:[#allocation11 + $0xd50] sm:$0xff] }
 0x397   :  { %6616 = vmatprep.subr.bf16.mxu0 %v6615_v32  ;;  %v6635_v32 = vpack.c.bf16 %v1785_v25, %v1781_v24  ;;  %v1816_v23 = vld [vmem:[#allocation11 + $0xd70] sm:$0xff]  ;;  %v2379_v24 = vld [vmem:[#allocation11 + $0x1f08] sm:$0xff] }
 0x398   :  { %v2383_v25 = vld [vmem:[#allocation11 + $0x1f28] sm:$0xff]  ;;  %v1844_v12 = vld [vmem:[#allocation11 + $0xe50] sm:$0xff] }
 0x399   :  { %6386 = vmatpush1.bf16.msra.mxu1 %v6385_v38  ;;  %v7811_v38 = vld [vmem:[#allocation5 + $0x20] sm:$0xff]  ;;  %v1848_v13 = vld [vmem:[#allocation11 + $0xe70] sm:$0xff] }
 0x39a   :  { %6618 = vmatpush1.bf16.msra.mxu0 %v6617_v39  ;;  %6388 = vmatprep.subr.bf16.mxu1 %v6387_v40  ;;  %v6405_v39 = vpack.c.bf16 %v2342_v30, %v2338_v29  ;;  %v6637_v40 = vpack.c.bf16 %v1784_v33, %v1780_v31  ;;  %v6653_v29 = vpack.c.bf16 %v1816_v23, %v1812_v21  ;;  %v2378_v31 = vld [vmem:[#allocation11 + $0x1f00] sm:$0xff]  ;;  %v1820_v33 = vld [vmem:[#allocation11 + $0xd90] sm:$0xff]  ;;  %v1861_v21 = vld [vmem:[#allocation11 + $0xed8] sm:$0xff] }
 0x39b   :  { %6620 = vmatprep.subr.bf16.mxu0 %v6619_v44  ;;  %v1788_v44 = vld [vmem:[#allocation11 + $0xc90] sm:$0xff]  ;;  %v6423_v30 = vpack.c.bf16 %v2383_v25, %v2379_v24  ;;  %v1384_v23 = vld [vmem:[#allocation5 + $0x70] sm:$0xff] }
 0x39c   :  { %v6641_v57 = vpack.c.bf16 %v1792_v46, %v1788_v44  ;;  %v6427_v44 = vpack.c.bf16 %v2391_v37, %v2387_v36  ;;  %v2390_v46 = vld [vmem:[#allocation11 + $0x1f60] sm:$0xff] }
 0x39d   :  { %6390 = vmatpush1.bf16.msra.mxu1 %v6389_v53  ;;  %v1797_v53 = vld [vmem:[#allocation11 + $0xcd8] sm:$0xff] }
 0x39e   :  { %6622 = vmatpush1.bf16.msra.mxu0 %v6621_v55  ;;  %6392 = vmatprep.subr.bf16.mxu1 %v6391_v56  ;;  %v1801_v55 = vld [vmem:[#allocation11 + $0xcf8] sm:$0xff]  ;;  %v6409_v56 = vpack.c.bf16 %v2350_v43, %v2346_v42  ;;  %v6657_v43 = vpack.c.bf16 %v1824_v35, %v1820_v33  ;;  %v1872_v33 = vld [vmem:[#allocation11 + $0xf30] sm:$0xff] }
 0x39f   :  { %6624 = vmatprep.subr.bf16.mxu0 %v6623_v60  ;;  %v2358_v60 = vld [vmem:[#allocation11 + $0x1e60] sm:$0xff]  ;;  %v6643_v11 = vpack.c.bf16 %v1801_v55, %v1797_v53  ;;  %v2395_v53 = vld [vmem:[#allocation11 + $0x1f88] sm:$0xff]  ;;  %v1881_v35 = vld [vmem:[#allocation11 + $0xf78] sm:$0xff] }
 0x3a0   :  { %v2399_v55 = vld [vmem:[#allocation11 + $0x1fa8] sm:$0xff] }
 0x3a1   :  { %6394 = vmatpush1.bf16.msra.mxu1 %v6393_v1  ;;  %v1805_v1 = vld [vmem:[#allocation11 + $0xd18] sm:$0xff] }
 0x3a2   :  { %6626 = vmatpush1.bf16.msra.mxu0 %v6625_v2  ;;  %6396 = vmatprep.subr.bf16.mxu1 %v6395_v3  ;;  %v1809_v2 = vld [vmem:[#allocation11 + $0xd38] sm:$0xff]  ;;  %v6413_v3 = vpack.c.bf16 %v2358_v60, %v2354_v59  ;;  %v6431_v60 = vpack.c.bf16 %v2399_v55, %v2395_v53 }
 0x3a3   :  { %6628 = vmatprep.subr.bf16.mxu0 %v6627_v7  ;;  %v2366_v7 = vld [vmem:[#allocation11 + $0x1ea0] sm:$0xff]  ;;  %v6647_v9 = vpack.c.bf16 %v1809_v2, %v1805_v1  ;;  %v2403_v1 = vld [vmem:[#allocation11 + $0x1fc8] sm:$0xff] }
 0x3a4   :  { %v2407_v2 = vld [vmem:[#allocation11 + $0x1fe8] sm:$0xff] }
 0x3a5   :  { %6398 = vmatpush1.bf16.msra.mxu1 %v6397_v14  ;;  %v1813_v14 = vld [vmem:[#allocation11 + $0xd58] sm:$0xff] }
 0x3a6   :  { %6630 = vmatpush1.bf16.msra.mxu0 %v6629_v15  ;;  %6400 = vmatprep.subr.bf16.mxu1 %v6399_v16  ;;  %v1817_v15 = vld [vmem:[#allocation11 + $0xd78] sm:$0xff]  ;;  %v6417_v16 = vpack.c.bf16 %v2366_v7, %v2362_v6  ;;  %v6665_v6 = vpack.c.bf16 %v1840_v0, %v1836_v62  ;;  %v6435_v7 = vpack.c.bf16 %v2407_v2, %v2403_v1  ;;  %v1904_v62 = vld [vmem:[#allocation11 + $0x1030] sm:$0xff] }
 0x3a7   :  { %6632 = vmatprep.subr.bf16.mxu0 %v6631_v20  ;;  %v2374_v20 = vld [vmem:[#allocation11 + $0x1ee0] sm:$0xff]  ;;  %v6651_v22 = vpack.c.bf16 %v1817_v15, %v1813_v14  ;;  %v1853_v14 = vld [vmem:[#allocation11 + $0xe98] sm:$0xff]  ;;  %v1908_v2 = vld [vmem:[#allocation11 + $0x1050] sm:$0xff] }
 0x3a8   :  { %v1857_v15 = vld [vmem:[#allocation11 + $0xeb8] sm:$0xff] }
 0x3a9   :  { %6402 = vmatpush1.bf16.msra.mxu1 %v6401_v26  ;;  %3207 = vmatmul.mubr.f32.vlgmr.msra.gmra.mrb[4].mxu0 %v7811_v38  ;;  %v1821_v26 = vld [vmem:[#allocation11 + $0xd98] sm:$0xff] }
 0x3aa   :  { %6634 = vmatpush1.bf16.msra.mxu0 %v6633_v27  ;;  %6404 = vmatprep.subr.bf16.mxu1 %v6403_v28  ;;  %v1825_v27 = vld [vmem:[#allocation11 + $0xdb8] sm:$0xff]  ;;  %v6421_v28 = vpack.c.bf16 %v2374_v20, %v2370_v19  ;;  %v1852_v19 = vld [vmem:[#allocation11 + $0xe90] sm:$0xff] }
 0x3ab   :  { %6636 = vmatprep.subr.bf16.mxu0 %v6635_v32  ;;  %3277 = vmatprep.mubr.f32.mxu0 %v7812_v50  ;;  %v2382_v32 = vld [vmem:[#allocation11 + $0x1f20] sm:$0xff]  ;;  %v6655_v34 = vpack.c.bf16 %v1825_v27, %v1821_v26  ;;  %v1832_v50 = vld [vmem:[#allocation11 + $0xdf0] sm:$0xff]  ;;  %v1913_v0 = vld [vmem:[#allocation11 + $0x1078] sm:$0xff] }
 0x3ac   :  { %v6425_v42 = vpack.c.bf16 %v2382_v32, %v2378_v31  ;;  %v6661_v59 = vpack.c.bf16 %v1832_v50, %v1828_v48  ;;  %v1856_v20 = vld [vmem:[#allocation11 + $0xeb0] sm:$0xff]  ;;  %v1897_v50 = vld [vmem:[#allocation11 + $0xff8] sm:$0xff] }
 0x3ad   :  { %6406 = vmatpush1.bf16.msra.mxu1 %v6405_v39  ;;  %v1829_v39 = vld [vmem:[#allocation11 + $0xdd8] sm:$0xff]  ;;  %v6673_v24 = vpack.c.bf16 %v1856_v20, %v1852_v19  ;;  %v1860_v26 = vld [vmem:[#allocation11 + $0xed0] sm:$0xff] }
 0x3ae   :  { %6638 = vmatpush1.bf16.msra.mxu0 %v6637_v40  ;;  %6408 = vmatprep.subr.bf16.mxu1 %v6407_v41  ;;  %v1833_v40 = vld [vmem:[#allocation11 + $0xdf8] sm:$0xff]  ;;  %v1864_v27 = vld [vmem:[#allocation11 + $0xef0] sm:$0xff] }
 0x3af   :  { %6640 = vmatprep.subr.bf16.mxu0 %v6639_v45  ;;  %v2386_v45 = vld [vmem:[#allocation11 + $0x1f40] sm:$0xff]  ;;  %v6659_v49 = vpack.c.bf16 %v1833_v40, %v1829_v39  ;;  %v1868_v32 = vld [vmem:[#allocation11 + $0xf10] sm:$0xff]  ;;  %v1925_v20 = vld [vmem:[#allocation11 + $0x10d8] sm:$0xff] }
 0x3b0   :  { %v6681_v36 = vpack.c.bf16 %v1872_v33, %v1868_v32  ;;  %v1876_v39 = vld [vmem:[#allocation11 + $0xf50] sm:$0xff]  ;;  %v1933_v32 = vld [vmem:[#allocation11 + $0x1118] sm:$0xff] }
 0x3b1   :  { %6410 = vmatpush1.bf16.msra.mxu1 %v6409_v56  ;;  %v1837_v56 = vld [vmem:[#allocation11 + $0xe18] sm:$0xff]  ;;  %v1880_v40 = vld [vmem:[#allocation11 + $0xf70] sm:$0xff] }
 0x3b2   :  { %6642 = vmatpush1.bf16.msra.mxu0 %v6641_v57  ;;  %6412 = vmatprep.subr.bf16.mxu1 %v6411_v58  ;;  %v1841_v57 = vld [vmem:[#allocation11 + $0xe38] sm:$0xff]  ;;  %v6429_v58 = vpack.c.bf16 %v2390_v46, %v2386_v45  ;;  %v1884_v46 = vld [vmem:[#allocation11 + $0xf90] sm:$0xff] }
 0x3b3   :  { %6644 = vmatprep.subr.bf16.mxu0 %v6643_v11  ;;  %v2398_v11 = vld [vmem:[#allocation11 + $0x1fa0] sm:$0xff]  ;;  %v6663_v63 = vpack.c.bf16 %v1841_v57, %v1837_v56  ;;  %v1888_v48 = vld [vmem:[#allocation11 + $0xfb0] sm:$0xff]  ;;  %v1937_v33 = vld [vmem:[#allocation11 + $0x1138] sm:$0xff] }
 0x3b4   :  { %v6689_v53 = vpack.c.bf16 %v1888_v48, %v1884_v46  ;;  %v1892_v56 = vld [vmem:[#allocation11 + $0xfd0] sm:$0xff]  ;;  %v1941_v46 = vld [vmem:[#allocation11 + $0x1158] sm:$0xff] }
 0x3b5   :  { %6414 = vmatpush1.bf16.msra.mxu1 %v6413_v3  ;;  %v1845_v3 = vld [vmem:[#allocation11 + $0xe58] sm:$0xff]  ;;  %v1896_v57 = vld [vmem:[#allocation11 + $0xff0] sm:$0xff] }
 0x3b6   :  { %6646 = vmatpush1.bf16.msra.mxu0 %v6645_v4  ;;  %6416 = vmatprep.subr.bf16.mxu1 %v6415_v5  ;;  %v1849_v4 = vld [vmem:[#allocation11 + $0xe78] sm:$0xff]  ;;  %v6433_v5 = vpack.c.bf16 %v2398_v11, %v2394_v61  ;;  %v1900_v11 = vld [vmem:[#allocation11 + $0x1010] sm:$0xff] }
 0x3b7   :  { %6648 = vmatprep.subr.bf16.mxu0 %v6647_v9  ;;  %v2406_v9 = vld [vmem:[#allocation11 + $0x1fe0] sm:$0xff]  ;;  %v6667_v10 = vpack.c.bf16 %v1849_v4, %v1845_v3  ;;  %v6697_v1 = vpack.c.bf16 %v1904_v62, %v1900_v11  ;;  %v1912_v3 = vld [vmem:[#allocation11 + $0x1070] sm:$0xff]  ;;  %v1945_v48 = vld [vmem:[#allocation11 + $0x1178] sm:$0xff] }
 0x3b8   :  { %v1949_v11 = vld [vmem:[#allocation11 + $0x1198] sm:$0xff] }
 0x3b9   :  { %6418 = vmatpush1.bf16.msra.mxu1 %v6417_v16  ;;  %v6437_v16 = vpack.c.bf16 %v2406_v9, %v2402_v8  ;;  %v3575_v8 = vld [vmem:[#allocation13 + $0x18] sm:$0xff]  ;;  %v3572_v9 = vld [vmem:[#allocation13] sm:$0xff] }
 0x3ba   :  { %6650 = vmatpush1.bf16.msra.mxu0 %v6649_v17  ;;  %6420 = vmatprep.subr.bf16.mxu1 %v6419_v18  ;;  %v6669_v17 = vpack.c.bf16 %v1848_v13, %v1844_v12  ;;  %v6671_v18 = vpack.c.bf16 %v1857_v15, %v1853_v14  ;;  %v7813_v12 = vld [vmem:[#allocation5 + $0x30] sm:$0xff]  ;;  %v6701_v15 = vpack.c.bf16 %v1912_v3, %v1908_v2  ;;  %v1953_v62 = vld [vmem:[#allocation11 + $0x11b8] sm:$0xff]  ;;  %v3590_v2 = vld [vmem:[#allocation13 + $0x90] sm:$0xff] }
 0x3bb   :  { %6652 = vmatprep.subr.bf16.mxu0 %v6651_v22  ;;  %v1865_v22 = vld [vmem:[#allocation11 + $0xef8] sm:$0xff] }
 0x3bc   :  { %v8527_v38 = vpop.f32.mrb[2].mxu0  ;;  %v6675_v25 = vpack.c.bf16 %v1865_v22, %v1861_v21  ;;  %v1929_v21 = vld [vmem:[#allocation11 + $0x10f8] sm:$0xff]  ;;  %v3577_v22 = vld [vmem:[#allocation13 + $0x28] sm:$0xff] }
 0x3bd   :  { %v8529_v41 = vpop.f32.mrb[3].mxu0  ;;  %6422 = vmatpush1.bf16.msra.mxu1 %v6421_v28  ;;  %v1869_v28 = vld [vmem:[#allocation11 + $0xf18] sm:$0xff] }
 0x3be   :  { %6654 = vmatpush1.bf16.msra.mxu0 %v6653_v29  ;;  %6424 = vmatprep.subr.bf16.mxu1 %v6423_v30  ;;  %v1873_v29 = vld [vmem:[#allocation11 + $0xf38] sm:$0xff]  ;;  %v6677_v30 = vpack.c.bf16 %v1864_v27, %v1860_v26 }
 0x3bf   :  { %6656 = vmatprep.subr.bf16.mxu0 %v6655_v34  ;;  %v6679_v31 = vpack.c.bf16 %v1873_v29, %v1869_v28  ;;  %v1877_v34 = vld [vmem:[#allocation11 + $0xf58] sm:$0xff]  ;;  %v1924_v29 = vld [vmem:[#allocation11 + $0x10d0] sm:$0xff] }
 0x3c0   :  { %v6683_v37 = vpack.c.bf16 %v1881_v35, %v1877_v34  ;;  %v3581_v34 = vld [vmem:[#allocation13 + $0x48] sm:$0xff]  ;;  %v3583_v35 = vld [vmem:[#allocation13 + $0x58] sm:$0xff] }
 0x3c1   :  { %6426 = vmatpush1.bf16.msra.mxu1 %v6425_v42  ;;  %v1885_v42 = vld [vmem:[#allocation11 + $0xf98] sm:$0xff] }
 0x3c2   :  { %6658 = vmatpush1.bf16.msra.mxu0 %v6657_v43  ;;  %6428 = vmatprep.subr.bf16.mxu1 %v6427_v44  ;;  %v1889_v43 = vld [vmem:[#allocation11 + $0xfb8] sm:$0xff]  ;;  %v6685_v44 = vpack.c.bf16 %v1880_v40, %v1876_v39  ;;  %v6959_v39 = vpack.c.bf16 %v3583_v35, %v3581_v34 }
 0x3c3   :  { %6660 = vmatprep.subr.bf16.mxu0 %v6659_v49  ;;  %v6687_v45 = vpack.c.bf16 %v1889_v43, %v1885_v42  ;;  %v1893_v49 = vld [vmem:[#allocation11 + $0xfd8] sm:$0xff]  ;;  %v1932_v43 = vld [vmem:[#allocation11 + $0x1110] sm:$0xff] }
 0x3c4   :  { %v6691_v55 = vpack.c.bf16 %v1897_v50, %v1893_v49  ;;  %v3585_v49 = vld [vmem:[#allocation13 + $0x68] sm:$0xff]  ;;  %v3587_v50 = vld [vmem:[#allocation13 + $0x78] sm:$0xff] }
 0x3c5   :  { %6430 = vmatpush1.bf16.msra.mxu1 %v6429_v58  ;;  %v1901_v58 = vld [vmem:[#allocation11 + $0x1018] sm:$0xff] }
 0x3c6   :  { %6662 = vmatpush1.bf16.msra.mxu0 %v6661_v59  ;;  %6432 = vmatprep.subr.bf16.mxu1 %v6431_v60  ;;  %v1905_v59 = vld [vmem:[#allocation11 + $0x1038] sm:$0xff]  ;;  %v6693_v60 = vpack.c.bf16 %v1896_v57, %v1892_v56  ;;  %v6963_v56 = vpack.c.bf16 %v3587_v50, %v3585_v49 }
 0x3c7   :  { %6664 = vmatprep.subr.bf16.mxu0 %v6663_v63  ;;  %v6695_v61 = vpack.c.bf16 %v1905_v59, %v1901_v58  ;;  %v1909_v63 = vld [vmem:[#allocation11 + $0x1058] sm:$0xff]  ;;  %v1940_v59 = vld [vmem:[#allocation11 + $0x1150] sm:$0xff] }
 0x3c8   :  { %v6699_v4 = vpack.c.bf16 %v1913_v0, %v1909_v63  ;;  %v3589_v63 = vld [vmem:[#allocation13 + $0x88] sm:$0xff]  ;;  %v3591_v0 = vld [vmem:[#allocation13 + $0x98] sm:$0xff] }
 0x3c9   :  { %6434 = vmatpush1.bf16.msra.mxu1 %v6433_v5  ;;  %v1917_v5 = vld [vmem:[#allocation11 + $0x1098] sm:$0xff]  ;;  %v6967_v3 = vpack.c.bf16 %v3591_v0, %v3589_v63 }
 0x3ca   :  { %6666 = vmatpush1.bf16.msra.mxu0 %v6665_v6  ;;  %6436 = vmatprep.subr.bf16.mxu1 %v6435_v7  ;;  %v1921_v6 = vld [vmem:[#allocation11 + $0x10b8] sm:$0xff]  ;;  %v3573_v7 = vld [vmem:[#allocation13 + $0x8] sm:$0xff] }
 0x3cb   :  { %6668 = vmatprep.subr.bf16.mxu0 %v6667_v10  ;;  %v3574_v10 = vld [vmem:[#allocation13 + $0x10] sm:$0xff]  ;;  %v6951_v13 = vpack.c.bf16 %v3575_v8, %v3573_v7  ;;  %v6703_v19 = vpack.c.bf16 %v1921_v6, %v1917_v5  ;;  %v6719_v8 = vpack.c.bf16 %v1953_v62, %v1949_v11  ;;  %v1973_v34 = vld [vmem:[#allocation11 + $0x1258] sm:$0xff] }
 0x3cc   :  { %v6953_v14 = vpack.c.bf16 %v3574_v10, %v3572_v9  ;;  %v1948_v6 = vld [vmem:[#allocation11 + $0x1190] sm:$0xff]  ;;  %v1957_v9 = vld [vmem:[#allocation11 + $0x11d8] sm:$0xff] }
 0x3cd   :  { %6438 = vmatpush1.bf16.msra.mxu1 %v6437_v16  ;;  %v1916_v16 = vld [vmem:[#allocation11 + $0x1090] sm:$0xff]  ;;  %v1961_v10 = vld [vmem:[#allocation11 + $0x11f8] sm:$0xff] }
 0x3ce   :  { %6670 = vmatpush1.bf16.msra.mxu0 %v6669_v17  ;;  %v1920_v17 = vld [vmem:[#allocation11 + $0x10b0] sm:$0xff]  ;;  %6952 = vmatprep.subr.bf16.mxu1 %v6951_v13  ;;  %v3595_v13 = vld [vmem:[#allocation13 + $0xb8] sm:$0xff] }
 0x3cf   :  { %6672 = vmatprep.subr.bf16.mxu0 %v6671_v18  ;;  %v7814_v18 = vld [vmem:[#allocation5 + $0x48] sm:$0xff]  ;;  %v6705_v28 = vpack.c.bf16 %v1920_v17, %v1916_v16  ;;  %v1952_v7 = vld [vmem:[#allocation11 + $0x11b0] sm:$0xff]  ;;  %v1977_v35 = vld [vmem:[#allocation11 + $0x1278] sm:$0xff] }
 0x3d0   :  { %2994 = vmatmul.mubr.f32.vlgmr.msra.gmra.mrb[2].mxu1 %v1384_v23  ;;  %v3579_v23 = vld [vmem:[#allocation13 + $0x38] sm:$0xff]  ;;  %v1984_v11 = vld [vmem:[#allocation11 + $0x12b0] sm:$0xff] }
 0x3d1   :  { %6954 = vmatpush1.bf16.msra.mxu1 %v6953_v14  ;;  %v6955_v26 = vpack.c.bf16 %v3579_v23, %v3577_v22  ;;  %v3592_v14 = vld [vmem:[#allocation13 + $0xa0] sm:$0xff]  ;;  %v1965_v22 = vld [vmem:[#allocation11 + $0x1218] sm:$0xff] }
 0x3d2   :  { %6674 = vmatpush1.bf16.msra.mxu0 %v6673_v24  ;;  %v3576_v24 = vld [vmem:[#allocation13 + $0x20] sm:$0xff]  ;;  %v1969_v23 = vld [vmem:[#allocation11 + $0x1238] sm:$0xff] }
 0x3d3   :  { %6676 = vmatprep.subr.bf16.mxu0 %v6675_v25  ;;  %v3578_v25 = vld [vmem:[#allocation13 + $0x30] sm:$0xff]  ;;  %6956 = vmatprep.subr.bf16.mxu1 %v6955_v26  ;;  %v3596_v26 = vld [vmem:[#allocation13 + $0xc0] sm:$0xff]  ;;  %v1981_v49 = vld [vmem:[#allocation11 + $0x1298] sm:$0xff] }
 0x3d4   :  { %v6957_v27 = vpack.c.bf16 %v3578_v25, %v3576_v24  ;;  %v3597_v24 = vld [vmem:[#allocation13 + $0xc8] sm:$0xff]  ;;  %v3599_v25 = vld [vmem:[#allocation13 + $0xd8] sm:$0xff] }
 0x3d5   :  { %v1985_v50 = vld [vmem:[#allocation11 + $0x12b8] sm:$0xff] }
 0x3d6   :  { %6678 = vmatpush1.bf16.msra.mxu0 %v6677_v30  ;;  %v1928_v30 = vld [vmem:[#allocation11 + $0x10f0] sm:$0xff]  ;;  %6958 = vmatpush1.bf16.msra.mxu1 %v6957_v27  ;;  %v6735_v62 = vpack.c.bf16 %v1985_v50, %v1981_v49  ;;  %v1989_v63 = vld [vmem:[#allocation11 + $0x12d8] sm:$0xff] }
 0x3d7   :  { %6680 = vmatprep.subr.bf16.mxu0 %v6679_v31  ;;  %v6707_v31 = vpack.c.bf16 %v1929_v21, %v1925_v20  ;;  %v6709_v42 = vpack.c.bf16 %v1928_v30, %v1924_v29  ;;  %6960 = vmatprep.subr.bf16.mxu1 %v6959_v39  ;;  %v1960_v20 = vld [vmem:[#allocation11 + $0x11f0] sm:$0xff]  ;;  %v6723_v21 = vpack.c.bf16 %v1961_v10, %v1957_v9  ;;  %v3600_v39 = vld [vmem:[#allocation13 + $0xe0] sm:$0xff]  ;;  %v1993_v0 = vld [vmem:[#allocation11 + $0x12f8] sm:$0xff] }
 0x3d8   :  { %v3598_v27 = vld [vmem:[#allocation13 + $0xd0] sm:$0xff]  ;;  %v6739_v10 = vpack.c.bf16 %v1993_v0, %v1989_v63 }
 0x3d9   :  { %v6977_v29 = vpack.c.bf16 %v3598_v27, %v3596_v26  ;;  %v1992_v9 = vld [vmem:[#allocation11 + $0x12f0] sm:$0xff]  ;;  %v3617_v26 = vld [vmem:[#allocation13 + $0x168] sm:$0xff]  ;;  %v3619_v27 = vld [vmem:[#allocation13 + $0x178] sm:$0xff] }
 0x3da   :  { %6682 = vmatpush1.bf16.msra.mxu0 %v6681_v36  ;;  %v3580_v36 = vld [vmem:[#allocation13 + $0x40] sm:$0xff]  ;;  %v2016_v49 = vld [vmem:[#allocation11 + $0x13b0] sm:$0xff] }
 0x3db   :  { %6684 = vmatprep.subr.bf16.mxu0 %v6683_v37  ;;  %v3582_v37 = vld [vmem:[#allocation13 + $0x50] sm:$0xff] }
 0x3dc   :  { %v6961_v40 = vpack.c.bf16 %v3582_v37, %v3580_v36  ;;  %v3601_v36 = vld [vmem:[#allocation13 + $0xe8] sm:$0xff]  ;;  %v3603_v37 = vld [vmem:[#allocation13 + $0xf8] sm:$0xff]  ;;  %v2024_v63 = vld [vmem:[#allocation11 + $0x13f0] sm:$0xff] }
 0x3de   :  { %6686 = vmatpush1.bf16.msra.mxu0 %v6685_v44  ;;  %v1936_v44 = vld [vmem:[#allocation11 + $0x1130] sm:$0xff]  ;;  %6962 = vmatpush1.bf16.msra.mxu1 %v6961_v40 }
 0x3df   :  { %6688 = vmatprep.subr.bf16.mxu0 %v6687_v45  ;;  %v6711_v45 = vpack.c.bf16 %v1937_v33, %v1933_v32  ;;  %v6713_v58 = vpack.c.bf16 %v1936_v44, %v1932_v43  ;;  %6964 = vmatprep.subr.bf16.mxu1 %v6963_v56  ;;  %v1968_v32 = vld [vmem:[#allocation11 + $0x1230] sm:$0xff]  ;;  %v6727_v33 = vpack.c.bf16 %v1969_v23, %v1965_v22  ;;  %v3604_v56 = vld [vmem:[#allocation13 + $0x100] sm:$0xff] }
 0x3e0   :  { %v3602_v40 = vld [vmem:[#allocation13 + $0xf0] sm:$0xff] }
 0x3e1   :  { %v6981_v43 = vpack.c.bf16 %v3602_v40, %v3600_v39  ;;  %v2000_v22 = vld [vmem:[#allocation11 + $0x1330] sm:$0xff]  ;;  %v3621_v39 = vld [vmem:[#allocation13 + $0x188] sm:$0xff]  ;;  %v3623_v40 = vld [vmem:[#allocation13 + $0x198] sm:$0xff] }
 0x3e2   :  { %6690 = vmatpush1.bf16.msra.mxu0 %v6689_v53  ;;  %v3584_v53 = vld [vmem:[#allocation13 + $0x60] sm:$0xff] }
 0x3e3   :  { %6692 = vmatprep.subr.bf16.mxu0 %v6691_v55  ;;  %v3586_v55 = vld [vmem:[#allocation13 + $0x70] sm:$0xff] }
 0x3e4   :  { %v6965_v57 = vpack.c.bf16 %v3586_v55, %v3584_v53  ;;  %v3605_v53 = vld [vmem:[#allocation13 + $0x108] sm:$0xff]  ;;  %v3607_v55 = vld [vmem:[#allocation13 + $0x118] sm:$0xff] }
 0x3e6   :  { %6694 = vmatpush1.bf16.msra.mxu0 %v6693_v60  ;;  %v1944_v60 = vld [vmem:[#allocation11 + $0x1170] sm:$0xff]  ;;  %6966 = vmatpush1.bf16.msra.mxu1 %v6965_v57 }
 0x3e7   :  { %6696 = vmatprep.subr.bf16.mxu0 %v6695_v61  ;;  %v6715_v61 = vpack.c.bf16 %v1945_v48, %v1941_v46  ;;  %v6717_v5 = vpack.c.bf16 %v1944_v60, %v1940_v59  ;;  %6968 = vmatprep.subr.bf16.mxu1 %v6967_v3  ;;  %v1976_v46 = vld [vmem:[#allocation11 + $0x1270] sm:$0xff]  ;;  %v6731_v48 = vpack.c.bf16 %v1977_v35, %v1973_v34  ;;  %v3608_v3 = vld [vmem:[#allocation13 + $0x120] sm:$0xff] }
 0x3e8   :  { %v3606_v57 = vld [vmem:[#allocation13 + $0x110] sm:$0xff] }
 0x3e9   :  { %3278 = vmatmul.mubr.f32.vlgmr.msra.gmra.mrb[4].mxu0 %v7813_v12  ;;  %v3593_v12 = vld [vmem:[#allocation13 + $0xa8] sm:$0xff]  ;;  %v6985_v59 = vpack.c.bf16 %v3606_v57, %v3604_v56  ;;  %v2008_v34 = vld [vmem:[#allocation11 + $0x1370] sm:$0xff]  ;;  %v3627_v57 = vld [vmem:[#allocation13 + $0x1b8] sm:$0xff] }
 0x3ea   :  { %6698 = vmatpush1.bf16.msra.mxu0 %v6697_v1  ;;  %3348 = vmatprep.mubr.f32.mxu0 %v7814_v18  ;;  %v3588_v1 = vld [vmem:[#allocation13 + $0x80] sm:$0xff]  ;;  %v6971_v16 = vpack.c.bf16 %v3595_v13, %v3593_v12  ;;  %v6721_v18 = vpack.c.bf16 %v1952_v7, %v1948_v6  ;;  %v1997_v12 = vld [vmem:[#allocation11 + $0x1318] sm:$0xff]  ;;  %v3625_v56 = vld [vmem:[#allocation13 + $0x1a8] sm:$0xff] }
 0x3eb   :  { %6700 = vmatprep.subr.bf16.mxu0 %v6699_v4  ;;  %v6969_v4 = vpack.c.bf16 %v3590_v2, %v3588_v1  ;;  %v3609_v1 = vld [vmem:[#allocation13 + $0x128] sm:$0xff]  ;;  %v3611_v2 = vld [vmem:[#allocation13 + $0x138] sm:$0xff] }
 0x3ec   :  { %v2001_v13 = vld [vmem:[#allocation11 + $0x1338] sm:$0xff] }
 0x3ed   :  { %6970 = vmatpush1.bf16.msra.mxu1 %v6969_v4  ;;  %v3610_v4 = vld [vmem:[#allocation13 + $0x130] sm:$0xff]  ;;  %v6743_v23 = vpack.c.bf16 %v2001_v13, %v1997_v12 }
 0x3ee   :  { %6702 = vmatpush1.bf16.msra.mxu0 %v6701_v15  ;;  %v3594_v15 = vld [vmem:[#allocation13 + $0xb0] sm:$0xff]  ;;  %6972 = vmatprep.subr.bf16.mxu1 %v6971_v16  ;;  %v6989_v6 = vpack.c.bf16 %v3610_v4, %v3608_v3  ;;  %v3612_v16 = vld [vmem:[#allocation13 + $0x140] sm:$0xff]  ;;  %v3629_v3 = vld [vmem:[#allocation13 + $0x1c8] sm:$0xff] }
 0x3ef   :  { %6704 = vmatprep.subr.bf16.mxu0 %v6703_v19  ;;  %v6973_v17 = vpack.c.bf16 %v3594_v15, %v3592_v14  ;;  %v1956_v19 = vld [vmem:[#allocation11 + $0x11d0] sm:$0xff]  ;;  %v3613_v14 = vld [vmem:[#allocation13 + $0x148] sm:$0xff]  ;;  %v3615_v15 = vld [vmem:[#allocation13 + $0x158] sm:$0xff] }
 0x3f0   :  { %v6725_v30 = vpack.c.bf16 %v1960_v20, %v1956_v19  ;;  %v3631_v4 = vld [vmem:[#allocation13 + $0x1d8] sm:$0xff]  ;;  %v2032_v12 = vld [vmem:[#allocation11 + $0x1430] sm:$0xff] }
 0x3f1   :  { %6974 = vmatpush1.bf16.msra.mxu1 %v6973_v17  ;;  %v3614_v17 = vld [vmem:[#allocation13 + $0x150] sm:$0xff] }
 0x3f2   :  { %6706 = vmatpush1.bf16.msra.mxu0 %v6705_v28  ;;  %v6975_v28 = vpack.c.bf16 %v3599_v25, %v3597_v24  ;;  %v6993_v19 = vpack.c.bf16 %v3614_v17, %v3612_v16  ;;  %v2005_v24 = vld [vmem:[#allocation11 + $0x1358] sm:$0xff]  ;;  %v3633_v16 = vld [vmem:[#allocation13 + $0x1e8] sm:$0xff] }
 0x3f3   :  { %6708 = vmatprep.subr.bf16.mxu0 %v6707_v31  ;;  %v1964_v31 = vld [vmem:[#allocation11 + $0x1210] sm:$0xff]  ;;  %v2009_v25 = vld [vmem:[#allocation11 + $0x1378] sm:$0xff] }
 0x3f4   :  { %6976 = vmatprep.subr.bf16.mxu1 %v6975_v28  ;;  %v6729_v44 = vpack.c.bf16 %v1968_v32, %v1964_v31  ;;  %v3616_v28 = vld [vmem:[#allocation13 + $0x160] sm:$0xff]  ;;  %v6747_v35 = vpack.c.bf16 %v2009_v25, %v2005_v24  ;;  %v3635_v17 = vld [vmem:[#allocation13 + $0x1f8] sm:$0xff]  ;;  %v2036_v24 = vld [vmem:[#allocation11 + $0x1450] sm:$0xff] }
 0x3f5   :  { %6978 = vmatpush1.bf16.msra.mxu1 %v6977_v29  ;;  %v3618_v29 = vld [vmem:[#allocation13 + $0x170] sm:$0xff] }
 0x3f6   :  { %6710 = vmatpush1.bf16.msra.mxu0 %v6709_v42  ;;  %v6979_v42 = vpack.c.bf16 %v3603_v37, %v3601_v36  ;;  %v6997_v31 = vpack.c.bf16 %v3618_v29, %v3616_v28  ;;  %v2013_v36 = vld [vmem:[#allocation11 + $0x1398] sm:$0xff]  ;;  %v2040_v25 = vld [vmem:[#allocation11 + $0x1470] sm:$0xff] }
 0x3f7   :  { %6712 = vmatprep.subr.bf16.mxu0 %v6711_v45  ;;  %v1972_v45 = vld [vmem:[#allocation11 + $0x1250] sm:$0xff]  ;;  %v2017_v37 = vld [vmem:[#allocation11 + $0x13b8] sm:$0xff]  ;;  %v6765_v29 = vpack.c.bf16 %v2040_v25, %v2036_v24 }
 0x3f8   :  { %6980 = vmatprep.subr.bf16.mxu1 %v6979_v42  ;;  %v6733_v60 = vpack.c.bf16 %v1976_v46, %v1972_v45  ;;  %v3620_v42 = vld [vmem:[#allocation13 + $0x180] sm:$0xff]  ;;  %v6751_v50 = vpack.c.bf16 %v2017_v37, %v2013_v36  ;;  %v7815_v28 = vld [vmem:[#allocation5 + $0x40] sm:$0xff] }
 0x3f9   :  { %6982 = vmatpush1.bf16.msra.mxu1 %v6981_v43  ;;  %v3622_v43 = vld [vmem:[#allocation13 + $0x190] sm:$0xff]  ;;  %v2117_v24 = vld [vmem:[#allocation11 + $0x16d8] sm:$0xff] }
 0x3fa   :  { %6714 = vmatpush1.bf16.msra.mxu0 %v6713_v58  ;;  %v6983_v58 = vpack.c.bf16 %v3607_v55, %v3605_v53  ;;  %v7001_v45 = vpack.c.bf16 %v3622_v43, %v3620_v42  ;;  %v2021_v53 = vld [vmem:[#allocation11 + $0x13d8] sm:$0xff] }
 0x3fb   :  { %6716 = vmatprep.subr.bf16.mxu0 %v6715_v61  ;;  %v1980_v61 = vld [vmem:[#allocation11 + $0x1290] sm:$0xff]  ;;  %v2025_v55 = vld [vmem:[#allocation11 + $0x13f8] sm:$0xff] }
 0x3fc   :  { %6984 = vmatprep.subr.bf16.mxu1 %v6983_v58  ;;  %v6737_v7 = vpack.c.bf16 %v1984_v11, %v1980_v61  ;;  %v3624_v58 = vld [vmem:[#allocation13 + $0x1a0] sm:$0xff]  ;;  %v6755_v0 = vpack.c.bf16 %v2025_v55, %v2021_v53  ;;  %v2061_v42 = vld [vmem:[#allocation11 + $0x1518] sm:$0xff] }
 0x3fd   :  { %6986 = vmatpush1.bf16.msra.mxu1 %v6985_v59  ;;  %v3626_v59 = vld [vmem:[#allocation13 + $0x1b0] sm:$0xff]  ;;  %v2065_v43 = vld [vmem:[#allocation11 + $0x1538] sm:$0xff] }
 0x3fe   :  { %6718 = vmatpush1.bf16.msra.mxu0 %v6717_v5  ;;  %v6987_v5 = vpack.c.bf16 %v3611_v2, %v3609_v1  ;;  %v7005_v61 = vpack.c.bf16 %v3626_v59, %v3624_v58  ;;  %v2029_v1 = vld [vmem:[#allocation11 + $0x1418] sm:$0xff] }
 0x3ff   :  { %6720 = vmatprep.subr.bf16.mxu0 %v6719_v8  ;;  %v1988_v8 = vld [vmem:[#allocation11 + $0x12d0] sm:$0xff]  ;;  %v2033_v2 = vld [vmem:[#allocation11 + $0x1438] sm:$0xff] }
 0x400   :  { %6988 = vmatprep.subr.bf16.mxu1 %v6987_v5  ;;  %v6741_v20 = vpack.c.bf16 %v1992_v9, %v1988_v8  ;;  %v3628_v5 = vld [vmem:[#allocation13 + $0x1c0] sm:$0xff]  ;;  %v6759_v13 = vpack.c.bf16 %v2033_v2, %v2029_v1  ;;  %v2077_v58 = vld [vmem:[#allocation11 + $0x1598] sm:$0xff] }
 0x401   :  { %6990 = vmatpush1.bf16.msra.mxu1 %v6989_v6  ;;  %v3630_v6 = vld [vmem:[#allocation13 + $0x1d0] sm:$0xff]  ;;  %v2081_v59 = vld [vmem:[#allocation11 + $0x15b8] sm:$0xff] }
 0x402   :  { %6722 = vmatpush1.bf16.msra.mxu0 %v6721_v18  ;;  %v6991_v18 = vpack.c.bf16 %v3615_v15, %v3613_v14  ;;  %v7009_v8 = vpack.c.bf16 %v3630_v6, %v3628_v5  ;;  %v2037_v14 = vld [vmem:[#allocation11 + $0x1458] sm:$0xff] }
 0x403   :  { %6724 = vmatprep.subr.bf16.mxu0 %v6723_v21  ;;  %v1996_v21 = vld [vmem:[#allocation11 + $0x1310] sm:$0xff]  ;;  %v2041_v15 = vld [vmem:[#allocation11 + $0x1478] sm:$0xff] }
 0x404   :  { %6992 = vmatprep.subr.bf16.mxu1 %v6991_v18  ;;  %v6745_v32 = vpack.c.bf16 %v2000_v22, %v1996_v21  ;;  %v3632_v18 = vld [vmem:[#allocation13 + $0x1e0] sm:$0xff]  ;;  %v2093_v5 = vld [vmem:[#allocation11 + $0x1618] sm:$0xff] }
 0x405   :  { %6994 = vmatpush1.bf16.msra.mxu1 %v6993_v19  ;;  %v3634_v19 = vld [vmem:[#allocation13 + $0x1f0] sm:$0xff]  ;;  %v2097_v6 = vld [vmem:[#allocation11 + $0x1638] sm:$0xff] }
 0x406   :  { %6726 = vmatpush1.bf16.msra.mxu0 %v6725_v30  ;;  %v6995_v30 = vpack.c.bf16 %v3619_v27, %v3617_v26  ;;  %v7013_v21 = vpack.c.bf16 %v3634_v19, %v3632_v18  ;;  %v2045_v26 = vld [vmem:[#allocation11 + $0x1498] sm:$0xff] }
 0x407   :  { %6728 = vmatprep.subr.bf16.mxu0 %v6727_v33  ;;  %v2004_v33 = vld [vmem:[#allocation11 + $0x1350] sm:$0xff]  ;;  %v2049_v27 = vld [vmem:[#allocation11 + $0x14b8] sm:$0xff] }
 0x408   :  { %6996 = vmatprep.subr.bf16.mxu1 %v6995_v30  ;;  %v6749_v46 = vpack.c.bf16 %v2008_v34, %v2004_v33  ;;  %v7816_v30 = vld [vmem:[#allocation5 + $0x58] sm:$0xff]  ;;  %v2053_v34 = vld [vmem:[#allocation11 + $0x14d8] sm:$0xff] }
 0x409   :  { %6998 = vmatpush1.bf16.msra.mxu1 %v6997_v31  ;;  %v6767_v31 = vpack.c.bf16 %v2049_v27, %v2045_v26  ;;  %v2048_v33 = vld [vmem:[#allocation11 + $0x14b0] sm:$0xff]  ;;  %v2109_v18 = vld [vmem:[#allocation11 + $0x1698] sm:$0xff] }
 0x40a   :  { %6730 = vmatpush1.bf16.msra.mxu0 %v6729_v44  ;;  %v6999_v44 = vpack.c.bf16 %v3623_v40, %v3621_v39  ;;  %v2052_v39 = vld [vmem:[#allocation11 + $0x14d0] sm:$0xff]  ;;  %v2113_v19 = vld [vmem:[#allocation11 + $0x16b8] sm:$0xff] }
 0x40b   :  { %6732 = vmatprep.subr.bf16.mxu0 %v6731_v48  ;;  %v2012_v48 = vld [vmem:[#allocation11 + $0x1390] sm:$0xff]  ;;  %v2121_v25 = vld [vmem:[#allocation11 + $0x16f8] sm:$0xff] }
 0x40c   :  { %7000 = vmatprep.subr.bf16.mxu1 %v6999_v44  ;;  %v6753_v11 = vpack.c.bf16 %v2016_v49, %v2012_v48  ;;  %v2056_v40 = vld [vmem:[#allocation11 + $0x14f0] sm:$0xff]  ;;  %v2069_v49 = vld [vmem:[#allocation11 + $0x1558] sm:$0xff]  ;;  %v6803_v27 = vpack.c.bf16 %v2121_v25, %v2117_v24 }
 0x40d   :  { %7002 = vmatpush1.bf16.msra.mxu1 %v7001_v45  ;;  %v6773_v44 = vpack.c.bf16 %v2056_v40, %v2052_v39  ;;  %v6775_v45 = vpack.c.bf16 %v2065_v43, %v2061_v42  ;;  %v2064_v48 = vld [vmem:[#allocation11 + $0x1530] sm:$0xff]  ;;  %v2189_v25 = vld [vmem:[#allocation11 + $0x1918] sm:$0xff] }
 0x40e   :  { %6734 = vmatpush1.bf16.msra.mxu0 %v6733_v60  ;;  %v7003_v60 = vpack.c.bf16 %v3627_v57, %v3625_v56  ;;  %v2068_v56 = vld [vmem:[#allocation11 + $0x1550] sm:$0xff] }
 0x40f   :  { %6736 = vmatprep.subr.bf16.mxu0 %v6735_v62  ;;  %v2020_v62 = vld [vmem:[#allocation11 + $0x13d0] sm:$0xff] }
 0x410   :  { %7004 = vmatprep.subr.bf16.mxu1 %v7003_v60  ;;  %v6757_v9 = vpack.c.bf16 %v2024_v63, %v2020_v62  ;;  %v2072_v57 = vld [vmem:[#allocation11 + $0x1570] sm:$0xff]  ;;  %v2085_v63 = vld [vmem:[#allocation11 + $0x15d8] sm:$0xff] }
 0x411   :  { %7006 = vmatpush1.bf16.msra.mxu1 %v7005_v61  ;;  %v6781_v60 = vpack.c.bf16 %v2072_v57, %v2068_v56  ;;  %v6783_v61 = vpack.c.bf16 %v2081_v59, %v2077_v58  ;;  %v2080_v62 = vld [vmem:[#allocation11 + $0x15b0] sm:$0xff] }
 0x412   :  { %6738 = vmatpush1.bf16.msra.mxu0 %v6737_v7  ;;  %v7007_v7 = vpack.c.bf16 %v3631_v4, %v3629_v3  ;;  %v2084_v3 = vld [vmem:[#allocation11 + $0x15d0] sm:$0xff] }
 0x413   :  { %6740 = vmatprep.subr.bf16.mxu0 %v6739_v10  ;;  %v2028_v10 = vld [vmem:[#allocation11 + $0x1410] sm:$0xff] }
 0x414   :  { %7008 = vmatprep.subr.bf16.mxu1 %v7007_v7  ;;  %v6761_v22 = vpack.c.bf16 %v2032_v12, %v2028_v10  ;;  %v2088_v4 = vld [vmem:[#allocation11 + $0x15f0] sm:$0xff]  ;;  %v2101_v12 = vld [vmem:[#allocation11 + $0x1658] sm:$0xff] }
 0x415   :  { %7010 = vmatpush1.bf16.msra.mxu1 %v7009_v8  ;;  %v6789_v7 = vpack.c.bf16 %v2088_v4, %v2084_v3  ;;  %v6791_v8 = vpack.c.bf16 %v2097_v6, %v2093_v5  ;;  %v2096_v10 = vld [vmem:[#allocation11 + $0x1630] sm:$0xff] }
 0x416   :  { %6742 = vmatpush1.bf16.msra.mxu0 %v6741_v20  ;;  %v7011_v20 = vpack.c.bf16 %v3635_v17, %v3633_v16  ;;  %v2100_v16 = vld [vmem:[#allocation11 + $0x1650] sm:$0xff] }
 0x417   :  { %6744 = vmatprep.subr.bf16.mxu0 %v6743_v23  ;;  %v6763_v23 = vpack.c.bf16 %v2041_v15, %v2037_v14  ;;  %v2104_v17 = vld [vmem:[#allocation11 + $0x1670] sm:$0xff] }
 0x418   :  { %7012 = vmatprep.subr.bf16.mxu1 %v7011_v20  ;;  %v6797_v20 = vpack.c.bf16 %v2104_v17, %v2100_v16  ;;  %v2132_v42 = vld [vmem:[#allocation11 + $0x1750] sm:$0xff] }
 0x419   :  { %7014 = vmatpush1.bf16.msra.mxu1 %v7013_v21  ;;  %v6799_v21 = vpack.c.bf16 %v2113_v19, %v2109_v18  ;;  %v2136_v43 = vld [vmem:[#allocation11 + $0x1770] sm:$0xff]  ;;  %v2181_v19 = vld [vmem:[#allocation11 + $0x18d8] sm:$0xff] }
 0x41a   :  { %6746 = vmatpush1.bf16.msra.mxu0 %v6745_v32  ;;  %v2044_v32 = vld [vmem:[#allocation11 + $0x1490] sm:$0xff] }
 0x41b   :  { %6748 = vmatprep.subr.bf16.mxu0 %v6747_v35  ;;  %v2057_v35 = vld [vmem:[#allocation11 + $0x14f8] sm:$0xff]  ;;  %v6769_v36 = vpack.c.bf16 %v2048_v33, %v2044_v32  ;;  %v2148_v58 = vld [vmem:[#allocation11 + $0x17d0] sm:$0xff] }
 0x41c   :  { %v6771_v37 = vpack.c.bf16 %v2057_v35, %v2053_v34  ;;  %v2124_v34 = vld [vmem:[#allocation11 + $0x1710] sm:$0xff] }
 0x41d   :  { %v2128_v35 = vld [vmem:[#allocation11 + $0x1730] sm:$0xff] }
 0x41e   :  { %6750 = vmatpush1.bf16.msra.mxu0 %v6749_v46  ;;  %v2060_v46 = vld [vmem:[#allocation11 + $0x1510] sm:$0xff]  ;;  %v6809_v39 = vpack.c.bf16 %v2128_v35, %v2124_v34 }
 0x41f   :  { %6752 = vmatprep.subr.bf16.mxu0 %v6751_v50  ;;  %v2073_v50 = vld [vmem:[#allocation11 + $0x1578] sm:$0xff]  ;;  %v6777_v53 = vpack.c.bf16 %v2064_v48, %v2060_v46  ;;  %v6813_v46 = vpack.c.bf16 %v2136_v43, %v2132_v42  ;;  %v2152_v59 = vld [vmem:[#allocation11 + $0x17f0] sm:$0xff] }
 0x420   :  { %v6779_v55 = vpack.c.bf16 %v2073_v50, %v2069_v49  ;;  %v2140_v49 = vld [vmem:[#allocation11 + $0x1790] sm:$0xff] }
 0x421   :  { %v2144_v50 = vld [vmem:[#allocation11 + $0x17b0] sm:$0xff] }
 0x422   :  { %6754 = vmatpush1.bf16.msra.mxu0 %v6753_v11  ;;  %v2076_v11 = vld [vmem:[#allocation11 + $0x1590] sm:$0xff]  ;;  %v6817_v56 = vpack.c.bf16 %v2144_v50, %v2140_v49 }
 0x423   :  { %6756 = vmatprep.subr.bf16.mxu0 %v6755_v0  ;;  %v2089_v0 = vld [vmem:[#allocation11 + $0x15f8] sm:$0xff]  ;;  %v6785_v1 = vpack.c.bf16 %v2080_v62, %v2076_v11  ;;  %v6821_v11 = vpack.c.bf16 %v2152_v59, %v2148_v58  ;;  %v2164_v5 = vld [vmem:[#allocation11 + $0x1850] sm:$0xff] }
 0x424   :  { %v6787_v2 = vpack.c.bf16 %v2089_v0, %v2085_v63  ;;  %v2156_v63 = vld [vmem:[#allocation11 + $0x1810] sm:$0xff] }
 0x425   :  { %v2160_v0 = vld [vmem:[#allocation11 + $0x1830] sm:$0xff] }
 0x426   :  { %6758 = vmatpush1.bf16.msra.mxu0 %v6757_v9  ;;  %v2092_v9 = vld [vmem:[#allocation11 + $0x1610] sm:$0xff]  ;;  %v6825_v3 = vpack.c.bf16 %v2160_v0, %v2156_v63 }
 0x427   :  { %6760 = vmatprep.subr.bf16.mxu0 %v6759_v13  ;;  %v2105_v13 = vld [vmem:[#allocation11 + $0x1678] sm:$0xff]  ;;  %v6793_v14 = vpack.c.bf16 %v2096_v10, %v2092_v9  ;;  %v2168_v6 = vld [vmem:[#allocation11 + $0x1870] sm:$0xff]  ;;  %v7817_v9 = vld [vmem:[#allocation5 + $0x50] sm:$0xff] }
 0x428   :  { %v6795_v15 = vpack.c.bf16 %v2105_v13, %v2101_v12  ;;  %v3637_v10 = vld [vmem:[#allocation13 + $0x208] sm:$0xff]  ;;  %v3639_v12 = vld [vmem:[#allocation13 + $0x218] sm:$0xff]  ;;  %v6829_v13 = vpack.c.bf16 %v2168_v6, %v2164_v5  ;;  %v2172_v17 = vld [vmem:[#allocation11 + $0x1890] sm:$0xff] }
 0x429   :  { %3349 = vmatmul.mubr.f32.vlgmr.msra.gmra.mrb[4].mxu0 %v7815_v28  ;;  %v2116_v28 = vld [vmem:[#allocation11 + $0x16d0] sm:$0xff] }
 0x42a   :  { %6762 = vmatpush1.bf16.msra.mxu0 %v6761_v22  ;;  %3419 = vmatprep.mubr.f32.mxu0 %v7816_v30  ;;  %v2108_v22 = vld [vmem:[#allocation11 + $0x1690] sm:$0xff]  ;;  %v2125_v30 = vld [vmem:[#allocation11 + $0x1718] sm:$0xff] }
 0x42b   :  { %6764 = vmatprep.subr.bf16.mxu0 %v6763_v23  ;;  %v2112_v23 = vld [vmem:[#allocation11 + $0x16b0] sm:$0xff] }
 0x42c   :  { %v6801_v26 = vpack.c.bf16 %v2112_v23, %v2108_v22  ;;  %v2176_v18 = vld [vmem:[#allocation11 + $0x18b0] sm:$0xff] }
 0x42d   :  { %v2180_v23 = vld [vmem:[#allocation11 + $0x18d0] sm:$0xff] }
 0x42e   :  { %6766 = vmatpush1.bf16.msra.mxu0 %v6765_v29  ;;  %v2120_v29 = vld [vmem:[#allocation11 + $0x16f0] sm:$0xff] }
 0x42f   :  { %6768 = vmatprep.subr.bf16.mxu0 %v6767_v31  ;;  %v2129_v31 = vld [vmem:[#allocation11 + $0x1738] sm:$0xff]  ;;  %v6805_v32 = vpack.c.bf16 %v2120_v29, %v2116_v28  ;;  %v2184_v24 = vld [vmem:[#allocation11 + $0x18f0] sm:$0xff] }
 0x430   :  { %v6807_v33 = vpack.c.bf16 %v2129_v31, %v2125_v30  ;;  %v2188_v29 = vld [vmem:[#allocation11 + $0x1910] sm:$0xff]  ;;  %v2197_v31 = vld [vmem:[#allocation11 + $0x1958] sm:$0xff] }
 0x431   :  { %v2192_v30 = vld [vmem:[#allocation11 + $0x1930] sm:$0xff] }
 0x432   :  { %6770 = vmatpush1.bf16.msra.mxu0 %v6769_v36  ;;  %v2133_v36 = vld [vmem:[#allocation11 + $0x1758] sm:$0xff]  ;;  %v2196_v35 = vld [vmem:[#allocation11 + $0x1950] sm:$0xff] }
 0x433   :  { %6772 = vmatprep.subr.bf16.mxu0 %v6771_v37  ;;  %v2137_v37 = vld [vmem:[#allocation11 + $0x1778] sm:$0xff]  ;;  %v2204_v43 = vld [vmem:[#allocation11 + $0x1990] sm:$0xff] }
 0x434   :  { %v6811_v40 = vpack.c.bf16 %v2137_v37, %v2133_v36  ;;  %v2200_v36 = vld [vmem:[#allocation11 + $0x1970] sm:$0xff]  ;;  %v2205_v37 = vld [vmem:[#allocation11 + $0x1998] sm:$0xff] }
 0x435   :  { %v2212_v50 = vld [vmem:[#allocation11 + $0x19d0] sm:$0xff] }
 0x436   :  { %6774 = vmatpush1.bf16.msra.mxu0 %v6773_v44  ;;  %v2141_v44 = vld [vmem:[#allocation11 + $0x1798] sm:$0xff]  ;;  %v2220_v59 = vld [vmem:[#allocation11 + $0x1a10] sm:$0xff] }
 0x437   :  { %6776 = vmatprep.subr.bf16.mxu0 %v6775_v45  ;;  %v2145_v45 = vld [vmem:[#allocation11 + $0x17b8] sm:$0xff]  ;;  %v2228_v0 = vld [vmem:[#allocation11 + $0x1a50] sm:$0xff] }
 0x438   :  { %v6815_v48 = vpack.c.bf16 %v2145_v45, %v2141_v44  ;;  %v2208_v44 = vld [vmem:[#allocation11 + $0x19b0] sm:$0xff]  ;;  %v2213_v45 = vld [vmem:[#allocation11 + $0x19d8] sm:$0xff] }
 0x439   :  { %v2236_v6 = vld [vmem:[#allocation11 + $0x1a90] sm:$0xff] }
 0x43a   :  { %6778 = vmatpush1.bf16.msra.mxu0 %v6777_v53  ;;  %v2149_v53 = vld [vmem:[#allocation11 + $0x17d8] sm:$0xff] }
 0x43b   :  { %6780 = vmatprep.subr.bf16.mxu0 %v6779_v55  ;;  %v2153_v55 = vld [vmem:[#allocation11 + $0x17f8] sm:$0xff] }
 0x43c   :  { %v6819_v57 = vpack.c.bf16 %v2153_v55, %v2149_v53  ;;  %v2216_v53 = vld [vmem:[#allocation11 + $0x19f0] sm:$0xff]  ;;  %v2221_v55 = vld [vmem:[#allocation11 + $0x1a18] sm:$0xff] }
 0x43e   :  { %6782 = vmatpush1.bf16.msra.mxu0 %v6781_v60  ;;  %v2157_v60 = vld [vmem:[#allocation11 + $0x1818] sm:$0xff] }
 0x43f   :  { %6784 = vmatprep.subr.bf16.mxu0 %v6783_v61  ;;  %v2161_v61 = vld [vmem:[#allocation11 + $0x1838] sm:$0xff] }
 0x440   :  { %v6823_v62 = vpack.c.bf16 %v2161_v61, %v2157_v60  ;;  %v2224_v60 = vld [vmem:[#allocation11 + $0x1a30] sm:$0xff]  ;;  %v2229_v61 = vld [vmem:[#allocation11 + $0x1a58] sm:$0xff] }
 0x442   :  { %6786 = vmatpush1.bf16.msra.mxu0 %v6785_v1  ;;  %v2165_v1 = vld [vmem:[#allocation11 + $0x1858] sm:$0xff] }
 0x443   :  { %6788 = vmatprep.subr.bf16.mxu0 %v6787_v2  ;;  %v2169_v2 = vld [vmem:[#allocation11 + $0x1878] sm:$0xff] }
 0x444   :  { %v6827_v4 = vpack.c.bf16 %v2169_v2, %v2165_v1  ;;  %v2232_v1 = vld [vmem:[#allocation11 + $0x1a70] sm:$0xff]  ;;  %v2237_v2 = vld [vmem:[#allocation11 + $0x1a98] sm:$0xff] }
 0x446   :  { %6790 = vmatpush1.bf16.msra.mxu0 %v6789_v7  ;;  %v2173_v7 = vld [vmem:[#allocation11 + $0x1898] sm:$0xff] }
 0x447   :  { %6792 = vmatprep.subr.bf16.mxu0 %v6791_v8  ;;  %v2177_v8 = vld [vmem:[#allocation11 + $0x18b8] sm:$0xff] }
 0x448   :  { %v6831_v16 = vpack.c.bf16 %v2177_v8, %v2173_v7  ;;  %v2240_v7 = vld [vmem:[#allocation11 + $0x1ab0] sm:$0xff]  ;;  %v2245_v8 = vld [vmem:[#allocation11 + $0x1ad8] sm:$0xff] }
 0x44a   :  { %6794 = vmatpush1.bf16.msra.mxu0 %v6793_v14  ;;  %v7818_v14 = vld [vmem:[#allocation5 + $0x68] sm:$0xff] }
 0x44b   :  { %6796 = vmatprep.subr.bf16.mxu0 %v6795_v15  ;;  %v7015_v15 = vpack.c.bf16 %v3639_v12, %v3637_v10  ;;  %v6865_v10 = vpack.c.bf16 %v2240_v7, %v2236_v6  ;;  %v2305_v6 = vld [vmem:[#allocation11 + $0x1cb8] sm:$0xff] }
 0x44d   :  { %7016 = vmatprep.subr.bf16.mxu1 %v7015_v15  ;;  %v2253_v15 = vld [vmem:[#allocation11 + $0x1b18] sm:$0xff] }
 0x44e   :  { %6798 = vmatpush1.bf16.msra.mxu0 %v6797_v20  ;;  %v2185_v20 = vld [vmem:[#allocation11 + $0x18f8] sm:$0xff] }
 0x44f   :  { %6800 = vmatprep.subr.bf16.mxu0 %v6799_v21  ;;  %v6833_v21 = vpack.c.bf16 %v2176_v18, %v2172_v17  ;;  %v6835_v22 = vpack.c.bf16 %v2185_v20, %v2181_v19  ;;  %v2252_v19 = vld [vmem:[#allocation11 + $0x1b10] sm:$0xff] }
 0x450   :  { %v2256_v20 = vld [vmem:[#allocation11 + $0x1b30] sm:$0xff] }
 0x452   :  { %6802 = vmatpush1.bf16.msra.mxu0 %v6801_v26  ;;  %v2193_v26 = vld [vmem:[#allocation11 + $0x1938] sm:$0xff] }
 0x453   :  { %6804 = vmatprep.subr.bf16.mxu0 %v6803_v27  ;;  %v6837_v27 = vpack.c.bf16 %v2184_v24, %v2180_v23  ;;  %v6839_v28 = vpack.c.bf16 %v2193_v26, %v2189_v25  ;;  %v6873_v23 = vpack.c.bf16 %v2256_v20, %v2252_v19  ;;  %v2260_v25 = vld [vmem:[#allocation11 + $0x1b50] sm:$0xff]  ;;  %v2309_v20 = vld [vmem:[#allocation11 + $0x1cd8] sm:$0xff] }
 0x454   :  { %v2264_v26 = vld [vmem:[#allocation11 + $0x1b70] sm:$0xff] }
 0x455   :  { %v7820_v19 = vld [vmem:[#allocation5 + $0x78] sm:$0xff] }
 0x456   :  { %6806 = vmatpush1.bf16.msra.mxu0 %v6805_v32  ;;  %v2201_v32 = vld [vmem:[#allocation11 + $0x1978] sm:$0xff] }
 0x457   :  { %6808 = vmatprep.subr.bf16.mxu0 %v6807_v33  ;;  %v6841_v33 = vpack.c.bf16 %v2192_v30, %v2188_v29  ;;  %v6843_v34 = vpack.c.bf16 %v2201_v32, %v2197_v31  ;;  %v6877_v29 = vpack.c.bf16 %v2264_v26, %v2260_v25  ;;  %v2268_v31 = vld [vmem:[#allocation11 + $0x1b90] sm:$0xff] }
 0x458   :  { %v2272_v32 = vld [vmem:[#allocation11 + $0x1bb0] sm:$0xff] }
 0x459   :  { %v3646_v25 = vld [vmem:[#allocation13 + $0x250] sm:$0xff] }
 0x45a   :  { %6810 = vmatpush1.bf16.msra.mxu0 %v6809_v39  ;;  %v2209_v39 = vld [vmem:[#allocation11 + $0x19b8] sm:$0xff] }
 0x45b   :  { %6812 = vmatprep.subr.bf16.mxu0 %v6811_v40  ;;  %v6845_v40 = vpack.c.bf16 %v2200_v36, %v2196_v35  ;;  %v6847_v42 = vpack.c.bf16 %v2209_v39, %v2205_v37  ;;  %v8531_v35 = vld [vmem:[#allocation25 + $0x6] sm:$0xf]  ;;  %v6881_v36 = vpack.c.bf16 %v2272_v32, %v2268_v31  ;;  %v2276_v39 = vld [vmem:[#allocation11 + $0x1bd0] sm:$0xff]  ;;  %v2317_v32 = vld [vmem:[#allocation11 + $0x1d18] sm:$0xff] }
 0x45c   :  { %v2312_v31 = vld [vmem:[#allocation11 + $0x1cf0] sm:$0xff] }
 0x45e   :  { %6814 = vmatpush1.bf16.msra.mxu0 %v6813_v46  ;;  %v2217_v46 = vld [vmem:[#allocation11 + $0x19f8] sm:$0xff] }
 0x45f   :  { %6816 = vmatprep.subr.bf16.mxu0 %v6815_v48  ;;  %v6849_v48 = vpack.c.bf16 %v2208_v44, %v2204_v43  ;;  %v6851_v49 = vpack.c.bf16 %v2217_v46, %v2213_v45  ;;  %v2285_v43 = vld [vmem:[#allocation11 + $0x1c18] sm:$0xff]  ;;  %v2419_v45 = vrot.slane %v8531_v35, %v8516_v52 }
 0x460   :  { %v2289_v44 = vld [vmem:[#allocation11 + $0x1c38] sm:$0xff] }
 0x462   :  { %6818 = vmatpush1.bf16.msra.mxu0 %v6817_v56  ;;  %v2225_v56 = vld [vmem:[#allocation11 + $0x1a38] sm:$0xff] }
 0x463   :  { %6820 = vmatprep.subr.bf16.mxu0 %v6819_v57  ;;  %v6853_v57 = vpack.c.bf16 %v2216_v53, %v2212_v50  ;;  %v6855_v58 = vpack.c.bf16 %v2225_v56, %v2221_v55  ;;  %v2284_v50 = vld [vmem:[#allocation11 + $0x1c10] sm:$0xff] }
 0x464   :  { %v2288_v53 = vld [vmem:[#allocation11 + $0x1c30] sm:$0xff] }
 0x466   :  { %6822 = vmatpush1.bf16.msra.mxu0 %v6821_v11  ;;  %v2233_v11 = vld [vmem:[#allocation11 + $0x1a78] sm:$0xff] }
 0x467   :  { %6824 = vmatprep.subr.bf16.mxu0 %v6823_v62  ;;  %v6857_v62 = vpack.c.bf16 %v2224_v60, %v2220_v59  ;;  %v6859_v63 = vpack.c.bf16 %v2233_v11, %v2229_v61  ;;  %v3636_v60 = vld [vmem:[#allocation13 + $0x200] sm:$0xff]  ;;  %v3638_v61 = vld [vmem:[#allocation13 + $0x210] sm:$0xff]  ;;  %v6889_v11 = vpack.c.bf16 %v2288_v53, %v2284_v50 }
 0x468   :  { %v7017_v7 = vpack.c.bf16 %v3638_v61, %v3636_v60  ;;  %v2324_v61 = vld [vmem:[#allocation11 + $0x1d50] sm:$0xff] }
 0x469   :  { %3420 = vmatmul.mubr.f32.vlgmr.msra.gmra.mrb[4].mxu0 %v7817_v9  ;;  %v2249_v9 = vld [vmem:[#allocation11 + $0x1af8] sm:$0xff] }
 0x46a   :  { %6826 = vmatpush1.bf16.msra.mxu0 %v6825_v3  ;;  %3490 = vmatprep.mubr.f32.mxu0 %v7818_v14  ;;  %v2241_v3 = vld [vmem:[#allocation11 + $0x1ab8] sm:$0xff]  ;;  %v6867_v12 = vpack.c.bf16 %v2249_v9, %v2245_v8  ;;  %v2248_v14 = vld [vmem:[#allocation11 + $0x1af0] sm:$0xff] }
 0x46b   :  { %6828 = vmatprep.subr.bf16.mxu0 %v6827_v4  ;;  %v6861_v4 = vpack.c.bf16 %v2232_v1, %v2228_v0  ;;  %v6863_v5 = vpack.c.bf16 %v2241_v3, %v2237_v2  ;;  %v2292_v2 = vld [vmem:[#allocation11 + $0x1c50] sm:$0xff]  ;;  %v7819_v8 = vld [vmem:[#allocation5 + $0x60] sm:$0xff] }
 0x46c   :  { %v2296_v3 = vld [vmem:[#allocation11 + $0x1c70] sm:$0xff] }
 0x46e   :  { %6830 = vmatpush1.bf16.msra.mxu0 %v6829_v13  ;;  %v2244_v13 = vld [vmem:[#allocation11 + $0x1ad0] sm:$0xff] }
 0x46f   :  { %6832 = vmatprep.subr.bf16.mxu0 %v6831_v16  ;;  %v2257_v16 = vld [vmem:[#allocation11 + $0x1b38] sm:$0xff]  ;;  %v6869_v17 = vpack.c.bf16 %v2248_v14, %v2244_v13  ;;  %v6893_v13 = vpack.c.bf16 %v2296_v3, %v2292_v2  ;;  %v3645_v14 = vld [vmem:[#allocation13 + $0x248] sm:$0xff]  ;;  %v3656_v2 = vld [vmem:[#allocation13 + $0x2a0] sm:$0xff] }
 0x470   :  { %v6871_v18 = vpack.c.bf16 %v2257_v16, %v2253_v15  ;;  %v3647_v15 = vld [vmem:[#allocation13 + $0x258] sm:$0xff]  ;;  %v3658_v3 = vld [vmem:[#allocation13 + $0x2b0] sm:$0xff] }
 0x472   :  { %6834 = vmatpush1.bf16.msra.mxu0 %v6833_v21  ;;  %v2261_v21 = vld [vmem:[#allocation11 + $0x1b58] sm:$0xff] }
 0x473   :  { %6836 = vmatprep.subr.bf16.mxu0 %v6835_v22  ;;  %v2265_v22 = vld [vmem:[#allocation11 + $0x1b78] sm:$0xff] }
 0x474   :  { %v6875_v24 = vpack.c.bf16 %v2265_v22, %v2261_v21  ;;  %v2313_v21 = vld [vmem:[#allocation11 + $0x1cf8] sm:$0xff] }
 0x476   :  { %6838 = vmatpush1.bf16.msra.mxu0 %v6837_v27  ;;  %v2269_v27 = vld [vmem:[#allocation11 + $0x1b98] sm:$0xff] }
 0x477   :  { %6840 = vmatprep.subr.bf16.mxu0 %v6839_v28  ;;  %v2273_v28 = vld [vmem:[#allocation11 + $0x1bb8] sm:$0xff] }
 0x478   :  { %v6879_v30 = vpack.c.bf16 %v2273_v28, %v2269_v27  ;;  %v3649_v27 = vld [vmem:[#allocation13 + $0x268] sm:$0xff]  ;;  %v3651_v28 = vld [vmem:[#allocation13 + $0x278] sm:$0xff] }
 0x47a   :  { %6842 = vmatpush1.bf16.msra.mxu0 %v6841_v33  ;;  %v2277_v33 = vld [vmem:[#allocation11 + $0x1bd8] sm:$0xff] }
 0x47b   :  { %6844 = vmatprep.subr.bf16.mxu0 %v6843_v34  ;;  %v2281_v34 = vld [vmem:[#allocation11 + $0x1bf8] sm:$0xff] }
 0x47c   :  { %v6883_v37 = vpack.c.bf16 %v2281_v34, %v2277_v33  ;;  %v2321_v33 = vld [vmem:[#allocation11 + $0x1d38] sm:$0xff] }
 0x47e   :  { %6846 = vmatpush1.bf16.msra.mxu0 %v6845_v40  ;;  %v2280_v40 = vld [vmem:[#allocation11 + $0x1bf0] sm:$0xff] }
 0x47f   :  { %6848 = vmatprep.subr.bf16.mxu0 %v6847_v42  ;;  %v2415_v42 = vrot.slane %v8531_v35, %v8512_v47  ;;  %v6885_v46 = vpack.c.bf16 %v2280_v40, %v2276_v39  ;;  %v3650_v39 = vld [vmem:[#allocation13 + $0x270] sm:$0xff] }
 0x482   :  { %6850 = vmatpush1.bf16.msra.mxu0 %v6849_v48 }
 0x483   :  { %6852 = vmatprep.subr.bf16.mxu0 %v6851_v49  ;;  %v6887_v49 = vpack.c.bf16 %v2289_v44, %v2285_v43  ;;  %v3655_v43 = vld [vmem:[#allocation13 + $0x298] sm:$0xff]  ;;  %v6903_v44 = vpack.c.bf16 %v2321_v33, %v2317_v32  ;;  %v2348_v33 = vld [vmem:[#allocation11 + $0x1e10] sm:$0xff] }
 0x486   :  { %6854 = vmatpush1.bf16.msra.mxu0 %v6853_v57  ;;  %v2293_v57 = vld [vmem:[#allocation11 + $0x1c58] sm:$0xff] }
 0x487   :  { %6856 = vmatprep.subr.bf16.mxu0 %v6855_v58  ;;  %v2297_v58 = vld [vmem:[#allocation11 + $0x1c78] sm:$0xff] }
 0x488   :  { %v6891_v1 = vpack.c.bf16 %v2297_v58, %v2293_v57  ;;  %v3657_v58 = vld [vmem:[#allocation13 + $0x2a8] sm:$0xff] }
 0x48a   :  { %6858 = vmatpush1.bf16.msra.mxu0 %v6857_v62  ;;  %v3641_v62 = vld [vmem:[#allocation13 + $0x228] sm:$0xff] }
 0x48b   :  { %6860 = vmatprep.subr.bf16.mxu0 %v6859_v63  ;;  %v3643_v63 = vld [vmem:[#allocation13 + $0x238] sm:$0xff] }
 0x48c   :  { %v7019_v9 = vpack.c.bf16 %v3643_v63, %v3641_v62  ;;  %v2333_v62 = vld [vmem:[#allocation11 + $0x1d98] sm:$0xff] }
 0x48d   :  { %v2337_v63 = vld [vmem:[#allocation11 + $0x1db8] sm:$0xff] }
 0x48e   :  { %6862 = vmatpush1.bf16.msra.mxu0 %v6861_v4 }
 0x48f   :  { %6864 = vmatprep.subr.bf16.mxu0 %v6863_v5  ;;  %v2301_v5 = vld [vmem:[#allocation11 + $0x1c98] sm:$0xff] }
 0x490   :  { %v6895_v16 = vpack.c.bf16 %v2305_v6, %v2301_v5  ;;  %v3661_v5 = vld [vmem:[#allocation13 + $0x2c8] sm:$0xff]  ;;  %v3663_v6 = vld [vmem:[#allocation13 + $0x2d8] sm:$0xff] }
 0x492   :  { %6866 = vmatpush1.bf16.msra.mxu0 %v6865_v10  ;;  %v3640_v10 = vld [vmem:[#allocation13 + $0x220] sm:$0xff] }
 0x493   :  { %6868 = vmatprep.subr.bf16.mxu0 %v6867_v12  ;;  %v3642_v12 = vld [vmem:[#allocation13 + $0x230] sm:$0xff] }
 0x494   :  { %v7021_v22 = vpack.c.bf16 %v3642_v12, %v3640_v10  ;;  %v2341_v10 = vld [vmem:[#allocation11 + $0x1dd8] sm:$0xff] }
 0x495   :  { %v2345_v12 = vld [vmem:[#allocation11 + $0x1df8] sm:$0xff] }
 0x496   :  { %6870 = vmatpush1.bf16.msra.mxu0 %v6869_v17  ;;  %v2300_v17 = vld [vmem:[#allocation11 + $0x1c90] sm:$0xff] }
 0x497   :  { %6872 = vmatprep.subr.bf16.mxu0 %v6871_v18  ;;  %v2304_v18 = vld [vmem:[#allocation11 + $0x1cb0] sm:$0xff] }
 0x498   :  { %v6897_v26 = vpack.c.bf16 %v2304_v18, %v2300_v17  ;;  %v3665_v18 = vld [vmem:[#allocation13 + $0x2e8] sm:$0xff] }
 0x49a   :  { %6874 = vmatpush1.bf16.msra.mxu0 %v6873_v23  ;;  %v7023_v23 = vpack.c.bf16 %v3647_v15, %v3645_v14  ;;  %v7039_v14 = vpack.c.bf16 %v3663_v6, %v3661_v5  ;;  %v3660_v15 = vld [vmem:[#allocation13 + $0x2c0] sm:$0xff]  ;;  %v3678_v6 = vld [vmem:[#allocation13 + $0x350] sm:$0xff] }
 0x49b   :  { %6876 = vmatprep.subr.bf16.mxu0 %v6875_v24  ;;  %v3644_v24 = vld [vmem:[#allocation13 + $0x240] sm:$0xff] }
 0x49c   :  { %v7025_v34 = vpack.c.bf16 %v3646_v25, %v3644_v24  ;;  %v2353_v24 = vld [vmem:[#allocation11 + $0x1e38] sm:$0xff]  ;;  %v3676_v5 = vld [vmem:[#allocation13 + $0x340] sm:$0xff] }
 0x49e   :  { %6878 = vmatpush1.bf16.msra.mxu0 %v6877_v29  ;;  %v6899_v29 = vpack.c.bf16 %v2313_v21, %v2309_v20  ;;  %v6915_v20 = vpack.c.bf16 %v2345_v12, %v2341_v10  ;;  %v2340_v21 = vld [vmem:[#allocation11 + $0x1dd0] sm:$0xff] }
 0x49f   :  { %6880 = vmatprep.subr.bf16.mxu0 %v6879_v30  ;;  %v2308_v30 = vld [vmem:[#allocation11 + $0x1cd0] sm:$0xff] }
 0x4a0   :  { %v6901_v40 = vpack.c.bf16 %v2312_v31, %v2308_v30  ;;  %v3669_v30 = vld [vmem:[#allocation13 + $0x308] sm:$0xff]  ;;  %v3671_v31 = vld [vmem:[#allocation13 + $0x318] sm:$0xff]  ;;  %v2372_v12 = vld [vmem:[#allocation11 + $0x1ed0] sm:$0xff] }
 0x4a2   :  { %6882 = vmatpush1.bf16.msra.mxu0 %v6881_v36  ;;  %v7027_v36 = vpack.c.bf16 %v3651_v28, %v3649_v27  ;;  %v3664_v27 = vld [vmem:[#allocation13 + $0x2e0] sm:$0xff]  ;;  %v3666_v28 = vld [vmem:[#allocation13 + $0x2f0] sm:$0xff] }
 0x4a3   :  { %v2995_v48 = vpop.f32.mrb[2].mxu1  ;;  %6884 = vmatprep.subr.bf16.mxu0 %v6883_v37  ;;  %v3648_v37 = vld [vmem:[#allocation13 + $0x260] sm:$0xff] }
 0x4a4   :  { %v7725_v55 = vadd.f32 %v2995_v48, %v2415_v42  ;;  %v2997_v56 = vpop.f32.mrb[3].mxu1  ;;  %v3653_v42 = vld [vmem:[#allocation13 + $0x288] sm:$0xff]  ;;  %v2325_v48 = vld [vmem:[#allocation11 + $0x1d58] sm:$0xff]  ;;  %v7029_v50 = vpack.c.bf16 %v3650_v39, %v3648_v37  ;;  %v7045_v39 = vpack.c.bf16 %v3666_v28, %v3664_v27 }
 0x4a5   :  { %v7726_v59 = vadd.f32 %v2997_v56, %v2419_v45  ;;  %v2316_v45 = vld [vmem:[#allocation11 + $0x1d10] sm:$0xff]  ;;  %v7031_v53 = vpack.c.bf16 %v3655_v43, %v3653_v42  ;;  %v2361_v37 = vld [vmem:[#allocation11 + $0x1e78] sm:$0xff]  ;;  %v3668_v42 = vld [vmem:[#allocation13 + $0x300] sm:$0xff] }
 0x4a6   :  { %6886 = vmatpush1.bf16.msra.mxu0 %v6885_v46  ;;  %v3568_v4 = vmax.f32 %v7725_v55, 0.0  ;;  %v2320_v46 = vld [vmem:[#allocation11 + $0x1d30] sm:$0xff]  ;;  %v3652_v55 = vld [vmem:[#allocation13 + $0x280] sm:$0xff]  ;;  %v2393_v27 = vld [vmem:[#allocation11 + $0x1f78] sm:$0xff] }
 0x4a7   :  { %v3569_v0 = vmax.f32 %v7726_v59, 0.0  ;;  %6888 = vmatprep.subr.bf16.mxu0 %v6887_v49  ;;  %v2329_v49 = vld [vmem:[#allocation11 + $0x1d78] sm:$0xff]  ;;  %v3654_v56 = vld [vmem:[#allocation13 + $0x290] sm:$0xff]  ;;  %v6905_v57 = vpack.c.bf16 %v2320_v46, %v2316_v45  ;;  %v3673_v45 = vld [vmem:[#allocation13 + $0x328] sm:$0xff] }
 0x4a8   :  { %v3659_v59 = vld [vmem:[#allocation13 + $0x2b8] sm:$0xff]  ;;  %v6907_v60 = vpack.c.bf16 %v2329_v49, %v2325_v48  ;;  %v3670_v43 = vld [vmem:[#allocation13 + $0x310] sm:$0xff] }
 0x4a9   :  { %3776 = vmatprep.mubr.f32.mxu1 %v3569_v0  ;;  %3491 = vmatmul.mubr.f32.vlgmr.msra.gmra.mrb[4].mxu0 %v7819_v8  ;;  %v7033_v0 = vpack.c.bf16 %v3654_v56, %v3652_v55  ;;  %v2332_v8 = vld [vmem:[#allocation11 + $0x1d90] sm:$0xff]  ;;  %v3675_v46 = vld [vmem:[#allocation13 + $0x338] sm:$0xff]  ;;  %v7049_v56 = vpack.c.bf16 %v3670_v43, %v3668_v42 }
 0x4aa   :  { %6890 = vmatpush1.bf16.msra.mxu0 %v6889_v11  ;;  %3777 = vmatmul.mubr.f32.vlgmr.msra.gmra.mrb[4].mxu1 %v3568_v4  ;;  %v2328_v11 = vld [vmem:[#allocation11 + $0x1d70] sm:$0xff]  ;;  %v2369_v55 = vld [vmem:[#allocation11 + $0x1eb8] sm:$0xff] }
 0x4ab   :  { %6892 = vmatprep.subr.bf16.mxu0 %v6891_v1  ;;  %3561 = vmatprep.mubr.f32.mxu0 %v7820_v19  ;;  %v7035_v1 = vpack.c.bf16 %v3659_v59, %v3657_v58  ;;  %v6909_v4 = vpack.c.bf16 %v2328_v11, %v2324_v61  ;;  %v3667_v19 = vld [vmem:[#allocation13 + $0x2f8] sm:$0xff]  ;;  %v2356_v49 = vld [vmem:[#allocation11 + $0x1e50] sm:$0xff]  ;;  %v3672_v58 = vld [vmem:[#allocation13 + $0x320] sm:$0xff] }
 0x4ac   :  { %7018 = vmatpush1.bf16.msra.mxu1 %v7017_v7  ;;  %v6911_v7 = vpack.c.bf16 %v2337_v63, %v2333_v62  ;;  %v3674_v59 = vld [vmem:[#allocation13 + $0x330] sm:$0xff]  ;;  %v3677_v61 = vld [vmem:[#allocation13 + $0x348] sm:$0xff]  ;;  %v3679_v11 = vld [vmem:[#allocation13 + $0x358] sm:$0xff] }
 0x4ad   :  { %7020 = vmatprep.subr.bf16.mxu1 %v7019_v9  ;;  %v2336_v9 = vld [vmem:[#allocation11 + $0x1db0] sm:$0xff]  ;;  %v2401_v42 = vld [vmem:[#allocation11 + $0x1fb8] sm:$0xff] }
 0x4ae   :  { %6894 = vmatpush1.bf16.msra.mxu0 %v6893_v13  ;;  %v7037_v13 = vpack.c.bf16 %v3658_v3, %v3656_v2  ;;  %v6913_v17 = vpack.c.bf16 %v2336_v9, %v2332_v8  ;;  %v2364_v63 = vld [vmem:[#allocation11 + $0x1e90] sm:$0xff]  ;;  %v2377_v2 = vld [vmem:[#allocation11 + $0x1ef8] sm:$0xff]  ;;  %v7053_v3 = vpack.c.bf16 %v3674_v59, %v3672_v58  ;;  %v3681_v8 = vld [vmem:[#allocation13 + $0x368] sm:$0xff] }
 0x4af   :  { %6896 = vmatprep.subr.bf16.mxu0 %v6895_v16  ;;  %v3662_v16 = vld [vmem:[#allocation13 + $0x2d0] sm:$0xff]  ;;  %v3683_v9 = vld [vmem:[#allocation13 + $0x378] sm:$0xff] }
 0x4b0   :  { %7022 = vmatpush1.bf16.msra.mxu1 %v7021_v22  ;;  %v2344_v22 = vld [vmem:[#allocation11 + $0x1df0] sm:$0xff]  ;;  %v7041_v25 = vpack.c.bf16 %v3662_v16, %v3660_v15  ;;  %v2385_v15 = vld [vmem:[#allocation11 + $0x1f38] sm:$0xff]  ;;  %v7057_v16 = vpack.c.bf16 %v3678_v6, %v3676_v5  ;;  %v3697_v5 = vld [vmem:[#allocation13 + $0x3e8] sm:$0xff] }
 0x4b1   :  { %7024 = vmatprep.subr.bf16.mxu1 %v7023_v23  ;;  %v2349_v23 = vld [vmem:[#allocation11 + $0x1e18] sm:$0xff] }
 0x4b2   :  { %6898 = vmatpush1.bf16.msra.mxu0 %v6897_v26  ;;  %v7043_v26 = vpack.c.bf16 %v3667_v19, %v3665_v18  ;;  %v6919_v32 = vpack.c.bf16 %v2353_v24, %v2349_v23  ;;  %v3680_v18 = vld [vmem:[#allocation13 + $0x360] sm:$0xff]  ;;  %v3682_v19 = vld [vmem:[#allocation13 + $0x370] sm:$0xff]  ;;  %v2409_v58 = vld [vmem:[#allocation11 + $0x1ff8] sm:$0xff] }
 0x4b3   :  { %6900 = vmatprep.subr.bf16.mxu0 %v6899_v29  ;;  %v6917_v29 = vpack.c.bf16 %v2344_v22, %v2340_v21  ;;  %v3685_v21 = vld [vmem:[#allocation13 + $0x388] sm:$0xff]  ;;  %v3687_v22 = vld [vmem:[#allocation13 + $0x398] sm:$0xff]  ;;  %v2380_v24 = vld [vmem:[#allocation11 + $0x1f10] sm:$0xff]  ;;  %v7061_v28 = vpack.c.bf16 %v3682_v19, %v3680_v18 }
 0x4b4   :  { %7026 = vmatpush1.bf16.msra.mxu1 %v7025_v34  ;;  %v2352_v34 = vld [vmem:[#allocation11 + $0x1e30] sm:$0xff]  ;;  %v3699_v6 = vld [vmem:[#allocation13 + $0x3f8] sm:$0xff]  ;;  %v4251_v19 = vld [vmem:[#allocation19 + $0x20] sm:$0xff] }
 0x4b5   :  { %7028 = vmatprep.subr.bf16.mxu1 %v7027_v36  ;;  %v2357_v36 = vld [vmem:[#allocation11 + $0x1e58] sm:$0xff] }
 0x4b6   :  { %6902 = vmatpush1.bf16.msra.mxu0 %v6901_v40  ;;  %v7047_v40 = vpack.c.bf16 %v3671_v31, %v3669_v30  ;;  %v6923_v48 = vpack.c.bf16 %v2361_v37, %v2357_v36  ;;  %v3684_v30 = vld [vmem:[#allocation13 + $0x380] sm:$0xff]  ;;  %v3686_v31 = vld [vmem:[#allocation13 + $0x390] sm:$0xff] }
 0x4b7   :  { %6904 = vmatprep.subr.bf16.mxu0 %v6903_v44  ;;  %v6921_v44 = vpack.c.bf16 %v2352_v34, %v2348_v33  ;;  %v3689_v33 = vld [vmem:[#allocation13 + $0x3a8] sm:$0xff]  ;;  %v3691_v34 = vld [vmem:[#allocation13 + $0x3b8] sm:$0xff]  ;;  %v2388_v37 = vld [vmem:[#allocation11 + $0x1f50] sm:$0xff]  ;;  %v7065_v43 = vpack.c.bf16 %v3686_v31, %v3684_v30 }
 0x4b8   :  { %7030 = vmatpush1.bf16.msra.mxu1 %v7029_v50  ;;  %v2360_v50 = vld [vmem:[#allocation11 + $0x1e70] sm:$0xff]  ;;  %v4263_v30 = vld [vmem:[#allocation19 + $0x80] sm:$0xff] }
 0x4b9   :  { %7032 = vmatprep.subr.bf16.mxu1 %v7031_v53  ;;  %v2365_v53 = vld [vmem:[#allocation11 + $0x1e98] sm:$0xff]  ;;  %v4267_v31 = vld [vmem:[#allocation19 + $0xa0] sm:$0xff] }
 0x4ba   :  { %6906 = vmatpush1.bf16.msra.mxu0 %v6905_v57  ;;  %v7051_v57 = vpack.c.bf16 %v3675_v46, %v3673_v45  ;;  %v6927_v62 = vpack.c.bf16 %v2369_v55, %v2365_v53  ;;  %v3688_v45 = vld [vmem:[#allocation13 + $0x3a0] sm:$0xff]  ;;  %v3690_v46 = vld [vmem:[#allocation13 + $0x3b0] sm:$0xff] }
 0x4bb   :  { %6908 = vmatprep.subr.bf16.mxu0 %v6907_v60  ;;  %v6925_v60 = vpack.c.bf16 %v2360_v50, %v2356_v49  ;;  %v3693_v49 = vld [vmem:[#allocation13 + $0x3c8] sm:$0xff]  ;;  %v3695_v50 = vld [vmem:[#allocation13 + $0x3d8] sm:$0xff]  ;;  %v2396_v55 = vld [vmem:[#allocation11 + $0x1f90] sm:$0xff]  ;;  %v7069_v59 = vpack.c.bf16 %v3690_v46, %v3688_v45 }
 0x4bc   :  { %7034 = vmatpush1.bf16.msra.mxu1 %v7033_v0  ;;  %v2368_v0 = vld [vmem:[#allocation11 + $0x1eb0] sm:$0xff]  ;;  %v4279_v45 = vld [vmem:[#allocation19 + $0x100] sm:$0xff] }
 0x4bd   :  { %7036 = vmatprep.subr.bf16.mxu1 %v7035_v1  ;;  %v2373_v1 = vld [vmem:[#allocation11 + $0x1ed8] sm:$0xff]  ;;  %v4283_v46 = vld [vmem:[#allocation19 + $0x120] sm:$0xff] }
 0x4be   :  { %6910 = vmatpush1.bf16.msra.mxu0 %v6909_v4  ;;  %v7055_v4 = vpack.c.bf16 %v3679_v11, %v3677_v61  ;;  %v6931_v10 = vpack.c.bf16 %v2377_v2, %v2373_v1  ;;  %v3692_v61 = vld [vmem:[#allocation13 + $0x3c0] sm:$0xff]  ;;  %v3694_v11 = vld [vmem:[#allocation13 + $0x3d0] sm:$0xff] }
 0x4bf   :  { %6912 = vmatprep.subr.bf16.mxu0 %v6911_v7  ;;  %v6929_v7 = vpack.c.bf16 %v2368_v0, %v2364_v63  ;;  %v2404_v0 = vld [vmem:[#allocation11 + $0x1fd0] sm:$0xff]  ;;  %v7073_v2 = vpack.c.bf16 %v3694_v11, %v3692_v61  ;;  %v4295_v61 = vld [vmem:[#allocation19 + $0x180] sm:$0xff] }
 0x4c0   :  { %7038 = vmatpush1.bf16.msra.mxu1 %v7037_v13  ;;  %v2376_v13 = vld [vmem:[#allocation11 + $0x1ef0] sm:$0xff]  ;;  %v4299_v11 = vld [vmem:[#allocation19 + $0x1a0] sm:$0xff] }
 0x4c1   :  { %7040 = vmatprep.subr.bf16.mxu1 %v7039_v14  ;;  %v2381_v14 = vld [vmem:[#allocation11 + $0x1f18] sm:$0xff]  ;;  %v2408_v1 = vld [vmem:[#allocation11 + $0x1ff0] sm:$0xff] }
 0x4c2   :  { %6914 = vmatpush1.bf16.msra.mxu0 %v6913_v17  ;;  %v7059_v17 = vpack.c.bf16 %v3683_v9, %v3681_v8  ;;  %v6935_v23 = vpack.c.bf16 %v2385_v15, %v2381_v14  ;;  %v3696_v8 = vld [vmem:[#allocation13 + $0x3e0] sm:$0xff]  ;;  %v3698_v9 = vld [vmem:[#allocation13 + $0x3f0] sm:$0xff]  ;;  %v4248_v15 = vld [vmem:[#allocation19 + $0x8] sm:$0xff] }
 0x4c3   :  { %6916 = vmatprep.subr.bf16.mxu0 %v6915_v20  ;;  %v6933_v20 = vpack.c.bf16 %v2376_v13, %v2372_v12  ;;  %v3856_v12 = vld [vmem:[#allocation14 + $0x8] sm:$0xff]  ;;  %v3858_v13 = vld [vmem:[#allocation14 + $0x18] sm:$0xff] }
 0x4c4   :  { %7042 = vmatpush1.bf16.msra.mxu1 %v7041_v25  ;;  %v2384_v25 = vld [vmem:[#allocation11 + $0x1f30] sm:$0xff]  ;;  %v7079_v14 = vpack.c.bf16 %v3858_v13, %v3856_v12  ;;  %v4324_v12 = vld [vmem:[#allocation19 + $0x268] sm:$0xff] }
 0x4c5   :  { %7044 = vmatprep.subr.bf16.mxu1 %v7043_v26  ;;  %v2389_v26 = vld [vmem:[#allocation11 + $0x1f58] sm:$0xff] }
 0x4c6   :  { %6918 = vmatpush1.bf16.msra.mxu0 %v6917_v29  ;;  %v7063_v29 = vpack.c.bf16 %v3687_v22, %v3685_v21  ;;  %v6939_v36 = vpack.c.bf16 %v2393_v27, %v2389_v26  ;;  %v4260_v21 = vld [vmem:[#allocation19 + $0x68] sm:$0xff] }
 0x4c7   :  { %6920 = vmatprep.subr.bf16.mxu0 %v6919_v32  ;;  %v6937_v32 = vpack.c.bf16 %v2384_v25, %v2380_v24  ;;  %v4255_v24 = vld [vmem:[#allocation19 + $0x40] sm:$0xff]  ;;  %v4264_v26 = vld [vmem:[#allocation19 + $0x88] sm:$0xff] }
 0x4c8   :  { %7046 = vmatpush1.bf16.msra.mxu1 %v7045_v39  ;;  %v2392_v39 = vld [vmem:[#allocation11 + $0x1f70] sm:$0xff]  ;;  %v4259_v25 = vld [vmem:[#allocation19 + $0x60] sm:$0xff]  ;;  %v4268_v27 = vld [vmem:[#allocation19 + $0xa8] sm:$0xff] }
 0x4c9   :  { %7048 = vmatprep.subr.bf16.mxu1 %v7047_v40  ;;  %v2397_v40 = vld [vmem:[#allocation11 + $0x1f98] sm:$0xff] }
 0x4ca   :  { %6922 = vmatpush1.bf16.msra.mxu0 %v6921_v44  ;;  %v7067_v44 = vpack.c.bf16 %v3691_v34, %v3689_v33  ;;  %v6943_v53 = vpack.c.bf16 %v2401_v42, %v2397_v40  ;;  %v4276_v33 = vld [vmem:[#allocation19 + $0xe8] sm:$0xff]  ;;  %v7185_v34 = vpack.c.bf16 %v4267_v31, %v4263_v30 }
 0x4cb   :  { %6924 = vmatprep.subr.bf16.mxu0 %v6923_v48  ;;  %v6941_v48 = vpack.c.bf16 %v2392_v39, %v2388_v37  ;;  %v4271_v37 = vld [vmem:[#allocation19 + $0xc0] sm:$0xff]  ;;  %v4280_v40 = vld [vmem:[#allocation19 + $0x108] sm:$0xff] }
 0x4cc   :  { %7050 = vmatpush1.bf16.msra.mxu1 %v7049_v56  ;;  %v2400_v56 = vld [vmem:[#allocation11 + $0x1fb0] sm:$0xff]  ;;  %v4275_v39 = vld [vmem:[#allocation19 + $0xe0] sm:$0xff]  ;;  %v4284_v42 = vld [vmem:[#allocation19 + $0x128] sm:$0xff] }
 0x4cd   :  { %7052 = vmatprep.subr.bf16.mxu1 %v7051_v57  ;;  %v2405_v57 = vld [vmem:[#allocation11 + $0x1fd8] sm:$0xff]  ;;  %v4348_v30 = vld [vmem:[#allocation19 + $0x328] sm:$0xff] }
 0x4ce   :  { %6926 = vmatpush1.bf16.msra.mxu0 %v6925_v60  ;;  %v7071_v60 = vpack.c.bf16 %v3695_v50, %v3693_v49  ;;  %v6947_v63 = vpack.c.bf16 %v2409_v58, %v2405_v57  ;;  %v4292_v49 = vld [vmem:[#allocation19 + $0x168] sm:$0xff]  ;;  %v7193_v50 = vpack.c.bf16 %v4283_v46, %v4279_v45 }
 0x4cf   :  { %6928 = vmatprep.subr.bf16.mxu0 %v6927_v62  ;;  %v6945_v62 = vpack.c.bf16 %v2400_v56, %v2396_v55  ;;  %v4287_v55 = vld [vmem:[#allocation19 + $0x140] sm:$0xff]  ;;  %v4296_v57 = vld [vmem:[#allocation19 + $0x188] sm:$0xff] }
 0x4d0   :  { %7054 = vmatpush1.bf16.msra.mxu1 %v7053_v3  ;;  %v6949_v3 = vpack.c.bf16 %v2408_v1, %v2404_v0  ;;  %v4291_v56 = vld [vmem:[#allocation19 + $0x160] sm:$0xff]  ;;  %v4300_v58 = vld [vmem:[#allocation19 + $0x1a8] sm:$0xff]  ;;  %v7201_v0 = vpack.c.bf16 %v4299_v11, %v4295_v61  ;;  %v3857_v61 = vld [vmem:[#allocation14 + $0x10] sm:$0xff] }
 0x4d1   :  { %7056 = vmatprep.subr.bf16.mxu1 %v7055_v4  ;;  %v7821_v4 = vld [vmem:[#allocation5 + $0x70] sm:$0xff] }
 0x4d2   :  { %6930 = vmatpush1.bf16.msra.mxu0 %v6929_v7  ;;  %v7075_v7 = vpack.c.bf16 %v3699_v6, %v3697_v5  ;;  %v4316_v5 = vld [vmem:[#allocation19 + $0x228] sm:$0xff] }
 0x4d3   :  { %6932 = vmatprep.subr.bf16.mxu0 %v6931_v10  ;;  %v7077_v10 = vpack.c.bf16 %v3698_v9, %v3696_v8  ;;  %v4311_v8 = vld [vmem:[#allocation19 + $0x200] sm:$0xff]  ;;  %v4364_v45 = vld [vmem:[#allocation19 + $0x3a8] sm:$0xff] }
 0x4d4   :  { %7058 = vmatpush1.bf16.msra.mxu1 %v7057_v16  ;;  %v4252_v16 = vld [vmem:[#allocation19 + $0x28] sm:$0xff]  ;;  %v4315_v9 = vld [vmem:[#allocation19 + $0x220] sm:$0xff] }
 0x4d5   :  { %7060 = vmatprep.subr.bf16.mxu1 %v7059_v17  ;;  %v4247_v17 = vld [vmem:[#allocation19] sm:$0xff]  ;;  %v7175_v18 = vpack.c.bf16 %v4252_v16, %v4248_v15  ;;  %v7209_v13 = vpack.c.bf16 %v4315_v9, %v4311_v8  ;;  %v8213_v8 = vmov 0.0  }
 0x4d6   :  { %6934 = vmatpush1.bf16.msra.mxu0 %v6933_v20  ;;  %v4256_v20 = vld [vmem:[#allocation19 + $0x48] sm:$0xff]  ;;  %v7177_v22 = vpack.c.bf16 %v4251_v19, %v4247_v17  ;;  %v4319_v15 = vld [vmem:[#allocation19 + $0x240] sm:$0xff] }
 0x4d7   :  { %6936 = vmatprep.subr.bf16.mxu0 %v6935_v23  ;;  %v7179_v23 = vpack.c.bf16 %v4260_v21, %v4256_v20  ;;  %v4323_v16 = vld [vmem:[#allocation19 + $0x260] sm:$0xff]  ;;  %v4328_v17 = vld [vmem:[#allocation19 + $0x288] sm:$0xff] }
 0x4d8   :  { %7062 = vmatpush1.bf16.msra.mxu1 %v7061_v28  ;;  %v7181_v28 = vpack.c.bf16 %v4259_v25, %v4255_v24  ;;  %v7213_v19 = vpack.c.bf16 %v4323_v16, %v4319_v15  ;;  %v4327_v21 = vld [vmem:[#allocation19 + $0x280] sm:$0xff]  ;;  %v4340_v24 = vld [vmem:[#allocation19 + $0x2e8] sm:$0xff] }
 0x4d9   :  { %7064 = vmatprep.subr.bf16.mxu1 %v7063_v29  ;;  %v7183_v29 = vpack.c.bf16 %v4268_v27, %v4264_v26  ;;  %v4335_v27 = vld [vmem:[#allocation19 + $0x2c0] sm:$0xff] }
 0x4da   :  { %6938 = vmatpush1.bf16.msra.mxu0 %v6937_v32  ;;  %v4272_v32 = vld [vmem:[#allocation19 + $0xc8] sm:$0xff] }
 0x4db   :  { %6940 = vmatprep.subr.bf16.mxu0 %v6939_v36  ;;  %v7187_v36 = vpack.c.bf16 %v4276_v33, %v4272_v32  ;;  %v4343_v33 = vld [vmem:[#allocation19 + $0x300] sm:$0xff] }
 0x4dc   :  { %7066 = vmatpush1.bf16.msra.mxu1 %v7065_v43  ;;  %v7189_v43 = vpack.c.bf16 %v4275_v39, %v4271_v37  ;;  %v4356_v37 = vld [vmem:[#allocation19 + $0x368] sm:$0xff] }
 0x4dd   :  { %7068 = vmatprep.subr.bf16.mxu1 %v7067_v44  ;;  %v7191_v44 = vpack.c.bf16 %v4284_v42, %v4280_v40  ;;  %v4351_v42 = vld [vmem:[#allocation19 + $0x340] sm:$0xff] }
 0x4de   :  { %6942 = vmatpush1.bf16.msra.mxu0 %v6941_v48  ;;  %v4288_v48 = vld [vmem:[#allocation19 + $0x148] sm:$0xff] }
 0x4df   :  { %6944 = vmatprep.subr.bf16.mxu0 %v6943_v53  ;;  %v7195_v53 = vpack.c.bf16 %v4292_v49, %v4288_v48  ;;  %v4359_v49 = vld [vmem:[#allocation19 + $0x380] sm:$0xff] }
 0x4e0   :  { %7070 = vmatpush1.bf16.msra.mxu1 %v7069_v59  ;;  %v7197_v59 = vpack.c.bf16 %v4291_v56, %v4287_v55  ;;  %v2423_v55 = vrot.slane %v8531_v35, %v8514_v51  ;;  %v2427_v56 = vrot.slane %v8531_v35, %v8518_v54 }
 0x4e1   :  { %7072 = vmatprep.subr.bf16.mxu1 %v7071_v60  ;;  %v7199_v60 = vpack.c.bf16 %v4300_v58, %v4296_v57 }
 0x4e2   :  { %6946 = vmatpush1.bf16.msra.mxu0 %v6945_v62  ;;  %v4304_v62 = vld [vmem:[#allocation19 + $0x1c8] sm:$0xff] }
 0x4e3   :  { %6948 = vmatprep.subr.bf16.mxu0 %v6947_v63  ;;  %v4308_v63 = vld [vmem:[#allocation19 + $0x1e8] sm:$0xff] }
 0x4e4   :  { %7074 = vmatpush1.bf16.msra.mxu1 %v7073_v2  ;;  %v7203_v1 = vpack.c.bf16 %v4308_v63, %v4304_v62  ;;  %v4303_v2 = vld [vmem:[#allocation19 + $0x1c0] sm:$0xff]  ;;  %v3860_v62 = vld [vmem:[#allocation14 + $0x28] sm:$0xff]  ;;  %v3862_v63 = vld [vmem:[#allocation14 + $0x38] sm:$0xff] }
 0x4e5   :  { %7076 = vmatprep.subr.bf16.mxu1 %v7075_v7 }
 0x4e6   :  { %6950 = vmatpush1.bf16.msra.mxu0 %v6949_v3  ;;  %v4307_v3 = vld [vmem:[#allocation19 + $0x1e0] sm:$0xff] }
 0x4e7   :  { %7176 = vmatprep.subr.bf16.mxu0 %v7175_v18  ;;  %v7205_v6 = vpack.c.bf16 %v4307_v3, %v4303_v2  ;;  %v4332_v18 = vld [vmem:[#allocation19 + $0x2a8] sm:$0xff]  ;;  %v7083_v3 = vpack.c.bf16 %v3862_v63, %v3860_v62  ;;  %v3983_v63 = vld [vmem:[#allocation16 + $0x58] sm:$0xff] }
 0x4e8   :  { %7078 = vmatpush1.bf16.msra.mxu1 %v7077_v10  ;;  %v4320_v10 = vld [vmem:[#allocation19 + $0x248] sm:$0xff]  ;;  %v7215_v20 = vpack.c.bf16 %v4332_v18, %v4328_v17  ;;  %v3867_v17 = vld [vmem:[#allocation14 + $0x60] sm:$0xff]  ;;  %v3869_v18 = vld [vmem:[#allocation14 + $0x70] sm:$0xff] }
 0x4e9   :  { %3562 = vmatmul.mubr.f32.vlgmr.msra.gmra.mrb[4].mxu0 %v7821_v4  ;;  %7080 = vmatprep.subr.bf16.mxu1 %v7079_v14  ;;  %v4312_v4 = vld [vmem:[#allocation19 + $0x208] sm:$0xff]  ;;  %v7211_v14 = vpack.c.bf16 %v4324_v12, %v4320_v10  ;;  %v3863_v10 = vld [vmem:[#allocation14 + $0x40] sm:$0xff]  ;;  %v3865_v12 = vld [vmem:[#allocation14 + $0x50] sm:$0xff] }
 0x4ea   :  { %7178 = vmatpush1.bf16.msra.mxu0 %v7177_v22  ;;  %v7207_v7 = vpack.c.bf16 %v4316_v5, %v4312_v4  ;;  %v4331_v22 = vld [vmem:[#allocation19 + $0x2a0] sm:$0xff]  ;;  %v3861_v5 = vld [vmem:[#allocation14 + $0x30] sm:$0xff]  ;;  %v7089_v15 = vpack.c.bf16 %v3865_v12, %v3863_v10  ;;  %v3981_v62 = vld [vmem:[#allocation16 + $0x48] sm:$0xff] }
 0x4eb   :  { %7180 = vmatprep.subr.bf16.mxu0 %v7179_v23  ;;  %v4336_v23 = vld [vmem:[#allocation19 + $0x2c8] sm:$0xff]  ;;  %v7217_v25 = vpack.c.bf16 %v4331_v22, %v4327_v21  ;;  %v3859_v4 = vld [vmem:[#allocation14 + $0x20] sm:$0xff]  ;;  %v7093_v21 = vpack.c.bf16 %v3869_v18, %v3867_v17  ;;  %v3991_v10 = vld [vmem:[#allocation16 + $0x98] sm:$0xff] }
 0x4ec   :  { %v7219_v26 = vpack.c.bf16 %v4340_v24, %v4336_v23  ;;  %v7085_v35 = vpack.c.bf16 %v3861_v5, %v3859_v4  ;;  %v3871_v23 = vld [vmem:[#allocation14 + $0x80] sm:$0xff]  ;;  %v3873_v24 = vld [vmem:[#allocation14 + $0x90] sm:$0xff]  ;;  %v3985_v4 = vld [vmem:[#allocation16 + $0x68] sm:$0xff] }
 0x4ed   :  { %v3987_v5 = vld [vmem:[#allocation16 + $0x78] sm:$0xff] }
 0x4ee   :  { %7182 = vmatpush1.bf16.msra.mxu0 %v7181_v28  ;;  %v4339_v28 = vld [vmem:[#allocation19 + $0x2e0] sm:$0xff]  ;;  %v3995_v17 = vld [vmem:[#allocation16 + $0xb8] sm:$0xff] }
 0x4ef   :  { %7184 = vmatprep.subr.bf16.mxu0 %v7183_v29  ;;  %v4344_v29 = vld [vmem:[#allocation19 + $0x308] sm:$0xff]  ;;  %v7221_v31 = vpack.c.bf16 %v4339_v28, %v4335_v27  ;;  %v7097_v27 = vpack.c.bf16 %v3873_v24, %v3871_v23  ;;  %v3999_v23 = vld [vmem:[#allocation16 + $0xd8] sm:$0xff] }
 0x4f0   :  { %v7223_v32 = vpack.c.bf16 %v4348_v30, %v4344_v29  ;;  %v3875_v29 = vld [vmem:[#allocation14 + $0xa0] sm:$0xff]  ;;  %v3877_v30 = vld [vmem:[#allocation14 + $0xb0] sm:$0xff] }
 0x4f2   :  { %7186 = vmatpush1.bf16.msra.mxu0 %v7185_v34  ;;  %v4347_v34 = vld [vmem:[#allocation19 + $0x320] sm:$0xff] }
 0x4f3   :  { %7188 = vmatprep.subr.bf16.mxu0 %v7187_v36  ;;  %v4352_v36 = vld [vmem:[#allocation19 + $0x348] sm:$0xff]  ;;  %v7225_v39 = vpack.c.bf16 %v4347_v34, %v4343_v33  ;;  %v7101_v33 = vpack.c.bf16 %v3877_v30, %v3875_v29 }
 0x4f4   :  { %v7227_v40 = vpack.c.bf16 %v4356_v37, %v4352_v36  ;;  %v3879_v36 = vld [vmem:[#allocation14 + $0xc0] sm:$0xff]  ;;  %v3881_v37 = vld [vmem:[#allocation14 + $0xd0] sm:$0xff]  ;;  %v4368_v29 = vld [vmem:[#allocation19 + $0x3c8] sm:$0xff] }
 0x4f5   :  { %v4372_v30 = vld [vmem:[#allocation19 + $0x3e8] sm:$0xff] }
 0x4f6   :  { %7190 = vmatpush1.bf16.msra.mxu0 %v7189_v43  ;;  %v4355_v43 = vld [vmem:[#allocation19 + $0x360] sm:$0xff] }
 0x4f7   :  { %7192 = vmatprep.subr.bf16.mxu0 %v7191_v44  ;;  %v4360_v44 = vld [vmem:[#allocation19 + $0x388] sm:$0xff]  ;;  %v7229_v46 = vpack.c.bf16 %v4355_v43, %v4351_v42  ;;  %v7105_v42 = vpack.c.bf16 %v3881_v37, %v3879_v36  ;;  %v4371_v37 = vld [vmem:[#allocation19 + $0x3e0] sm:$0xff] }
 0x4f8   :  { %v7231_v48 = vpack.c.bf16 %v4364_v45, %v4360_v44  ;;  %v3883_v44 = vld [vmem:[#allocation14 + $0xe0] sm:$0xff]  ;;  %v3885_v45 = vld [vmem:[#allocation14 + $0xf0] sm:$0xff] }
 0x4fa   :  { %7194 = vmatpush1.bf16.msra.mxu0 %v7193_v50  ;;  %v4363_v50 = vld [vmem:[#allocation19 + $0x3a0] sm:$0xff] }
 0x4fb   :  { %7196 = vmatprep.subr.bf16.mxu0 %v7195_v53  ;;  %v7233_v53 = vpack.c.bf16 %v4363_v50, %v4359_v49  ;;  %v7109_v49 = vpack.c.bf16 %v3885_v45, %v3883_v44  ;;  %v4120_v44 = vld [vmem:[#allocation17 + $0x8] sm:$0xff] }
 0x4fc   :  { %v4124_v45 = vld [vmem:[#allocation17 + $0x28] sm:$0xff] }
 0x4fe   :  { %7198 = vmatpush1.bf16.msra.mxu0 %v7197_v59 }
 0x4ff   :  { %7200 = vmatprep.subr.bf16.mxu0 %v7199_v60  ;;  %v3855_v60 = vld [vmem:[#allocation14] sm:$0xff] }
 0x502   :  { %7202 = vmatpush1.bf16.msra.mxu0 %v7201_v0 }
 0x503   :  { %7204 = vmatprep.subr.bf16.mxu0 %v7203_v1  ;;  %v7081_v1 = vpack.c.bf16 %v3857_v61, %v3855_v60  ;;  %v3976_v61 = vld [vmem:[#allocation16 + $0x20] sm:$0xff] }
 0x506   :  { %7206 = vmatpush1.bf16.msra.mxu0 %v7205_v6  ;;  %v3864_v6 = vld [vmem:[#allocation14 + $0x48] sm:$0xff] }
 0x507   :  { %7208 = vmatprep.subr.bf16.mxu0 %v7207_v7  ;;  %v3866_v7 = vld [vmem:[#allocation14 + $0x58] sm:$0xff] }
 0x508   :  { %v7087_v9 = vpack.c.bf16 %v3866_v7, %v3864_v6  ;;  %v7123_v7 = vpack.c.bf16 %v3987_v5, %v3985_v4  ;;  %v4017_v4 = vld [vmem:[#allocation16 + $0x168] sm:$0xff]  ;;  %v4019_v5 = vld [vmem:[#allocation16 + $0x178] sm:$0xff] }
 0x50a   :  { %7210 = vmatpush1.bf16.msra.mxu0 %v7209_v13  ;;  %v3868_v13 = vld [vmem:[#allocation14 + $0x68] sm:$0xff] }
 0x50b   :  { %7212 = vmatprep.subr.bf16.mxu0 %v7211_v14  ;;  %v3870_v14 = vld [vmem:[#allocation14 + $0x78] sm:$0xff] }
 0x50c   :  { %v7091_v16 = vpack.c.bf16 %v3870_v14, %v3868_v13  ;;  %v3988_v14 = vld [vmem:[#allocation16 + $0x80] sm:$0xff] }
 0x50e   :  { %7214 = vmatpush1.bf16.msra.mxu0 %v7213_v19  ;;  %v3872_v19 = vld [vmem:[#allocation14 + $0x88] sm:$0xff] }
 0x50f   :  { %7216 = vmatprep.subr.bf16.mxu0 %v7215_v20  ;;  %v3874_v20 = vld [vmem:[#allocation14 + $0x98] sm:$0xff] }
 0x510   :  { %v7095_v22 = vpack.c.bf16 %v3874_v20, %v3872_v19  ;;  %v3992_v20 = vld [vmem:[#allocation16 + $0xa0] sm:$0xff] }
 0x512   :  { %7218 = vmatpush1.bf16.msra.mxu0 %v7217_v25  ;;  %v3876_v25 = vld [vmem:[#allocation14 + $0xa8] sm:$0xff] }
 0x513   :  { %7220 = vmatprep.subr.bf16.mxu0 %v7219_v26  ;;  %v3878_v26 = vld [vmem:[#allocation14 + $0xb8] sm:$0xff] }
 0x514   :  { %v7099_v28 = vpack.c.bf16 %v3878_v26, %v3876_v25  ;;  %v3996_v26 = vld [vmem:[#allocation16 + $0xc0] sm:$0xff] }
 0x516   :  { %7222 = vmatpush1.bf16.msra.mxu0 %v7221_v31  ;;  %v3880_v31 = vld [vmem:[#allocation14 + $0xc8] sm:$0xff] }
 0x517   :  { %7224 = vmatprep.subr.bf16.mxu0 %v7223_v32  ;;  %v3882_v32 = vld [vmem:[#allocation14 + $0xd8] sm:$0xff] }
 0x518   :  { %v7103_v34 = vpack.c.bf16 %v3882_v32, %v3880_v31  ;;  %v7235_v31 = vpack.c.bf16 %v4372_v30, %v4368_v29  ;;  %v4001_v32 = vld [vmem:[#allocation16 + $0xe8] sm:$0xff]  ;;  %v4035_v29 = vld [vmem:[#allocation16 + $0x1f8] sm:$0xff] }
 0x51a   :  { %7226 = vmatpush1.bf16.msra.mxu0 %v7225_v39  ;;  %v3884_v39 = vld [vmem:[#allocation14 + $0xe8] sm:$0xff] }
 0x51b   :  { %7228 = vmatprep.subr.bf16.mxu0 %v7227_v40  ;;  %v3886_v40 = vld [vmem:[#allocation14 + $0xf8] sm:$0xff] }
 0x51c   :  { %v7107_v43 = vpack.c.bf16 %v3886_v40, %v3884_v39  ;;  %v4000_v39 = vld [vmem:[#allocation16 + $0xe0] sm:$0xff]  ;;  %v4002_v40 = vld [vmem:[#allocation16 + $0xf0] sm:$0xff] }
 0x51e   :  { %7230 = vmatpush1.bf16.msra.mxu0 %v7229_v46  ;;  %v3973_v46 = vld [vmem:[#allocation16 + $0x8] sm:$0xff] }
 0x51f   :  { %7232 = vmatprep.subr.bf16.mxu0 %v7231_v48  ;;  %v3975_v48 = vld [vmem:[#allocation16 + $0x18] sm:$0xff] }
 0x520   :  { %v7111_v50 = vpack.c.bf16 %v3975_v48, %v3973_v46  ;;  %v7303_v46 = vpack.c.bf16 %v4124_v45, %v4120_v44  ;;  %v4005_v48 = vld [vmem:[#allocation16 + $0x108] sm:$0xff]  ;;  %v4119_v44 = vld [vmem:[#allocation17] sm:$0xff] }
 0x521   :  { %v4123_v45 = vld [vmem:[#allocation17 + $0x20] sm:$0xff] }
 0x522   :  { %7234 = vmatpush1.bf16.msra.mxu0 %v7233_v53  ;;  %v3972_v53 = vld [vmem:[#allocation16] sm:$0xff] }
 0x523   :  { %7236 = vmatprep.subr.bf16.mxu0 %v7235_v31  ;;  %v4032_v31 = vld [vmem:[#allocation16 + $0x1e0] sm:$0xff] }
 0x5bc   :  { %v3563_v57 = vpop.f32.mrb[4].mxu0 }
 0x5bd   :  { %v7727_v58 = vadd.f32 %v3563_v57, %v2423_v55  ;;  %v3565_v59 = vpop.f32.mrb[5].mxu0  ;;  %v3974_v55 = vld [vmem:[#allocation16 + $0x10] sm:$0xff]  ;;  %v3979_v57 = vld [vmem:[#allocation16 + $0x38] sm:$0xff] }
 0x5be   :  { %v7728_v11 = vadd.f32 %v3565_v59, %v2427_v56  ;;  %v3977_v56 = vld [vmem:[#allocation16 + $0x28] sm:$0xff]  ;;  %v7113_v59 = vpack.c.bf16 %v3974_v55, %v3972_v53  ;;  %v4004_v53 = vld [vmem:[#allocation16 + $0x100] sm:$0xff]  ;;  %v4006_v55 = vld [vmem:[#allocation16 + $0x110] sm:$0xff] }
 0x5bf   :  { %v3570_v2 = vmax.f32 %v7727_v58, 0.0  ;;  %v3854_v58 = vld [vmem:[#allocation7] sm:$0xff]  ;;  %v7115_v60 = vpack.c.bf16 %v3979_v57, %v3977_v56  ;;  %v7145_v56 = vpack.c.bf16 %v4006_v55, %v4004_v53  ;;  %v4009_v57 = vld [vmem:[#allocation16 + $0x128] sm:$0xff] }
 0x5c0   :  { %v3571_v0 = vmax.f32 %v7728_v11, 0.0  ;;  %v3978_v11 = vld [vmem:[#allocation16 + $0x30] sm:$0xff] }
 0x5c2   :  { %3847 = vmatprep.mubr.f32.mxu1 %v3571_v0  ;;  %v7117_v0 = vpack.c.bf16 %v3978_v11, %v3976_v61  ;;  %v4010_v61 = vld [vmem:[#allocation16 + $0x130] sm:$0xff] }
 0x5c3   :  { %3848 = vmatmul.mubr.f32.vlgmr.msra.gmra.mrb[4].mxu1 %v3570_v2  ;;  %v3980_v2 = vld [vmem:[#allocation16 + $0x40] sm:$0xff] }
 0x5c4   :  { %7082 = vmatpush1.bf16.msra.mxu1 %v7081_v1  ;;  %3963 = vmatprep.mubr.f32.mxu1 %v8213_v8  ;;  %v7119_v1 = vpack.c.bf16 %v3983_v63, %v3981_v62  ;;  %v3986_v8 = vld [vmem:[#allocation16 + $0x70] sm:$0xff]  ;;  %v4013_v62 = vld [vmem:[#allocation16 + $0x148] sm:$0xff]  ;;  %v4015_v63 = vld [vmem:[#allocation16 + $0x158] sm:$0xff] }
 0x5c5   :  { %7084 = vmatprep.subr.bf16.mxu1 %v7083_v3  ;;  %v3982_v3 = vld [vmem:[#allocation16 + $0x50] sm:$0xff] }
 0x5c6   :  { %v7121_v6 = vpack.c.bf16 %v3982_v3, %v3980_v2  ;;  %v4014_v2 = vld [vmem:[#allocation16 + $0x150] sm:$0xff] }
 0x5c8   :  { %7086 = vmatpush1.bf16.msra.mxu1 %v7085_v35  ;;  %v3984_v35 = vld [vmem:[#allocation16 + $0x60] sm:$0xff] }
 0x5c9   :  { %7088 = vmatprep.subr.bf16.mxu1 %v7087_v9  ;;  %v3989_v9 = vld [vmem:[#allocation16 + $0x88] sm:$0xff]  ;;  %v7125_v12 = vpack.c.bf16 %v3986_v8, %v3984_v35  ;;  %v4018_v35 = vld [vmem:[#allocation16 + $0x170] sm:$0xff] }
 0x5ca   :  { %v7127_v13 = vpack.c.bf16 %v3991_v10, %v3989_v9  ;;  %v4021_v9 = vld [vmem:[#allocation16 + $0x188] sm:$0xff]  ;;  %v4023_v10 = vld [vmem:[#allocation16 + $0x198] sm:$0xff] }
 0x5cc   :  { %7090 = vmatpush1.bf16.msra.mxu1 %v7089_v15  ;;  %v3990_v15 = vld [vmem:[#allocation16 + $0x90] sm:$0xff] }
 0x5cd   :  { %7092 = vmatprep.subr.bf16.mxu1 %v7091_v16  ;;  %v3993_v16 = vld [vmem:[#allocation16 + $0xa8] sm:$0xff]  ;;  %v7129_v18 = vpack.c.bf16 %v3990_v15, %v3988_v14  ;;  %v4022_v14 = vld [vmem:[#allocation16 + $0x190] sm:$0xff] }
 0x5ce   :  { %v7131_v19 = vpack.c.bf16 %v3995_v17, %v3993_v16  ;;  %v4025_v16 = vld [vmem:[#allocation16 + $0x1a8] sm:$0xff]  ;;  %v4027_v17 = vld [vmem:[#allocation16 + $0x1b8] sm:$0xff] }
 0x5d0   :  { %7094 = vmatpush1.bf16.msra.mxu1 %v7093_v21  ;;  %v3994_v21 = vld [vmem:[#allocation16 + $0xb0] sm:$0xff] }
 0x5d1   :  { %7096 = vmatprep.subr.bf16.mxu1 %v7095_v22  ;;  %v3997_v22 = vld [vmem:[#allocation16 + $0xc8] sm:$0xff]  ;;  %v7133_v24 = vpack.c.bf16 %v3994_v21, %v3992_v20  ;;  %v4026_v20 = vld [vmem:[#allocation16 + $0x1b0] sm:$0xff] }
 0x5d2   :  { %v7135_v25 = vpack.c.bf16 %v3999_v23, %v3997_v22  ;;  %v4029_v22 = vld [vmem:[#allocation16 + $0x1c8] sm:$0xff]  ;;  %v4031_v23 = vld [vmem:[#allocation16 + $0x1d8] sm:$0xff] }
 0x5d4   :  { %7098 = vmatpush1.bf16.msra.mxu1 %v7097_v27  ;;  %v3998_v27 = vld [vmem:[#allocation16 + $0xd0] sm:$0xff] }
 0x5d5   :  { %7100 = vmatprep.subr.bf16.mxu1 %v7099_v28  ;;  %v7137_v28 = vpack.c.bf16 %v3998_v27, %v3996_v26  ;;  %v4030_v26 = vld [vmem:[#allocation16 + $0x1d0] sm:$0xff] }
 0x5d8   :  { %7102 = vmatpush1.bf16.msra.mxu1 %v7101_v33  ;;  %v4003_v33 = vld [vmem:[#allocation16 + $0xf8] sm:$0xff] }
 0x5d9   :  { %7104 = vmatprep.subr.bf16.mxu1 %v7103_v34  ;;  %v4367_v34 = vld [vmem:[#allocation19 + $0x3c0] sm:$0xff]  ;;  %v7139_v36 = vpack.c.bf16 %v4003_v33, %v4001_v32  ;;  %v4034_v32 = vld [vmem:[#allocation16 + $0x1f0] sm:$0xff] }
 0x5da   :  { %v7173_v33 = vpack.c.bf16 %v4034_v32, %v4032_v31  ;;  %v4175_v31 = vld [vmem:[#allocation17 + $0x1c0] sm:$0xff] }
 0x5db   :  { %v4179_v32 = vld [vmem:[#allocation17 + $0x1e0] sm:$0xff] }
 0x5dc   :  { %7106 = vmatpush1.bf16.msra.mxu1 %v7105_v42  ;;  %v7237_v42 = vpack.c.bf16 %v4371_v37, %v4367_v34  ;;  %v4250_v34 = vld [vmem:[#allocation19 + $0x18] sm:$0xff] }
 0x5dd   :  { %7108 = vmatprep.subr.bf16.mxu1 %v7107_v43  ;;  %v7141_v43 = vpack.c.bf16 %v4002_v40, %v4000_v39  ;;  %v3700_v39 = vld [vmem:[#allocation25 + $0xa] sm:$0x3]  ;;  %v8541_v40 = vld [vmem:[#allocation25 + $0x4] sm:$0x3] }
 0x5de   :  { %7238 = vmatpush1.bf16.msra.mxu0 %v7237_v42  ;;  %v3709_v42 = vrot.slane %v3700_v39, %v8516_v52 }
 0x5df   :  { %7304 = vmatprep.subr.bf16.mxu0 %v7303_v46  ;;  %v1225_v46 = vrot.slane %v8541_v40, %v8516_v52 }
 0x5e0   :  { %7110 = vmatpush1.bf16.msra.mxu1 %v7109_v49  ;;  %v4007_v49 = vld [vmem:[#allocation16 + $0x118] sm:$0xff] }
 0x5e1   :  { %7112 = vmatprep.subr.bf16.mxu1 %v7111_v50  ;;  %v7143_v50 = vpack.c.bf16 %v4007_v49, %v4005_v48  ;;  %v4128_v49 = vld [vmem:[#allocation17 + $0x48] sm:$0xff] }
 0x5e3   :  { %3964 = vmatmul.mubr.f32.vlgmr.msra.gmra.mrb[6].mxu1 %v3854_v58  ;;  %v4011_v58 = vld [vmem:[#allocation16 + $0x138] sm:$0xff] }
 0x5e4   :  { %7114 = vmatpush1.bf16.msra.mxu1 %v7113_v59  ;;  %v7147_v59 = vpack.c.bf16 %v4011_v58, %v4009_v57 }
 0x5e5   :  { %7116 = vmatprep.subr.bf16.mxu1 %v7115_v60  ;;  %v4008_v60 = vld [vmem:[#allocation16 + $0x120] sm:$0xff] }
 0x5e6   :  { %v7149_v11 = vpack.c.bf16 %v4010_v61, %v4008_v60  ;;  %v4131_v60 = vld [vmem:[#allocation17 + $0x60] sm:$0xff]  ;;  %v8552_v61 = vadd.f32 %v8529_v41, %v1225_v46  ;;  %v4192_v46 = vld [vmem:[#allocation17 + $0x248] sm:$0xff] }
 0x5e8   :  { %7118 = vmatpush1.bf16.msra.mxu1 %v7117_v0  ;;  %v7151_v0 = vpack.c.bf16 %v4015_v63, %v4013_v62  ;;  %v4140_v62 = vld [vmem:[#allocation17 + $0xa8] sm:$0xff] }
 0x5e9   :  { %7120 = vmatprep.subr.bf16.mxu1 %v7119_v1  ;;  %v4012_v1 = vld [vmem:[#allocation16 + $0x140] sm:$0xff] }
 0x5ea   :  { %v7153_v3 = vpack.c.bf16 %v4014_v2, %v4012_v1  ;;  %v4135_v1 = vld [vmem:[#allocation17 + $0x80] sm:$0xff] }
 0x5eb   :  { %v4139_v2 = vld [vmem:[#allocation17 + $0xa0] sm:$0xff] }
 0x5ec   :  { %7122 = vmatpush1.bf16.msra.mxu1 %v7121_v6  ;;  %v7155_v6 = vpack.c.bf16 %v4019_v5, %v4017_v4  ;;  %v4148_v4 = vld [vmem:[#allocation17 + $0xe8] sm:$0xff]  ;;  %v7313_v5 = vpack.c.bf16 %v4139_v2, %v4135_v1 }
 0x5ed   :  { %7124 = vmatprep.subr.bf16.mxu1 %v7123_v7  ;;  %v4016_v7 = vld [vmem:[#allocation16 + $0x160] sm:$0xff] }
 0x5ee   :  { %v7157_v8 = vpack.c.bf16 %v4018_v35, %v4016_v7  ;;  %v4147_v7 = vld [vmem:[#allocation17 + $0xe0] sm:$0xff]  ;;  %v4152_v35 = vld [vmem:[#allocation17 + $0x108] sm:$0xff] }
 0x5f0   :  { %7126 = vmatpush1.bf16.msra.mxu1 %v7125_v12  ;;  %v7159_v12 = vpack.c.bf16 %v4023_v10, %v4021_v9 }
 0x5f1   :  { %7128 = vmatprep.subr.bf16.mxu1 %v7127_v13  ;;  %v4020_v13 = vld [vmem:[#allocation16 + $0x180] sm:$0xff] }
 0x5f2   :  { %v7161_v15 = vpack.c.bf16 %v4022_v14, %v4020_v13  ;;  %v4155_v13 = vld [vmem:[#allocation17 + $0x120] sm:$0xff]  ;;  %v4160_v14 = vld [vmem:[#allocation17 + $0x148] sm:$0xff] }
 0x5f4   :  { %7130 = vmatpush1.bf16.msra.mxu1 %v7129_v18  ;;  %v7163_v18 = vpack.c.bf16 %v4027_v17, %v4025_v16 }
 0x5f5   :  { %7132 = vmatprep.subr.bf16.mxu1 %v7131_v19  ;;  %v4024_v19 = vld [vmem:[#allocation16 + $0x1a0] sm:$0xff] }
 0x5f6   :  { %v7165_v21 = vpack.c.bf16 %v4026_v20, %v4024_v19  ;;  %v4163_v19 = vld [vmem:[#allocation17 + $0x160] sm:$0xff]  ;;  %v4168_v20 = vld [vmem:[#allocation17 + $0x188] sm:$0xff] }
 0x5f8   :  { %7134 = vmatpush1.bf16.msra.mxu1 %v7133_v24  ;;  %v7167_v24 = vpack.c.bf16 %v4031_v23, %v4029_v22 }
 0x5f9   :  { %7136 = vmatprep.subr.bf16.mxu1 %v7135_v25  ;;  %v4028_v25 = vld [vmem:[#allocation16 + $0x1c0] sm:$0xff] }
 0x5fa   :  { %v7169_v27 = vpack.c.bf16 %v4030_v26, %v4028_v25  ;;  %v4171_v25 = vld [vmem:[#allocation17 + $0x1a0] sm:$0xff]  ;;  %v4176_v26 = vld [vmem:[#allocation17 + $0x1c8] sm:$0xff] }
 0x5fc   :  { %7138 = vmatpush1.bf16.msra.mxu1 %v7137_v28  ;;  %v4033_v28 = vld [vmem:[#allocation16 + $0x1e8] sm:$0xff] }
 0x5fd   :  { %7140 = vmatprep.subr.bf16.mxu1 %v7139_v36  ;;  %v7171_v30 = vpack.c.bf16 %v4035_v29, %v4033_v28  ;;  %v4254_v36 = vld [vmem:[#allocation19 + $0x38] sm:$0xff]  ;;  %v3887_v29 = vld [vmem:[#allocation25 + $0xc] sm:$0x3] }
 0x5fe   :  { %v7239_v37 = vpack.c.bf16 %v4254_v36, %v4250_v34  ;;  %v4188_v34 = vld [vmem:[#allocation17 + $0x228] sm:$0xff]  ;;  %v3892_v36 = vrot.slane %v3887_v29, %v8512_v47 }
 0x600   :  { %7142 = vmatpush1.bf16.msra.mxu1 %v7141_v43  ;;  %v3705_v43 = vrot.slane %v3700_v39, %v8512_v47  ;;  %v7333_v39 = vpack.c.bf16 %v4179_v32, %v4175_v31  ;;  %v4282_v32 = vld [vmem:[#allocation19 + $0x118] sm:$0xff] }
 0x601   :  { %7144 = vmatprep.subr.bf16.mxu1 %v7143_v50  ;;  %v4132_v50 = vld [vmem:[#allocation17 + $0x68] sm:$0xff] }
 0x602   :  { %v7307_v58 = vpack.c.bf16 %v4132_v50, %v4128_v49 }
 0x604   :  { %7146 = vmatpush1.bf16.msra.mxu1 %v7145_v56  ;;  %v7305_v56 = vpack.c.bf16 %v4123_v45, %v4119_v44  ;;  %v4187_v44 = vld [vmem:[#allocation17 + $0x220] sm:$0xff] }
 0x605   :  { %7148 = vmatprep.subr.bf16.mxu1 %v7147_v59  ;;  %v4127_v59 = vld [vmem:[#allocation17 + $0x40] sm:$0xff] }
 0x606   :  { %v7309_v63 = vpack.c.bf16 %v4131_v60, %v4127_v59  ;;  %v4258_v60 = vld [vmem:[#allocation19 + $0x58] sm:$0xff] }
 0x608   :  { %7150 = vmatpush1.bf16.msra.mxu1 %v7149_v11  ;;  %v4136_v11 = vld [vmem:[#allocation17 + $0x88] sm:$0xff] }
 0x609   :  { %7152 = vmatprep.subr.bf16.mxu1 %v7151_v0  ;;  %v7311_v0 = vpack.c.bf16 %v4140_v62, %v4136_v11  ;;  %v4262_v11 = vld [vmem:[#allocation19 + $0x78] sm:$0xff] }
 0x60c   :  { %7154 = vmatpush1.bf16.msra.mxu1 %v7153_v3  ;;  %v4144_v3 = vld [vmem:[#allocation17 + $0xc8] sm:$0xff] }
 0x60d   :  { %7156 = vmatprep.subr.bf16.mxu1 %v7155_v6  ;;  %v7315_v41 = vpack.c.bf16 %v4148_v4, %v4144_v3  ;;  %v4143_v6 = vld [vmem:[#allocation17 + $0xc0] sm:$0xff]  ;;  %v4200_v3 = vld [vmem:[#allocation17 + $0x288] sm:$0xff] }
 0x60e   :  { %v7317_v9 = vpack.c.bf16 %v4147_v7, %v4143_v6  ;;  %v4204_v4 = vld [vmem:[#allocation17 + $0x2a8] sm:$0xff]  ;;  %v4257_v6 = vld [vmem:[#allocation19 + $0x50] sm:$0xff] }
 0x60f   :  { %v4261_v7 = vld [vmem:[#allocation19 + $0x70] sm:$0xff] }
 0x610   :  { %7158 = vmatpush1.bf16.msra.mxu1 %v7157_v8  ;;  %v4156_v8 = vld [vmem:[#allocation17 + $0x128] sm:$0xff] }
 0x611   :  { %7160 = vmatprep.subr.bf16.mxu1 %v7159_v12  ;;  %v7319_v10 = vpack.c.bf16 %v4156_v8, %v4152_v35  ;;  %v4151_v12 = vld [vmem:[#allocation17 + $0x100] sm:$0xff]  ;;  %v4266_v8 = vld [vmem:[#allocation19 + $0x98] sm:$0xff] }
 0x612   :  { %v7321_v16 = vpack.c.bf16 %v4155_v13, %v4151_v12  ;;  %v4199_v12 = vld [vmem:[#allocation17 + $0x280] sm:$0xff] }
 0x613   :  { %v4203_v13 = vld [vmem:[#allocation17 + $0x2a0] sm:$0xff] }
 0x614   :  { %7162 = vmatpush1.bf16.msra.mxu1 %v7161_v15  ;;  %v4164_v15 = vld [vmem:[#allocation17 + $0x168] sm:$0xff] }
 0x615   :  { %7164 = vmatprep.subr.bf16.mxu1 %v7163_v18  ;;  %v7323_v17 = vpack.c.bf16 %v4164_v15, %v4160_v14  ;;  %v4159_v18 = vld [vmem:[#allocation17 + $0x140] sm:$0xff]  ;;  %v7245_v14 = vpack.c.bf16 %v4261_v7, %v4257_v6  ;;  %v4208_v15 = vld [vmem:[#allocation17 + $0x2c8] sm:$0xff] }
 0x616   :  { %v7325_v22 = vpack.c.bf16 %v4163_v19, %v4159_v18  ;;  %v4265_v18 = vld [vmem:[#allocation19 + $0x90] sm:$0xff]  ;;  %v4240_v7 = vld [vmem:[#allocation17 + $0x3c8] sm:$0xff] }
 0x617   :  { %v4269_v19 = vld [vmem:[#allocation19 + $0xb0] sm:$0xff] }
 0x618   :  { %7166 = vmatpush1.bf16.msra.mxu1 %v7165_v21  ;;  %v4172_v21 = vld [vmem:[#allocation17 + $0x1a8] sm:$0xff] }
 0x619   :  { %7168 = vmatprep.subr.bf16.mxu1 %v7167_v24  ;;  %v7327_v23 = vpack.c.bf16 %v4172_v21, %v4168_v20  ;;  %v4167_v24 = vld [vmem:[#allocation17 + $0x180] sm:$0xff]  ;;  %v7345_v20 = vpack.c.bf16 %v4203_v13, %v4199_v12  ;;  %v4274_v21 = vld [vmem:[#allocation19 + $0xd8] sm:$0xff] }
 0x61a   :  { %v7329_v28 = vpack.c.bf16 %v4171_v25, %v4167_v24  ;;  %v4207_v24 = vld [vmem:[#allocation17 + $0x2c0] sm:$0xff]  ;;  %v4306_v13 = vld [vmem:[#allocation19 + $0x1d8] sm:$0xff] }
 0x61b   :  { %v4211_v25 = vld [vmem:[#allocation17 + $0x2e0] sm:$0xff] }
 0x61c   :  { %7170 = vmatpush1.bf16.msra.mxu1 %v7169_v27  ;;  %v4180_v27 = vld [vmem:[#allocation17 + $0x1e8] sm:$0xff]  ;;  %v7349_v31 = vpack.c.bf16 %v4211_v25, %v4207_v24  ;;  %v4314_v25 = vld [vmem:[#allocation19 + $0x218] sm:$0xff] }
 0x61d   :  { %7172 = vmatprep.subr.bf16.mxu1 %v7171_v30  ;;  %v7331_v30 = vpack.c.bf16 %v4180_v27, %v4176_v26  ;;  %v7249_v26 = vpack.c.bf16 %v4269_v19, %v4265_v18  ;;  %v4216_v27 = vld [vmem:[#allocation17 + $0x308] sm:$0xff] }
 0x61e   :  { %v4660_v19 = vld [vmem:[#allocation20 + $0x8] sm:$0xff] }
 0x620   :  { %7174 = vmatpush1.bf16.msra.mxu1 %v7173_v33  ;;  %v4184_v33 = vld [vmem:[#allocation17 + $0x208] sm:$0xff] }
 0x621   :  { %7240 = vmatprep.subr.bf16.mxu1 %v7239_v37  ;;  %v3896_v37 = vrot.slane %v3887_v29, %v8516_v52  ;;  %v4273_v29 = vld [vmem:[#allocation19 + $0xd0] sm:$0xff] }
 0x696   :  { %v3849_v48 = vpop.f32.mrb[4].mxu1 }
 0x697   :  { %v3851_v53 = vpop.f32.mrb[5].mxu1  ;;  %v8549_v57 = vadd.f32 %v3849_v48, %v3705_v43  ;;  %v4183_v43 = vld [vmem:[#allocation17 + $0x200] sm:$0xff]  ;;  %v4196_v48 = vld [vmem:[#allocation17 + $0x268] sm:$0xff] }
 0x698   :  { %v8547_v55 = vadd.f32 %v3851_v53, %v3709_v42  ;;  %v7335_v42 = vpack.c.bf16 %v4188_v34, %v4184_v33  ;;  %v4249_v53 = vld [vmem:[#allocation19 + $0x10] sm:$0xff]  ;;  %v7337_v59 = vpack.c.bf16 %v4187_v44, %v4183_v43  ;;  %v7339_v62 = vpack.c.bf16 %v4196_v48, %v4192_v46  ;;  %v4286_v33 = vld [vmem:[#allocation19 + $0x138] sm:$0xff]  ;;  %v4228_v43 = vld [vmem:[#allocation17 + $0x368] sm:$0xff] }
 0x699   :  { %v7255_v44 = vpack.c.bf16 %v4286_v33, %v4282_v32  ;;  %v4285_v46 = vld [vmem:[#allocation19 + $0x130] sm:$0xff]  ;;  %v4672_v32 = vld [vmem:[#allocation20 + $0x68] sm:$0xff] }
 0x69a   :  { %4439 = vmatprep.mubr.f32.mxu0 %v8547_v55 }
 0x69b   :  { %4440 = vmatmul.mubr.f32.vlgmr.msra.gmra.mrb[6].mxu0 %v8549_v57 }
 0x69c   :  { %7306 = vmatpush1.bf16.msra.mxu0 %v7305_v56  ;;  %4581 = vmatprep.mubr.f32.mxu0 %v8552_v61  ;;  %v4253_v56 = vld [vmem:[#allocation19 + $0x30] sm:$0xff] }
 0x69d   :  { %7308 = vmatprep.subr.bf16.mxu0 %v7307_v58  ;;  %v7241_v2 = vpack.c.bf16 %v4253_v56, %v4249_v53  ;;  %v4223_v56 = vld [vmem:[#allocation17 + $0x340] sm:$0xff] }
 0x6a0   :  { %7310 = vmatpush1.bf16.msra.mxu0 %v7309_v63  ;;  %v4191_v63 = vld [vmem:[#allocation17 + $0x240] sm:$0xff] }
 0x6a1   :  { %7312 = vmatprep.subr.bf16.mxu0 %v7311_v0  ;;  %v4195_v0 = vld [vmem:[#allocation17 + $0x260] sm:$0xff] }
 0x6a2   :  { %v7341_v35 = vpack.c.bf16 %v4195_v0, %v4191_v63  ;;  %v4289_v63 = vld [vmem:[#allocation19 + $0x150] sm:$0xff] }
 0x6a3   :  { %v4293_v0 = vld [vmem:[#allocation19 + $0x170] sm:$0xff] }
 0x6a4   :  { %7314 = vmatpush1.bf16.msra.mxu0 %v7313_v5  ;;  %v7261_v6 = vpack.c.bf16 %v4293_v0, %v4289_v63  ;;  %v4684_v0 = vld [vmem:[#allocation20 + $0xc8] sm:$0xff] }
 0x6a5   :  { %7316 = vmatprep.subr.bf16.mxu0 %v7315_v41  ;;  %v7243_v41 = vpack.c.bf16 %v4262_v11, %v4258_v60  ;;  %v4232_v60 = vld [vmem:[#allocation17 + $0x388] sm:$0xff] }
 0x6a6   :  { %v4236_v11 = vld [vmem:[#allocation17 + $0x3a8] sm:$0xff] }
 0x6a8   :  { %7318 = vmatpush1.bf16.msra.mxu0 %v7317_v9  ;;  %v4270_v9 = vld [vmem:[#allocation19 + $0xb8] sm:$0xff] }
 0x6a9   :  { %7320 = vmatprep.subr.bf16.mxu0 %v7319_v10  ;;  %v7343_v10 = vpack.c.bf16 %v4204_v4, %v4200_v3  ;;  %v4302_v3 = vld [vmem:[#allocation19 + $0x1b8] sm:$0xff]  ;;  %v7359_v4 = vpack.c.bf16 %v4236_v11, %v4232_v60  ;;  %v4675_v11 = vld [vmem:[#allocation20 + $0x80] sm:$0xff] }
 0x6ac   :  { %7322 = vmatpush1.bf16.msra.mxu0 %v7321_v16  ;;  %v4212_v16 = vld [vmem:[#allocation17 + $0x2e8] sm:$0xff] }
 0x6ad   :  { %7324 = vmatprep.subr.bf16.mxu0 %v7323_v17  ;;  %v7247_v17 = vpack.c.bf16 %v4270_v9, %v4266_v8  ;;  %v4297_v9 = vld [vmem:[#allocation19 + $0x190] sm:$0xff] }
 0x6b0   :  { %7326 = vmatpush1.bf16.msra.mxu0 %v7325_v22  ;;  %v4278_v22 = vld [vmem:[#allocation19 + $0xf8] sm:$0xff] }
 0x6b1   :  { %7328 = vmatprep.subr.bf16.mxu0 %v7327_v23  ;;  %v7347_v23 = vpack.c.bf16 %v4212_v16, %v4208_v15  ;;  %v4239_v16 = vld [vmem:[#allocation17 + $0x3c0] sm:$0xff] }
 0x6b4   :  { %7330 = vmatpush1.bf16.msra.mxu0 %v7329_v28  ;;  %v4220_v28 = vld [vmem:[#allocation17 + $0x328] sm:$0xff] }
 0x6b5   :  { %7332 = vmatprep.subr.bf16.mxu0 %v7331_v30  ;;  %v4277_v30 = vld [vmem:[#allocation19 + $0xf0] sm:$0xff]  ;;  %v7351_v34 = vpack.c.bf16 %v4220_v28, %v4216_v27  ;;  %v1221_v27 = vrot.slane %v8541_v40, %v8512_v47 }
 0x6b6   :  { %v3965_v45 = vpop.f32.mrb[6].mxu1 }
 0x6b7   :  { %v3966_v49 = vadd.f32 %v3965_v45, %v3892_v36  ;;  %v3967_v50 = vpop.f32.mrb[7].mxu1  ;;  %v4215_v36 = vld [vmem:[#allocation17 + $0x300] sm:$0xff]  ;;  %v4281_v45 = vld [vmem:[#allocation19 + $0x110] sm:$0xff] }
 0x6b8   :  { %v3968_v58 = vadd.f32 %v3967_v50, %v3896_v37  ;;  %7334 = vmatpush1.bf16.msra.mxu0 %v7333_v39  ;;  %v4219_v37 = vld [vmem:[#allocation17 + $0x320] sm:$0xff]  ;;  %v7253_v39 = vpack.c.bf16 %v4277_v30, %v4273_v29  ;;  %v4294_v50 = vld [vmem:[#allocation19 + $0x178] sm:$0xff] }
 0x6b9   :  { %7336 = vmatprep.subr.bf16.mxu0 %v7335_v42  ;;  %v3970_v5 = vmax.f32 %v3966_v49, 0.0  ;;  %v4224_v42 = vld [vmem:[#allocation17 + $0x348] sm:$0xff]  ;;  %v7353_v48 = vpack.c.bf16 %v4219_v37, %v4215_v36  ;;  %v4290_v49 = vld [vmem:[#allocation19 + $0x158] sm:$0xff]  ;;  %v4663_v29 = vld [vmem:[#allocation20 + $0x20] sm:$0xff] }
 0x6ba   :  { %v3971_v1 = vmax.f32 %v3968_v58, 0.0  ;;  %v7355_v53 = vpack.c.bf16 %v4228_v43, %v4224_v42  ;;  %v4227_v58 = vld [vmem:[#allocation17 + $0x360] sm:$0xff]  ;;  %v4317_v36 = vld [vmem:[#allocation19 + $0x230] sm:$0xff]  ;;  %v4322_v37 = vld [vmem:[#allocation19 + $0x258] sm:$0xff]  ;;  %v8563_v43 = vadd.f32 %v8527_v38, %v1221_v27 }
 0x6bb   :  { %v4349_v27 = vld [vmem:[#allocation19 + $0x330] sm:$0xff] }
 0x6bc   :  { %4112 = vmatprep.mubr.f32.mxu1 %v3971_v1  ;;  %7338 = vmatpush1.bf16.msra.mxu0 %v7337_v59  ;;  %v7257_v59 = vpack.c.bf16 %v4285_v46, %v4281_v45  ;;  %v7357_v1 = vpack.c.bf16 %v4227_v58, %v4223_v56  ;;  %v4671_v45 = vld [vmem:[#allocation20 + $0x60] sm:$0xff]  ;;  %v4325_v56 = vld [vmem:[#allocation19 + $0x270] sm:$0xff]  ;;  %v4330_v58 = vld [vmem:[#allocation19 + $0x298] sm:$0xff] }
 0x6bd   :  { %4113 = vmatmul.mubr.f32.vlgmr.msra.gmra.mrb[8].mxu1 %v3970_v5  ;;  %7340 = vmatprep.subr.bf16.mxu0 %v7339_v62  ;;  %v7259_v62 = vpack.c.bf16 %v4294_v50, %v4290_v49  ;;  %v4231_v5 = vld [vmem:[#allocation17 + $0x380] sm:$0xff]  ;;  %v4680_v49 = vld [vmem:[#allocation20 + $0xa8] sm:$0xff] }
 0x6be   :  { %7242 = vmatpush1.bf16.msra.mxu1 %v7241_v2  ;;  %4510 = vmatprep.mubr.f32.mxu1 %v8547_v55  ;;  %v7251_v55 = vpack.c.bf16 %v4278_v22, %v4274_v21  ;;  %v4298_v2 = vld [vmem:[#allocation19 + $0x198] sm:$0xff]  ;;  %v4305_v22 = vld [vmem:[#allocation19 + $0x1d0] sm:$0xff] }
 0x6bf   :  { %7244 = vmatprep.subr.bf16.mxu1 %v7243_v41  ;;  %v4235_v41 = vld [vmem:[#allocation17 + $0x3a0] sm:$0xff]  ;;  %v7263_v8 = vpack.c.bf16 %v4302_v3, %v4298_v2  ;;  %v4329_v3 = vld [vmem:[#allocation19 + $0x290] sm:$0xff] }
 0x6c0   :  { %7342 = vmatpush1.bf16.msra.mxu0 %v7341_v35  ;;  %v4244_v35 = vld [vmem:[#allocation17 + $0x3e8] sm:$0xff]  ;;  %v7361_v12 = vpack.c.bf16 %v4235_v41, %v4231_v5  ;;  %v4338_v5 = vld [vmem:[#allocation19 + $0x2d8] sm:$0xff] }
 0x6c1   :  { %7344 = vmatprep.subr.bf16.mxu0 %v7343_v10  ;;  %v4301_v10 = vld [vmem:[#allocation19 + $0x1b0] sm:$0xff]  ;;  %v7363_v15 = vpack.c.bf16 %v4244_v35, %v4240_v7  ;;  %v4342_v41 = vld [vmem:[#allocation19 + $0x2f8] sm:$0xff]  ;;  %v4683_v35 = vld [vmem:[#allocation20 + $0xc0] sm:$0xff] }
 0x6c2   :  { %7246 = vmatpush1.bf16.msra.mxu1 %v7245_v14  ;;  %v4310_v14 = vld [vmem:[#allocation19 + $0x1f8] sm:$0xff]  ;;  %v7265_v18 = vpack.c.bf16 %v4301_v10, %v4297_v9  ;;  %v4692_v10 = vld [vmem:[#allocation20 + $0x108] sm:$0xff] }
 0x6c3   :  { %7248 = vmatprep.subr.bf16.mxu1 %v7247_v17  ;;  %v4243_v17 = vld [vmem:[#allocation17 + $0x3e0] sm:$0xff]  ;;  %v7267_v21 = vpack.c.bf16 %v4310_v14, %v4306_v13  ;;  %v7283_v13 = vpack.c.bf16 %v4342_v41, %v4338_v5  ;;  %v4337_v14 = vld [vmem:[#allocation19 + $0x2d0] sm:$0xff] }
 0x6c4   :  { %7346 = vmatpush1.bf16.msra.mxu0 %v7345_v20  ;;  %v4664_v20 = vld [vmem:[#allocation20 + $0x28] sm:$0xff]  ;;  %v7365_v24 = vpack.c.bf16 %v4243_v17, %v4239_v16  ;;  %v4346_v16 = vld [vmem:[#allocation19 + $0x318] sm:$0xff]  ;;  %v4369_v41 = vld [vmem:[#allocation19 + $0x3d0] sm:$0xff] }
 0x6c5   :  { %7348 = vmatprep.subr.bf16.mxu0 %v7347_v23  ;;  %v4309_v23 = vld [vmem:[#allocation19 + $0x1f0] sm:$0xff]  ;;  %v7431_v28 = vpack.c.bf16 %v4664_v20, %v4660_v19  ;;  %v4350_v17 = vld [vmem:[#allocation19 + $0x338] sm:$0xff]  ;;  %v4691_v20 = vld [vmem:[#allocation20 + $0x100] sm:$0xff] }
 0x6c6   :  { %7250 = vmatpush1.bf16.msra.mxu1 %v7249_v26  ;;  %v4318_v26 = vld [vmem:[#allocation19 + $0x238] sm:$0xff]  ;;  %v7269_v30 = vpack.c.bf16 %v4309_v23, %v4305_v22  ;;  %v4700_v23 = vld [vmem:[#allocation20 + $0x148] sm:$0xff] }
 0x6c7   :  { %7252 = vmatprep.subr.bf16.mxu1 %v7251_v55  ;;  %v4659_v55 = vld [vmem:[#allocation20] sm:$0xff]  ;;  %v7271_v33 = vpack.c.bf16 %v4318_v26, %v4314_v25  ;;  %v7287_v25 = vpack.c.bf16 %v4350_v17, %v4346_v16  ;;  %v4345_v26 = vld [vmem:[#allocation19 + $0x310] sm:$0xff] }
 0x6c8   :  { %7350 = vmatpush1.bf16.msra.mxu0 %v7349_v31  ;;  %v4668_v31 = vld [vmem:[#allocation20 + $0x48] sm:$0xff]  ;;  %v7433_v42 = vpack.c.bf16 %v4663_v29, %v4659_v55  ;;  %v4358_v55 = vld [vmem:[#allocation19 + $0x378] sm:$0xff]  ;;  %v4121_v17 = vld [vmem:[#allocation17 + $0x10] sm:$0xff] }
 0x6c9   :  { %7352 = vmatprep.subr.bf16.mxu0 %v7351_v34  ;;  %v4313_v34 = vld [vmem:[#allocation19 + $0x210] sm:$0xff]  ;;  %v7435_v40 = vpack.c.bf16 %v4672_v32, %v4668_v31  ;;  %v4699_v31 = vld [vmem:[#allocation20 + $0x140] sm:$0xff] }
 0x6ca   :  { %7254 = vmatpush1.bf16.msra.mxu1 %v7253_v39  ;;  %v4326_v39 = vld [vmem:[#allocation19 + $0x278] sm:$0xff]  ;;  %v7273_v46 = vpack.c.bf16 %v4317_v36, %v4313_v34  ;;  %v4703_v32 = vld [vmem:[#allocation20 + $0x160] sm:$0xff]  ;;  %v4708_v34 = vld [vmem:[#allocation20 + $0x188] sm:$0xff] }
 0x6cb   :  { %7256 = vmatprep.subr.bf16.mxu1 %v7255_v44  ;;  %v4667_v44 = vld [vmem:[#allocation20 + $0x40] sm:$0xff]  ;;  %v7275_v50 = vpack.c.bf16 %v4326_v39, %v4322_v37  ;;  %v4712_v36 = vld [vmem:[#allocation20 + $0x1a8] sm:$0xff]  ;;  %v4353_v39 = vld [vmem:[#allocation19 + $0x350] sm:$0xff] }
 0x6cc   :  { %7354 = vmatpush1.bf16.msra.mxu0 %v7353_v48  ;;  %v4676_v48 = vld [vmem:[#allocation20 + $0x88] sm:$0xff]  ;;  %v7437_v60 = vpack.c.bf16 %v4671_v45, %v4667_v44  ;;  %v4366_v44 = vld [vmem:[#allocation19 + $0x3b8] sm:$0xff]  ;;  %v7453_v45 = vpack.c.bf16 %v4703_v32, %v4699_v31 }
 0x6cd   :  { %7356 = vmatprep.subr.bf16.mxu0 %v7355_v53  ;;  %v4321_v53 = vld [vmem:[#allocation19 + $0x250] sm:$0xff]  ;;  %v7439_v38 = vpack.c.bf16 %v4680_v49, %v4676_v48  ;;  %v4707_v48 = vld [vmem:[#allocation20 + $0x180] sm:$0xff]  ;;  %v4142_v31 = vld [vmem:[#allocation17 + $0xb8] sm:$0xff] }
 0x6ce   :  { %7258 = vmatpush1.bf16.msra.mxu1 %v7257_v59  ;;  %v4334_v59 = vld [vmem:[#allocation19 + $0x2b8] sm:$0xff]  ;;  %v7277_v63 = vpack.c.bf16 %v4325_v56, %v4321_v53  ;;  %v4711_v49 = vld [vmem:[#allocation20 + $0x1a0] sm:$0xff]  ;;  %v4716_v53 = vld [vmem:[#allocation20 + $0x1c8] sm:$0xff] }
 0x6cf   :  { %7260 = vmatprep.subr.bf16.mxu1 %v7259_v62  ;;  %v4679_v62 = vld [vmem:[#allocation20 + $0xa0] sm:$0xff]  ;;  %v7279_v2 = vpack.c.bf16 %v4334_v59, %v4330_v58  ;;  %v4720_v56 = vld [vmem:[#allocation20 + $0x1e8] sm:$0xff]  ;;  %v4361_v59 = vld [vmem:[#allocation19 + $0x390] sm:$0xff] }
 0x6d0   :  { %7358 = vmatpush1.bf16.msra.mxu0 %v7357_v1  ;;  %v4688_v1 = vld [vmem:[#allocation20 + $0xe8] sm:$0xff] }
 0x6d1   :  { %7360 = vmatprep.subr.bf16.mxu0 %v7359_v4  ;;  %v4333_v4 = vld [vmem:[#allocation19 + $0x2b0] sm:$0xff]  ;;  %v7443_v7 = vpack.c.bf16 %v4688_v1, %v4684_v0  ;;  %v4715_v0 = vld [vmem:[#allocation20 + $0x1c0] sm:$0xff] }
 0x6d2   :  { %7262 = vmatpush1.bf16.msra.mxu1 %v7261_v6  ;;  %v7441_v6 = vpack.c.bf16 %v4679_v62, %v4675_v11  ;;  %v7281_v9 = vpack.c.bf16 %v4333_v4, %v4329_v3  ;;  %v4374_v11 = vld [vmem:[#allocation19 + $0x3f8] sm:$0xff]  ;;  %v7457_v62 = vpack.c.bf16 %v4711_v49, %v4707_v48  ;;  %v4719_v1 = vld [vmem:[#allocation20 + $0x1e0] sm:$0xff]  ;;  %v4724_v3 = vld [vmem:[#allocation20 + $0x208] sm:$0xff] }
 0x6d3   :  { %7264 = vmatprep.subr.bf16.mxu1 %v7263_v8  ;;  %v4687_v8 = vld [vmem:[#allocation20 + $0xe0] sm:$0xff]  ;;  %v4728_v4 = vld [vmem:[#allocation20 + $0x228] sm:$0xff]  ;;  %v4150_v48 = vld [vmem:[#allocation17 + $0xf8] sm:$0xff] }
 0x6d4   :  { %7362 = vmatpush1.bf16.msra.mxu0 %v7361_v12  ;;  %v4696_v12 = vld [vmem:[#allocation20 + $0x128] sm:$0xff] }
 0x6d5   :  { %7364 = vmatprep.subr.bf16.mxu0 %v7363_v15  ;;  %v4341_v15 = vld [vmem:[#allocation19 + $0x2f0] sm:$0xff]  ;;  %v7447_v19 = vpack.c.bf16 %v4696_v12, %v4692_v10  ;;  %v4723_v10 = vld [vmem:[#allocation20 + $0x200] sm:$0xff] }
 0x6d6   :  { %7266 = vmatpush1.bf16.msra.mxu1 %v7265_v18  ;;  %v7445_v18 = vpack.c.bf16 %v4687_v8, %v4683_v35  ;;  %v7285_v22 = vpack.c.bf16 %v4341_v15, %v4337_v14  ;;  %v4126_v35 = vld [vmem:[#allocation17 + $0x38] sm:$0xff]  ;;  %v7461_v8 = vpack.c.bf16 %v4719_v1, %v4715_v0  ;;  %v4727_v12 = vld [vmem:[#allocation20 + $0x220] sm:$0xff]  ;;  %v4732_v14 = vld [vmem:[#allocation20 + $0x248] sm:$0xff] }
 0x6d7   :  { %7268 = vmatprep.subr.bf16.mxu1 %v7267_v21  ;;  %v4695_v21 = vld [vmem:[#allocation20 + $0x120] sm:$0xff]  ;;  %v4736_v15 = vld [vmem:[#allocation20 + $0x268] sm:$0xff] }
 0x6d8   :  { %7366 = vmatpush1.bf16.msra.mxu0 %v7365_v24  ;;  %v4704_v24 = vld [vmem:[#allocation20 + $0x168] sm:$0xff]  ;;  %v7449_v29 = vpack.c.bf16 %v4695_v21, %v4691_v20  ;;  %v4134_v20 = vld [vmem:[#allocation17 + $0x78] sm:$0xff]  ;;  %v7465_v21 = vpack.c.bf16 %v4727_v12, %v4723_v10  ;;  %v4755_v1 = vld [vmem:[#allocation20 + $0x300] sm:$0xff] }
 0x6d9   :  { %7432 = vmatprep.subr.bf16.mxu0 %v7431_v28  ;;  %v4354_v28 = vld [vmem:[#allocation19 + $0x358] sm:$0xff]  ;;  %v4763_v12 = vld [vmem:[#allocation20 + $0x340] sm:$0xff] }
 0x6da   :  { %7270 = vmatpush1.bf16.msra.mxu1 %v7269_v30  ;;  %v7451_v30 = vpack.c.bf16 %v4704_v24, %v4700_v23  ;;  %v7291_v37 = vpack.c.bf16 %v4358_v55, %v4354_v28  ;;  %v4731_v23 = vld [vmem:[#allocation20 + $0x240] sm:$0xff]  ;;  %v4129_v55 = vld [vmem:[#allocation17 + $0x50] sm:$0xff] }
 0x6db   :  { %4582 = vmatmul.mubr.f32.vlgmr.msra.gmra.mrb[6].mxu0 %v8563_v43  ;;  %7272 = vmatprep.subr.bf16.mxu1 %v7271_v33  ;;  %v7289_v33 = vpack.c.bf16 %v4349_v27, %v4345_v26  ;;  %v4735_v24 = vld [vmem:[#allocation20 + $0x260] sm:$0xff]  ;;  %v4740_v26 = vld [vmem:[#allocation20 + $0x288] sm:$0xff] }
 0x6dc   :  { %7434 = vmatpush1.bf16.msra.mxu0 %v7433_v42  ;;  %v4357_v42 = vld [vmem:[#allocation19 + $0x370] sm:$0xff]  ;;  %v4744_v27 = vld [vmem:[#allocation20 + $0x2a8] sm:$0xff]  ;;  %v7469_v32 = vpack.c.bf16 %v4735_v24, %v4731_v23  ;;  %v4771_v24 = vld [vmem:[#allocation20 + $0x380] sm:$0xff] }
 0x6dd   :  { %7436 = vmatprep.subr.bf16.mxu0 %v7435_v40  ;;  %v4362_v40 = vld [vmem:[#allocation19 + $0x398] sm:$0xff] }
 0x6de   :  { %7274 = vmatpush1.bf16.msra.mxu1 %v7273_v46  ;;  %v7455_v46 = vpack.c.bf16 %v4712_v36, %v4708_v34  ;;  %v7295_v58 = vpack.c.bf16 %v4366_v44, %v4362_v40  ;;  %v4739_v34 = vld [vmem:[#allocation20 + $0x280] sm:$0xff]  ;;  %v4137_v44 = vld [vmem:[#allocation17 + $0x90] sm:$0xff] }
 0x6df   :  { %7276 = vmatprep.subr.bf16.mxu1 %v7275_v50  ;;  %v7293_v50 = vpack.c.bf16 %v4357_v42, %v4353_v39  ;;  %v4743_v36 = vld [vmem:[#allocation20 + $0x2a0] sm:$0xff]  ;;  %v4748_v39 = vld [vmem:[#allocation20 + $0x2c8] sm:$0xff] }
 0x6e0   :  { %7438 = vmatpush1.bf16.msra.mxu0 %v7437_v60  ;;  %v4365_v60 = vld [vmem:[#allocation19 + $0x3b0] sm:$0xff]  ;;  %v4752_v42 = vld [vmem:[#allocation20 + $0x2e8] sm:$0xff]  ;;  %v7473_v49 = vpack.c.bf16 %v4743_v36, %v4739_v34  ;;  %v4779_v36 = vld [vmem:[#allocation20 + $0x3c0] sm:$0xff] }
 0x6e1   :  { %7440 = vmatprep.subr.bf16.mxu0 %v7439_v38  ;;  %v4370_v38 = vld [vmem:[#allocation19 + $0x3d8] sm:$0xff] }
 0x6e2   :  { %7278 = vmatpush1.bf16.msra.mxu1 %v7277_v63  ;;  %v7459_v63 = vpack.c.bf16 %v4720_v56, %v4716_v53  ;;  %v7299_v5 = vpack.c.bf16 %v4374_v11, %v4370_v38  ;;  %v4751_v53 = vld [vmem:[#allocation20 + $0x2e0] sm:$0xff]  ;;  %v4149_v38 = vld [vmem:[#allocation17 + $0xf0] sm:$0xff]  ;;  %v4154_v11 = vld [vmem:[#allocation17 + $0x118] sm:$0xff] }
 0x6e3   :  { %7280 = vmatprep.subr.bf16.mxu1 %v7279_v2  ;;  %v7297_v2 = vpack.c.bf16 %v4365_v60, %v4361_v59  ;;  %v4760_v59 = vld [vmem:[#allocation20 + $0x328] sm:$0xff]  ;;  %v4145_v60 = vld [vmem:[#allocation17 + $0xd0] sm:$0xff] }
 0x6e4   :  { %7442 = vmatpush1.bf16.msra.mxu0 %v7441_v6  ;;  %v4373_v6 = vld [vmem:[#allocation19 + $0x3f0] sm:$0xff] }
 0x6e5   :  { %7444 = vmatprep.subr.bf16.mxu0 %v7443_v7  ;;  %v4122_v7 = vld [vmem:[#allocation17 + $0x18] sm:$0xff] }
 0x6e6   :  { %7282 = vmatpush1.bf16.msra.mxu1 %v7281_v9  ;;  %v7463_v9 = vpack.c.bf16 %v4728_v4, %v4724_v3  ;;  %v7367_v16 = vpack.c.bf16 %v4126_v35, %v4122_v7  ;;  %v7381_v3 = vpack.c.bf16 %v4149_v38, %v4145_v60  ;;  %v4764_v4 = vld [vmem:[#allocation20 + $0x348] sm:$0xff]  ;;  %v4157_v7 = vld [vmem:[#allocation17 + $0x130] sm:$0xff]  ;;  %v4162_v35 = vld [vmem:[#allocation17 + $0x158] sm:$0xff] }
 0x6e7   :  { %7284 = vmatprep.subr.bf16.mxu1 %v7283_v13  ;;  %v7301_v13 = vpack.c.bf16 %v4373_v6, %v4369_v41  ;;  %v4153_v6 = vld [vmem:[#allocation17 + $0x110] sm:$0xff]  ;;  %v4198_v60 = vld [vmem:[#allocation17 + $0x278] sm:$0xff] }
 0x6e8   :  { %7446 = vmatpush1.bf16.msra.mxu0 %v7445_v18  ;;  %v4125_v18 = vld [vmem:[#allocation17 + $0x30] sm:$0xff] }
 0x6e9   :  { %7448 = vmatprep.subr.bf16.mxu0 %v7447_v19  ;;  %v4130_v19 = vld [vmem:[#allocation17 + $0x58] sm:$0xff] }
 0x6ea   :  { %7286 = vmatpush1.bf16.msra.mxu1 %v7285_v22  ;;  %v7467_v22 = vpack.c.bf16 %v4736_v15, %v4732_v14  ;;  %v7371_v28 = vpack.c.bf16 %v4134_v20, %v4130_v19  ;;  %v7385_v14 = vpack.c.bf16 %v4157_v7, %v4153_v6  ;;  %v4772_v15 = vld [vmem:[#allocation20 + $0x388] sm:$0xff]  ;;  %v4165_v19 = vld [vmem:[#allocation17 + $0x170] sm:$0xff]  ;;  %v4170_v20 = vld [vmem:[#allocation17 + $0x198] sm:$0xff] }
 0x6eb   :  { %7288 = vmatprep.subr.bf16.mxu1 %v7287_v25  ;;  %v7369_v25 = vpack.c.bf16 %v4125_v18, %v4121_v17  ;;  %v4161_v18 = vld [vmem:[#allocation17 + $0x150] sm:$0xff]  ;;  %v4214_v6 = vld [vmem:[#allocation17 + $0x2f8] sm:$0xff] }
 0x6ec   :  { %7450 = vmatpush1.bf16.msra.mxu0 %v7449_v29  ;;  %v4133_v29 = vld [vmem:[#allocation17 + $0x70] sm:$0xff] }
 0x6ed   :  { %7452 = vmatprep.subr.bf16.mxu0 %v7451_v30  ;;  %v4138_v30 = vld [vmem:[#allocation17 + $0x98] sm:$0xff] }
 0x6ee   :  { %7290 = vmatpush1.bf16.msra.mxu1 %v7289_v33  ;;  %v7471_v33 = vpack.c.bf16 %v4744_v27, %v4740_v26  ;;  %v7375_v40 = vpack.c.bf16 %v4142_v31, %v4138_v30  ;;  %v7389_v26 = vpack.c.bf16 %v4165_v19, %v4161_v18  ;;  %v4169_v27 = vld [vmem:[#allocation17 + $0x190] sm:$0xff]  ;;  %v4784_v30 = vld [vmem:[#allocation20 + $0x3e8] sm:$0xff]  ;;  %v4178_v31 = vld [vmem:[#allocation17 + $0x1d8] sm:$0xff] }
 0x6ef   :  { %7292 = vmatprep.subr.bf16.mxu1 %v7291_v37  ;;  %v7373_v37 = vpack.c.bf16 %v4133_v29, %v4129_v55  ;;  %v4173_v55 = vld [vmem:[#allocation17 + $0x1b0] sm:$0xff]  ;;  %v4780_v29 = vld [vmem:[#allocation20 + $0x3c8] sm:$0xff]  ;;  %v4230_v18 = vld [vmem:[#allocation17 + $0x378] sm:$0xff] }
 0x6f0   :  { %7454 = vmatpush1.bf16.msra.mxu0 %v7453_v45  ;;  %v4141_v45 = vld [vmem:[#allocation17 + $0xb0] sm:$0xff]  ;;  %v7491_v34 = vpack.c.bf16 %v4784_v30, %v4780_v29  ;;  %v4246_v29 = vld [vmem:[#allocation17 + $0x3f8] sm:$0xff] }
 0x6f1   :  { %7456 = vmatprep.subr.bf16.mxu0 %v7455_v46  ;;  %v4146_v46 = vld [vmem:[#allocation17 + $0xd8] sm:$0xff]  ;;  %v7377_v56 = vpack.c.bf16 %v4141_v45, %v4137_v44  ;;  %v4181_v44 = vld [vmem:[#allocation17 + $0x1f0] sm:$0xff] }
 0x6f2   :  { %7294 = vmatpush1.bf16.msra.mxu1 %v7293_v50  ;;  %v4747_v50 = vld [vmem:[#allocation20 + $0x2c0] sm:$0xff]  ;;  %v4186_v45 = vld [vmem:[#allocation17 + $0x218] sm:$0xff] }
 0x6f3   :  { %7296 = vmatprep.subr.bf16.mxu1 %v7295_v58  ;;  %v4756_v58 = vld [vmem:[#allocation20 + $0x308] sm:$0xff] }
 0x6f4   :  { %7458 = vmatpush1.bf16.msra.mxu0 %v7457_v62  ;;  %v4158_v62 = vld [vmem:[#allocation17 + $0x138] sm:$0xff]  ;;  %v7479_v0 = vpack.c.bf16 %v4760_v59, %v4756_v58  ;;  %v4185_v58 = vld [vmem:[#allocation17 + $0x210] sm:$0xff] }
 0x6f5   :  { %7460 = vmatprep.subr.bf16.mxu0 %v7459_v63  ;;  %v7477_v63 = vpack.c.bf16 %v4751_v53, %v4747_v50  ;;  %v7383_v41 = vpack.c.bf16 %v4158_v62, %v4154_v11  ;;  %v4189_v59 = vld [vmem:[#allocation17 + $0x230] sm:$0xff] }
 0x6f6   :  { %7298 = vmatpush1.bf16.msra.mxu1 %v7297_v2  ;;  %v4759_v2 = vld [vmem:[#allocation20 + $0x320] sm:$0xff]  ;;  %v7401_v38 = vpack.c.bf16 %v4189_v59, %v4185_v58  ;;  %v4193_v62 = vld [vmem:[#allocation17 + $0x250] sm:$0xff] }
 0x6f7   :  { %7300 = vmatprep.subr.bf16.mxu1 %v7299_v5  ;;  %v4768_v5 = vld [vmem:[#allocation20 + $0x368] sm:$0xff]  ;;  %v4677_v59 = vld [vmem:[#allocation20 + $0x90] sm:$0xff] }
 0x6f8   :  { %7462 = vmatpush1.bf16.msra.mxu0 %v7461_v8  ;;  %v4166_v8 = vld [vmem:[#allocation17 + $0x178] sm:$0xff]  ;;  %v7483_v10 = vpack.c.bf16 %v4768_v5, %v4764_v4  ;;  %v4201_v4 = vld [vmem:[#allocation17 + $0x290] sm:$0xff] }
 0x6f9   :  { %7464 = vmatprep.subr.bf16.mxu0 %v7463_v9  ;;  %v7481_v9 = vpack.c.bf16 %v4759_v2, %v4755_v1  ;;  %v7387_v17 = vpack.c.bf16 %v4166_v8, %v4162_v35  ;;  %v4206_v1 = vld [vmem:[#allocation17 + $0x2b8] sm:$0xff]  ;;  %v4205_v5 = vld [vmem:[#allocation17 + $0x2b0] sm:$0xff] }
 0x6fa   :  { %7302 = vmatpush1.bf16.msra.mxu1 %v7301_v13  ;;  %v4767_v13 = vld [vmem:[#allocation20 + $0x360] sm:$0xff]  ;;  %v7409_v7 = vpack.c.bf16 %v4205_v5, %v4201_v4  ;;  %v4209_v8 = vld [vmem:[#allocation17 + $0x2d0] sm:$0xff] }
 0x6fb   :  { %7368 = vmatprep.subr.bf16.mxu1 %v7367_v16  ;;  %v4776_v16 = vld [vmem:[#allocation20 + $0x3a8] sm:$0xff]  ;;  %v4693_v4 = vld [vmem:[#allocation20 + $0x110] sm:$0xff] }
 0x6fc   :  { %7466 = vmatpush1.bf16.msra.mxu0 %v7465_v21  ;;  %v4174_v21 = vld [vmem:[#allocation17 + $0x1b8] sm:$0xff]  ;;  %v7487_v23 = vpack.c.bf16 %v4776_v16, %v4772_v15  ;;  %v4217_v15 = vld [vmem:[#allocation17 + $0x310] sm:$0xff] }
 0x6fd   :  { %4511 = vmatmul.mubr.f32.vlgmr.msra.gmra.mrb[10].mxu1 %v8549_v57  ;;  %7468 = vmatprep.subr.bf16.mxu0 %v7467_v22  ;;  %v7475_v57 = vpack.c.bf16 %v4752_v42, %v4748_v39  ;;  %v7485_v22 = vpack.c.bf16 %v4767_v13, %v4763_v12  ;;  %v7393_v39 = vpack.c.bf16 %v4173_v55, %v4169_v27  ;;  %v4222_v12 = vld [vmem:[#allocation17 + $0x338] sm:$0xff]  ;;  %v4221_v16 = vld [vmem:[#allocation17 + $0x330] sm:$0xff] }
 0x6fe   :  { %7370 = vmatpush1.bf16.msra.mxu1 %v7369_v25  ;;  %4652 = vmatprep.mubr.f32.mxu1 %v8552_v61  ;;  %v7379_v61 = vpack.c.bf16 %v4150_v48, %v4146_v46  ;;  %v4775_v25 = vld [vmem:[#allocation20 + $0x3a0] sm:$0xff]  ;;  %v4190_v46 = vld [vmem:[#allocation17 + $0x238] sm:$0xff]  ;;  %v7417_v19 = vpack.c.bf16 %v4221_v16, %v4217_v15  ;;  %v4233_v27 = vld [vmem:[#allocation17 + $0x390] sm:$0xff] }
 0x6ff   :  { %7372 = vmatprep.subr.bf16.mxu1 %v7371_v28  ;;  %v7391_v28 = vpack.c.bf16 %v4174_v21, %v4170_v20  ;;  %v4225_v21 = vld [vmem:[#allocation17 + $0x350] sm:$0xff]  ;;  %v4242_v55 = vld [vmem:[#allocation17 + $0x3d8] sm:$0xff] }
 0x700   :  { %7470 = vmatpush1.bf16.msra.mxu0 %v7469_v32  ;;  %v4182_v32 = vld [vmem:[#allocation17 + $0x1f8] sm:$0xff]  ;;  %v4697_v5 = vld [vmem:[#allocation20 + $0x130] sm:$0xff] }
 0x701   :  { %7472 = vmatprep.subr.bf16.mxu0 %v7471_v33  ;;  %v7489_v33 = vpack.c.bf16 %v4775_v25, %v4771_v24  ;;  %v7395_v42 = vpack.c.bf16 %v4182_v32, %v4178_v31  ;;  %v4238_v24 = vld [vmem:[#allocation17 + $0x3b8] sm:$0xff]  ;;  %v7427_v31 = vpack.c.bf16 %v4246_v29, %v4242_v55  ;;  %v4241_v32 = vld [vmem:[#allocation17 + $0x3d0] sm:$0xff] }
 0x702   :  { %7374 = vmatpush1.bf16.msra.mxu1 %v7373_v37  ;;  %v4783_v37 = vld [vmem:[#allocation20 + $0x3e0] sm:$0xff]  ;;  %v4709_v15 = vld [vmem:[#allocation20 + $0x190] sm:$0xff]  ;;  %v4734_v55 = vld [vmem:[#allocation20 + $0x258] sm:$0xff] }
 0x703   :  { %7376 = vmatprep.subr.bf16.mxu1 %v7375_v40  ;;  %v4177_v40 = vld [vmem:[#allocation17 + $0x1d0] sm:$0xff]  ;;  %v7493_v48 = vpack.c.bf16 %v4783_v37, %v4779_v36  ;;  %v4666_v36 = vld [vmem:[#allocation20 + $0x38] sm:$0xff] }
 0x704   :  { %7474 = vmatpush1.bf16.msra.mxu0 %v7473_v49  ;;  %v4964_v49 = vld [vmem:[#allocation22 + $0x8] sm:$0xff]  ;;  %v7397_v50 = vpack.c.bf16 %v4181_v44, %v4177_v40  ;;  %v4665_v40 = vld [vmem:[#allocation20 + $0x30] sm:$0xff]  ;;  %v4670_v44 = vld [vmem:[#allocation20 + $0x58] sm:$0xff] }
 0x705   :  { %7476 = vmatprep.subr.bf16.mxu0 %v7475_v57  ;;  %v4966_v57 = vld [vmem:[#allocation22 + $0x18] sm:$0xff]  ;;  %v4713_v16 = vld [vmem:[#allocation20 + $0x1b0] sm:$0xff] }
 0x706   :  { %7378 = vmatpush1.bf16.msra.mxu1 %v7377_v56  ;;  %v7559_v53 = vpack.c.bf16 %v4966_v57, %v4964_v49  ;;  %v7399_v56 = vpack.c.bf16 %v4190_v46, %v4186_v45  ;;  %v4674_v45 = vld [vmem:[#allocation20 + $0x78] sm:$0xff]  ;;  %v4669_v49 = vld [vmem:[#allocation20 + $0x50] sm:$0xff] }
 0x707   :  { %7380 = vmatprep.subr.bf16.mxu1 %v7379_v61  ;;  %v4194_v61 = vld [vmem:[#allocation17 + $0x258] sm:$0xff]  ;;  %v4673_v57 = vld [vmem:[#allocation20 + $0x70] sm:$0xff] }
 0x708   :  { %7478 = vmatpush1.bf16.msra.mxu0 %v7477_v63  ;;  %v7403_v11 = vpack.c.bf16 %v4198_v60, %v4194_v61  ;;  %v4197_v63 = vld [vmem:[#allocation17 + $0x270] sm:$0xff]  ;;  %v4686_v60 = vld [vmem:[#allocation20 + $0xd8] sm:$0xff] }
 0x709   :  { %7480 = vmatprep.subr.bf16.mxu0 %v7479_v0  ;;  %v4202_v0 = vld [vmem:[#allocation17 + $0x298] sm:$0xff]  ;;  %v7405_v2 = vpack.c.bf16 %v4197_v63, %v4193_v62  ;;  %v4681_v61 = vld [vmem:[#allocation20 + $0xb0] sm:$0xff] }
 0x70a   :  { %7382 = vmatpush1.bf16.msra.mxu1 %v7381_v3  ;;  %v7407_v3 = vpack.c.bf16 %v4206_v1, %v4202_v0  ;;  %v4685_v63 = vld [vmem:[#allocation20 + $0xd0] sm:$0xff]  ;;  %v4694_v1 = vld [vmem:[#allocation20 + $0x118] sm:$0xff] }
 0x70b   :  { %7384 = vmatprep.subr.bf16.mxu1 %v7383_v41  ;;  %v4210_v41 = vld [vmem:[#allocation17 + $0x2d8] sm:$0xff]  ;;  %v4689_v0 = vld [vmem:[#allocation20 + $0xf0] sm:$0xff] }
 0x70c   :  { %7482 = vmatpush1.bf16.msra.mxu0 %v7481_v9  ;;  %v7411_v35 = vpack.c.bf16 %v4214_v6, %v4210_v41  ;;  %v4213_v9 = vld [vmem:[#allocation17 + $0x2f0] sm:$0xff]  ;;  %v4702_v41 = vld [vmem:[#allocation20 + $0x158] sm:$0xff] }
 0x70d   :  { %7484 = vmatprep.subr.bf16.mxu0 %v7483_v10  ;;  %v4218_v10 = vld [vmem:[#allocation17 + $0x318] sm:$0xff]  ;;  %v7413_v13 = vpack.c.bf16 %v4213_v9, %v4209_v8  ;;  %v4701_v8 = vld [vmem:[#allocation20 + $0x150] sm:$0xff] }
 0x70e   :  { %7386 = vmatpush1.bf16.msra.mxu1 %v7385_v14  ;;  %v7415_v14 = vpack.c.bf16 %v4222_v12, %v4218_v10  ;;  %v4706_v6 = vld [vmem:[#allocation20 + $0x178] sm:$0xff]  ;;  %v4705_v9 = vld [vmem:[#allocation20 + $0x170] sm:$0xff] }
 0x70f   :  { %7388 = vmatprep.subr.bf16.mxu1 %v7387_v17  ;;  %v4226_v17 = vld [vmem:[#allocation17 + $0x358] sm:$0xff] }
 0x710   :  { %7486 = vmatpush1.bf16.msra.mxu0 %v7485_v22  ;;  %v7419_v20 = vpack.c.bf16 %v4230_v18, %v4226_v17  ;;  %v4229_v22 = vld [vmem:[#allocation17 + $0x370] sm:$0xff]  ;;  %v4710_v10 = vld [vmem:[#allocation20 + $0x198] sm:$0xff] }
 0x711   :  { %7488 = vmatprep.subr.bf16.mxu0 %v7487_v23  ;;  %v4234_v23 = vld [vmem:[#allocation17 + $0x398] sm:$0xff]  ;;  %v7421_v25 = vpack.c.bf16 %v4229_v22, %v4225_v21  ;;  %v4717_v21 = vld [vmem:[#allocation20 + $0x1d0] sm:$0xff] }
 0x712   :  { %7390 = vmatpush1.bf16.msra.mxu1 %v7389_v26  ;;  %v7423_v26 = vpack.c.bf16 %v4238_v24, %v4234_v23  ;;  %v4714_v12 = vld [vmem:[#allocation20 + $0x1b8] sm:$0xff]  ;;  %v4721_v22 = vld [vmem:[#allocation20 + $0x1f0] sm:$0xff] }
 0x713   :  { %7392 = vmatprep.subr.bf16.mxu1 %v7391_v28  ;;  %v4237_v28 = vld [vmem:[#allocation17 + $0x3b0] sm:$0xff]  ;;  %v4718_v17 = vld [vmem:[#allocation20 + $0x1d8] sm:$0xff] }
 0x714   :  { %7490 = vmatpush1.bf16.msra.mxu0 %v7489_v33  ;;  %v7425_v30 = vpack.c.bf16 %v4237_v28, %v4233_v27  ;;  %v4245_v33 = vld [vmem:[#allocation17 + $0x3f0] sm:$0xff]  ;;  %v4722_v18 = vld [vmem:[#allocation20 + $0x1f8] sm:$0xff] }
 0x715   :  { %7492 = vmatprep.subr.bf16.mxu0 %v7491_v34  ;;  %v4662_v34 = vld [vmem:[#allocation20 + $0x18] sm:$0xff]  ;;  %v7429_v37 = vpack.c.bf16 %v4245_v33, %v4241_v32  ;;  %v4725_v27 = vld [vmem:[#allocation20 + $0x210] sm:$0xff] }
 0x716   :  { %7394 = vmatpush1.bf16.msra.mxu1 %v7393_v39  ;;  %v7495_v39 = vpack.c.bf16 %v4666_v36, %v4662_v34  ;;  %v4726_v23 = vld [vmem:[#allocation20 + $0x218] sm:$0xff]  ;;  %v4729_v28 = vld [vmem:[#allocation20 + $0x230] sm:$0xff] }
 0x717   :  { %7396 = vmatprep.subr.bf16.mxu1 %v7395_v42  ;;  %v4661_v42 = vld [vmem:[#allocation20 + $0x10] sm:$0xff]  ;;  %v4730_v24 = vld [vmem:[#allocation20 + $0x238] sm:$0xff] }
 0x718   :  { %7494 = vmatpush1.bf16.msra.mxu0 %v7493_v48  ;;  %v7497_v46 = vpack.c.bf16 %v4665_v40, %v4661_v42  ;;  %v7499_v48 = vpack.c.bf16 %v4674_v45, %v4670_v44  ;;  %v4738_v29 = vld [vmem:[#allocation20 + $0x278] sm:$0xff]  ;;  %v4733_v32 = vld [vmem:[#allocation20 + $0x250] sm:$0xff] }
 0x719   :  { %7560 = vmatprep.subr.bf16.mxu0 %v7559_v53  ;;  %v4682_v53 = vld [vmem:[#allocation20 + $0xb8] sm:$0xff]  ;;  %v4737_v33 = vld [vmem:[#allocation20 + $0x270] sm:$0xff] }
 0x71a   :  { %7398 = vmatpush1.bf16.msra.mxu1 %v7397_v50  ;;  %v4678_v50 = vld [vmem:[#allocation20 + $0x98] sm:$0xff]  ;;  %v4741_v42 = vld [vmem:[#allocation20 + $0x290] sm:$0xff] }
 0x71b   :  { %7400 = vmatprep.subr.bf16.mxu1 %v7399_v56  ;;  %v7501_v56 = vpack.c.bf16 %v4673_v57, %v4669_v49  ;;  %v7503_v58 = vpack.c.bf16 %v4682_v53, %v4678_v50  ;;  %v4742_v34 = vld [vmem:[#allocation20 + $0x298] sm:$0xff]  ;;  %v4745_v40 = vld [vmem:[#allocation20 + $0x2b0] sm:$0xff] }
 0x71c   :  { %v4746_v36 = vld [vmem:[#allocation20 + $0x2b8] sm:$0xff]  ;;  %v4749_v49 = vld [vmem:[#allocation20 + $0x2d0] sm:$0xff] }
 0x71d   :  { %v4750_v44 = vld [vmem:[#allocation20 + $0x2d8] sm:$0xff]  ;;  %v4753_v57 = vld [vmem:[#allocation20 + $0x2f0] sm:$0xff] }
 0x71e   :  { %7402 = vmatpush1.bf16.msra.mxu1 %v7401_v38  ;;  %v4690_v38 = vld [vmem:[#allocation20 + $0xf8] sm:$0xff] }
 0x71f   :  { %7404 = vmatprep.subr.bf16.mxu1 %v7403_v11  ;;  %v7505_v11 = vpack.c.bf16 %v4681_v61, %v4677_v59  ;;  %v7507_v62 = vpack.c.bf16 %v4690_v38, %v4686_v60  ;;  %v4754_v45 = vld [vmem:[#allocation20 + $0x2f8] sm:$0xff]  ;;  %v4757_v59 = vld [vmem:[#allocation20 + $0x310] sm:$0xff] }
 0x720   :  { %v4758_v50 = vld [vmem:[#allocation20 + $0x318] sm:$0xff]  ;;  %v4761_v61 = vld [vmem:[#allocation20 + $0x330] sm:$0xff] }
 0x721   :  { %v4762_v53 = vld [vmem:[#allocation20 + $0x338] sm:$0xff] }
 0x722   :  { %7406 = vmatpush1.bf16.msra.mxu1 %v7405_v2  ;;  %v4698_v2 = vld [vmem:[#allocation20 + $0x138] sm:$0xff] }
 0x723   :  { %7408 = vmatprep.subr.bf16.mxu1 %v7407_v3  ;;  %v7509_v3 = vpack.c.bf16 %v4689_v0, %v4685_v63  ;;  %v4766_v60 = vld [vmem:[#allocation20 + $0x358] sm:$0xff]  ;;  %v4765_v63 = vld [vmem:[#allocation20 + $0x350] sm:$0xff] }
 0x724   :  { %v4770_v38 = vld [vmem:[#allocation20 + $0x378] sm:$0xff]  ;;  %v4769_v0 = vld [vmem:[#allocation20 + $0x370] sm:$0xff] }
 0x726   :  { %7410 = vmatpush1.bf16.msra.mxu1 %v7409_v7  ;;  %v7513_v7 = vpack.c.bf16 %v4697_v5, %v4693_v4  ;;  %v4773_v4 = vld [vmem:[#allocation20 + $0x390] sm:$0xff] }
 0x727   :  { %7412 = vmatprep.subr.bf16.mxu1 %v7411_v35  ;;  %v7515_v35 = vpack.c.bf16 %v4706_v6, %v4702_v41  ;;  %v4777_v5 = vld [vmem:[#allocation20 + $0x3b0] sm:$0xff]  ;;  %v4782_v41 = vld [vmem:[#allocation20 + $0x3d8] sm:$0xff] }
 0x728   :  { %v4786_v6 = vld [vmem:[#allocation20 + $0x3f8] sm:$0xff] }
 0x72a   :  { %7414 = vmatpush1.bf16.msra.mxu1 %v7413_v13  ;;  %v7517_v13 = vpack.c.bf16 %v4705_v9, %v4701_v8  ;;  %v4781_v8 = vld [vmem:[#allocation20 + $0x3d0] sm:$0xff] }
 0x72b   :  { %7416 = vmatprep.subr.bf16.mxu1 %v7415_v14  ;;  %v7519_v14 = vpack.c.bf16 %v4714_v12, %v4710_v10  ;;  %v4785_v9 = vld [vmem:[#allocation20 + $0x3f0] sm:$0xff]  ;;  %v4036_v12 = vld [vmem:[#allocation25 + $0xe] sm:$0x3] }
 0x72c   :  { %v7557_v10 = vpack.c.bf16 %v4785_v9, %v4781_v8  ;;  %v5000_v8 = vld [vmem:[#allocation22 + $0x128] sm:$0xff]  ;;  %v5002_v9 = vld [vmem:[#allocation22 + $0x138] sm:$0xff] }
 0x72e   :  { %7418 = vmatpush1.bf16.msra.mxu1 %v7417_v19  ;;  %v7521_v19 = vpack.c.bf16 %v4713_v16, %v4709_v15  ;;  %v4963_v15 = vld [vmem:[#allocation22] sm:$0xff]  ;;  %v4965_v16 = vld [vmem:[#allocation22 + $0x10] sm:$0xff] }
 0x72f   :  { %7420 = vmatprep.subr.bf16.mxu1 %v7419_v20  ;;  %v7523_v20 = vpack.c.bf16 %v4722_v18, %v4718_v17  ;;  %v4968_v18 = vld [vmem:[#allocation22 + $0x28] sm:$0xff] }
 0x732   :  { %7422 = vmatpush1.bf16.msra.mxu1 %v7421_v25  ;;  %v7525_v25 = vpack.c.bf16 %v4721_v22, %v4717_v21  ;;  %v7561_v22 = vpack.c.bf16 %v4965_v16, %v4963_v15  ;;  %v5004_v15 = vld [vmem:[#allocation22 + $0x148] sm:$0xff]  ;;  %v5006_v16 = vld [vmem:[#allocation22 + $0x158] sm:$0xff] }
 0x733   :  { %7424 = vmatprep.subr.bf16.mxu1 %v7423_v26  ;;  %v7527_v26 = vpack.c.bf16 %v4730_v24, %v4726_v23 }
 0x736   :  { %7426 = vmatpush1.bf16.msra.mxu1 %v7425_v30  ;;  %v7529_v30 = vpack.c.bf16 %v4729_v28, %v4725_v27  ;;  %v4972_v27 = vld [vmem:[#allocation22 + $0x48] sm:$0xff]  ;;  %v4974_v28 = vld [vmem:[#allocation22 + $0x58] sm:$0xff] }
 0x737   :  { %7428 = vmatprep.subr.bf16.mxu1 %v7427_v31  ;;  %v7531_v31 = vpack.c.bf16 %v4738_v29, %v4734_v55  ;;  %v7567_v29 = vpack.c.bf16 %v4974_v28, %v4972_v27  ;;  %v5012_v27 = vld [vmem:[#allocation22 + $0x188] sm:$0xff]  ;;  %v5014_v28 = vld [vmem:[#allocation22 + $0x198] sm:$0xff] }
 0x73a   :  { %7430 = vmatpush1.bf16.msra.mxu1 %v7429_v37  ;;  %v7533_v37 = vpack.c.bf16 %v4737_v33, %v4733_v32  ;;  %v4976_v32 = vld [vmem:[#allocation22 + $0x68] sm:$0xff]  ;;  %v4978_v33 = vld [vmem:[#allocation22 + $0x78] sm:$0xff] }
 0x73b   :  { %7496 = vmatprep.subr.bf16.mxu1 %v7495_v39  ;;  %v7535_v39 = vpack.c.bf16 %v4746_v36, %v4742_v34  ;;  %v7571_v36 = vpack.c.bf16 %v4978_v33, %v4976_v32  ;;  %v5016_v32 = vld [vmem:[#allocation22 + $0x1a8] sm:$0xff]  ;;  %v5018_v33 = vld [vmem:[#allocation22 + $0x1b8] sm:$0xff] }
 0x73d   :  { %4653 = vmatmul.mubr.f32.vlgmr.msra.gmra.mrb[10].mxu1 %v8563_v43  ;;  %v7511_v43 = vpack.c.bf16 %v4698_v2, %v4694_v1  ;;  %v4774_v1 = vld [vmem:[#allocation20 + $0x398] sm:$0xff] }
 0x73e   :  { %7498 = vmatpush1.bf16.msra.mxu1 %v7497_v46  ;;  %v7537_v46 = vpack.c.bf16 %v4745_v40, %v4741_v42  ;;  %v4778_v2 = vld [vmem:[#allocation20 + $0x3b8] sm:$0xff]  ;;  %v4980_v42 = vld [vmem:[#allocation22 + $0x88] sm:$0xff] }
 0x73f   :  { %7500 = vmatprep.subr.bf16.mxu1 %v7499_v48  ;;  %v7539_v48 = vpack.c.bf16 %v4754_v45, %v4750_v44  ;;  %v4982_v40 = vld [vmem:[#allocation22 + $0x98] sm:$0xff] }
 0x740   :  { %v7575_v45 = vpack.c.bf16 %v4982_v40, %v4980_v42  ;;  %v5020_v42 = vld [vmem:[#allocation22 + $0x1c8] sm:$0xff]  ;;  %v5022_v40 = vld [vmem:[#allocation22 + $0x1d8] sm:$0xff] }
 0x742   :  { %7502 = vmatpush1.bf16.msra.mxu1 %v7501_v56  ;;  %v7541_v56 = vpack.c.bf16 %v4753_v57, %v4749_v49  ;;  %v4984_v49 = vld [vmem:[#allocation22 + $0xa8] sm:$0xff]  ;;  %v4986_v57 = vld [vmem:[#allocation22 + $0xb8] sm:$0xff] }
 0x743   :  { %7504 = vmatprep.subr.bf16.mxu1 %v7503_v58  ;;  %v7543_v58 = vpack.c.bf16 %v4762_v53, %v4758_v50  ;;  %v7579_v53 = vpack.c.bf16 %v4986_v57, %v4984_v49  ;;  %v5024_v57 = vld [vmem:[#allocation22 + $0x1e8] sm:$0xff] }
 0x746   :  { %7506 = vmatpush1.bf16.msra.mxu1 %v7505_v11  ;;  %v7545_v11 = vpack.c.bf16 %v4761_v61, %v4757_v59  ;;  %v4988_v59 = vld [vmem:[#allocation22 + $0xc8] sm:$0xff]  ;;  %v4990_v61 = vld [vmem:[#allocation22 + $0xd8] sm:$0xff] }
 0x747   :  { %7508 = vmatprep.subr.bf16.mxu1 %v7507_v62  ;;  %v7547_v62 = vpack.c.bf16 %v4770_v38, %v4766_v60  ;;  %v7583_v38 = vpack.c.bf16 %v4990_v61, %v4988_v59  ;;  %v5028_v61 = vld [vmem:[#allocation22 + $0x208] sm:$0xff] }
 0x74a   :  { %7510 = vmatpush1.bf16.msra.mxu1 %v7509_v3  ;;  %v7549_v3 = vpack.c.bf16 %v4769_v0, %v4765_v63  ;;  %v4992_v63 = vld [vmem:[#allocation22 + $0xe8] sm:$0xff]  ;;  %v4994_v0 = vld [vmem:[#allocation22 + $0xf8] sm:$0xff] }
 0x74b   :  { %7512 = vmatprep.subr.bf16.mxu1 %v7511_v43  ;;  %v7551_v43 = vpack.c.bf16 %v4778_v2, %v4774_v1  ;;  %v7587_v2 = vpack.c.bf16 %v4994_v0, %v4992_v63  ;;  %v5247_v63 = vld [vmem:[#allocation23] sm:$0xff] }
 0x74e   :  { %7514 = vmatpush1.bf16.msra.mxu1 %v7513_v7  ;;  %v7553_v7 = vpack.c.bf16 %v4777_v5, %v4773_v4  ;;  %v4996_v4 = vld [vmem:[#allocation22 + $0x108] sm:$0xff]  ;;  %v4998_v5 = vld [vmem:[#allocation22 + $0x118] sm:$0xff] }
 0x74f   :  { %7516 = vmatprep.subr.bf16.mxu1 %v7515_v35  ;;  %v7555_v35 = vpack.c.bf16 %v4786_v6, %v4782_v41  ;;  %v7591_v6 = vpack.c.bf16 %v4998_v5, %v4996_v4  ;;  %v5249_v5 = vld [vmem:[#allocation23 + $0x10] sm:$0xff] }
 0x752   :  { %7518 = vmatpush1.bf16.msra.mxu1 %v7517_v13  ;;  %v4045_v13 = vrot.slane %v4036_v12, %v8516_v52 }
 0x753   :  { %7520 = vmatprep.subr.bf16.mxu1 %v7519_v14  ;;  %v4041_v14 = vrot.slane %v4036_v12, %v8512_v47  ;;  %v7595_v12 = vpack.c.bf16 %v5002_v9, %v5000_v8  ;;  %v5251_v9 = vld [vmem:[#allocation23 + $0x20] sm:$0xff] }
 0x756   :  { %7522 = vmatpush1.bf16.msra.mxu1 %v7521_v19  ;;  %v4970_v19 = vld [vmem:[#allocation22 + $0x38] sm:$0xff] }
 0x757   :  { %7524 = vmatprep.subr.bf16.mxu1 %v7523_v20  ;;  %v7563_v24 = vpack.c.bf16 %v4970_v19, %v4968_v18  ;;  %v7599_v18 = vpack.c.bf16 %v5006_v16, %v5004_v15  ;;  %v5003_v19 = vld [vmem:[#allocation22 + $0x140] sm:$0xff]  ;;  %v5253_v16 = vld [vmem:[#allocation23 + $0x30] sm:$0xff] }
 0x75a   :  { %7526 = vmatpush1.bf16.msra.mxu1 %v7525_v25  ;;  %v4967_v25 = vld [vmem:[#allocation22 + $0x20] sm:$0xff] }
 0x75b   :  { %7528 = vmatprep.subr.bf16.mxu1 %v7527_v26  ;;  %v4969_v26 = vld [vmem:[#allocation22 + $0x30] sm:$0xff] }
 0x75c   :  { %v7565_v55 = vpack.c.bf16 %v4969_v26, %v4967_v25  ;;  %v5007_v25 = vld [vmem:[#allocation22 + $0x160] sm:$0xff]  ;;  %v5009_v26 = vld [vmem:[#allocation22 + $0x170] sm:$0xff] }
 0x75e   :  { %7530 = vmatpush1.bf16.msra.mxu1 %v7529_v30  ;;  %v4971_v30 = vld [vmem:[#allocation22 + $0x40] sm:$0xff] }
 0x75f   :  { %7532 = vmatprep.subr.bf16.mxu1 %v7531_v31  ;;  %v4973_v31 = vld [vmem:[#allocation22 + $0x50] sm:$0xff] }
 0x760   :  { %v7569_v34 = vpack.c.bf16 %v4973_v31, %v4971_v30  ;;  %v5011_v30 = vld [vmem:[#allocation22 + $0x180] sm:$0xff]  ;;  %v5013_v31 = vld [vmem:[#allocation22 + $0x190] sm:$0xff] }
 0x762   :  { %7534 = vmatpush1.bf16.msra.mxu1 %v7533_v37  ;;  %v4975_v37 = vld [vmem:[#allocation22 + $0x60] sm:$0xff] }
 0x763   :  { %7536 = vmatprep.subr.bf16.mxu1 %v7535_v39  ;;  %v4977_v39 = vld [vmem:[#allocation22 + $0x70] sm:$0xff] }
 0x764   :  { %v7573_v44 = vpack.c.bf16 %v4977_v39, %v4975_v37  ;;  %v5015_v37 = vld [vmem:[#allocation22 + $0x1a0] sm:$0xff]  ;;  %v5017_v39 = vld [vmem:[#allocation22 + $0x1b0] sm:$0xff] }
 0x766   :  { %7538 = vmatpush1.bf16.msra.mxu1 %v7537_v46  ;;  %v4979_v46 = vld [vmem:[#allocation22 + $0x80] sm:$0xff] }
 0x767   :  { %7540 = vmatprep.subr.bf16.mxu1 %v7539_v48  ;;  %v4981_v48 = vld [vmem:[#allocation22 + $0x90] sm:$0xff] }
 0x768   :  { %v7577_v50 = vpack.c.bf16 %v4981_v48, %v4979_v46  ;;  %v5019_v46 = vld [vmem:[#allocation22 + $0x1c0] sm:$0xff]  ;;  %v5021_v48 = vld [vmem:[#allocation22 + $0x1d0] sm:$0xff] }
 0x769   :  { %v7617_v49 = vpack.c.bf16 %v5021_v48, %v5019_v46 }
 0x76a   :  { %7542 = vmatpush1.bf16.msra.mxu1 %v7541_v56  ;;  %v4983_v56 = vld [vmem:[#allocation22 + $0xa0] sm:$0xff] }
 0x76b   :  { %7544 = vmatprep.subr.bf16.mxu1 %v7543_v58  ;;  %v4985_v58 = vld [vmem:[#allocation22 + $0xb0] sm:$0xff] }
 0x76c   :  { %v7581_v60 = vpack.c.bf16 %v4985_v58, %v4983_v56  ;;  %v5023_v56 = vld [vmem:[#allocation22 + $0x1e0] sm:$0xff]  ;;  %v5025_v58 = vld [vmem:[#allocation22 + $0x1f0] sm:$0xff] }
 0x76d   :  { %v7621_v59 = vpack.c.bf16 %v5025_v58, %v5023_v56  ;;  %v5032_v56 = vld [vmem:[#allocation22 + $0x228] sm:$0xff]  ;;  %v5034_v58 = vld [vmem:[#allocation22 + $0x238] sm:$0xff] }
 0x76e   :  { %7546 = vmatpush1.bf16.msra.mxu1 %v7545_v11  ;;  %v4987_v11 = vld [vmem:[#allocation22 + $0xc0] sm:$0xff] }
 0x76f   :  { %7548 = vmatprep.subr.bf16.mxu1 %v7547_v62  ;;  %v4989_v62 = vld [vmem:[#allocation22 + $0xd0] sm:$0xff] }
 0x770   :  { %v7585_v1 = vpack.c.bf16 %v4989_v62, %v4987_v11  ;;  %v5263_v11 = vld [vmem:[#allocation23 + $0x80] sm:$0xff]  ;;  %v5264_v62 = vld [vmem:[#allocation23 + $0x88] sm:$0xff] }
 0x771   :  { %v7687_v0 = vpack.c.bf16 %v5264_v62, %v5263_v11  ;;  %v5033_v11 = vld [vmem:[#allocation22 + $0x230] sm:$0xff]  ;;  %v5036_v62 = vld [vmem:[#allocation22 + $0x248] sm:$0xff] }
 0x772   :  { %7550 = vmatpush1.bf16.msra.mxu1 %v7549_v3  ;;  %v4991_v3 = vld [vmem:[#allocation22 + $0xe0] sm:$0xff] }
 0x773   :  { %7552 = vmatprep.subr.bf16.mxu1 %v7551_v43  ;;  %v4993_v43 = vld [vmem:[#allocation22 + $0xf0] sm:$0xff] }
 0x774   :  { %v7589_v41 = vpack.c.bf16 %v4993_v43, %v4991_v3  ;;  %v5266_v3 = vld [vmem:[#allocation23 + $0x98] sm:$0xff] }
 0x776   :  { %7554 = vmatpush1.bf16.msra.mxu1 %v7553_v7  ;;  %v4995_v7 = vld [vmem:[#allocation22 + $0x100] sm:$0xff] }
 0x777   :  { %7556 = vmatprep.subr.bf16.mxu1 %v7555_v35  ;;  %v4997_v35 = vld [vmem:[#allocation22 + $0x110] sm:$0xff] }
 0x77a   :  { %7558 = vmatpush1.bf16.msra.mxu1 %v7557_v10  ;;  %v7593_v10 = vpack.c.bf16 %v4997_v35, %v4995_v7  ;;  %v5268_v7 = vld [vmem:[#allocation23 + $0xa8] sm:$0xff] }
 0x77b   :  { %7688 = vmatprep.subr.bf16.mxu1 %v7687_v0 }
 0x790   :  { %v4114_v17 = vpop.f32.mrb[8].mxu1 }
 0x791   :  { %v4116_v20 = vpop.f32.mrb[9].mxu1  ;;  %v4115_v23 = vadd.f32 %v4114_v17, %v4041_v14  ;;  %v5001_v14 = vld [vmem:[#allocation22 + $0x130] sm:$0xff] }
 0x792   :  { %v4117_v21 = vadd.f32 %v4116_v20, %v4045_v13  ;;  %v4999_v13 = vld [vmem:[#allocation22 + $0x120] sm:$0xff]  ;;  %v5005_v20 = vld [vmem:[#allocation22 + $0x150] sm:$0xff] }
 0x793   :  { %v7597_v17 = vpack.c.bf16 %v5001_v14, %v4999_v13  ;;  %v5270_v13 = vld [vmem:[#allocation23 + $0xb8] sm:$0xff] }
 0x794   :  { %4851 = vmatprep.mubr.f32.mxu0 %v4117_v21  ;;  %4922 = vmatprep.mubr.f32.mxu1 %v4117_v21  ;;  %v5008_v21 = vld [vmem:[#allocation22 + $0x168] sm:$0xff] }
 0x795   :  { %4852 = vmatmul.mubr.f32.vlgmr.msra.gmra.mrb[6].mxu0 %v4115_v23  ;;  %4923 = vmatmul.mubr.f32.vlgmr.msra.gmra.mrb[10].mxu1 %v4115_v23  ;;  %v7601_v23 = vpack.c.bf16 %v5005_v20, %v5003_v19  ;;  %v5272_v19 = vld [vmem:[#allocation23 + $0xc8] sm:$0xff] }
 0x796   :  { %7562 = vmatpush1.bf16.msra.mxu0 %v7561_v22  ;;  %v5010_v22 = vld [vmem:[#allocation22 + $0x178] sm:$0xff] }
 0x797   :  { %7564 = vmatprep.subr.bf16.mxu0 %v7563_v24  ;;  %v7603_v24 = vpack.c.bf16 %v5010_v22, %v5008_v21  ;;  %v5255_v22 = vld [vmem:[#allocation23 + $0x40] sm:$0xff] }
 0x79a   :  { %7566 = vmatpush1.bf16.msra.mxu0 %v7565_v55  ;;  %v7605_v55 = vpack.c.bf16 %v5009_v26, %v5007_v25  ;;  %v5274_v25 = vld [vmem:[#allocation23 + $0xd8] sm:$0xff] }
 0x79b   :  { %7568 = vmatprep.subr.bf16.mxu0 %v7567_v29  ;;  %v7607_v29 = vpack.c.bf16 %v5014_v28, %v5012_v27  ;;  %v5257_v28 = vld [vmem:[#allocation23 + $0x50] sm:$0xff] }
 0x79e   :  { %7570 = vmatpush1.bf16.msra.mxu0 %v7569_v34  ;;  %v7609_v34 = vpack.c.bf16 %v5013_v31, %v5011_v30  ;;  %v5276_v30 = vld [vmem:[#allocation23 + $0xe8] sm:$0xff] }
 0x79f   :  { %7572 = vmatprep.subr.bf16.mxu0 %v7571_v36  ;;  %v7611_v36 = vpack.c.bf16 %v5018_v33, %v5016_v32  ;;  %v4933_v33 = vld [vmem:[#allocation25 + $0x10] sm:$0xf] }
 0x7a2   :  { %7574 = vmatpush1.bf16.msra.mxu0 %v7573_v44  ;;  %v7613_v44 = vpack.c.bf16 %v5017_v39, %v5015_v37  ;;  %v4942_v37 = vrot.slane %v4933_v33, %v8516_v52  ;;  %v4950_v39 = vrot.slane %v4933_v33, %v8518_v54 }
 0x7a3   :  { %7576 = vmatprep.subr.bf16.mxu0 %v7575_v45  ;;  %v7615_v45 = vpack.c.bf16 %v5022_v40, %v5020_v42 }
 0x7a6   :  { %7578 = vmatpush1.bf16.msra.mxu0 %v7577_v50  ;;  %v5026_v50 = vld [vmem:[#allocation22 + $0x1f8] sm:$0xff] }
 0x7a7   :  { %7580 = vmatprep.subr.bf16.mxu0 %v7579_v53  ;;  %v7619_v53 = vpack.c.bf16 %v5026_v50, %v5024_v57  ;;  %v5029_v57 = vld [vmem:[#allocation22 + $0x210] sm:$0xff] }
 0x7aa   :  { %7582 = vmatpush1.bf16.msra.mxu0 %v7581_v60  ;;  %v5030_v60 = vld [vmem:[#allocation22 + $0x218] sm:$0xff] }
 0x7ab   :  { %7584 = vmatprep.subr.bf16.mxu0 %v7583_v38  ;;  %v7623_v38 = vpack.c.bf16 %v5030_v60, %v5028_v61  ;;  %v7627_v60 = vpack.c.bf16 %v5034_v58, %v5032_v56  ;;  %v5067_v56 = vld [vmem:[#allocation22 + $0x340] sm:$0xff]  ;;  %v5069_v58 = vld [vmem:[#allocation22 + $0x350] sm:$0xff] }
 0x7ae   :  { %7586 = vmatpush1.bf16.msra.mxu0 %v7585_v1  ;;  %v5248_v1 = vld [vmem:[#allocation23 + $0x8] sm:$0xff] }
 0x7af   :  { %7588 = vmatprep.subr.bf16.mxu0 %v7587_v2  ;;  %v5265_v2 = vld [vmem:[#allocation23 + $0x90] sm:$0xff]  ;;  %v7689_v43 = vpack.c.bf16 %v5248_v1, %v5247_v63  ;;  %v5038_v63 = vld [vmem:[#allocation22 + $0x258] sm:$0xff] }
 0x7b0   :  { %v7691_v4 = vpack.c.bf16 %v5266_v3, %v5265_v2  ;;  %v7631_v1 = vpack.c.bf16 %v5038_v63, %v5036_v62  ;;  %v5035_v2 = vld [vmem:[#allocation22 + $0x240] sm:$0xff]  ;;  %v5037_v3 = vld [vmem:[#allocation22 + $0x250] sm:$0xff]  ;;  %v5078_v62 = vld [vmem:[#allocation22 + $0x398] sm:$0xff] }
 0x7b1   :  { %7690 = vmatpush3.bf16.msra.mxu1 %v7689_v43  ;;  %v5040_v43 = vld [vmem:[#allocation22 + $0x268] sm:$0xff] }
 0x7b2   :  { %7590 = vmatpush1.bf16.msra.mxu0 %v7589_v41  ;;  %v5250_v41 = vld [vmem:[#allocation23 + $0x18] sm:$0xff]  ;;  %7692 = vmatprep.subr.bf16.mxu1 %v7691_v4 }
 0x7b3   :  { %7592 = vmatprep.subr.bf16.mxu0 %v7591_v6  ;;  %v5267_v6 = vld [vmem:[#allocation23 + $0xa0] sm:$0xff]  ;;  %v7693_v35 = vpack.c.bf16 %v5250_v41, %v5249_v5  ;;  %v5042_v4 = vld [vmem:[#allocation22 + $0x278] sm:$0xff]  ;;  %v7633_v5 = vpack.c.bf16 %v5037_v3, %v5035_v2  ;;  %v5077_v2 = vld [vmem:[#allocation22 + $0x390] sm:$0xff] }
 0x7b4   :  { %v7695_v8 = vpack.c.bf16 %v5268_v7, %v5267_v6  ;;  %v7635_v41 = vpack.c.bf16 %v5042_v4, %v5040_v43  ;;  %v5039_v6 = vld [vmem:[#allocation22 + $0x260] sm:$0xff]  ;;  %v5041_v7 = vld [vmem:[#allocation22 + $0x270] sm:$0xff]  ;;  %v5080_v3 = vld [vmem:[#allocation22 + $0x3a8] sm:$0xff] }
 0x7b5   :  { %7694 = vmatpush3.bf16.msra.mxu1 %v7693_v35  ;;  %v5044_v35 = vld [vmem:[#allocation22 + $0x288] sm:$0xff]  ;;  %v5082_v43 = vld [vmem:[#allocation22 + $0x3b8] sm:$0xff] }
 0x7b6   :  { %7594 = vmatpush1.bf16.msra.mxu0 %v7593_v10  ;;  %v5252_v10 = vld [vmem:[#allocation23 + $0x28] sm:$0xff]  ;;  %7696 = vmatprep.subr.bf16.mxu1 %v7695_v8  ;;  %v5046_v8 = vld [vmem:[#allocation22 + $0x298] sm:$0xff] }
 0x7b7   :  { %7596 = vmatprep.subr.bf16.mxu0 %v7595_v12  ;;  %v5269_v12 = vld [vmem:[#allocation23 + $0xb0] sm:$0xff]  ;;  %v7697_v14 = vpack.c.bf16 %v5252_v10, %v5251_v9  ;;  %v7637_v9 = vpack.c.bf16 %v5041_v7, %v5039_v6  ;;  %v7639_v10 = vpack.c.bf16 %v5046_v8, %v5044_v35  ;;  %v5084_v7 = vld [vmem:[#allocation22 + $0x3c8] sm:$0xff]  ;;  %v5086_v35 = vld [vmem:[#allocation22 + $0x3d8] sm:$0xff] }
 0x7b8   :  { %v7699_v15 = vpack.c.bf16 %v5270_v13, %v5269_v12  ;;  %v5043_v12 = vld [vmem:[#allocation22 + $0x280] sm:$0xff]  ;;  %v5045_v13 = vld [vmem:[#allocation22 + $0x290] sm:$0xff] }
 0x7b9   :  { %7698 = vmatpush3.bf16.msra.mxu1 %v7697_v14  ;;  %v5048_v14 = vld [vmem:[#allocation22 + $0x2a8] sm:$0xff]  ;;  %v5081_v6 = vld [vmem:[#allocation22 + $0x3b0] sm:$0xff] }
 0x7ba   :  { %7598 = vmatpush1.bf16.msra.mxu0 %v7597_v17  ;;  %v5254_v17 = vld [vmem:[#allocation23 + $0x38] sm:$0xff]  ;;  %7700 = vmatprep.subr.bf16.mxu1 %v7699_v15 }
 0x7bb   :  { %7600 = vmatprep.subr.bf16.mxu0 %v7599_v18  ;;  %v5271_v18 = vld [vmem:[#allocation23 + $0xc0] sm:$0xff]  ;;  %v7701_v20 = vpack.c.bf16 %v5254_v17, %v5253_v16  ;;  %v5050_v15 = vld [vmem:[#allocation22 + $0x2b8] sm:$0xff]  ;;  %v7641_v16 = vpack.c.bf16 %v5045_v13, %v5043_v12  ;;  %v5085_v12 = vld [vmem:[#allocation22 + $0x3d0] sm:$0xff] }
 0x7bc   :  { %v7703_v21 = vpack.c.bf16 %v5272_v19, %v5271_v18  ;;  %v7643_v17 = vpack.c.bf16 %v5050_v15, %v5048_v14  ;;  %v5047_v18 = vld [vmem:[#allocation22 + $0x2a0] sm:$0xff]  ;;  %v5049_v19 = vld [vmem:[#allocation22 + $0x2b0] sm:$0xff]  ;;  %v5088_v13 = vld [vmem:[#allocation22 + $0x3e8] sm:$0xff] }
 0x7bd   :  { %7702 = vmatpush3.bf16.msra.mxu1 %v7701_v20  ;;  %v5052_v20 = vld [vmem:[#allocation22 + $0x2c8] sm:$0xff]  ;;  %v5090_v14 = vld [vmem:[#allocation22 + $0x3f8] sm:$0xff] }
 0x7be   :  { %7602 = vmatpush1.bf16.msra.mxu0 %v7601_v23  ;;  %v5256_v23 = vld [vmem:[#allocation23 + $0x48] sm:$0xff]  ;;  %7704 = vmatprep.subr.bf16.mxu1 %v7703_v21  ;;  %v5054_v21 = vld [vmem:[#allocation22 + $0x2d8] sm:$0xff] }
 0x7bf   :  { %7604 = vmatprep.subr.bf16.mxu0 %v7603_v24  ;;  %v5273_v24 = vld [vmem:[#allocation23 + $0xd0] sm:$0xff]  ;;  %v7705_v26 = vpack.c.bf16 %v5256_v23, %v5255_v22  ;;  %v7645_v22 = vpack.c.bf16 %v5049_v19, %v5047_v18  ;;  %v7647_v23 = vpack.c.bf16 %v5054_v21, %v5052_v20  ;;  %v5259_v21 = vld [vmem:[#allocation23 + $0x60] sm:$0xff] }
 0x7c0   :  { %v7707_v27 = vpack.c.bf16 %v5274_v25, %v5273_v24  ;;  %v5051_v24 = vld [vmem:[#allocation22 + $0x2c0] sm:$0xff]  ;;  %v5053_v25 = vld [vmem:[#allocation22 + $0x2d0] sm:$0xff] }
 0x7c1   :  { %7706 = vmatpush3.bf16.msra.mxu1 %v7705_v26  ;;  %v5056_v26 = vld [vmem:[#allocation22 + $0x2e8] sm:$0xff]  ;;  %v5089_v18 = vld [vmem:[#allocation22 + $0x3f0] sm:$0xff] }
 0x7c2   :  { %7606 = vmatpush1.bf16.msra.mxu0 %v7605_v55  ;;  %v5258_v55 = vld [vmem:[#allocation23 + $0x58] sm:$0xff]  ;;  %7708 = vmatprep.subr.bf16.mxu1 %v7707_v27 }
 0x7c3   :  { %7608 = vmatprep.subr.bf16.mxu0 %v7607_v29  ;;  %v5275_v29 = vld [vmem:[#allocation23 + $0xe0] sm:$0xff]  ;;  %v7709_v31 = vpack.c.bf16 %v5258_v55, %v5257_v28  ;;  %v5058_v27 = vld [vmem:[#allocation22 + $0x2f8] sm:$0xff]  ;;  %v7649_v28 = vpack.c.bf16 %v5053_v25, %v5051_v24  ;;  %v5277_v24 = vld [vmem:[#allocation23 + $0xf0] sm:$0xff] }
 0x7c4   :  { %v7711_v32 = vpack.c.bf16 %v5276_v30, %v5275_v29  ;;  %v7651_v55 = vpack.c.bf16 %v5058_v27, %v5056_v26  ;;  %v5055_v29 = vld [vmem:[#allocation22 + $0x2e0] sm:$0xff]  ;;  %v5057_v30 = vld [vmem:[#allocation22 + $0x2f0] sm:$0xff]  ;;  %v5278_v25 = vld [vmem:[#allocation23 + $0xf8] sm:$0xff] }
 0x7c5   :  { %7710 = vmatpush3.bf16.msra.mxu1 %v7709_v31  ;;  %v5060_v31 = vld [vmem:[#allocation22 + $0x308] sm:$0xff]  ;;  %v7715_v26 = vpack.c.bf16 %v5278_v25, %v5277_v24  ;;  %v5261_v27 = vld [vmem:[#allocation23 + $0x70] sm:$0xff] }
 0x7c6   :  { %7610 = vmatpush1.bf16.msra.mxu0 %v7609_v34  ;;  %7712 = vmatprep.subr.bf16.mxu1 %v7711_v32  ;;  %v4938_v34 = vrot.slane %v4933_v33, %v8512_v47  ;;  %v5062_v32 = vld [vmem:[#allocation22 + $0x318] sm:$0xff] }
 0x7c7   :  { %7612 = vmatprep.subr.bf16.mxu0 %v7611_v36  ;;  %v4946_v36 = vrot.slane %v4933_v33, %v8514_v51  ;;  %v7653_v33 = vpack.c.bf16 %v5057_v30, %v5055_v29  ;;  %v5091_v29 = vld [vmem:[#allocation25 + $0x14] sm:$0x3] }
 0x7c8   :  { %v5096_v30 = vrot.slane %v5091_v29, %v8512_v47 }
 0x7ca   :  { %7614 = vmatpush1.bf16.msra.mxu0 %v7613_v44 }
 0x7cb   :  { %7616 = vmatprep.subr.bf16.mxu0 %v7615_v45 }
 0x7ce   :  { %7618 = vmatpush1.bf16.msra.mxu0 %v7617_v49  ;;  %v5027_v49 = vld [vmem:[#allocation22 + $0x200] sm:$0xff] }
 0x7cf   :  { %7620 = vmatprep.subr.bf16.mxu0 %v7619_v53  ;;  %v7625_v61 = vpack.c.bf16 %v5029_v57, %v5027_v49  ;;  %v5068_v49 = vld [vmem:[#allocation22 + $0x348] sm:$0xff]  ;;  %v5070_v57 = vld [vmem:[#allocation22 + $0x358] sm:$0xff] }
 0x7d2   :  { %7622 = vmatpush1.bf16.msra.mxu0 %v7621_v59 }
 0x7d3   :  { %7624 = vmatprep.subr.bf16.mxu0 %v7623_v38  ;;  %v5031_v38 = vld [vmem:[#allocation22 + $0x220] sm:$0xff] }
 0x7d4   :  { %v7629_v0 = vpack.c.bf16 %v5033_v11, %v5031_v38  ;;  %v5071_v38 = vld [vmem:[#allocation22 + $0x360] sm:$0xff]  ;;  %v5073_v11 = vld [vmem:[#allocation22 + $0x370] sm:$0xff] }
 0x7d5   :  { %v7669_v63 = vpack.c.bf16 %v5073_v11, %v5071_v38 }
 0x868   :  { %v4853_v42 = vpop.f32.mrb[6].mxu0  ;;  %v4924_v40 = vpop.f32.mrb[10].mxu1 }
 0x869   :  { %v4955_v44 = vadd.f32 %v4938_v34, %v4853_v42  ;;  %v8575_v45 = vadd.f32 %v4946_v36, %v4924_v40  ;;  %v4855_v46 = vpop.f32.mrb[7].mxu0  ;;  %v4926_v48 = vpop.f32.mrb[11].mxu1  ;;  %v7655_v34 = vpack.c.bf16 %v5062_v32, %v5060_v31  ;;  %v5059_v36 = vld [vmem:[#allocation22 + $0x300] sm:$0xff]  ;;  %v5066_v42 = vld [vmem:[#allocation22 + $0x338] sm:$0xff]  ;;  %v5100_v31 = vrot.slane %v5091_v29, %v8516_v52 }
 0x86a   :  { %v4956_v50 = vadd.f32 %v4942_v37, %v4855_v46  ;;  %v4958_v53 = vadd.f32 %v4950_v39, %v4926_v48  ;;  %v5061_v37 = vld [vmem:[#allocation22 + $0x310] sm:$0xff]  ;;  %v5064_v39 = vld [vmem:[#allocation22 + $0x328] sm:$0xff]  ;;  %v5063_v46 = vld [vmem:[#allocation22 + $0x320] sm:$0xff] }
 0x86b   :  { %v4959_v51 = vmax.f32 %v4955_v44, 0.0  ;;  %v7657_v40 = vpack.c.bf16 %v5061_v37, %v5059_v36  ;;  %v7659_v44 = vpack.c.bf16 %v5066_v42, %v5064_v39  ;;  %v5065_v48 = vld [vmem:[#allocation22 + $0x330] sm:$0xff]  ;;  %v4961_v20 = vmax.f32 %v8575_v45, 0.0 }
 0x86c   :  { %v4960_v59 = vmax.f32 %v4956_v50, 0.0  ;;  %v4962_v54 = vmax.f32 %v4958_v53, 0.0  ;;  %v7661_v50 = vpack.c.bf16 %v5065_v48, %v5063_v46  ;;  %v7663_v53 = vpack.c.bf16 %v5070_v57, %v5068_v49  ;;  %v5379_v42 = vld [vmem:[#allocation25 + $0x16] ss:$0 sm:$0xff] }
 0x86e   :  { %5167 = vmatprep.mubr.f32.mxu0 %v4960_v59  ;;  %v5072_v59 = vld [vmem:[#allocation22 + $0x368] sm:$0xff] }
 0x86f   :  { %5168 = vmatmul.mubr.f32.vlgmr.msra.gmra.mrb[8].mxu0 %v4959_v51  ;;  %v7665_v51 = vpack.c.bf16 %v5069_v58, %v5067_v56 }
 0x870   :  { %7626 = vmatpush1.bf16.msra.mxu0 %v7625_v61  ;;  %5238 = vmatprep.mubr.f32.mxu0 %v4962_v54  ;;  %v5074_v61 = vld [vmem:[#allocation22 + $0x378] sm:$0xff]  ;;  %v5076_v54 = vld [vmem:[#allocation22 + $0x388] sm:$0xff] }
 0x871   :  { %7628 = vmatprep.subr.bf16.mxu0 %v7627_v60  ;;  %v7667_v60 = vpack.c.bf16 %v5074_v61, %v5072_v59 }
 0x874   :  { %7630 = vmatpush1.bf16.msra.mxu0 %v7629_v0  ;;  %v7671_v0 = vpack.c.bf16 %v5078_v62, %v5076_v54 }
 0x875   :  { %7632 = vmatprep.subr.bf16.mxu0 %v7631_v1  ;;  %v5075_v1 = vld [vmem:[#allocation22 + $0x380] sm:$0xff] }
 0x876   :  { %v7673_v4 = vpack.c.bf16 %v5077_v2, %v5075_v1 }
 0x878   :  { %7634 = vmatpush1.bf16.msra.mxu0 %v7633_v5  ;;  %v7675_v5 = vpack.c.bf16 %v5082_v43, %v5080_v3 }
 0x879   :  { %7636 = vmatprep.subr.bf16.mxu0 %v7635_v41  ;;  %v5079_v41 = vld [vmem:[#allocation22 + $0x3a0] sm:$0xff] }
 0x87a   :  { %v7677_v8 = vpack.c.bf16 %v5081_v6, %v5079_v41 }
 0x87c   :  { %7638 = vmatpush1.bf16.msra.mxu0 %v7637_v9  ;;  %v7679_v9 = vpack.c.bf16 %v5086_v35, %v5084_v7 }
 0x87d   :  { %7640 = vmatprep.subr.bf16.mxu0 %v7639_v10  ;;  %v5083_v10 = vld [vmem:[#allocation22 + $0x3c0] sm:$0xff] }
 0x87e   :  { %v7681_v15 = vpack.c.bf16 %v5085_v12, %v5083_v10 }
 0x880   :  { %7642 = vmatpush1.bf16.msra.mxu0 %v7641_v16  ;;  %v7683_v16 = vpack.c.bf16 %v5090_v14, %v5088_v13 }
 0x881   :  { %7644 = vmatprep.subr.bf16.mxu0 %v7643_v17  ;;  %v5087_v17 = vld [vmem:[#allocation22 + $0x3e0] sm:$0xff] }
 0x882   :  { %v7685_v19 = vpack.c.bf16 %v5089_v18, %v5087_v17 }
 0x884   :  { %7646 = vmatpush1.bf16.msra.mxu0 %v7645_v22  ;;  %v5260_v22 = vld [vmem:[#allocation23 + $0x68] sm:$0xff] }
 0x885   :  { %7648 = vmatprep.subr.bf16.mxu0 %v7647_v23  ;;  %v7713_v23 = vpack.c.bf16 %v5260_v22, %v5259_v21 }
 0x887   :  { %7714 = vmatpush3.bf16.msra.mxu1 %v7713_v23 }
 0x888   :  { %7650 = vmatpush1.bf16.msra.mxu0 %v7649_v28  ;;  %v5262_v28 = vld [vmem:[#allocation23 + $0x78] sm:$0xff]  ;;  %7716 = vmatprep.subr.bf16.mxu1 %v7715_v26 }
 0x889   :  { %7652 = vmatprep.subr.bf16.mxu0 %v7651_v55  ;;  %v7717_v55 = vpack.c.bf16 %v5262_v28, %v5261_v27 }
 0x88b   :  { %7718 = vmatpush3.bf16.msra.mxu1 %v7717_v55 }
 0x88c   :  { %7654 = vmatpush1.bf16.msra.mxu0 %v7653_v33 }
 0x88d   :  { %7656 = vmatprep.subr.bf16.mxu0 %v7655_v34 }
 0x890   :  { %7658 = vmatpush1.bf16.msra.mxu0 %v7657_v40 }
 0x891   :  { %7660 = vmatprep.subr.bf16.mxu0 %v7659_v44 }
 0x894   :  { %7662 = vmatpush1.bf16.msra.mxu0 %v7661_v50 }
 0x895   :  { %7664 = vmatprep.subr.bf16.mxu0 %v7663_v53 }
 0x898   :  { %7666 = vmatpush1.bf16.msra.mxu0 %v7665_v51 }
 0x899   :  { %7668 = vmatprep.subr.bf16.mxu0 %v7667_v60 }
 0x89c   :  { %7670 = vmatpush1.bf16.msra.mxu0 %v7669_v63 }
 0x89d   :  { %7672 = vmatprep.subr.bf16.mxu0 %v7671_v0 }
 0x8a0   :  { %7674 = vmatpush1.bf16.msra.mxu0 %v7673_v4 }
 0x8a1   :  { %7676 = vmatprep.subr.bf16.mxu0 %v7675_v5 }
 0x8a4   :  { %7678 = vmatpush1.bf16.msra.mxu0 %v7677_v8 }
 0x8a5   :  { %7680 = vmatprep.subr.bf16.mxu0 %v7679_v9 }
 0x8a8   :  { %7682 = vmatpush1.bf16.msra.mxu0 %v7681_v15 }
 0x8a9   :  { %7684 = vmatprep.subr.bf16.mxu0 %v7683_v16 }
 0x8ac   :  { %7686 = vmatpush1.bf16.msra.mxu0 %v7685_v19 }
 0x8af   :  { %5239 = vmatmul.mubr.f32.vlgmr.msra.gmra.mrb[8].mxu0 %v4961_v20 }
 0x982   :  { %v5240_v32 = vpop.f32.mrb[8].mxu0 }
 0x983   :  { %v7731_v45 = vadd.f32 %v5240_v32, %v5096_v30  ;;  %v5242_v33 = vpop.f32.mrb[9].mxu0 }
 0x984   :  { %v7732_v34 = vadd.f32 %v5242_v33, %v5100_v31 }
 0x985   :  { %v5245_v37 = vmax.f32 %v7731_v45, 0.0 }
 0x986   :  { %v5246_v36 = vmax.f32 %v7732_v34, 0.0 }
 0x988   :  { %5350 = vmatprep.mubr.f32.mxu1 %v5246_v36 }
 0x989   :  { %5351 = vmatmul.mubr.f32.vlgmr.msra.gmra.mrb[12].mxu1 %v5245_v37 }
 0xa5c   :  { %v5412_v39 = vpop.f32.mrb[12].mxu1 }
 0xa5d   :  { %v5413_v40 = vpop.f32.mrb[13].mxu1 }
 0xa5e   :  { %v5414_v44 = vadd.f32 %v5413_v40, %v5412_v39 }
 0xa60   :  { %v5353_v46 = vadd.f32 %v5414_v44, %v5379_v42 }
 0xa62   :  { %5356 = vst [vmem:[#allocation26] sm:$0xff] %v5353_v46 }
 0xa63   :  { %8163 = shalt.err (!%p8160_p12)
}
 0xa64   :  { %s8164_s13 = scalar_lea.hbm %s8607_s15, 128 }
 0xa65   :  { %p8165_p13 = scmp.ne.s32.totalorder %s8607_s15, %s8164_s13  ;;  %p8168_p0 = scmp.lt.u32.totalorder %s8164_s13, %s8607_s15 }
 0xa67   :  { %p8170_p1 = pnand %p8168_p0, %p8165_p13 }
 0xa69   :  { %8173 = shalt.err (!%p8170_p1)
}
 0xa6a   :  { %5366 = dma.vmem_to_hbm [thread:$0]  %s5364_s25, 128, %s8607_s15, [#allocation4]  }
 0xa6b   :  { %8190 = dma.done.wait [#allocation4], 128  }
 0xa6c   :  { %8191 = vsyncadd [#allocation4], 4294967168 }
 0xa6d   :  { %5370 = vsyncpa [#allocation3], 1 }
 0xa6e   :  { %5371 = vsyncpa [#allocation6], 1 }
 0xa6f   :  { %5372 = vsyncpa [#allocation9], 1 }
 0xa70   :  { %5373 = vsyncpa [#allocation12], 1 }
 0xa71   :  { %5374 = vsyncpa [#allocation15], 1 }
 0xa72   :  { %5375 = vsyncpa [#allocation18], 1 }
 0xa73   :  { %5376 = vsyncpa [#allocation21], 1 }
 0xa74   :  { %5377 = vsyncpa [#allocation24], 1 }
 0xa75   :  { %5378 = vsyncpa [#allocation4], 1 }

</bundles_post_ra>
